<compile_context>
chip_gen: v5e
topology: v5e:2x2
jax: 0.10.0
libtpu: 0.0.40
codegen_flags: <defaults>
</compile_context>

<pallas_src>
import functools

import jax
import jax.numpy as jnp
import numpy as np
from jax import lax
from jax.experimental import pallas as pl
from jax.experimental.pallas import tpu as pltpu

_VMEM_BUDGET = 24 * 1024 * 1024  # stays inside v7x's 32 MiB scoped default


def _sublane(dtype):
    # 8 sublanes for f32, 16 for bf16, 32 for int8/fp8.
    return max(8, 32 // jnp.dtype(dtype).itemsize)


def _pick_tile(dim, preferred, align):
    """Largest tile <= preferred that divides `dim` and is a multiple of
    `align`; falls back to the full dimension (always a legal block)."""
    if dim <= preferred:
        return dim
    t = (preferred // align) * align
    while t >= align:
        if dim % t == 0:
            return t
        t -= align
    return dim


def _pick_lane_tile(dim, preferred):
    """Lane-dim tile: prefer multiples of 256 (2x256 MXU on v6e/v7x), fall
    back to multiples of 128."""
    t = _pick_tile(dim, preferred, 256)
    if dim > preferred and t == dim:
        t = _pick_tile(dim, preferred, 128)
    return t


def _ensure_parallel_blocks(T, tm, N, tn):
    """v7x has 2 TensorCores; keep >= 2 blocks along the parallel (M,N) axes
    so the grid can shard across both cores even at decode-sized T."""
    if (T // tm) * (N // tn) >= 2:
        return tn
    half = tn // 2
    if half >= 128 and half % 128 == 0 and N % half == 0:
        return half
    return tn


def _vmem_footprint(tm, tn, tk, nbytes, n_weights):
    # Double-buffered input/output blocks + f32 accumulator(s).
    io = 2 * (tm * tk + n_weights * tk * tn + tm * tn) * nbytes
    acc = n_weights * tm * tn * 4
    return io + acc


def _fit_tiles(T, N, K, tm, tn, tk, nbytes, n_weights, sub):
    """Shrink tk, then tn, then tm until the footprint fits the VMEM budget."""

    def shrink(dim, tile, align):
        t = ((tile - 1) // align) * align
        while t >= align:
            if dim % t == 0:
                return t
            t -= align
        return tile

    while _vmem_footprint(tm, tn, tk, nbytes, n_weights) > _VMEM_BUDGET:
        new_tk = shrink(K, tk, 128)
        if new_tk < tk:
            tk = new_tk
            continue
        new_tn = shrink(N, tn, 128)
        if new_tn < tn:
            tn = new_tn
            continue
        new_tm = shrink(T, tm, sub)
        if new_tm < tm:
            tm = new_tm
            continue
        break
    assert _vmem_footprint(tm, tn, tk, nbytes, n_weights) <= _VMEM_BUDGET, (
        f"CohereMLP Pallas tiles exceed the VMEM budget: tm={tm}, tn={tn}, tk={tk}")
    return tm, tn, tk


def _vmem_limit(tm, tn, tk, nbytes, n_weights):
    footprint = _vmem_footprint(tm, tn, tk, nbytes, n_weights)
    # >= 32 MiB (v6e default is fine, v5e default is only 16 MiB), <= 48 MiB
    # so the same config is safe on v7x's 64 MiB physical VMEM.
    return int(min(48 << 20, max(32 << 20, footprint + (8 << 20))))


# ---------------------------------------------------------------------------
# Kernel 1: fused gate/up projection + activation + gating
#   h = act(x @ Wg) * (x @ Wu)
# ---------------------------------------------------------------------------
def _gate_up_kernel(x_ref, wg_ref, wu_ref, o_ref, acc_g_ref, acc_u_ref, *, act):
    k = pl.program_id(2)

    @pl.when(k == 0)
    def _init():
        acc_g_ref[...] = jnp.zeros_like(acc_g_ref)
        acc_u_ref[...] = jnp.zeros_like(acc_u_ref)

    x = x_ref[...]
    acc_g_ref[...] += jnp.dot(x, wg_ref[...], preferred_element_type=jnp.float32)
    acc_u_ref[...] += jnp.dot(x, wu_ref[...], preferred_element_type=jnp.float32)

    @pl.when(k == pl.num_programs(2) - 1)
    def _finalize():
        g = acc_g_ref[...]          # f32
        u = acc_u_ref[...]          # f32
        if act == "silu":
            gated = g * jax.nn.sigmoid(g)               # exp -> EUP slot
        elif act in ("gelu_fast", "gelu_pytorch_tanh"):
            gated = jax.nn.gelu(g, approximate=True)    # tanh -> EUP slot
        elif act == "gelu":
            gated = jax.nn.gelu(g, approximate=False)
        else:
            raise NotImplementedError(f"activation {act}")
        o_ref[...] = (gated * u).astype(o_ref.dtype)


def gate_up_act(x, w_gate, w_up, *, act, tm=256, tn=512, tk=1024):
    """x: [T, H]; w_gate/w_up: [H, I] (pre-transposed). Returns bf16/x-dtype [T, I]."""
    T, K = x.shape
    N = w_gate.shape[1]
    nbytes = jnp.dtype(x.dtype).itemsize
    sub = _sublane(x.dtype)

    tm = _pick_tile(T, tm, sub)
    tn = _pick_lane_tile(N, tn)
    tk = _pick_lane_tile(K, tk)
    tn = _ensure_parallel_blocks(T, tm, N, tn)
    tm, tn, tk = _fit_tiles(T, N, K, tm, tn, tk, nbytes, n_weights=2, sub=sub)

    # Deeper weight pipeline when decode-sized T leaves the kernel DMA-bound.
    wspec_kwargs = {"pipeline_mode": pl.Buffered(3)} if tm <= 64 else {}

    cost = pl.CostEstimate(
        flops=2 * 2 * T * K * N,
        transcendentals=T * N,
        bytes_accessed=(T * K * (N // tn) + 2 * K * N * (T // tm) + T * N) * nbytes,
    )

    return pl.pallas_call(
        functools.partial(_gate_up_kernel, act=act),
        out_shape=jax.ShapeDtypeStruct((T, N), x.dtype),
        grid_spec=pltpu.PrefetchScalarGridSpec(
            num_scalar_prefetch=0,
            grid=(T // tm, N // tn, K // tk),
            in_specs=[
                pl.BlockSpec((tm, tk), lambda i, j, k: (i, k)),
                pl.BlockSpec((tk, tn), lambda i, j, k: (k, j), **wspec_kwargs),
                pl.BlockSpec((tk, tn), lambda i, j, k: (k, j), **wspec_kwargs),
            ],
            out_specs=pl.BlockSpec((tm, tn), lambda i, j, k: (i, j)),
            scratch_shapes=[pltpu.VMEM((tm, tn), jnp.float32),
                            pltpu.VMEM((tm, tn), jnp.float32)],
        ),
        compiler_params=pltpu.CompilerParams(
            dimension_semantics=("parallel", "parallel", "arbitrary"),
            vmem_limit_bytes=_vmem_limit(tm, tn, tk, nbytes, 2)),
        cost_estimate=cost,
    )(x, w_gate, w_up)


# ---------------------------------------------------------------------------
# Kernel 2: tiled matmul (down projection)  y = x @ W
# ---------------------------------------------------------------------------
def _matmul_kernel(x_ref, w_ref, o_ref, acc_ref):
    k = pl.program_id(2)

    @pl.when(k == 0)
    def _init():
        acc_ref[...] = jnp.zeros_like(acc_ref)

    acc_ref[...] += jnp.dot(x_ref[...], w_ref[...],
                            preferred_element_type=jnp.float32)

    @pl.when(k == pl.num_programs(2) - 1)
    def _finalize():
        o_ref[...] = acc_ref[...].astype(o_ref.dtype)


def matmul(x, w, *, tm=256, tn=512, tk=1024):
    """x: [T, K]; w: [K, N] (pre-transposed). Returns [T, N]."""
    T, K = x.shape
    N = w.shape[1]
    nbytes = jnp.dtype(x.dtype).itemsize
    sub = _sublane(x.dtype)

    tm = _pick_tile(T, tm, sub)
    tn = _pick_lane_tile(N, tn)
    tk = _pick_lane_tile(K, tk)
    tn = _ensure_parallel_blocks(T, tm, N, tn)
    tm, tn, tk = _fit_tiles(T, N, K, tm, tn, tk, nbytes, n_weights=1, sub=sub)

    wspec_kwargs = {"pipeline_mode": pl.Buffered(3)} if tm <= 64 else {}

    cost = pl.CostEstimate(
        flops=2 * T * K * N,
        transcendentals=0,
        bytes_accessed=(T * K * (N // tn) + K * N * (T // tm) + T * N) * nbytes,
    )

    return pl.pallas_call(
        _matmul_kernel,
        out_shape=jax.ShapeDtypeStruct((T, N), x.dtype),
        grid_spec=pltpu.PrefetchScalarGridSpec(
            num_scalar_prefetch=0,
            grid=(T // tm, N // tn, K // tk),
            in_specs=[
                pl.BlockSpec((tm, tk), lambda i, j, k: (i, k)),
                pl.BlockSpec((tk, tn), lambda i, j, k: (k, j), **wspec_kwargs),
            ],
            out_specs=pl.BlockSpec((tm, tn), lambda i, j, k: (i, j)),
            scratch_shapes=[pltpu.VMEM((tm, tn), jnp.float32)],
        ),
        compiler_params=pltpu.CompilerParams(
            dimension_semantics=("parallel", "parallel", "arbitrary"),
            vmem_limit_bytes=_vmem_limit(tm, tn, tk, nbytes, 1)),
        cost_estimate=cost,
    )(x, w)


# ---------------------------------------------------------------------------
# Module wrapper (parameter container + forward glue).
# ---------------------------------------------------------------------------
class CohereMLPPallas:
    def __init__(self, key, *, hidden_size, intermediate_size,
                 hidden_act="silu", dtype=jnp.bfloat16):
        self.hidden_size = hidden_size
        self.intermediate_size = intermediate_size
        self.hidden_act = hidden_act

        kg, ku, kd = jax.random.split(key, 3)
        s = 0.02
        # Stored pre-transposed ([in, out]) so the kernels compute x @ W
        # directly. Equivalent to the fused gate_up weight split into its two
        # halves (no slicing of a fused [T, 2*I] output inside the kernel).
        # bf16 operands -> single-pass MXU + half the weight DMA bytes;
        # accumulation stays f32 inside the kernels.
        self.w_gate = (s * jax.random.normal(
            kg, (hidden_size, intermediate_size))).astype(dtype)
        self.w_up = (s * jax.random.normal(
            ku, (hidden_size, intermediate_size))).astype(dtype)
        self.w_down = (s * jax.random.normal(
            kd, (intermediate_size, hidden_size))).astype(dtype)

    def __call__(self, hidden_states):
        # hidden_states: [num_tokens, hidden_size] (TGI "flash" token-major).
        h = gate_up_act(hidden_states, self.w_gate, self.w_up,
                        act=self.hidden_act)
        return matmul(h, self.w_down)


# ---------------------------------------------------------------------------
# Pure-JAX reference (for a sanity check).  Mirrors the kernel's numerics:
# bf16 operands, f32 accumulation, bf16 intermediate h.
# ---------------------------------------------------------------------------
def reference_forward(m, x):
    f32 = jnp.float32
    xf = x.astype(f32)
    g = jnp.dot(xf, m.w_gate.astype(f32))
    u = jnp.dot(xf, m.w_up.astype(f32))
    if m.hidden_act == "silu":
        gated = g * jax.nn.sigmoid(g)
    elif m.hidden_act in ("gelu_fast", "gelu_pytorch_tanh"):
        gated = jax.nn.gelu(g, approximate=True)
    else:
        gated = jax.nn.gelu(g, approximate=False)
    h = (gated * u).astype(m.w_down.dtype).astype(f32)   # bf16 h, like the kernel
    return jnp.dot(h, m.w_down.astype(f32)).astype(x.dtype)


if __name__ == "__main__":
    # Small but tile-aligned shapes (tokens=256, hidden=512, intermediate=1024).
    T = 256
    hidden_size = 512
    intermediate_size = 1024

    key = jax.random.PRNGKey(0)
    kx, kp = jax.random.split(key)

    module = CohereMLPPallas(
        kp,
        hidden_size=hidden_size,
        intermediate_size=intermediate_size,
        hidden_act="silu",
        dtype=jnp.bfloat16,
    )

    hidden_states = jax.random.normal(
        kx, (T, hidden_size), jnp.float32).astype(jnp.bfloat16)

    out = module(hidden_states)
    out = jax.block_until_ready(out)

    ref = reference_forward(module, hidden_states)
    np.testing.assert_allclose(np.asarray(out, dtype=np.float32),
                               np.asarray(ref, dtype=np.float32),
                               rtol=2e-2, atol=2e-2)
    assert out.shape == (T, hidden_size)
    print("KERNEL_OK")
</pallas_src>

<mosaic_0001>
module attributes {stable_mosaic.version = 11 : i64} {
  func.func @_gate_up_kernel(%arg0: i32, %arg1: i32, %arg2: i32, %arg3: memref<256x512xbf16, #tpu.memory_space<vmem>>, %arg4: memref<512x512xbf16, #tpu.memory_space<vmem>>, %arg5: memref<512x512xbf16, #tpu.memory_space<vmem>>, %arg6: memref<256x512xbf16, #tpu.memory_space<vmem>>, %arg7: memref<256x512xf32, #tpu.memory_space<vmem>>, %arg8: memref<256x512xf32, #tpu.memory_space<vmem>>) attributes {dimension_semantics = [#tpu.dimension_semantics<parallel>, #tpu.dimension_semantics<parallel>, #tpu.dimension_semantics<arbitrary>], iteration_bounds = array<i64: 1, 2, 1>, scalar_prefetch = 0 : i64, scratch_operands = 2 : i64, tpu.core_type = #tpu.core_type<tc>, window_params = [{transform_indices = @transform_0, window_bounds = array<i64: 256, 512>}, {transform_indices = @transform_1, window_bounds = array<i64: 512, 512>}, {transform_indices = @transform_2, window_bounds = array<i64: 512, 512>}, {transform_indices = @transform_3, window_bounds = array<i64: 256, 512>}]} {
    %c0_i32 = arith.constant 0 : i32
    %0 = arith.cmpi eq, %arg2, %c0_i32 : i32
    %1 = arith.extui %0 : i1 to i32
    %c0_i32_0 = arith.constant 0 : i32
    %2 = arith.cmpi ne, %1, %c0_i32_0 : i32
    scf.if %2 {
      %cst_17 = arith.constant 0.000000e+00 : f32
      %17 = vector.broadcast %cst_17 : f32 to vector<256x512xf32>
      %c0_18 = arith.constant 0 : index
      %c0_19 = arith.constant 0 : index
      %18 = vector.load %arg7[%c0_18, %c0_19] : memref<256x512xf32, #tpu.memory_space<vmem>>, vector<256x512xf32>
      tpu.vector_store %arg7[%c0_18, %c0_19], %17 {strides = array<i32>} : memref<256x512xf32, #tpu.memory_space<vmem>>, vector<256x512xf32>,
      %cst_20 = arith.constant 0.000000e+00 : f32
      %19 = vector.broadcast %cst_20 : f32 to vector<256x512xf32>
      %c0_21 = arith.constant 0 : index
      %c0_22 = arith.constant 0 : index
      %20 = vector.load %arg8[%c0_21, %c0_22] : memref<256x512xf32, #tpu.memory_space<vmem>>, vector<256x512xf32>
      tpu.vector_store %arg8[%c0_21, %c0_22], %19 {strides = array<i32>} : memref<256x512xf32, #tpu.memory_space<vmem>>, vector<256x512xf32>,
    } else {
    }
    %c0 = arith.constant 0 : index
    %c0_1 = arith.constant 0 : index
    %3 = vector.load %arg3[%c0, %c0_1] : memref<256x512xbf16, #tpu.memory_space<vmem>>, vector<256x512xbf16>
    %c0_2 = arith.constant 0 : index
    %c0_3 = arith.constant 0 : index
    %4 = vector.load %arg7[%c0_2, %c0_3] : memref<256x512xf32, #tpu.memory_space<vmem>>, vector<256x512xf32>
    %c0_4 = arith.constant 0 : index
    %c0_5 = arith.constant 0 : index
    %5 = vector.load %arg4[%c0_4, %c0_5] : memref<512x512xbf16, #tpu.memory_space<vmem>>, vector<512x512xbf16>
    %cst = arith.constant dense<0.000000e+00> : vector<256x512xf32>
    %6 = tpu.matmul %3, %5, %cst {dimension_numbers = #tpu.dot_dimension_numbers<[1], [0], [0], [1], [0, 0, 1, 1], [], []>} : vector<256x512xbf16>, vector<512x512xbf16>, vector<256x512xf32> -> vector<256x512xf32>
    %7 = arith.addf %4, %6 : vector<256x512xf32>
    %c0_6 = arith.constant 0 : index
    %c0_7 = arith.constant 0 : index
    %8 = vector.load %arg7[%c0_6, %c0_7] : memref<256x512xf32, #tpu.memory_space<vmem>>, vector<256x512xf32>
    tpu.vector_store %arg7[%c0_6, %c0_7], %7 {strides = array<i32>} : memref<256x512xf32, #tpu.memory_space<vmem>>, vector<256x512xf32>,
    %c0_8 = arith.constant 0 : index
    %c0_9 = arith.constant 0 : index
    %9 = vector.load %arg8[%c0_8, %c0_9] : memref<256x512xf32, #tpu.memory_space<vmem>>, vector<256x512xf32>
    %c0_10 = arith.constant 0 : index
    %c0_11 = arith.constant 0 : index
    %10 = vector.load %arg5[%c0_10, %c0_11] : memref<512x512xbf16, #tpu.memory_space<vmem>>, vector<512x512xbf16>
    %cst_12 = arith.constant dense<0.000000e+00> : vector<256x512xf32>
    %11 = tpu.matmul %3, %10, %cst_12 {dimension_numbers = #tpu.dot_dimension_numbers<[1], [0], [0], [1], [0, 0, 1, 1], [], []>} : vector<256x512xbf16>, vector<512x512xbf16>, vector<256x512xf32> -> vector<256x512xf32>
    %12 = arith.addf %9, %11 : vector<256x512xf32>
    %c0_13 = arith.constant 0 : index
    %c0_14 = arith.constant 0 : index
    %13 = vector.load %arg8[%c0_13, %c0_14] : memref<256x512xf32, #tpu.memory_space<vmem>>, vector<256x512xf32>
    tpu.vector_store %arg8[%c0_13, %c0_14], %12 {strides = array<i32>} : memref<256x512xf32, #tpu.memory_space<vmem>>, vector<256x512xf32>,
    %c0_i32_15 = arith.constant 0 : i32
    %14 = arith.cmpi eq, %arg2, %c0_i32_15 : i32
    %15 = arith.extui %14 : i1 to i32
    %c0_i32_16 = arith.constant 0 : i32
    %16 = arith.cmpi ne, %15, %c0_i32_16 : i32
    scf.if %16 {
      %c0_17 = arith.constant 0 : index
      %c0_18 = arith.constant 0 : index
      %17 = vector.load %arg7[%c0_17, %c0_18] : memref<256x512xf32, #tpu.memory_space<vmem>>, vector<256x512xf32>
      %c0_19 = arith.constant 0 : index
      %c0_20 = arith.constant 0 : index
      %18 = vector.load %arg8[%c0_19, %c0_20] : memref<256x512xf32, #tpu.memory_space<vmem>>, vector<256x512xf32>
      %19 = arith.negf %17 : vector<256x512xf32>
      %20 = math.exp %19 : vector<256x512xf32>
      %cst_21 = arith.constant 1.000000e+00 : f32
      %21 = vector.broadcast %cst_21 : f32 to vector<256x512xf32>
      %22 = arith.addf %21, %20 : vector<256x512xf32>
      %23 = arith.divf %21, %22 : vector<256x512xf32>
      %24 = arith.mulf %17, %23 : vector<256x512xf32>
      %25 = arith.mulf %24, %18 : vector<256x512xf32>
      %26 = arith.truncf %25 : vector<256x512xf32> to vector<256x512xbf16>
      %c0_22 = arith.constant 0 : index
      %c0_23 = arith.constant 0 : index
      %27 = vector.load %arg6[%c0_22, %c0_23] : memref<256x512xbf16, #tpu.memory_space<vmem>>, vector<256x512xbf16>
      tpu.vector_store %arg6[%c0_22, %c0_23], %26 {strides = array<i32>} : memref<256x512xbf16, #tpu.memory_space<vmem>>, vector<256x512xbf16>,
    } else {
    }
    return
  }
  func.func @transform_0(%arg0: i32, %arg1: i32, %arg2: i32) -> (i32, i32) {
    %c0_i32 = arith.constant 0 : i32
    return %arg0, %arg2 : i32, i32
  }
  func.func @transform_1(%arg0: i32, %arg1: i32, %arg2: i32) -> (i32, i32) {
    %c0_i32 = arith.constant 0 : i32
    return %arg2, %arg1 : i32, i32
  }
  func.func @transform_2(%arg0: i32, %arg1: i32, %arg2: i32) -> (i32, i32) {
    %c0_i32 = arith.constant 0 : i32
    return %arg2, %arg1 : i32, i32
  }
  func.func @transform_3(%arg0: i32, %arg1: i32, %arg2: i32) -> (i32, i32) {
    %c0_i32 = arith.constant 0 : i32
    return %arg0, %arg1 : i32, i32
  }
}

</mosaic_0001>

<bundles_post_ra>
// kernel: tpu_custom_call.1
= control target key start
LH: loop header
LB: loop body
LE: loop exit
PB: predicated region body
PF: predicated region fallthrough
CT: control target
= control target key end

     0   :  { %8 = vsyncpa [#allocation5], 0  ;;  %s16217_s0 = inlined_call_operand.hbm [shape: bf16[256,512], index: 0, kind: input, shape index: {}]   ;;  %s16218_s1 = inlined_call_operand.hbm [shape: bf16[512,1024], index: 1, kind: input, shape index: {}]   ;;  %s16219_s2 = inlined_call_operand.hbm [shape: bf16[512,1024], index: 2, kind: input, shape index: {}]   ;;  %s16220_s3 = inlined_call_operand.hbm [shape: bf16[256,1024], index: 3, kind: output, shape index: {}]  }
   0x1   :  { %9 = vsyncpa [#allocation8], 0 }
   0x2   :  { %11 = vsyncpa [#allocation8 + $0x1], 0 }
   0x3   :  { %12 = vsyncpa [#allocation6], 0 }
   0x4   :  { %14 = vsyncpa [#allocation6 + $0x1], 0  ;;  %s11872_s12 = smov 0   ;;  %s11874_s13 = smov 0  }
   0x5   :  { %s11876_s14 = smov 0   ;;  %s11878_s15 = smov 0  }
   0x6   :  { %s11880_s16 = smov 0   ;;  %s11882_s17 = smov 0  }
   0x7 LB: > { %s35_s18 = sadd.s32 1, %s11839_s16  ;;  %s76_s19 = sadd.s32 1, %s11831_s14  ;;  %s11843_s17 = sphi %s11882_s17, %s20_s17   ;;  %s11839_s16 = sphi %s11880_s16, %s17167_s16   ;;  %s11835_s15 = sphi %s11878_s15, %s17166_s15   ;;  %s11831_s14 = sphi %s11876_s14, %s17165_s14   ;;  %s11827_s13 = sphi %s11874_s13, %s17164_s13   ;;  %s11823_s12 = sphi %s11872_s12, %s17163_s12  }
   0x8   : > { %p37_p0 = scmp.ge.s32.totalorder %s35_s18, 2  ;;  %p83_p1 = scmp.ne.s32.totalorder %s11831_s14, %s11827_s13 }
   0x9   : > { %p84_p2 = scmp.eq.s32.totalorder %s11843_s17, 0  ;;  %p9323_p4 = scmp.ge.s32.totalorder %s11843_s17, 2 }
   0xa   : > { %s17169_s18 = smov (%p37_p0, %s35_s18), 0  ;;  %p11097_p6 = scmp.lt.s32.totalorder %s11843_s17, 2 }
   0xb   : > { %p11912_p3 = por %p84_p2, %p83_p1  ;;  %s72_s21 = ssub.s32 %s11839_s16, %s17169_s18 }
   0xc   : > { %p74_p5 = scmp.eq.s32.totalorder %s72_s21, 0  ;;  %s189_s22 = sand.u32 1, %s11843_s17  }
   0xd   : > { %s191_s23 = sand.u32 1, %s11831_s14   ;;  %s10748_s26 = sshll.u32 %s11839_s16, 4 }
   0xe   : > { %s11923_s24 = scalar_select %p74_p5, %s11831_s14, %s76_s19  }
   0xf   : > { %s9324_s25 = sshll.u32 %s191_s23, 10  ;;  %s201_s29 = scalar_lea.hbm %s16218_s1, %s10748_s26 }
  0x10   : > { %s193_s30 = scalar_lea.vmem [#allocation7], %s9324_s25  ;;  %s202_s5 = sshll.u32 %s201_s29, 4  ;;  %s203_s5 = int_to_ptr.hbm [resolvable:$true] %s202_s5 }
  0x11   : > { %s204_s4 = sshll.u32 %s193_s30, 4  ;;  %p11931_p7 = pnand %p11097_p6, %p11912_p3  ;;  %s205_s4 = int_to_ptr.vmem [resolvable:$true] %s204_s4 }
  0x12   : > { %s226_s9 = scalar_lea.hbm %s16219_s2, %s10748_s26  ;;  %s11938_s10 = scalar_lea.sflag [#allocation8], %s189_s22 }
  0x13   : > { %s11845_s11 = smov 512   ;;  %s11846_s19 = smov 256  }
  0x14   : > { %s11847_s21 = smov 16   ;;  %s227_s20 = sshll.u32 %s226_s9, 4  ;;  %s228_s20 = int_to_ptr.hbm [resolvable:$true] %s227_s20 }
  0x15   : > { %11088 = dma.hbm_to_vmem [thread:$0]  (!%p11931_p7), %s203_s5, 16384, %s205_s4, %s11938_s10, %s11845_s11, %s11846_s19, %s11847_s21  }
  0x16   : > { %s218_s23 = scalar_lea.vmem [#allocation9], %s9324_s25  ;;  %s9319_s26 = sadd.s32 4294967295, %s11843_s17  }
  0x17   : > { %s229_s27 = sshll.u32 %s218_s23, 4  ;;  %s9320_s22 = sadd.s32 4294967294, %s11843_s17   ;;  %s230_s27 = int_to_ptr.vmem [resolvable:$true] %s229_s27 }
  0x18   : > { %p89_p8 = scmp.ne.s32.totalorder %s11827_s13, %s11823_s12  ;;  %p90_p9 = scmp.eq.s32.totalorder %s9319_s26, 0 }
  0x19   : > { %p143_p10 = scmp.eq.s32.totalorder %s9319_s26, 1  ;;  %p149_p11 = scmp.eq.s32.totalorder %s9320_s22, 1 }
  0x1a   : > { %p11951_p12 = por %p90_p9, %p89_p8  ;;  %p9321_p13 = scmp.ge.s32.totalorder %s11843_s17, 1 }
  0x1b   : > { %p11959_p0 = por %p143_p10, %p83_p1  ;;  %p11963_p2 = por %p149_p11, %p89_p8 }
  0x1c   : > { %p156_p3 = scmp.lt.s32.totalorder %s11843_s17, 3  ;;  %s173_s5 = sshll.u32 %s16217_s0, 4  ;;  %s174_s5 = int_to_ptr.hbm [resolvable:$true] %s173_s5 }
  0x1d   : > { %s11848_s7 = smov [#allocation4]  }
  0x1e   : > { %p157_p5 = pnand %p9321_p13, %p156_p3  ;;  %s175_s8 = sshll.u32 %s11848_s7, 4  ;;  %s176_s8 = int_to_ptr.vmem [resolvable:$true] %s175_s8 }
  0x1f   : > { %11091 = dma.hbm_to_vmem [thread:$0]  (!%p11931_p7), %s228_s20, 16384, %s230_s27, %s11938_s10, %s11845_s11, %s11846_s19, %s11847_s21  }
  0x20   : > { %p11081_p6 = pneg %p157_p5  ;;  %241 = sbr.rel (%p157_p5) target bundleno = 2263 (0x8d7), region = 32 }
  0x22   : > { %p11082_p1 = pnand %p11081_p6, %p90_p9 }
  0x24   : > { %11084 = dma.hbm_to_vmem [thread:$0]  (!%p11082_p1), %s174_s5, 8192, %s176_s8, [#allocation5], %s11846_s19, %s11846_s19, %s11847_s21  }
  0x25   : > { %11810 = dma.done.wait (%p90_p9), [#allocation5], 8192  }
  0x26   : > { %11812 = vsyncadd (%p90_p9), [#allocation5], 4294959104  ;;  %s248_s9 = sand.u32 1, %s9319_s26   ;;  %s11984_s6 = sand.u32 1, %s11827_s13  }
  0x27   : > { %s9332_s10 = sshll.u32 %s11984_s6, 10  ;;  %s249_s11 = scalar_lea.sflag [#allocation8], %s248_s9 }
  0x28   : > { %s11989_s20 = scalar_lea.vmem [#allocation7], %s9332_s10 }
  0x29   : > { %11814 = dma.done.wait (%p11951_p12), %s249_s11, 32768  }
  0x2a   : > { %11816 = vsyncadd (%p11951_p12), %s249_s11, 4294934528  ;;  %v9705_v0 = vld [vmem:[%s11989_s20 + $0xe0] sm:$0xf]  ;;  %v10844_v1 = vld [vmem:[%s11989_s20 + $0xec] sm:$0xf0]  ;;  %s12731_s19 = scalar_lea.vmem [#allocation9], %s9332_s10 }
  0x2b   : > { %v9833_v2 = vld [vmem:[%s11989_s20 + $0x1e0] sm:$0xf]  ;;  %v9706_v3 = vor.u32 %v10844_v1, %v9705_v0  ;;  %v10876_v4 = vld [vmem:[%s11989_s20 + $0x1ec] sm:$0xf0]  ;;  %s9334_s21 = sshll.u32 %s11984_s6, 9  ;;  %s11070_s27 = sshll.u32 %s11835_s15, 4 }
  0x2c   : > { %v9961_v5 = vld [vmem:[%s11989_s20 + $0x2e0] sm:$0xf]  ;;  %v10908_v6 = vld [vmem:[%s11989_s20 + $0x2ec] sm:$0xf0]  ;;  %v9834_v7 = vor.u32 %v10876_v4, %v9833_v2  ;;  %s13987_s23 = scalar_lea.vmem [#allocation10], %s9334_s21  ;;  %s9185_s28 = scalar_lea.hbm %s16220_s3, %s11070_s27 }
  0x2d   : > { %v9962_v8 = vor.u32 %v10908_v6, %v9961_v5  ;;  %v10089_v9 = vld [vmem:[%s11989_s20 + $0x3e0] sm:$0xf]  ;;  %v10940_v10 = vld [vmem:[%s11989_s20 + $0x3ec] sm:$0xf0]  ;;  %1839 = vmatpush.bf16.msra.mxu0 %v9706_v3  ;;  %s9186_s30 = sshll.u32 %s13987_s23, 4  ;;  %s9188_s15 = sshll.u32 %s9185_s28, 4  ;;  %s9187_s30 = int_to_ptr.vmem [resolvable:$true] %s9186_s30  ;;  %s9189_s15 = int_to_ptr.hbm [resolvable:$true] %s9188_s15 }
  0x2e   : > { %v9689_v11 = vld [vmem:[%s11989_s20 + $0xc0] sm:$0xf]  ;;  %v10090_v12 = vor.u32 %v10940_v10, %v10089_v9  ;;  %v10840_v13 = vld [vmem:[%s11989_s20 + $0xcc] sm:$0xf0]  ;;  %1928 = vmatpush.bf16.msra.mxu1 %v9834_v7  ;;  %s9171_s4 = scalar_lea.sflag [#allocation6], %s11984_s6  ;;  %s11771_s5 = sshra.s32 %s9189_s15, 4  ;;  %s11772_s5 = int_to_ptr.hbm [resolvable:$true] %s11771_s5 }
  0x2f   : > { %v9817_v14 = vld [vmem:[%s11989_s20 + $0x1c0] sm:$0xf]  ;;  %v10872_v15 = vld [vmem:[%s11989_s20 + $0x1cc] sm:$0xf0]  ;;  %2017 = vmatpush.bf16.msra.mxu2 %v9962_v8  ;;  %v9690_v16 = vor.u32 %v10840_v13, %v9689_v11  ;;  %s11773_s7 = scalar_lea.hbm %s11772_s5, 512  ;;  %s11777_s10 = scalar_lea.hbm %s16220_s3, 1024 }
  0x30   : > { %v9818_v17 = vor.u32 %v10872_v15, %v9817_v14  ;;  %v9945_v18 = vld [vmem:[%s11989_s20 + $0x2c0] sm:$0xf]  ;;  %v10904_v19 = vld [vmem:[%s11989_s20 + $0x2cc] sm:$0xf0]  ;;  %2106 = vmatpush.bf16.msra.mxu3 %v10090_v12  ;;  %p11774_p7 = scmp.ne.s32.totalorder %s11772_s5, %s11773_s7  ;;  %p11778_p10 = scmp.lt.s32.totalorder %s11772_s5, %s16220_s3 }
  0x31   : > { %v10073_v20 = vld [vmem:[%s11989_s20 + $0x3c0] sm:$0xf]  ;;  %v9946_v21 = vor.u32 %v10904_v19, %v9945_v18  ;;  %v10936_v22 = vld [vmem:[%s11989_s20 + $0x3cc] sm:$0xf0]  ;;  %1840 = vmatpush.bf16.msra.mxu0 %v9690_v16  ;;  %p11779_p11 = scmp.lt.s32.totalorder %s11777_s10, %s11773_s7 }
  0x32   : > { %v9673_v23 = vld [vmem:[%s11989_s20 + $0xa0] sm:$0xf]  ;;  %v10836_v24 = vld [vmem:[%s11989_s20 + $0xac] sm:$0xf0]  ;;  %v10074_v25 = vor.u32 %v10936_v22, %v10073_v20  ;;  %1929 = vmatpush.bf16.msra.mxu1 %v9818_v17  ;;  %p11775_p8 = pnand %p11774_p7, %p11959_p0 }
  0x33   : > { %v9801_v26 = vld [vmem:[%s11989_s20 + $0x1a0] sm:$0xf]  ;;  %v10868_v27 = vld [vmem:[%s11989_s20 + $0x1ac] sm:$0xf0]  ;;  %v9674_v29 = vor.u32 %v10836_v24, %v9673_v23  ;;  %2018 = vmatpush.bf16.msra.mxu2 %v9946_v21  ;;  %p11780_p12 = por %p11779_p11, %p11778_p10 }
  0x34   : > { %v9929_v28 = vld [vmem:[%s11989_s20 + $0x2a0] sm:$0xf]  ;;  %v10900_v30 = vld [vmem:[%s11989_s20 + $0x2ac] sm:$0xf0]  ;;  %v9802_v33 = vor.u32 %v10868_v27, %v9801_v26  ;;  %2107 = vmatpush.bf16.msra.mxu3 %v10074_v25  ;;  %p11776_p9 = pneg %p11775_p8 }
  0x35   : > { %v10057_v31 = vld [vmem:[%s11989_s20 + $0x3a0] sm:$0xf]  ;;  %v10932_v32 = vld [vmem:[%s11989_s20 + $0x3ac] sm:$0xf0]  ;;  %v9930_v34 = vor.u32 %v10900_v30, %v9929_v28  ;;  %1841 = vmatpush.bf16.msra.mxu0 %v9674_v29  ;;  %v10750_v30 = vld [vmem:[#allocation4 + $0x4] sm:$0xf] }
  0x36   : > { %v9657_v35 = vld [vmem:[%s11989_s20 + $0x80] sm:$0xf]  ;;  %v10832_v36 = vld [vmem:[%s11989_s20 + $0x8c] sm:$0xf0]  ;;  %v10058_v38 = vor.u32 %v10932_v32, %v10057_v31  ;;  %1930 = vmatpush.bf16.msra.mxu1 %v9802_v33  ;;  %v10906_v31 = vld [vmem:[%s11989_s20 + $0x2e4] sm:$0xf]  ;;  %p11781_p13 = pnand %p11780_p12, %p11776_p9 }
  0x37   : > { %v9785_v37 = vld [vmem:[%s11989_s20 + $0x180] sm:$0xf]  ;;  %v10864_v39 = vld [vmem:[%s11989_s20 + $0x18c] sm:$0xf0]  ;;  %v9658_v44 = vor.u32 %v10832_v36, %v9657_v35  ;;  %2019 = vmatpush.bf16.msra.mxu2 %v9930_v34  ;;  %v9963_v32 = vld [vmem:[%s11989_s20 + $0x2f0] sm:$0xf0] }
  0x38   : > { %v9913_v40 = vld [vmem:[%s11989_s20 + $0x280] sm:$0xf]  ;;  %v10896_v41 = vld [vmem:[%s11989_s20 + $0x28c] sm:$0xf0]  ;;  %v9786_v45 = vor.u32 %v10864_v39, %v9785_v37  ;;  %2108 = vmatpush.bf16.msra.mxu3 %v10058_v38  ;;  %v9339_v34 = vld [vmem:[#allocation4 + $0x10] sm:$0xf0] }
  0x39   : > { %v10041_v42 = vld [vmem:[%s11989_s20 + $0x380] sm:$0xf]  ;;  %v10928_v43 = vld [vmem:[%s11989_s20 + $0x38c] sm:$0xf0]  ;;  %v9914_v46 = vor.u32 %v10896_v41, %v9913_v40  ;;  %1842 = vmatpush.bf16.msra.mxu0 %v9658_v44  ;;  %v10938_v35 = vld [vmem:[%s11989_s20 + $0x3e4] sm:$0xf]  ;;  %v9966_v44 = vor.u32 %v10906_v31, %v9963_v32 }
  0x3a   : > { %v9641_v47 = vld [vmem:[%s11989_s20 + $0x60] sm:$0xf]  ;;  %v10828_v48 = vld [vmem:[%s11989_s20 + $0x6c] sm:$0xf0]  ;;  %v10042_v50 = vor.u32 %v10928_v43, %v10041_v42  ;;  %1931 = vmatpush.bf16.msra.mxu1 %v9786_v45  ;;  %v10091_v36 = vld [vmem:[%s11989_s20 + $0x3f0] sm:$0xf0] }
  0x3b   : > { %v9769_v49 = vld [vmem:[%s11989_s20 + $0x160] sm:$0xf]  ;;  %v10860_v51 = vld [vmem:[%s11989_s20 + $0x16c] sm:$0xf0]  ;;  %v9642_v56 = vor.u32 %v10828_v48, %v9641_v47  ;;  %2020 = vmatpush.bf16.msra.mxu2 %v9914_v46  ;;  %v9345_v39 = vld [vmem:[#allocation4 + $0x8] sm:$0xf]  ;;  %v10094_v48 = vor.u32 %v10938_v35, %v10091_v36 }
  0x3c   : > { %v9897_v52 = vld [vmem:[%s11989_s20 + $0x260] sm:$0xf]  ;;  %v10892_v53 = vld [vmem:[%s11989_s20 + $0x26c] sm:$0xf0]  ;;  %v9770_v57 = vor.u32 %v10860_v51, %v9769_v49  ;;  %2109 = vmatpush.bf16.msra.mxu3 %v10042_v50  ;;  %v10753_v40 = vld [vmem:[#allocation4 + $0x14] sm:$0xf0]  ;;  %v12069_v51 = vor.u32 %v10750_v30, %v9339_v34 }
  0x3d   : > { %v10025_v54 = vld [vmem:[%s11989_s20 + $0x360] sm:$0xf]  ;;  %v10924_v55 = vld [vmem:[%s11989_s20 + $0x36c] sm:$0xf0]  ;;  %v9898_v58 = vor.u32 %v10892_v53, %v9897_v52  ;;  %1843 = vmatpush.bf16.msra.mxu0 %v9642_v56  ;;  %v10751_v41 = vld [vmem:[#allocation4 + $0xc] sm:$0xf]  ;;  %v12071_v52 = vor.u32 %v10753_v40, %v9345_v39 }
  0x3e   : > { %v9625_v59 = vld [vmem:[%s11989_s20 + $0x40] sm:$0xf]  ;;  %v10824_v60 = vld [vmem:[%s11989_s20 + $0x4c] sm:$0xf0]  ;;  %v10026_v62 = vor.u32 %v10924_v55, %v10025_v54  ;;  %1932 = vmatpush.bf16.msra.mxu1 %v9770_v57  ;;  %v9347_v43 = vld [vmem:[#allocation4 + $0x18] sm:$0xf0] }
  0x3f   : > { %v9753_v61 = vld [vmem:[%s11989_s20 + $0x140] sm:$0xf]  ;;  %v10856_v63 = vld [vmem:[%s11989_s20 + $0x14c] sm:$0xf0]  ;;  %v9626_v4 = vor.u32 %v10824_v60, %v9625_v59  ;;  %2021 = vmatpush.bf16.msra.mxu2 %v9898_v58  ;;  %v10842_v45 = vld [vmem:[%s11989_s20 + $0xe4] sm:$0xf]  ;;  %v12073_v53 = vor.u32 %v10751_v41, %v9347_v43 }
  0x40   : > { %v9881_v0 = vld [vmem:[%s11989_s20 + $0x240] sm:$0xf]  ;;  %v10888_v1 = vld [vmem:[%s11989_s20 + $0x24c] sm:$0xf0]  ;;  %v9754_v5 = vor.u32 %v10856_v63, %v9753_v61  ;;  %2110 = vmatpush.bf16.msra.mxu3 %v10026_v62  ;;  %v9707_v46 = vld [vmem:[%s11989_s20 + $0xf0] sm:$0xf0] }
  0x41   : > { %v10009_v2 = vld [vmem:[%s11989_s20 + $0x340] sm:$0xf]  ;;  %v10920_v3 = vld [vmem:[%s11989_s20 + $0x34c] sm:$0xf0]  ;;  %v9882_v6 = vor.u32 %v10888_v1, %v9881_v0  ;;  %1844 = vmatpush.bf16.msra.mxu0 %v9626_v4  ;;  %v10874_v49 = vld [vmem:[%s11989_s20 + $0x1e4] sm:$0xf]  ;;  %v9710_v54 = vor.u32 %v10842_v45, %v9707_v46 }
  0x42   : > { %v9609_v7 = vld [vmem:[%s11989_s20 + $0x20] sm:$0xf]  ;;  %v10820_v8 = vld [vmem:[%s11989_s20 + $0x2c] sm:$0xf0]  ;;  %v10010_v10 = vor.u32 %v10920_v3, %v10009_v2  ;;  %1933 = vmatpush.bf16.msra.mxu1 %v9754_v5  ;;  %v9835_v50 = vld [vmem:[%s11989_s20 + $0x1f0] sm:$0xf0] }
  0x43   : > { %v9737_v9 = vld [vmem:[%s11989_s20 + $0x120] sm:$0xf]  ;;  %v10852_v11 = vld [vmem:[%s11989_s20 + $0x12c] sm:$0xf0]  ;;  %v9610_v17 = vor.u32 %v10820_v8, %v9609_v7  ;;  %2022 = vmatpush.bf16.msra.mxu2 %v9882_v6  ;;  %16464 = vst [vmem:[#allocation14_spill] sm:$0xff] %v12069_v51  ;;  %v9838_v55 = vor.u32 %v10874_v49, %v9835_v50 }
  0x44   : > { %v9865_v12 = vld [vmem:[%s11989_s20 + $0x220] sm:$0xf]  ;;  %v10884_v13 = vld [vmem:[%s11989_s20 + $0x22c] sm:$0xf0]  ;;  %v9738_v21 = vor.u32 %v10852_v11, %v9737_v9  ;;  %2111 = vmatpush.bf16.msra.mxu3 %v10010_v10  ;;  %16465 = vst [vmem:[#allocation15_spill] sm:$0xff] %v12071_v52 }
  0x45   : > { %v9993_v14 = vld [vmem:[%s11989_s20 + $0x320] sm:$0xf]  ;;  %v10916_v15 = vld [vmem:[%s11989_s20 + $0x32c] sm:$0xf0]  ;;  %v9866_v22 = vor.u32 %v10884_v13, %v9865_v12  ;;  %1845 = vmatpush.bf16.msra.mxu0 %v9610_v17  ;;  %16466 = vst [vmem:[#allocation16_spill] sm:$0xff] %v12073_v53 }
  0x46   : > { %v9593_v16 = vld [vmem:[%s11989_s20] sm:$0xf]  ;;  %v10816_v18 = vld [vmem:[%s11989_s20 + $0xc] sm:$0xf0]  ;;  %v9994_v26 = vor.u32 %v10916_v15, %v9993_v14  ;;  %1934 = vmatpush.bf16.msra.mxu1 %v9738_v21  ;;  %v10902_v56 = vld [vmem:[%s11989_s20 + $0x2c4] sm:$0xf] }
  0x47   : > { %v9721_v19 = vld [vmem:[%s11989_s20 + $0x100] sm:$0xf]  ;;  %v10848_v20 = vld [vmem:[%s11989_s20 + $0x10c] sm:$0xf0]  ;;  %v9594_v33 = vor.u32 %v10816_v18, %v9593_v16  ;;  %2023 = vmatpush.bf16.msra.mxu2 %v9866_v22  ;;  %v9947_v57 = vld [vmem:[%s11989_s20 + $0x2d0] sm:$0xf0] }
  0x48   : > { %v9849_v23 = vld [vmem:[%s11989_s20 + $0x200] sm:$0xf]  ;;  %v10880_v24 = vld [vmem:[%s11989_s20 + $0x20c] sm:$0xf0]  ;;  %v9722_v37 = vor.u32 %v10848_v20, %v9721_v19  ;;  %2112 = vmatpush.bf16.msra.mxu3 %v9994_v26  ;;  %v10934_v58 = vld [vmem:[%s11989_s20 + $0x3c4] sm:$0xf]  ;;  %v9950_v59 = vor.u32 %v10902_v56, %v9947_v57 }
  0x49   : > { %v9977_v25 = vld [vmem:[%s11989_s20 + $0x300] sm:$0xf]  ;;  %v10912_v27 = vld [vmem:[%s11989_s20 + $0x30c] sm:$0xf0]  ;;  %v9850_v38 = vor.u32 %v10880_v24, %v9849_v23  ;;  %1846 = vmatpush.bf16.msra.mxu0 %v9594_v33  ;;  %v10075_v60 = vld [vmem:[%s11989_s20 + $0x3d0] sm:$0xf0] }
  0x4a   : > { %v9337_v28 = vld [vmem:[#allocation4] sm:$0xf]  ;;  %v10752_v29 = vld [vmem:[#allocation4 + $0xc] sm:$0xf0]  ;;  %v9978_v42 = vor.u32 %v10912_v27, %v9977_v25  ;;  %1935 = vmatpush.bf16.msra.mxu1 %v9722_v37  ;;  %v10838_v61 = vld [vmem:[%s11989_s20 + $0xc4] sm:$0xf]  ;;  %v10078_v63 = vor.u32 %v10934_v58, %v10075_v60 }
  0x4b   : > { %v12065_v47 = vor.u32 %v10752_v29, %v9337_v28  ;;  %2024 = vmatpush.bf16.msra.mxu2 %v9850_v38  ;;  %v9691_v62 = vld [vmem:[%s11989_s20 + $0xd0] sm:$0xf0]  ;;  %v10870_v1 = vld [vmem:[%s11989_s20 + $0x1c4] sm:$0xf]  ;;  %v9353_v4 = vld [vmem:[#allocation4 + $0x20] sm:$0xf] }
  0x4c   : > { %2113 = vmatpush.bf16.msra.mxu3 %v9978_v42  ;;  %v9694_v0 = vor.u32 %v10838_v61, %v9691_v62  ;;  %v9819_v2 = vld [vmem:[%s11989_s20 + $0x1d0] sm:$0xf0]  ;;  %v10756_v5 = vld [vmem:[#allocation4 + $0x2c] sm:$0xf0]  ;;  %v10754_v6 = vld [vmem:[#allocation4 + $0x24] sm:$0xf] }
  0x4d   : > { %1847 = vmatmul.bf16.vlgmr.msra.gmra.mxu0 %v12065_v47  ;;  %1936 = vmatmul.bf16.vlgmr.msra.gmra.mxu1 %v12069_v51  ;;  %v9822_v3 = vor.u32 %v10870_v1, %v9819_v2  ;;  %v9355_v7 = vld [vmem:[#allocation4 + $0x30] sm:$0xf0]  ;;  %v9361_v8 = vld [vmem:[#allocation4 + $0x28] sm:$0xf]  ;;  %v10757_v9 = vld [vmem:[#allocation4 + $0x34] sm:$0xf0]  ;;  %v12087_v12 = vor.u32 %v10756_v5, %v9353_v4 }
  0x4e   : > { %2025 = vmatmul.bf16.vlgmr.msra.gmra.mxu2 %v12071_v52  ;;  %2195 = vmatpush.bf16.msrb.mxu0 %v9710_v54  ;;  %v10755_v10 = vld [vmem:[#allocation4 + $0x2c] sm:$0xf]  ;;  %v9363_v11 = vld [vmem:[#allocation4 + $0x38] sm:$0xf0]  ;;  %v12089_v13 = vor.u32 %v10754_v6, %v9355_v7  ;;  %v12091_v14 = vor.u32 %v10757_v9, %v9361_v8  ;;  %v9369_v16 = vld [vmem:[#allocation4 + $0x40] sm:$0xf] }
  0x4f   : > { %2373 = vmatpush.bf16.msrb.mxu2 %v9966_v44  ;;  %2114 = vmatmul.bf16.vlgmr.msra.gmra.mxu3 %v12073_v53  ;;  %v12093_v15 = vor.u32 %v10755_v10, %v9363_v11  ;;  %v10760_v17 = vld [vmem:[#allocation4 + $0x4c] sm:$0xf0]  ;;  %v10758_v18 = vld [vmem:[#allocation4 + $0x44] sm:$0xf]  ;;  %v9371_v19 = vld [vmem:[#allocation4 + $0x50] sm:$0xf0] }
  0x50   : > { %2462 = vmatpush.bf16.msrb.mxu3 %v10094_v48  ;;  %2284 = vmatpush.bf16.msrb.mxu1 %v9838_v55  ;;  %v9377_v20 = vld [vmem:[#allocation4 + $0x48] sm:$0xf]  ;;  %v10761_v21 = vld [vmem:[#allocation4 + $0x54] sm:$0xf0]  ;;  %v10759_v22 = vld [vmem:[#allocation4 + $0x4c] sm:$0xf]  ;;  %v12099_v24 = vor.u32 %v10760_v17, %v9369_v16  ;;  %v12101_v25 = vor.u32 %v10758_v18, %v9371_v19 }
  0x51   : > { %v9379_v23 = vld [vmem:[#allocation4 + $0x58] sm:$0xf0]  ;;  %v12103_v26 = vor.u32 %v10761_v21, %v9377_v20  ;;  %v10898_v28 = vld [vmem:[%s11989_s20 + $0x2a4] sm:$0xf]  ;;  %v9931_v29 = vld [vmem:[%s11989_s20 + $0x2b0] sm:$0xf0] }
  0x52   : > { %2196 = vmatpush.bf16.msrb.mxu0 %v9694_v0  ;;  %16467 = vst [vmem:[#allocation17_spill] sm:$0xff] %v12101_v25  ;;  %v12105_v27 = vor.u32 %v10759_v22, %v9379_v23  ;;  %v10930_v30 = vld [vmem:[%s11989_s20 + $0x3a4] sm:$0xf]  ;;  %v9934_v31 = vor.u32 %v10898_v28, %v9931_v29  ;;  %v10059_v32 = vld [vmem:[%s11989_s20 + $0x3b0] sm:$0xf0] }
  0x53   : > { %2374 = vmatpush.bf16.msrb.mxu2 %v9950_v59  ;;  %16468 = vst [vmem:[#allocation18_spill] sm:$0xff] %v12103_v26  ;;  %v10834_v33 = vld [vmem:[%s11989_s20 + $0xa4] sm:$0xf]  ;;  %v9675_v34 = vld [vmem:[%s11989_s20 + $0xb0] sm:$0xf0]  ;;  %v10062_v35 = vor.u32 %v10930_v30, %v10059_v32 }
  0x54   : > { %2463 = vmatpush.bf16.msrb.mxu3 %v10078_v63  ;;  %2285 = vmatpush.bf16.msrb.mxu1 %v9822_v3  ;;  %16469 = vst [vmem:[#allocation19_spill] sm:$0xff] %v12105_v27  ;;  %v9678_v36 = vor.u32 %v10834_v33, %v9675_v34  ;;  %v10866_v37 = vld [vmem:[%s11989_s20 + $0x1a4] sm:$0xf]  ;;  %v9803_v38 = vld [vmem:[%s11989_s20 + $0x1b0] sm:$0xf0] }
  0x55   : > { %v9806_v39 = vor.u32 %v10866_v37, %v9803_v38  ;;  %v9385_v40 = vld [vmem:[#allocation4 + $0x60] sm:$0xf]  ;;  %v10764_v41 = vld [vmem:[#allocation4 + $0x6c] sm:$0xf0]  ;;  %v10762_v42 = vld [vmem:[#allocation4 + $0x64] sm:$0xf] }
  0x56   : > { %2197 = vmatpush.bf16.msrb.mxu0 %v9678_v36  ;;  %v9387_v43 = vld [vmem:[#allocation4 + $0x70] sm:$0xf0]  ;;  %v9393_v44 = vld [vmem:[#allocation4 + $0x68] sm:$0xf]  ;;  %v10765_v45 = vld [vmem:[#allocation4 + $0x74] sm:$0xf0]  ;;  %v12119_v49 = vor.u32 %v10764_v41, %v9385_v40 }
  0x57   : > { %2375 = vmatpush.bf16.msrb.mxu2 %v9934_v31  ;;  %v10763_v46 = vld [vmem:[#allocation4 + $0x6c] sm:$0xf]  ;;  %v9395_v48 = vld [vmem:[#allocation4 + $0x78] sm:$0xf0]  ;;  %v12121_v50 = vor.u32 %v10762_v42, %v9387_v43  ;;  %v12123_v54 = vor.u32 %v10765_v45, %v9393_v44  ;;  %v9401_v56 = vld [vmem:[#allocation4 + $0x80] sm:$0xf] }
  0x58   : > { %2464 = vmatpush.bf16.msrb.mxu3 %v10062_v35  ;;  %2286 = vmatpush.bf16.msrb.mxu1 %v9806_v39  ;;  %16470 = vst [vmem:[#allocation20_spill] sm:$0xff] %v12119_v49  ;;  %v12125_v55 = vor.u32 %v10763_v46, %v9395_v48  ;;  %v10768_v57 = vld [vmem:[#allocation4 + $0x8c] sm:$0xf0]  ;;  %v10766_v58 = vld [vmem:[#allocation4 + $0x84] sm:$0xf] }
  0x59   : > { %16471 = vst [vmem:[#allocation21_spill] sm:$0xff] %v12121_v50  ;;  %v9403_v59 = vld [vmem:[#allocation4 + $0x90] sm:$0xf0]  ;;  %v9409_v60 = vld [vmem:[#allocation4 + $0x88] sm:$0xf]  ;;  %v12131_v0 = vor.u32 %v10768_v57, %v9401_v56 }
  0x5a   : > { %16472 = vst [vmem:[#allocation22_spill] sm:$0xff] %v12123_v54  ;;  %v10769_v61 = vld [vmem:[#allocation4 + $0x94] sm:$0xf0]  ;;  %v10767_v62 = vld [vmem:[#allocation4 + $0x8c] sm:$0xf]  ;;  %v12133_v1 = vor.u32 %v10766_v58, %v9403_v59 }
  0x5b   : > { %16473 = vst [vmem:[#allocation23_spill] sm:$0xff] %v12125_v55  ;;  %v9411_v63 = vld [vmem:[#allocation4 + $0x98] sm:$0xf0]  ;;  %v12135_v2 = vor.u32 %v10769_v61, %v9409_v60  ;;  %v10894_v4 = vld [vmem:[%s11989_s20 + $0x284] sm:$0xf] }
  0x5c   : > { %16474 = vst [vmem:[#allocation24_spill] sm:$0xff] %v12131_v0  ;;  %v12137_v3 = vor.u32 %v10767_v62, %v9411_v63  ;;  %v9915_v5 = vld [vmem:[%s11989_s20 + $0x290] sm:$0xf0]  ;;  %v10926_v6 = vld [vmem:[%s11989_s20 + $0x384] sm:$0xf] }
  0x5d   : > { %1852 = vmatmul.bf16.gmra.mxu0 %v12087_v12  ;;  %1941 = vmatmul.bf16.gmra.mxu1 %v12089_v13  ;;  %16475 = vst [vmem:[#allocation25_spill] sm:$0xff] %v12133_v1  ;;  %v9918_v7 = vor.u32 %v10894_v4, %v9915_v5  ;;  %v10043_v8 = vld [vmem:[%s11989_s20 + $0x390] sm:$0xf0]  ;;  %v10830_v9 = vld [vmem:[%s11989_s20 + $0x84] sm:$0xf] }
  0x5e   : > { %2030 = vmatmul.bf16.gmra.mxu2 %v12091_v14  ;;  %16476 = vst [vmem:[#allocation26_spill] sm:$0xff] %v12135_v2  ;;  %v9659_v10 = vld [vmem:[%s11989_s20 + $0x90] sm:$0xf0]  ;;  %v10046_v11 = vor.u32 %v10926_v6, %v10043_v8  ;;  %v10862_v17 = vld [vmem:[%s11989_s20 + $0x184] sm:$0xf] }
  0x5f   : > { %2119 = vmatmul.bf16.gmra.mxu3 %v12093_v15  ;;  %16477 = vst [vmem:[#allocation27_spill] sm:$0xff] %v12137_v3  ;;  %v9662_v16 = vor.u32 %v10830_v9, %v9659_v10  ;;  %v9787_v18 = vld [vmem:[%s11989_s20 + $0x190] sm:$0xf0]  ;;  %2376 = vmatpush.bf16.msrb.mxu2 %v9918_v7  ;;  %v9417_v20 = vld [vmem:[#allocation4 + $0xa0] sm:$0xf] }
  0x60   : > { %v9790_v19 = vor.u32 %v10862_v17, %v9787_v18  ;;  %2465 = vmatpush.bf16.msrb.mxu3 %v10046_v11  ;;  %v10772_v21 = vld [vmem:[#allocation4 + $0xac] sm:$0xf0]  ;;  %v10770_v22 = vld [vmem:[#allocation4 + $0xa4] sm:$0xf]  ;;  %v9419_v23 = vld [vmem:[#allocation4 + $0xb0] sm:$0xf0] }
  0x61   : > { %2198 = vmatpush.bf16.msrb.mxu0 %v9662_v16  ;;  %v9425_v28 = vld [vmem:[#allocation4 + $0xa8] sm:$0xf]  ;;  %v10773_v29 = vld [vmem:[#allocation4 + $0xb4] sm:$0xf0]  ;;  %v10771_v30 = vld [vmem:[#allocation4 + $0xac] sm:$0xf]  ;;  %v12151_v32 = vor.u32 %v10772_v21, %v9417_v20  ;;  %v12153_v33 = vor.u32 %v10770_v22, %v9419_v23 }
  0x62   : > { %2287 = vmatpush.bf16.msrb.mxu1 %v9790_v19  ;;  %v9427_v31 = vld [vmem:[#allocation4 + $0xb8] sm:$0xf0]  ;;  %v12155_v34 = vor.u32 %v10773_v29, %v9425_v28  ;;  %v9433_v36 = vld [vmem:[#allocation4 + $0xc0] sm:$0xf]  ;;  %v10776_v37 = vld [vmem:[#allocation4 + $0xcc] sm:$0xf0] }
  0x63   : > { %16478 = vst [vmem:[#allocation28_spill] sm:$0xff] %v12151_v32  ;;  %v12157_v35 = vor.u32 %v10771_v30, %v9427_v31  ;;  %v10774_v38 = vld [vmem:[#allocation4 + $0xc4] sm:$0xf]  ;;  %v9435_v39 = vld [vmem:[#allocation4 + $0xd0] sm:$0xf0]  ;;  %v12163_v44 = vor.u32 %v10776_v37, %v9433_v36 }
  0x64   : > { %16479 = vst [vmem:[#allocation29_spill] sm:$0xff] %v12153_v33  ;;  %v9441_v40 = vld [vmem:[#allocation4 + $0xc8] sm:$0xf]  ;;  %v10777_v41 = vld [vmem:[#allocation4 + $0xd4] sm:$0xf0]  ;;  %v12165_v45 = vor.u32 %v10774_v38, %v9435_v39 }
  0x65   : > { %16480 = vst [vmem:[#allocation30_spill] sm:$0xff] %v12155_v34  ;;  %v10775_v42 = vld [vmem:[#allocation4 + $0xcc] sm:$0xf]  ;;  %v9443_v43 = vld [vmem:[#allocation4 + $0xd8] sm:$0xf0]  ;;  %v12167_v46 = vor.u32 %v10777_v41, %v9441_v40 }
  0x66   : > { %16481 = vst [vmem:[#allocation31_spill] sm:$0xff] %v12157_v35  ;;  %v12169_v48 = vor.u32 %v10775_v42, %v9443_v43  ;;  %v10890_v56 = vld [vmem:[%s11989_s20 + $0x264] sm:$0xf]  ;;  %v9899_v57 = vld [vmem:[%s11989_s20 + $0x270] sm:$0xf0] }
  0x67   : > { %16482 = vst [vmem:[#allocation32_spill] sm:$0xff] %v12163_v44  ;;  %v10922_v58 = vld [vmem:[%s11989_s20 + $0x364] sm:$0xf]  ;;  %v9902_v59 = vor.u32 %v10890_v56, %v9899_v57  ;;  %v10027_v60 = vld [vmem:[%s11989_s20 + $0x370] sm:$0xf0] }
  0x68   : > { %16483 = vst [vmem:[#allocation33_spill] sm:$0xff] %v12165_v45  ;;  %v10030_v61 = vor.u32 %v10922_v58, %v10027_v60  ;;  %v9449_v62 = vld [vmem:[#allocation4 + $0xe0] sm:$0xf]  ;;  %v10780_v63 = vld [vmem:[#allocation4 + $0xec] sm:$0xf0] }
  0x69   : > { %16484 = vst [vmem:[#allocation34_spill] sm:$0xff] %v12167_v46  ;;  %2377 = vmatpush.bf16.msrb.mxu2 %v9902_v59  ;;  %v10778_v4 = vld [vmem:[#allocation4 + $0xe4] sm:$0xf]  ;;  %v9451_v5 = vld [vmem:[#allocation4 + $0xf0] sm:$0xf0]  ;;  %v12179_v10 = vor.u32 %v10780_v63, %v9449_v62 }
  0x6a   : > { %16485 = vst [vmem:[#allocation35_spill] sm:$0xff] %v12169_v48  ;;  %2466 = vmatpush.bf16.msrb.mxu3 %v10030_v61  ;;  %v9457_v6 = vld [vmem:[#allocation4 + $0xe8] sm:$0xf]  ;;  %v10781_v7 = vld [vmem:[#allocation4 + $0xf4] sm:$0xf0]  ;;  %v12181_v11 = vor.u32 %v10778_v4, %v9451_v5 }
  0x6b   : > { %v10779_v8 = vld [vmem:[#allocation4 + $0xec] sm:$0xf]  ;;  %v9459_v9 = vld [vmem:[#allocation4 + $0xf8] sm:$0xf0]  ;;  %16486 = vst [vmem:[#allocation36_spill] sm:$0xff] %v12179_v10  ;;  %v12183_v16 = vor.u32 %v10781_v7, %v9457_v6 }
  0x6c   : > { %16487 = vst [vmem:[#allocation37_spill] sm:$0xff] %v12181_v11  ;;  %v12185_v17 = vor.u32 %v10779_v8, %v9459_v9  ;;  %v9465_v18 = vld [vmem:[#allocation4 + $0x100] sm:$0xf]  ;;  %v10784_v19 = vld [vmem:[#allocation4 + $0x10c] sm:$0xf0] }
  0x6d   : > { %1857 = vmatmul.bf16.gmra.mxu0 %v12099_v24  ;;  %1946 = vmatmul.bf16.gmra.mxu1 %v12101_v25  ;;  %16488 = vst [vmem:[#allocation38_spill] sm:$0xff] %v12183_v16  ;;  %v10782_v20 = vld [vmem:[#allocation4 + $0x104] sm:$0xf]  ;;  %v9467_v21 = vld [vmem:[#allocation4 + $0x110] sm:$0xf0]  ;;  %v12191_v30 = vor.u32 %v10784_v19, %v9465_v18 }
  0x6e   : > { %2035 = vmatmul.bf16.gmra.mxu2 %v12103_v26  ;;  %16489 = vst [vmem:[#allocation39_spill] sm:$0xff] %v12185_v17  ;;  %v9473_v22 = vld [vmem:[#allocation4 + $0x108] sm:$0xf]  ;;  %v10785_v23 = vld [vmem:[#allocation4 + $0x114] sm:$0xf0]  ;;  %v12193_v36 = vor.u32 %v10782_v20, %v9467_v21 }
  0x6f   : > { %2124 = vmatmul.bf16.gmra.mxu3 %v12105_v27  ;;  %v10783_v28 = vld [vmem:[#allocation4 + $0x10c] sm:$0xf]  ;;  %v9475_v29 = vld [vmem:[#allocation4 + $0x118] sm:$0xf0]  ;;  %16490 = vst [vmem:[#allocation40_spill] sm:$0xff] %v12191_v30  ;;  %v12195_v37 = vor.u32 %v10785_v23, %v9473_v22 }
  0x70   : > { %16491 = vst [vmem:[#allocation41_spill] sm:$0xff] %v12193_v36  ;;  %v12197_v39 = vor.u32 %v10783_v28, %v9475_v29  ;;  %v10826_v56 = vld [vmem:[%s11989_s20 + $0x64] sm:$0xf]  ;;  %v9643_v57 = vld [vmem:[%s11989_s20 + $0x70] sm:$0xf0] }
  0x71   : > { %16492 = vst [vmem:[#allocation42_spill] sm:$0xff] %v12195_v37  ;;  %v10858_v58 = vld [vmem:[%s11989_s20 + $0x164] sm:$0xf]  ;;  %v9646_v60 = vor.u32 %v10826_v56, %v9643_v57  ;;  %v9771_v61 = vld [vmem:[%s11989_s20 + $0x170] sm:$0xf0] }
  0x72   : > { %16493 = vst [vmem:[#allocation43_spill] sm:$0xff] %v12197_v39  ;;  %v9774_v4 = vor.u32 %v10858_v58, %v9771_v61  ;;  %v9481_v6 = vld [vmem:[#allocation4 + $0x120] sm:$0xf]  ;;  %v10788_v7 = vld [vmem:[#allocation4 + $0x12c] sm:$0xf0] }
  0x73   : > { %2199 = vmatpush.bf16.msrb.mxu0 %v9646_v60  ;;  %v10786_v8 = vld [vmem:[#allocation4 + $0x124] sm:$0xf]  ;;  %v9483_v9 = vld [vmem:[#allocation4 + $0x130] sm:$0xf0]  ;;  %v9489_v18 = vld [vmem:[#allocation4 + $0x128] sm:$0xf]  ;;  %v12209_v23 = vor.u32 %v10788_v7, %v9481_v6 }
  0x74   : > { %2288 = vmatpush.bf16.msrb.mxu1 %v9774_v4  ;;  %v10789_v19 = vld [vmem:[#allocation4 + $0x134] sm:$0xf0]  ;;  %v10787_v20 = vld [vmem:[#allocation4 + $0x12c] sm:$0xf]  ;;  %v9491_v21 = vld [vmem:[#allocation4 + $0x138] sm:$0xf0] }
  0x75   : > { %16495 = vst [vmem:[#allocation45_spill] sm:$0xff] %v12209_v23  ;;  %v10792_v6 = vld [vmem:[#allocation4 + $0x14c] sm:$0xf0]  ;;  %v10790_v7 = vld [vmem:[#allocation4 + $0x144] sm:$0xf] }
  0x7d   : > { %1862 = vmatmul.bf16.gmra.mxu0 %v12119_v49  ;;  %1951 = vmatmul.bf16.gmra.mxu1 %v12121_v50 }
  0x7e   : > { %2040 = vmatmul.bf16.gmra.mxu2 %v12123_v54 }
  0x7f   : > { %2129 = vmatmul.bf16.gmra.mxu3 %v12125_v55 }
  0x8d   : > { %1867 = vmatmul.bf16.gmra.mxu0 %v12131_v0  ;;  %1956 = vmatmul.bf16.gmra.mxu1 %v12133_v1 }
  0x8e   : > { %2045 = vmatmul.bf16.gmra.mxu2 %v12135_v2 }
  0x8f   : > { %2134 = vmatmul.bf16.gmra.mxu3 %v12137_v3 }
  0x9d   : > { %1872 = vmatmul.bf16.gmra.mxu0 %v12151_v32  ;;  %1961 = vmatmul.bf16.gmra.mxu1 %v12153_v33 }
  0x9e   : > { %2050 = vmatmul.bf16.gmra.mxu2 %v12155_v34 }
  0x9f   : > { %2139 = vmatmul.bf16.gmra.mxu3 %v12157_v35 }
  0xad   : > { %1877 = vmatmul.bf16.gmra.mxu0 %v12163_v44  ;;  %1966 = vmatmul.bf16.gmra.mxu1 %v12165_v45 }
  0xae   : > { %2055 = vmatmul.bf16.gmra.mxu2 %v12167_v46 }
  0xaf   : > { %2144 = vmatmul.bf16.gmra.mxu3 %v12169_v48 }
  0xbd   : > { %1882 = vmatmul.bf16.gmra.mxu0 %v12179_v10  ;;  %1971 = vmatmul.bf16.gmra.mxu1 %v12181_v11 }
  0xbe   : > { %2060 = vmatmul.bf16.gmra.mxu2 %v12183_v16 }
  0xbf   : > { %2149 = vmatmul.bf16.gmra.mxu3 %v12185_v17 }
  0xca   : > { %v1848_v31 = vpop.f32.mrf.mxu0  ;;  %v1937_v38 = vpop.f32.mrf.mxu1 }
  0xcb   : > { %v1938_v40 = vadd.f32 %v1937_v38, %v1848_v31  ;;  %v12211_v38 = vor.u32 %v10786_v8, %v9483_v9  ;;  %v9499_v8 = vld [vmem:[#allocation4 + $0x150] sm:$0xf0]  ;;  %v9505_v9 = vld [vmem:[#allocation4 + $0x148] sm:$0xf] }
  0xcd   : > { %1887 = vmatmul.bf16.gmra.mxu0 %v12191_v30  ;;  %1976 = vmatmul.bf16.gmra.mxu1 %v12193_v36  ;;  %16496 = vst [vmem:[#allocation46_spill] sm:$0xff] %v12211_v38 }
  0xce   : > { %2065 = vmatmul.bf16.gmra.mxu2 %v12195_v37 }
  0xcf   : > { %2154 = vmatmul.bf16.gmra.mxu3 %v12197_v39 }
  0xd1   : > { %v2026_v41 = vpop.f32.mrf.mxu2 }
  0xd2   : > { %v2027_v42 = vadd.f32 %v2026_v41, %v1938_v40  ;;  %v2115_v43 = vpop.f32.mrf.mxu3  ;;  %v1850_v59 = vpop.f32.mrf.mxu0  ;;  %v12213_v40 = vor.u32 %v10789_v19, %v9489_v18  ;;  %v10793_v18 = vld [vmem:[#allocation4 + $0x154] sm:$0xf0]  ;;  %v10791_v19 = vld [vmem:[#allocation4 + $0x14c] sm:$0xf] }
  0xd3   : > { %v1939_v62 = vpop.f32.mrf.mxu1 }
  0xd4   : > { %v12207_v63 = vadd.f32 %v2115_v43, %v2027_v42  ;;  %v1940_v5 = vadd.f32 %v1939_v62, %v1850_v59  ;;  %16497 = vst [vmem:[#allocation47_spill] sm:$0xff] %v12213_v40  ;;  %v12215_v42 = vor.u32 %v10787_v20, %v9491_v21  ;;  %v9507_v20 = vld [vmem:[#allocation4 + $0x158] sm:$0xf0] }
  0xd6   : > { %16494 = vst [vmem:[#allocation44_spill] sm:$0xff] %v12207_v63 }
  0xd7   : > { %16498 = vst [vmem:[#allocation48_spill] sm:$0xff] %v12215_v42 }
  0xd9   : > { %v2028_v22 = vpop.f32.mrf.mxu2 }
  0xda   : > { %v2029_v28 = vadd.f32 %v2028_v22, %v1940_v5  ;;  %v2117_v29 = vpop.f32.mrf.mxu3  ;;  %v1853_v31 = vpop.f32.mrf.mxu0  ;;  %v9497_v5 = vld [vmem:[#allocation4 + $0x140] sm:$0xf] }
  0xdb   : > { %v1942_v41 = vpop.f32.mrf.mxu1  ;;  %v12225_v22 = vor.u32 %v10792_v6, %v9497_v5 }
  0xdc   : > { %v12217_v43 = vadd.f32 %v2117_v29, %v2029_v28  ;;  %v1943_v56 = vadd.f32 %v1942_v41, %v1853_v31  ;;  %v12227_v41 = vor.u32 %v10790_v7, %v9499_v8 }
  0xdd   : > { %1892 = vmatmul.bf16.gmra.mxu0 %v12209_v23  ;;  %1981 = vmatmul.bf16.gmra.mxu1 %v12211_v38  ;;  %16501 = vst [vmem:[#allocation51_spill] sm:$0xff] %v12225_v22 }
  0xde   : > { %16499 = vst [vmem:[#allocation49_spill] sm:$0xff] %v12217_v43  ;;  %2070 = vmatmul.bf16.gmra.mxu2 %v12213_v40  ;;  %v10011_v43 = vld [vmem:[%s11989_s20 + $0x350] sm:$0xf0] }
  0xdf   : > { %2159 = vmatmul.bf16.gmra.mxu3 %v12215_v42  ;;  %16502 = vst [vmem:[#allocation52_spill] sm:$0xff] %v12227_v41 }
  0xe1   : > { %v2031_v57 = vpop.f32.mrf.mxu2 }
  0xe2   : > { %v2032_v58 = vadd.f32 %v2031_v57, %v1943_v56  ;;  %v2120_v59 = vpop.f32.mrf.mxu3  ;;  %v1855_v60 = vpop.f32.mrf.mxu0  ;;  %v12229_v56 = vor.u32 %v10793_v18, %v9505_v9  ;;  %v10886_v57 = vld [vmem:[%s11989_s20 + $0x244] sm:$0xf]  ;;  %v9627_v18 = vld [vmem:[%s11989_s20 + $0x50] sm:$0xf0] }
  0xe3   : > { %v1944_v61 = vpop.f32.mrf.mxu1  ;;  %v10822_v9 = vld [vmem:[%s11989_s20 + $0x44] sm:$0xf] }
  0xe4   : > { %v12223_v62 = vadd.f32 %v2120_v59, %v2032_v58  ;;  %v1945_v4 = vadd.f32 %v1944_v61, %v1855_v60  ;;  %16503 = vst [vmem:[#allocation53_spill] sm:$0xff] %v12229_v56  ;;  %v9883_v58 = vld [vmem:[%s11989_s20 + $0x250] sm:$0xf0]  ;;  %v12233_v60 = vor.u32 %v10791_v19, %v9507_v20  ;;  %v9630_v20 = vor.u32 %v10822_v9, %v9627_v18 }
  0xe5   : > { %v9886_v61 = vor.u32 %v10886_v57, %v9883_v58  ;;  %v9513_v57 = vld [vmem:[#allocation4 + $0x160] sm:$0xf]  ;;  %v10796_v58 = vld [vmem:[#allocation4 + $0x16c] sm:$0xf0] }
  0xe6   : > { %16500 = vst [vmem:[#allocation50_spill] sm:$0xff] %v12223_v62  ;;  %v10918_v62 = vld [vmem:[%s11989_s20 + $0x344] sm:$0xf]  ;;  %2200 = vmatpush.bf16.msrb.mxu0 %v9630_v20 }
  0xe7   : > { %16504 = vst [vmem:[#allocation54_spill] sm:$0xff] %v12233_v60  ;;  %v10014_v5 = vor.u32 %v10918_v62, %v10011_v43  ;;  %2378 = vmatpush.bf16.msrb.mxu2 %v9886_v61  ;;  %v9515_v61 = vld [vmem:[#allocation4 + $0x170] sm:$0xf0] }
  0xe9   : > { %v2033_v21 = vpop.f32.mrf.mxu2  ;;  %2467 = vmatpush.bf16.msrb.mxu3 %v10014_v5  ;;  %v9521_v5 = vld [vmem:[#allocation4 + $0x168] sm:$0xf] }
  0xea   : > { %v2034_v28 = vadd.f32 %v2033_v21, %v1945_v4  ;;  %v2122_v29 = vpop.f32.mrf.mxu3  ;;  %v1858_v31 = vpop.f32.mrf.mxu0  ;;  %v10854_v21 = vld [vmem:[%s11989_s20 + $0x144] sm:$0xf] }
  0xeb   : > { %v1947_v59 = vpop.f32.mrf.mxu1 }
  0xec   : > { %v12237_v63 = vadd.f32 %v2122_v29, %v2034_v28  ;;  %v1948_v4 = vadd.f32 %v1947_v59, %v1858_v31  ;;  %v9755_v28 = vld [vmem:[%s11989_s20 + $0x150] sm:$0xf0]  ;;  %v10794_v59 = vld [vmem:[#allocation4 + $0x164] sm:$0xf] }
  0xed   : > { %1897 = vmatmul.bf16.gmra.mxu0 %v12225_v22  ;;  %1986 = vmatmul.bf16.gmra.mxu1 %v12227_v41  ;;  %v9758_v29 = vor.u32 %v10854_v21, %v9755_v28 }
  0xee   : > { %16505 = vst [vmem:[#allocation55_spill] sm:$0xff] %v12237_v63  ;;  %2075 = vmatmul.bf16.gmra.mxu2 %v12229_v56  ;;  %v9523_v63 = vld [vmem:[#allocation4 + $0x178] sm:$0xf0]  ;;  %v12249_v56 = vor.u32 %v10796_v58, %v9513_v57 }
  0xef   : > { %2164 = vmatmul.bf16.gmra.mxu3 %v12233_v60  ;;  %2289 = vmatpush.bf16.msrb.mxu1 %v9758_v29 }
  0xf0   : > { %16507 = vst [vmem:[#allocation57_spill] sm:$0xff] %v12249_v56 }
  0xf1   : > { %v2036_v6 = vpop.f32.mrf.mxu2 }
  0xf2   : > { %v2037_v7 = vadd.f32 %v2036_v6, %v1948_v4  ;;  %v2125_v8 = vpop.f32.mrf.mxu3  ;;  %v1860_v19 = vpop.f32.mrf.mxu0  ;;  %v10797_v4 = vld [vmem:[#allocation4 + $0x174] sm:$0xf0]  ;;  %v10795_v6 = vld [vmem:[#allocation4 + $0x16c] sm:$0xf] }
  0xf3   : > { %v1949_v43 = vpop.f32.mrf.mxu1  ;;  %v12255_v20 = vor.u32 %v10795_v6, %v9523_v63  ;;  %v10801_v6 = vld [vmem:[#allocation4 + $0x194] sm:$0xf0] }
  0xf4   : > { %v12247_v62 = vadd.f32 %v2125_v8, %v2037_v7  ;;  %v1950_v31 = vadd.f32 %v1949_v43, %v1860_v19  ;;  %v12251_v7 = vor.u32 %v10794_v59, %v9515_v61  ;;  %v12253_v8 = vor.u32 %v10797_v4, %v9521_v5  ;;  %v9529_v59 = vld [vmem:[#allocation4 + $0x180] sm:$0xf]  ;;  %v10798_v61 = vld [vmem:[#allocation4 + $0x184] sm:$0xf]  ;;  %v9531_v5 = vld [vmem:[#allocation4 + $0x190] sm:$0xf0] }
  0xf5   : > { %16510 = vst [vmem:[#allocation60_spill] sm:$0xff] %v12255_v20  ;;  %v9537_v4 = vld [vmem:[#allocation4 + $0x188] sm:$0xf] }
  0xf6   : > { %16506 = vst [vmem:[#allocation56_spill] sm:$0xff] %v12247_v62 }
  0xf7   : > { %16508 = vst [vmem:[#allocation58_spill] sm:$0xff] %v12251_v7 }
  0xf8   : > { %16509 = vst [vmem:[#allocation59_spill] sm:$0xff] %v12253_v8 }
  0xf9   : > { %v2038_v60 = vpop.f32.mrf.mxu2 }
  0xfa   : > { %v2039_v9 = vadd.f32 %v2038_v60, %v1950_v31  ;;  %v2127_v18 = vpop.f32.mrf.mxu3  ;;  %v1863_v41 = vpop.f32.mrf.mxu0 }
  0xfb   : > { %v1952_v19 = vpop.f32.mrf.mxu1 }
  0xfc   : > { %v12257_v21 = vadd.f32 %v2127_v18, %v2039_v9  ;;  %v1953_v28 = vadd.f32 %v1952_v19, %v1863_v41  ;;  %v10800_v41 = vld [vmem:[#allocation4 + $0x18c] sm:$0xf0]  ;;  %v10799_v9 = vld [vmem:[#allocation4 + $0x18c] sm:$0xf]  ;;  %v9539_v18 = vld [vmem:[#allocation4 + $0x198] sm:$0xf0] }
  0xfd   : > { %1902 = vmatmul.bf16.gmra.mxu0 %v12249_v56  ;;  %1991 = vmatmul.bf16.gmra.mxu1 %v12251_v7  ;;  %v10914_v7 = vld [vmem:[%s11989_s20 + $0x324] sm:$0xf]  ;;  %v9995_v56 = vld [vmem:[%s11989_s20 + $0x330] sm:$0xf0] }
  0xfe   : > { %16511 = vst [vmem:[#allocation61_spill] sm:$0xff] %v12257_v21  ;;  %2080 = vmatmul.bf16.gmra.mxu2 %v12253_v8 }
  0xff   : > { %2169 = vmatmul.bf16.gmra.mxu3 %v12255_v20  ;;  %v12273_v20 = vor.u32 %v10799_v9, %v9539_v18  ;;  %v9739_v9 = vld [vmem:[%s11989_s20 + $0x130] sm:$0xf0] }
 0x101   : > { %v2041_v60 = vpop.f32.mrf.mxu2  ;;  %16516 = vst [vmem:[#allocation66_spill] sm:$0xff] %v12273_v20 }
 0x102   : > { %v2042_v43 = vadd.f32 %v2041_v60, %v1953_v28  ;;  %v2130_v29 = vpop.f32.mrf.mxu3  ;;  %v1865_v31 = vpop.f32.mrf.mxu0  ;;  %v12265_v28 = vor.u32 %v10800_v41, %v9529_v59  ;;  %v9998_v59 = vor.u32 %v10914_v7, %v9995_v56 }
 0x103   : > { %v1954_v57 = vpop.f32.mrf.mxu1 }
 0x104   : > { %v12263_v58 = vadd.f32 %v2130_v29, %v2042_v43  ;;  %v1955_v63 = vadd.f32 %v1954_v57, %v1865_v31  ;;  %16513 = vst [vmem:[#allocation63_spill] sm:$0xff] %v12265_v28  ;;  %v12267_v29 = vor.u32 %v10798_v61, %v9531_v5  ;;  %v12269_v31 = vor.u32 %v10801_v6, %v9537_v4  ;;  %v10882_v57 = vld [vmem:[%s11989_s20 + $0x224] sm:$0xf] }
 0x105   : > { %2468 = vmatpush.bf16.msrb.mxu3 %v9998_v59  ;;  %v10818_v5 = vld [vmem:[%s11989_s20 + $0x24] sm:$0xf]  ;;  %v9553_v59 = vld [vmem:[#allocation4 + $0x1a8] sm:$0xf] }
 0x106   : > { %16512 = vst [vmem:[#allocation62_spill] sm:$0xff] %v12263_v58  ;;  %v9867_v58 = vld [vmem:[%s11989_s20 + $0x230] sm:$0xf0] }
 0x107   : > { %16514 = vst [vmem:[#allocation64_spill] sm:$0xff] %v12267_v29  ;;  %v9870_v8 = vor.u32 %v10882_v57, %v9867_v58  ;;  %v9547_v57 = vld [vmem:[#allocation4 + $0x1b0] sm:$0xf0] }
 0x108   : > { %16515 = vst [vmem:[#allocation65_spill] sm:$0xff] %v12269_v31 }
 0x109   : > { %v2043_v19 = vpop.f32.mrf.mxu2  ;;  %2379 = vmatpush.bf16.msrb.mxu2 %v9870_v8  ;;  %v9545_v8 = vld [vmem:[#allocation4 + $0x1a0] sm:$0xf] }
 0x10a   : > { %v2044_v60 = vadd.f32 %v2043_v19, %v1955_v63  ;;  %v2132_v21 = vpop.f32.mrf.mxu3  ;;  %v1868_v43 = vpop.f32.mrf.mxu0 }
 0x10b   : > { %v1957_v62 = vpop.f32.mrf.mxu1 }
 0x10c   : > { %v12277_v22 = vadd.f32 %v2132_v21, %v2044_v60  ;;  %v1958_v63 = vadd.f32 %v1957_v62, %v1868_v43  ;;  %v9611_v21 = vld [vmem:[%s11989_s20 + $0x30] sm:$0xf0]  ;;  %v10850_v62 = vld [vmem:[%s11989_s20 + $0x124] sm:$0xf]  ;;  %v10804_v60 = vld [vmem:[#allocation4 + $0x1ac] sm:$0xf0] }
 0x10d   : > { %1907 = vmatmul.bf16.gmra.mxu0 %v12265_v28  ;;  %1996 = vmatmul.bf16.gmra.mxu1 %v12267_v29  ;;  %v9614_v6 = vor.u32 %v10818_v5, %v9611_v21  ;;  %v9742_v56 = vor.u32 %v10850_v62, %v9739_v9  ;;  %v10802_v43 = vld [vmem:[#allocation4 + $0x1a4] sm:$0xf] }
 0x10e   : > { %16517 = vst [vmem:[#allocation67_spill] sm:$0xff] %v12277_v22  ;;  %2085 = vmatmul.bf16.gmra.mxu2 %v12269_v31  ;;  %v9555_v22 = vld [vmem:[#allocation4 + $0x1b8] sm:$0xf0]  ;;  %v12289_v31 = vor.u32 %v10804_v60, %v9545_v8  ;;  %v10814_v28 = vld [vmem:[%s11989_s20 + $0x4] sm:$0xf] }
 0x10f   : > { %2174 = vmatmul.bf16.gmra.mxu3 %v12273_v20  ;;  %2201 = vmatpush.bf16.msrb.mxu0 %v9614_v6 }
 0x110   : > { %2290 = vmatpush.bf16.msrb.mxu1 %v9742_v56  ;;  %16519 = vst [vmem:[#allocation69_spill] sm:$0xff] %v12289_v31 }
 0x111   : > { %v2046_v58 = vpop.f32.mrf.mxu2 }
 0x112   : > { %v2047_v41 = vadd.f32 %v2046_v58, %v1958_v63  ;;  %v2135_v61 = vpop.f32.mrf.mxu3  ;;  %v1870_v4 = vpop.f32.mrf.mxu0  ;;  %v10805_v63 = vld [vmem:[#allocation4 + $0x1b4] sm:$0xf0]  ;;  %v10803_v58 = vld [vmem:[#allocation4 + $0x1ac] sm:$0xf] }
 0x113   : > { %v1959_v18 = vpop.f32.mrf.mxu1  ;;  %v12295_v6 = vor.u32 %v10803_v58, %v9555_v22  ;;  %v10809_v58 = vld [vmem:[#allocation4 + $0x1d4] sm:$0xf0] }
 0x114   : > { %v12287_v19 = vadd.f32 %v2135_v61, %v2047_v41  ;;  %v1960_v7 = vadd.f32 %v1959_v18, %v1870_v4  ;;  %v12291_v41 = vor.u32 %v10802_v43, %v9547_v57  ;;  %v12293_v61 = vor.u32 %v10805_v63, %v9553_v59  ;;  %v9561_v43 = vld [vmem:[#allocation4 + $0x1c0] sm:$0xf]  ;;  %v10806_v57 = vld [vmem:[#allocation4 + $0x1c4] sm:$0xf]  ;;  %v9563_v59 = vld [vmem:[#allocation4 + $0x1d0] sm:$0xf0] }
 0x115   : > { %16522 = vst [vmem:[#allocation72_spill] sm:$0xff] %v12295_v6  ;;  %v9569_v63 = vld [vmem:[#allocation4 + $0x1c8] sm:$0xf] }
 0x116   : > { %16518 = vst [vmem:[#allocation68_spill] sm:$0xff] %v12287_v19  ;;  %v10910_v19 = vld [vmem:[%s11989_s20 + $0x304] sm:$0xf] }
 0x117   : > { %16520 = vst [vmem:[#allocation70_spill] sm:$0xff] %v12291_v41 }
 0x118   : > { %16521 = vst [vmem:[#allocation71_spill] sm:$0xff] %v12293_v61 }
 0x119   : > { %v2048_v20 = vpop.f32.mrf.mxu2 }
 0x11a   : > { %v2049_v5 = vadd.f32 %v2048_v20, %v1960_v7  ;;  %v2137_v21 = vpop.f32.mrf.mxu3  ;;  %v1873_v29 = vpop.f32.mrf.mxu0 }
 0x11b   : > { %v1962_v4 = vpop.f32.mrf.mxu1 }
 0x11c   : > { %v12297_v62 = vadd.f32 %v2137_v21, %v2049_v5  ;;  %v1963_v9 = vadd.f32 %v1962_v4, %v1873_v29  ;;  %v10808_v29 = vld [vmem:[#allocation4 + $0x1cc] sm:$0xf0]  ;;  %v10807_v5 = vld [vmem:[#allocation4 + $0x1cc] sm:$0xf]  ;;  %v9571_v21 = vld [vmem:[#allocation4 + $0x1d8] sm:$0xf0] }
 0x11d   : > { %1912 = vmatmul.bf16.gmra.mxu0 %v12289_v31  ;;  %2001 = vmatmul.bf16.gmra.mxu1 %v12291_v41  ;;  %v12315_v41 = vor.u32 %v10807_v5, %v9571_v21  ;;  %v10810_v21 = vld [vmem:[#allocation4 + $0x1e4] sm:$0xf] }
 0x11e   : > { %16523 = vst [vmem:[#allocation73_spill] sm:$0xff] %v12297_v62  ;;  %2090 = vmatmul.bf16.gmra.mxu2 %v12293_v61  ;;  %v9851_v62 = vld [vmem:[%s11989_s20 + $0x210] sm:$0xf0] }
 0x11f   : > { %2179 = vmatmul.bf16.gmra.mxu3 %v12295_v6  ;;  %v9979_v6 = vld [vmem:[%s11989_s20 + $0x310] sm:$0xf0]  ;;  %16528 = vst [vmem:[#allocation78_spill] sm:$0xff] %v12315_v41 }
 0x120   : > { %v9982_v40 = vor.u32 %v10910_v19, %v9979_v6 }
 0x121   : > { %v2051_v20 = vpop.f32.mrf.mxu2 }
 0x122   : > { %v2052_v18 = vadd.f32 %v2051_v20, %v1963_v9  ;;  %v2140_v56 = vpop.f32.mrf.mxu3  ;;  %v1875_v7 = vpop.f32.mrf.mxu0  ;;  %v12305_v9 = vor.u32 %v10808_v29, %v9561_v43  ;;  %v10878_v20 = vld [vmem:[%s11989_s20 + $0x204] sm:$0xf]  ;;  %v9595_v43 = vld [vmem:[%s11989_s20 + $0x10] sm:$0xf0]  ;;  %2469 = vmatpush.bf16.msrb.mxu3 %v9982_v40 }
 0x123   : > { %v1964_v8 = vpop.f32.mrf.mxu1  ;;  %v9854_v31 = vor.u32 %v10878_v20, %v9851_v62  ;;  %v9579_v20 = vld [vmem:[#allocation4 + $0x1f0] sm:$0xf0] }
 0x124   : > { %v12303_v22 = vadd.f32 %v2140_v56, %v2052_v18  ;;  %v1965_v60 = vadd.f32 %v1964_v8, %v1875_v7  ;;  %16525 = vst [vmem:[#allocation75_spill] sm:$0xff] %v12305_v9  ;;  %v12309_v8 = vor.u32 %v10806_v57, %v9563_v59  ;;  %v9598_v57 = vor.u32 %v10814_v28, %v9595_v43  ;;  %v10812_v28 = vld [vmem:[#allocation4 + $0x1ec] sm:$0xf0]  ;;  %v9587_v43 = vld [vmem:[#allocation4 + $0x1f8] sm:$0xf0] }
 0x125   : > { %2380 = vmatpush.bf16.msrb.mxu2 %v9854_v31  ;;  %v9577_v31 = vld [vmem:[#allocation4 + $0x1e0] sm:$0xf] }
 0x126   : > { %16524 = vst [vmem:[#allocation74_spill] sm:$0xff] %v12303_v22  ;;  %v12311_v22 = vor.u32 %v10809_v58, %v9569_v63  ;;  %2202 = vmatpush.bf16.msrb.mxu0 %v9598_v57 }
 0x127   : > { %16526 = vst [vmem:[#allocation76_spill] sm:$0xff] %v12309_v8 }
 0x128   : > { %16527 = vst [vmem:[#allocation77_spill] sm:$0xff] %v12311_v22 }
 0x129   : > { %v2053_v4 = vpop.f32.mrf.mxu2 }
 0x12a   : > { %v2054_v18 = vadd.f32 %v2053_v4, %v1965_v60  ;;  %v2142_v56 = vpop.f32.mrf.mxu3  ;;  %v1878_v7 = vpop.f32.mrf.mxu0  ;;  %v10846_v60 = vld [vmem:[%s11989_s20 + $0x104] sm:$0xf]  ;;  %v9723_v4 = vld [vmem:[%s11989_s20 + $0x110] sm:$0xf0] }
 0x12b   : > { %v1967_v61 = vpop.f32.mrf.mxu1  ;;  %v9726_v59 = vor.u32 %v10846_v60, %v9723_v4  ;;  %v12329_v4 = vor.u32 %v10812_v28, %v9577_v31 }
 0x12c   : > { %v12319_v29 = vadd.f32 %v2142_v56, %v2054_v18  ;;  %v1968_v42 = vadd.f32 %v1967_v61, %v1878_v7  ;;  %v9585_v18 = vld [vmem:[#allocation4 + $0x1e8] sm:$0xf]  ;;  %v10813_v56 = vld [vmem:[#allocation4 + $0x1f4] sm:$0xf0]  ;;  %v10811_v7 = vld [vmem:[#allocation4 + $0x1ec] sm:$0xf] }
 0x12d   : > { %1917 = vmatmul.bf16.gmra.mxu0 %v12305_v9  ;;  %2006 = vmatmul.bf16.gmra.mxu1 %v12309_v8 }
 0x12e   : > { %16529 = vst [vmem:[#allocation79_spill] sm:$0xff] %v12319_v29  ;;  %2095 = vmatmul.bf16.gmra.mxu2 %v12311_v22  ;;  %2291 = vmatpush.bf16.msrb.mxu1 %v9726_v59  ;;  %v12331_v59 = vor.u32 %v10810_v21, %v9579_v20  ;;  %v10941_v29 = vld [vmem:[%s11989_s20 + $0x3f4] sm:$0xf0] }
 0x12f   : > { %2184 = vmatmul.bf16.gmra.mxu3 %v12315_v41 }
 0x131   : > { %v2056_v62 = vpop.f32.mrf.mxu2 }
 0x132   : > { %v2057_v63 = vadd.f32 %v2056_v62, %v1968_v42  ;;  %v2145_v61 = vpop.f32.mrf.mxu3  ;;  %v1880_v19 = vpop.f32.mrf.mxu0  ;;  %v12333_v62 = vor.u32 %v10813_v56, %v9585_v18 }
 0x133   : > { %v1969_v6 = vpop.f32.mrf.mxu1 }
 0x134   : > { %v12327_v58 = vadd.f32 %v2145_v61, %v2057_v63  ;;  %v1970_v5 = vadd.f32 %v1969_v6, %v1880_v19  ;;  %16531 = vst [vmem:[#allocation81_spill] sm:$0xff] %v12333_v62  ;;  %v12335_v61 = vor.u32 %v10811_v7, %v9587_v43 }
 0x136   : > { %16530 = vst [vmem:[#allocation80_spill] sm:$0xff] %v12327_v58  ;;  %v10097_v58 = vld [vmem:[%s11989_s20 + $0x3e8] sm:$0xf] }
 0x137   : > { %16532 = vst [vmem:[#allocation82_spill] sm:$0xff] %v12335_v61 }
 0x139   : > { %v2058_v60 = vpop.f32.mrf.mxu2 }
 0x13a   : > { %v2059_v40 = vadd.f32 %v2058_v60, %v1970_v5  ;;  %v2147_v57 = vpop.f32.mrf.mxu3  ;;  %v1883_v42 = vpop.f32.mrf.mxu0 }
 0x13b   : > { %v1972_v63 = vpop.f32.mrf.mxu1 }
 0x13c   : > { %v12337_v19 = vadd.f32 %v2147_v57, %v2059_v40  ;;  %v1973_v6 = vadd.f32 %v1972_v63, %v1883_v42  ;;  %v9969_v57 = vld [vmem:[%s11989_s20 + $0x2e8] sm:$0xf]  ;;  %v10909_v42 = vld [vmem:[%s11989_s20 + $0x2f4] sm:$0xf0] }
 0x13d   : > { %1922 = vmatmul.bf16.gmra.mxu0 %v12329_v4  ;;  %2011 = vmatmul.bf16.gmra.mxu1 %v12331_v59 }
 0x13e   : > { %16533 = vst [vmem:[#allocation83_spill] sm:$0xff] %v12337_v19  ;;  %2100 = vmatmul.bf16.gmra.mxu2 %v12333_v62  ;;  %v9970_v19 = vor.u32 %v10909_v42, %v9969_v57 }
 0x13f   : > { %2189 = vmatmul.bf16.gmra.mxu3 %v12335_v61 }
 0x140   : > { %2729 = vmatpush.bf16.msra.mxu2 %v9970_v19 }
 0x141   : > { %v2061_v5 = vpop.f32.mrf.mxu2 }
 0x142   : > { %v2062_v31 = vadd.f32 %v2061_v5, %v1973_v6  ;;  %v2150_v28 = vpop.f32.mrf.mxu3  ;;  %v1885_v21 = vpop.f32.mrf.mxu0  ;;  %v10098_v5 = vor.u32 %v10941_v29, %v10097_v58 }
 0x143   : > { %v1974_v20 = vpop.f32.mrf.mxu1 }
 0x144   : > { %v12343_v18 = vadd.f32 %v2150_v28, %v2062_v31  ;;  %v1975_v56 = vadd.f32 %v1974_v20, %v1885_v21  ;;  %2818 = vmatpush.bf16.msra.mxu3 %v10098_v5  ;;  %v9713_v20 = vld [vmem:[%s11989_s20 + $0xe8] sm:$0xf] }
 0x146   : > { %16534 = vst [vmem:[#allocation84_spill] sm:$0xff] %v12343_v18 }
 0x149   : > { %v2063_v7 = vpop.f32.mrf.mxu2 }
 0x14a   : > { %v2064_v43 = vadd.f32 %v2063_v7, %v1975_v56  ;;  %v2152_v60 = vpop.f32.mrf.mxu3  ;;  %v1888_v40 = vpop.f32.mrf.mxu0  ;;  %v10845_v56 = vld [vmem:[%s11989_s20 + $0xf4] sm:$0xf0] }
 0x14b   : > { %v1977_v63 = vpop.f32.mrf.mxu1 }
 0x14c   : > { %v12349_v61 = vadd.f32 %v2152_v60, %v2064_v43  ;;  %v1978_v6 = vadd.f32 %v1977_v63, %v1888_v40  ;;  %v9714_v43 = vor.u32 %v10845_v56, %v9713_v20  ;;  %v9841_v60 = vld [vmem:[%s11989_s20 + $0x1e8] sm:$0xf]  ;;  %v10877_v40 = vld [vmem:[%s11989_s20 + $0x1f4] sm:$0xf0] }
 0x14d   : > { %2203 = vmatmul.bf16.vlgmr.msrb.gmra.mxu0 %v12065_v47  ;;  %2292 = vmatmul.bf16.vlgmr.msrb.gmra.mxu1 %v12069_v51  ;;  %v9842_v29 = vor.u32 %v10877_v40, %v9841_v60 }
 0x14e   : > { %16535 = vst [vmem:[#allocation85_spill] sm:$0xff] %v12349_v61  ;;  %2381 = vmatmul.bf16.vlgmr.msrb.gmra.mxu2 %v12071_v52  ;;  %2551 = vmatpush.bf16.msra.mxu0 %v9714_v43 }
 0x14f   : > { %2470 = vmatmul.bf16.vlgmr.msrb.gmra.mxu3 %v12073_v53  ;;  %2640 = vmatpush.bf16.msra.mxu1 %v9842_v29  ;;  %v9953_v29 = vld [vmem:[%s11989_s20 + $0x2c8] sm:$0xf] }
 0x151   : > { %v2066_v31 = vpop.f32.mrf.mxu2 }
 0x152   : > { %v2067_v28 = vadd.f32 %v2066_v31, %v1978_v6  ;;  %v2155_v21 = vpop.f32.mrf.mxu3  ;;  %v1890_v7 = vpop.f32.mrf.mxu0 }
 0x153   : > { %v1979_v57 = vpop.f32.mrf.mxu1 }
 0x154   : > { %v12359_v42 = vadd.f32 %v2155_v21, %v2067_v28  ;;  %v1980_v58 = vadd.f32 %v1979_v57, %v1890_v7 }
 0x156   : > { %16536 = vst [vmem:[#allocation86_spill] sm:$0xff] %v12359_v42 }
 0x159   : > { %v2068_v19 = vpop.f32.mrf.mxu2 }
 0x15a   : > { %v2069_v63 = vadd.f32 %v2068_v19, %v1980_v58  ;;  %v2157_v61 = vpop.f32.mrf.mxu3  ;;  %v1893_v5 = vpop.f32.mrf.mxu0  ;;  %v10905_v58 = vld [vmem:[%s11989_s20 + $0x2d4] sm:$0xf0] }
 0x15b   : > { %v1982_v18 = vpop.f32.mrf.mxu1 }
 0x15c   : > { %v12361_v6 = vadd.f32 %v2157_v61, %v2069_v63  ;;  %v1983_v31 = vadd.f32 %v1982_v18, %v1893_v5  ;;  %v9954_v63 = vor.u32 %v10905_v58, %v9953_v29  ;;  %v10081_v5 = vld [vmem:[%s11989_s20 + $0x3c8] sm:$0xf] }
 0x15d   : > { %2208 = vmatmul.bf16.gmra.mxu0 %v12087_v12  ;;  %2297 = vmatmul.bf16.gmra.mxu1 %v12089_v13 }
 0x15e   : > { %16537 = vst [vmem:[#allocation87_spill] sm:$0xff] %v12361_v6  ;;  %2386 = vmatmul.bf16.gmra.mxu2 %v12091_v14  ;;  %v10937_v6 = vld [vmem:[%s11989_s20 + $0x3d4] sm:$0xf0] }
 0x15f   : > { %2475 = vmatmul.bf16.gmra.mxu3 %v12093_v15  ;;  %2730 = vmatpush.bf16.msra.mxu2 %v9954_v63 }
 0x161   : > { %v2071_v28 = vpop.f32.mrf.mxu2 }
 0x162   : > { %v2072_v21 = vadd.f32 %v2071_v28, %v1983_v31  ;;  %v2160_v20 = vpop.f32.mrf.mxu3  ;;  %v1895_v56 = vpop.f32.mrf.mxu0  ;;  %v10082_v28 = vor.u32 %v10937_v6, %v10081_v5 }
 0x163   : > { %v1984_v7 = vpop.f32.mrf.mxu1 }
 0x164   : > { %v12367_v61 = vadd.f32 %v2160_v20, %v2072_v21  ;;  %v1985_v18 = vadd.f32 %v1984_v7, %v1895_v56  ;;  %2819 = vmatpush.bf16.msra.mxu3 %v10082_v28  ;;  %v9697_v7 = vld [vmem:[%s11989_s20 + $0xc8] sm:$0xf] }
 0x166   : > { %16538 = vst [vmem:[#allocation88_spill] sm:$0xff] %v12367_v61 }
 0x169   : > { %v2073_v43 = vpop.f32.mrf.mxu2 }
 0x16a   : > { %v2074_v60 = vadd.f32 %v2073_v43, %v1985_v18  ;;  %v2162_v40 = vpop.f32.mrf.mxu3  ;;  %v1898_v57 = vpop.f32.mrf.mxu0  ;;  %v10841_v18 = vld [vmem:[%s11989_s20 + $0xd4] sm:$0xf0] }
 0x16b   : > { %v1987_v19 = vpop.f32.mrf.mxu1 }
 0x16c   : > { %v12373_v42 = vadd.f32 %v2162_v40, %v2074_v60  ;;  %v1988_v31 = vadd.f32 %v1987_v19, %v1898_v57  ;;  %v9698_v60 = vor.u32 %v10841_v18, %v9697_v7  ;;  %v9825_v40 = vld [vmem:[%s11989_s20 + $0x1c8] sm:$0xf]  ;;  %v10873_v57 = vld [vmem:[%s11989_s20 + $0x1d4] sm:$0xf0] }
 0x16d   : > { %2213 = vmatmul.bf16.gmra.mxu0 %v12099_v24  ;;  %2302 = vmatmul.bf16.gmra.mxu1 %v12101_v25  ;;  %v9826_v6 = vor.u32 %v10873_v57, %v9825_v40 }
 0x16e   : > { %16539 = vst [vmem:[#allocation89_spill] sm:$0xff] %v12373_v42  ;;  %2391 = vmatmul.bf16.gmra.mxu2 %v12103_v26  ;;  %2552 = vmatpush.bf16.msra.mxu0 %v9698_v60 }
 0x16f   : > { %2480 = vmatmul.bf16.gmra.mxu3 %v12105_v27  ;;  %2641 = vmatpush.bf16.msra.mxu1 %v9826_v6  ;;  %v9937_v6 = vld [vmem:[%s11989_s20 + $0x2a8] sm:$0xf] }
 0x171   : > { %v2076_v21 = vpop.f32.mrf.mxu2 }
 0x172   : > { %v2077_v20 = vadd.f32 %v2076_v21, %v1988_v31  ;;  %v2165_v56 = vpop.f32.mrf.mxu3  ;;  %v1900_v43 = vpop.f32.mrf.mxu0 }
 0x173   : > { %v1989_v29 = vpop.f32.mrf.mxu1 }
 0x174   : > { %v12383_v58 = vadd.f32 %v2165_v56, %v2077_v20  ;;  %v1990_v19 = vadd.f32 %v1989_v29, %v1900_v43 }
 0x176   : > { %16540 = vst [vmem:[#allocation90_spill] sm:$0xff] %v12383_v58 }
 0x179   : > { %v2078_v63 = vpop.f32.mrf.mxu2 }
 0x17a   : > { %v2079_v5 = vadd.f32 %v2078_v63, %v1990_v19  ;;  %v2167_v42 = vpop.f32.mrf.mxu3  ;;  %v1903_v28 = vpop.f32.mrf.mxu0  ;;  %v10901_v19 = vld [vmem:[%s11989_s20 + $0x2b4] sm:$0xf0] }
 0x17b   : > { %v1992_v61 = vpop.f32.mrf.mxu1 }
 0x17c   : > { %v12385_v31 = vadd.f32 %v2167_v42, %v2079_v5  ;;  %v1993_v21 = vadd.f32 %v1992_v61, %v1903_v28  ;;  %v9938_v5 = vor.u32 %v10901_v19, %v9937_v6  ;;  %v10065_v28 = vld [vmem:[%s11989_s20 + $0x3a8] sm:$0xf] }
 0x17d   : > { %2218 = vmatmul.bf16.gmra.mxu0 %v12119_v49  ;;  %2307 = vmatmul.bf16.gmra.mxu1 %v12121_v50 }
 0x17e   : > { %16541 = vst [vmem:[#allocation91_spill] sm:$0xff] %v12385_v31  ;;  %2396 = vmatmul.bf16.gmra.mxu2 %v12123_v54  ;;  %v10933_v31 = vld [vmem:[%s11989_s20 + $0x3b4] sm:$0xf0] }
 0x17f   : > { %2485 = vmatmul.bf16.gmra.mxu3 %v12125_v55  ;;  %2731 = vmatpush.bf16.msra.mxu2 %v9938_v5 }
 0x181   : > { %v2081_v20 = vpop.f32.mrf.mxu2 }
 0x182   : > { %v2082_v56 = vadd.f32 %v2081_v20, %v1993_v21  ;;  %v2170_v7 = vpop.f32.mrf.mxu3  ;;  %v1905_v18 = vpop.f32.mrf.mxu0  ;;  %v10066_v20 = vor.u32 %v10933_v31, %v10065_v28 }
 0x183   : > { %v1994_v43 = vpop.f32.mrf.mxu1 }
 0x184   : > { %v12391_v42 = vadd.f32 %v2170_v7, %v2082_v56  ;;  %v1995_v61 = vadd.f32 %v1994_v43, %v1905_v18  ;;  %2820 = vmatpush.bf16.msra.mxu3 %v10066_v20  ;;  %v9681_v43 = vld [vmem:[%s11989_s20 + $0xa8] sm:$0xf] }
 0x186   : > { %16542 = vst [vmem:[#allocation92_spill] sm:$0xff] %v12391_v42 }
 0x189   : > { %v2083_v60 = vpop.f32.mrf.mxu2 }
 0x18a   : > { %v2084_v40 = vadd.f32 %v2083_v60, %v1995_v61  ;;  %v2172_v57 = vpop.f32.mrf.mxu3  ;;  %v1908_v29 = vpop.f32.mrf.mxu0  ;;  %v10837_v61 = vld [vmem:[%s11989_s20 + $0xb4] sm:$0xf0] }
 0x18b   : > { %v1997_v63 = vpop.f32.mrf.mxu1 }
 0x18c   : > { %v12397_v58 = vadd.f32 %v2172_v57, %v2084_v40  ;;  %v1998_v21 = vadd.f32 %v1997_v63, %v1908_v29  ;;  %v9682_v40 = vor.u32 %v10837_v61, %v9681_v43  ;;  %v9809_v57 = vld [vmem:[%s11989_s20 + $0x1a8] sm:$0xf]  ;;  %v10869_v29 = vld [vmem:[%s11989_s20 + $0x1b4] sm:$0xf0] }
 0x18d   : > { %2223 = vmatmul.bf16.gmra.mxu0 %v12131_v0  ;;  %2312 = vmatmul.bf16.gmra.mxu1 %v12133_v1  ;;  %v9810_v31 = vor.u32 %v10869_v29, %v9809_v57 }
 0x18e   : > { %16543 = vst [vmem:[#allocation93_spill] sm:$0xff] %v12397_v58  ;;  %2401 = vmatmul.bf16.gmra.mxu2 %v12135_v2  ;;  %2553 = vmatpush.bf16.msra.mxu0 %v9682_v40 }
 0x18f   : > { %2490 = vmatmul.bf16.gmra.mxu3 %v12137_v3  ;;  %2642 = vmatpush.bf16.msra.mxu1 %v9810_v31  ;;  %v9921_v31 = vld [vmem:[%s11989_s20 + $0x288] sm:$0xf] }
 0x191   : > { %v2086_v56 = vpop.f32.mrf.mxu2 }
 0x192   : > { %v2087_v7 = vadd.f32 %v2086_v56, %v1998_v21  ;;  %v2175_v18 = vpop.f32.mrf.mxu3  ;;  %v1910_v60 = vpop.f32.mrf.mxu0 }
 0x193   : > { %v1999_v6 = vpop.f32.mrf.mxu1 }
 0x194   : > { %v12407_v19 = vadd.f32 %v2175_v18, %v2087_v7  ;;  %v2000_v63 = vadd.f32 %v1999_v6, %v1910_v60 }
 0x196   : > { %16544 = vst [vmem:[#allocation94_spill] sm:$0xff] %v12407_v19 }
 0x199   : > { %v2088_v5 = vpop.f32.mrf.mxu2 }
 0x19a   : > { %v2089_v28 = vadd.f32 %v2088_v5, %v2000_v63  ;;  %v2177_v58 = vpop.f32.mrf.mxu3  ;;  %v1913_v20 = vpop.f32.mrf.mxu0  ;;  %v10897_v63 = vld [vmem:[%s11989_s20 + $0x294] sm:$0xf0] }
 0x19b   : > { %v2002_v42 = vpop.f32.mrf.mxu1 }
 0x19c   : > { %v12409_v21 = vadd.f32 %v2177_v58, %v2089_v28  ;;  %v2003_v56 = vadd.f32 %v2002_v42, %v1913_v20  ;;  %v9922_v28 = vor.u32 %v10897_v63, %v9921_v31  ;;  %v10049_v20 = vld [vmem:[%s11989_s20 + $0x388] sm:$0xf] }
 0x19d   : > { %2228 = vmatmul.bf16.gmra.mxu0 %v12151_v32  ;;  %2317 = vmatmul.bf16.gmra.mxu1 %v12153_v33 }
 0x19e   : > { %16545 = vst [vmem:[#allocation95_spill] sm:$0xff] %v12409_v21  ;;  %2406 = vmatmul.bf16.gmra.mxu2 %v12155_v34  ;;  %v10929_v21 = vld [vmem:[%s11989_s20 + $0x394] sm:$0xf0] }
 0x19f   : > { %2495 = vmatmul.bf16.gmra.mxu3 %v12157_v35  ;;  %2732 = vmatpush.bf16.msra.mxu2 %v9922_v28 }
 0x1a1   : > { %v2091_v7 = vpop.f32.mrf.mxu2 }
 0x1a2   : > { %v2092_v18 = vadd.f32 %v2091_v7, %v2003_v56  ;;  %v2180_v43 = vpop.f32.mrf.mxu3  ;;  %v1915_v61 = vpop.f32.mrf.mxu0  ;;  %v10050_v7 = vor.u32 %v10929_v21, %v10049_v20 }
 0x1a3   : > { %v2004_v60 = vpop.f32.mrf.mxu1 }
 0x1a4   : > { %v12415_v58 = vadd.f32 %v2180_v43, %v2092_v18  ;;  %v2005_v42 = vadd.f32 %v2004_v60, %v1915_v61  ;;  %2821 = vmatpush.bf16.msra.mxu3 %v10050_v7  ;;  %v9665_v60 = vld [vmem:[%s11989_s20 + $0x88] sm:$0xf] }
 0x1a6   : > { %16546 = vst [vmem:[#allocation96_spill] sm:$0xff] %v12415_v58 }
 0x1a9   : > { %v2093_v40 = vpop.f32.mrf.mxu2 }
 0x1aa   : > { %v2094_v57 = vadd.f32 %v2093_v40, %v2005_v42  ;;  %v2182_v29 = vpop.f32.mrf.mxu3  ;;  %v1918_v6 = vpop.f32.mrf.mxu0  ;;  %v10833_v42 = vld [vmem:[%s11989_s20 + $0x94] sm:$0xf0] }
 0x1ab   : > { %v2007_v5 = vpop.f32.mrf.mxu1 }
 0x1ac   : > { %v12421_v19 = vadd.f32 %v2182_v29, %v2094_v57  ;;  %v2008_v56 = vadd.f32 %v2007_v5, %v1918_v6  ;;  %v9666_v57 = vor.u32 %v10833_v42, %v9665_v60  ;;  %v9793_v29 = vld [vmem:[%s11989_s20 + $0x188] sm:$0xf]  ;;  %v10865_v6 = vld [vmem:[%s11989_s20 + $0x194] sm:$0xf0] }
 0x1ad   : > { %2233 = vmatmul.bf16.gmra.mxu0 %v12163_v44  ;;  %2322 = vmatmul.bf16.gmra.mxu1 %v12165_v45  ;;  %v9794_v21 = vor.u32 %v10865_v6, %v9793_v29 }
 0x1ae   : > { %16547 = vst [vmem:[#allocation97_spill] sm:$0xff] %v12421_v19  ;;  %2411 = vmatmul.bf16.gmra.mxu2 %v12167_v46  ;;  %2554 = vmatpush.bf16.msra.mxu0 %v9666_v57 }
 0x1af   : > { %2500 = vmatmul.bf16.gmra.mxu3 %v12169_v48  ;;  %2643 = vmatpush.bf16.msra.mxu1 %v9794_v21  ;;  %v9905_v21 = vld [vmem:[%s11989_s20 + $0x268] sm:$0xf] }
 0x1b1   : > { %v2096_v18 = vpop.f32.mrf.mxu2 }
 0x1b2   : > { %v2097_v43 = vadd.f32 %v2096_v18, %v2008_v56  ;;  %v2185_v61 = vpop.f32.mrf.mxu3  ;;  %v1920_v40 = vpop.f32.mrf.mxu0 }
 0x1b3   : > { %v2009_v31 = vpop.f32.mrf.mxu1 }
 0x1b4   : > { %v12431_v63 = vadd.f32 %v2185_v61, %v2097_v43  ;;  %v2010_v5 = vadd.f32 %v2009_v31, %v1920_v40 }
 0x1b6   : > { %16548 = vst [vmem:[#allocation98_spill] sm:$0xff] %v12431_v63 }
 0x1b9   : > { %v2098_v28 = vpop.f32.mrf.mxu2 }
 0x1ba   : > { %v2099_v20 = vadd.f32 %v2098_v28, %v2010_v5  ;;  %v2187_v19 = vpop.f32.mrf.mxu3  ;;  %v1923_v7 = vpop.f32.mrf.mxu0  ;;  %v10893_v5 = vld [vmem:[%s11989_s20 + $0x274] sm:$0xf0] }
 0x1bb   : > { %v2012_v58 = vpop.f32.mrf.mxu1 }
 0x1bc   : > { %v12433_v56 = vadd.f32 %v2187_v19, %v2099_v20  ;;  %v2013_v18 = vadd.f32 %v2012_v58, %v1923_v7  ;;  %v9906_v20 = vor.u32 %v10893_v5, %v9905_v21  ;;  %v10033_v7 = vld [vmem:[%s11989_s20 + $0x368] sm:$0xf] }
 0x1bd   : > { %2238 = vmatmul.bf16.gmra.mxu0 %v12179_v10  ;;  %2327 = vmatmul.bf16.gmra.mxu1 %v12181_v11 }
 0x1be   : > { %16549 = vst [vmem:[#allocation99_spill] sm:$0xff] %v12433_v56  ;;  %2416 = vmatmul.bf16.gmra.mxu2 %v12183_v16  ;;  %v10925_v56 = vld [vmem:[%s11989_s20 + $0x374] sm:$0xf0] }
 0x1bf   : > { %2505 = vmatmul.bf16.gmra.mxu3 %v12185_v17  ;;  %2733 = vmatpush.bf16.msra.mxu2 %v9906_v20 }
 0x1c1   : > { %v2101_v43 = vpop.f32.mrf.mxu2 }
 0x1c2   : > { %v2102_v61 = vadd.f32 %v2101_v43, %v2013_v18  ;;  %v2190_v60 = vpop.f32.mrf.mxu3  ;;  %v1925_v42 = vpop.f32.mrf.mxu0  ;;  %v10034_v43 = vor.u32 %v10925_v56, %v10033_v7 }
 0x1c3   : > { %v2014_v40 = vpop.f32.mrf.mxu1 }
 0x1c4   : > { %v12439_v19 = vadd.f32 %v2190_v60, %v2102_v61  ;;  %v2015_v58 = vadd.f32 %v2014_v40, %v1925_v42  ;;  %2822 = vmatpush.bf16.msra.mxu3 %v10034_v43  ;;  %v9649_v40 = vld [vmem:[%s11989_s20 + $0x68] sm:$0xf] }
 0x1c6   : > { %16550 = vst [vmem:[#allocation100_spill] sm:$0xff] %v12439_v19 }
 0x1c9   : > { %v2103_v57 = vpop.f32.mrf.mxu2 }
 0x1ca   : > { %v2104_v29 = vadd.f32 %v2103_v57, %v2015_v58  ;;  %v2192_v6 = vpop.f32.mrf.mxu3  ;;  %v2204_v31 = vpop.f32.mrf.mxu0  ;;  %v10829_v58 = vld [vmem:[%s11989_s20 + $0x74] sm:$0xf0] }
 0x1cb   : > { %v2293_v28 = vpop.f32.mrf.mxu1 }
 0x1cc   : > { %v12445_v63 = vadd.f32 %v2192_v6, %v2104_v29  ;;  %v2294_v18 = vadd.f32 %v2293_v28, %v2204_v31  ;;  %v9650_v29 = vor.u32 %v10829_v58, %v9649_v40  ;;  %v9777_v6 = vld [vmem:[%s11989_s20 + $0x168] sm:$0xf]  ;;  %v10861_v31 = vld [vmem:[%s11989_s20 + $0x174] sm:$0xf0] }
 0x1cd   : > { %2243 = vmatmul.bf16.gmra.mxu0 %v12191_v30  ;;  %2332 = vmatmul.bf16.gmra.mxu1 %v12193_v36  ;;  %v9778_v56 = vor.u32 %v10861_v31, %v9777_v6 }
 0x1ce   : > { %16551 = vst [vmem:[#allocation101_spill] sm:$0xff] %v12445_v63  ;;  %2421 = vmatmul.bf16.gmra.mxu2 %v12195_v37  ;;  %2555 = vmatpush.bf16.msra.mxu0 %v9650_v29 }
 0x1cf   : > { %2510 = vmatmul.bf16.gmra.mxu3 %v12197_v39  ;;  %2644 = vmatpush.bf16.msra.mxu1 %v9778_v56 }
 0x1d1   : > { %v2382_v61 = vpop.f32.mrf.mxu2 }
 0x1d2   : > { %v2383_v60 = vadd.f32 %v2382_v61, %v2294_v18  ;;  %v2471_v42 = vpop.f32.mrf.mxu3  ;;  %v2206_v57 = vpop.f32.mrf.mxu0 }
 0x1d3   : > { %v2295_v21 = vpop.f32.mrf.mxu1 }
 0x1d4   : > { %v12455_v5 = vadd.f32 %v2471_v42, %v2383_v60  ;;  %v2296_v28 = vadd.f32 %v2295_v21, %v2206_v57  ;;  %v16554_v60 = vld [vmem:[#allocation47_spill] sm:$0xff]  ;;  %v16555_v42 = vld [vmem:[#allocation48_spill] sm:$0xff] }
 0x1d6   : > { %16552 = vst [vmem:[#allocation102_spill] sm:$0xff] %v12455_v5  ;;  %v10017_v5 = vld [vmem:[%s11989_s20 + $0x348] sm:$0xf] }
 0x1d9   : > { %v2384_v20 = vpop.f32.mrf.mxu2 }
 0x1da   : > { %v2385_v7 = vadd.f32 %v2384_v20, %v2296_v28  ;;  %v2473_v63 = vpop.f32.mrf.mxu3  ;;  %v2209_v43 = vpop.f32.mrf.mxu0  ;;  %v9889_v20 = vld [vmem:[%s11989_s20 + $0x248] sm:$0xf] }
 0x1db   : > { %v2298_v19 = vpop.f32.mrf.mxu1 }
 0x1dc   : > { %v12457_v18 = vadd.f32 %v2473_v63, %v2385_v7  ;;  %v2299_v61 = vadd.f32 %v2298_v19, %v2209_v43  ;;  %v10889_v7 = vld [vmem:[%s11989_s20 + $0x254] sm:$0xf0] }
 0x1dd   : > { %2248 = vmatmul.bf16.gmra.mxu0 %v12209_v23  ;;  %2337 = vmatmul.bf16.gmra.mxu1 %v12211_v38  ;;  %v16564_v38 = vld [vmem:[#allocation57_spill] sm:$0xff] }
 0x1de   : > { %16553 = vst [vmem:[#allocation103_spill] sm:$0xff] %v12457_v18  ;;  %2426 = vmatmul.bf16.gmra.mxu2 %v16554_v60  ;;  %v9890_v18 = vor.u32 %v10889_v7, %v9889_v20  ;;  %v9633_v7 = vld [vmem:[%s11989_s20 + $0x48] sm:$0xf] }
 0x1df   : > { %2515 = vmatmul.bf16.gmra.mxu3 %v16555_v42  ;;  %v10921_v42 = vld [vmem:[%s11989_s20 + $0x354] sm:$0xf0] }
 0x1e0   : > { %2734 = vmatpush.bf16.msra.mxu2 %v9890_v18 }
 0x1e1   : > { %v2387_v40 = vpop.f32.mrf.mxu2 }
 0x1e2   : > { %v2388_v58 = vadd.f32 %v2387_v40, %v2299_v61  ;;  %v2476_v57 = vpop.f32.mrf.mxu3  ;;  %v2211_v29 = vpop.f32.mrf.mxu0  ;;  %v16558_v40 = vld [vmem:[#allocation51_spill] sm:$0xff] }
 0x1e3   : > { %v2300_v6 = vpop.f32.mrf.mxu1 }
 0x1e4   : > { %v12463_v63 = vadd.f32 %v2476_v57, %v2388_v58  ;;  %v2301_v19 = vadd.f32 %v2300_v6, %v2211_v29  ;;  %v10018_v58 = vor.u32 %v10921_v42, %v10017_v5  ;;  %v16559_v57 = vld [vmem:[#allocation52_spill] sm:$0xff]  ;;  %v16560_v29 = vld [vmem:[#allocation53_spill] sm:$0xff]  ;;  %v16561_v6 = vld [vmem:[#allocation54_spill] sm:$0xff] }
 0x1e6   : > { %16556 = vst [vmem:[#allocation104_spill] sm:$0xff] %v12463_v63  ;;  %2823 = vmatpush.bf16.msra.mxu3 %v10018_v58 }
 0x1e9   : > { %v2389_v31 = vpop.f32.mrf.mxu2 }
 0x1ea   : > { %v2390_v21 = vadd.f32 %v2389_v31, %v2301_v19  ;;  %v2478_v56 = vpop.f32.mrf.mxu3  ;;  %v2214_v28 = vpop.f32.mrf.mxu0 }
 0x1eb   : > { %v2303_v43 = vpop.f32.mrf.mxu1 }
 0x1ec   : > { %v12469_v60 = vadd.f32 %v2478_v56, %v2390_v21  ;;  %v2304_v61 = vadd.f32 %v2303_v43, %v2214_v28  ;;  %v10825_v21 = vld [vmem:[%s11989_s20 + $0x54] sm:$0xf0]  ;;  %v9761_v28 = vld [vmem:[%s11989_s20 + $0x148] sm:$0xf] }
 0x1ed   : > { %2253 = vmatmul.bf16.gmra.mxu0 %v16558_v40  ;;  %2342 = vmatmul.bf16.gmra.mxu1 %v16559_v57  ;;  %v10857_v43 = vld [vmem:[%s11989_s20 + $0x154] sm:$0xf0] }
 0x1ee   : > { %16557 = vst [vmem:[#allocation105_spill] sm:$0xff] %v12469_v60  ;;  %2431 = vmatmul.bf16.gmra.mxu2 %v16560_v29  ;;  %v9634_v60 = vor.u32 %v10825_v21, %v9633_v7  ;;  %v9762_v5 = vor.u32 %v10857_v43, %v9761_v28  ;;  %v16565_v7 = vld [vmem:[#allocation58_spill] sm:$0xff] }
 0x1ef   : > { %2520 = vmatmul.bf16.gmra.mxu3 %v16561_v6 }
 0x1f0   : > { %2556 = vmatpush.bf16.msra.mxu0 %v9634_v60  ;;  %2645 = vmatpush.bf16.msra.mxu1 %v9762_v5 }
 0x1f1   : > { %v2392_v19 = vpop.f32.mrf.mxu2 }
 0x1f2   : > { %v2393_v31 = vadd.f32 %v2392_v19, %v2304_v61  ;;  %v2481_v20 = vpop.f32.mrf.mxu3  ;;  %v2216_v56 = vpop.f32.mrf.mxu0 }
 0x1f3   : > { %v2305_v63 = vpop.f32.mrf.mxu1 }
 0x1f4   : > { %v12479_v40 = vadd.f32 %v2481_v20, %v2393_v31  ;;  %v2306_v18 = vadd.f32 %v2305_v63, %v2216_v56  ;;  %v16566_v31 = vld [vmem:[#allocation59_spill] sm:$0xff]  ;;  %v16567_v20 = vld [vmem:[#allocation60_spill] sm:$0xff] }
 0x1f6   : > { %16562 = vst [vmem:[#allocation106_spill] sm:$0xff] %v12479_v40 }
 0x1f9   : > { %v2394_v42 = vpop.f32.mrf.mxu2 }
 0x1fa   : > { %v2395_v29 = vadd.f32 %v2394_v42, %v2306_v18  ;;  %v2483_v6 = vpop.f32.mrf.mxu3  ;;  %v2219_v58 = vpop.f32.mrf.mxu0  ;;  %v9873_v42 = vld [vmem:[%s11989_s20 + $0x228] sm:$0xf] }
 0x1fb   : > { %v2308_v57 = vpop.f32.mrf.mxu1 }
 0x1fc   : > { %v12481_v61 = vadd.f32 %v2483_v6, %v2395_v29  ;;  %v2309_v19 = vadd.f32 %v2308_v57, %v2219_v58  ;;  %v10885_v58 = vld [vmem:[%s11989_s20 + $0x234] sm:$0xf0] }
 0x1fd   : > { %2258 = vmatmul.bf16.gmra.mxu0 %v16564_v38  ;;  %2347 = vmatmul.bf16.gmra.mxu1 %v16565_v7  ;;  %v9874_v40 = vor.u32 %v10885_v58, %v9873_v42  ;;  %v9617_v58 = vld [vmem:[%s11989_s20 + $0x28] sm:$0xf] }
 0x1fe   : > { %16563 = vst [vmem:[#allocation107_spill] sm:$0xff] %v12481_v61  ;;  %2436 = vmatmul.bf16.gmra.mxu2 %v16566_v31  ;;  %v10917_v31 = vld [vmem:[%s11989_s20 + $0x334] sm:$0xf0] }
 0x1ff   : > { %2525 = vmatmul.bf16.gmra.mxu3 %v16567_v20  ;;  %v10001_v20 = vld [vmem:[%s11989_s20 + $0x328] sm:$0xf]  ;;  %2735 = vmatpush.bf16.msra.mxu2 %v9874_v40 }
 0x201   : > { %v2397_v60 = vpop.f32.mrf.mxu2 }
 0x202   : > { %v2398_v63 = vadd.f32 %v2397_v60, %v2309_v19  ;;  %v2486_v21 = vpop.f32.mrf.mxu3  ;;  %v2221_v56 = vpop.f32.mrf.mxu0  ;;  %v16570_v60 = vld [vmem:[#allocation63_spill] sm:$0xff] }
 0x203   : > { %v2310_v28 = vpop.f32.mrf.mxu1 }
 0x204   : > { %v12487_v29 = vadd.f32 %v2486_v21, %v2398_v63  ;;  %v2311_v57 = vadd.f32 %v2310_v28, %v2221_v56  ;;  %v10002_v63 = vor.u32 %v10917_v31, %v10001_v20  ;;  %v16571_v21 = vld [vmem:[#allocation64_spill] sm:$0xff]  ;;  %v16572_v56 = vld [vmem:[#allocation65_spill] sm:$0xff]  ;;  %v16573_v28 = vld [vmem:[#allocation66_spill] sm:$0xff] }
 0x206   : > { %16568 = vst [vmem:[#allocation108_spill] sm:$0xff] %v12487_v29  ;;  %2824 = vmatpush.bf16.msra.mxu3 %v10002_v63 }
 0x209   : > { %v2399_v6 = vpop.f32.mrf.mxu2 }
 0x20a   : > { %v2400_v43 = vadd.f32 %v2399_v6, %v2311_v57  ;;  %v2488_v5 = vpop.f32.mrf.mxu3  ;;  %v2224_v18 = vpop.f32.mrf.mxu0 }
 0x20b   : > { %v2313_v61 = vpop.f32.mrf.mxu1 }
 0x20c   : > { %v12493_v7 = vadd.f32 %v2488_v5, %v2400_v43  ;;  %v2314_v19 = vadd.f32 %v2313_v61, %v2224_v18  ;;  %v10821_v43 = vld [vmem:[%s11989_s20 + $0x34] sm:$0xf0]  ;;  %v9745_v61 = vld [vmem:[%s11989_s20 + $0x128] sm:$0xf] }
 0x20d   : > { %2263 = vmatmul.bf16.gmra.mxu0 %v16570_v60  ;;  %2352 = vmatmul.bf16.gmra.mxu1 %v16571_v21  ;;  %v10853_v18 = vld [vmem:[%s11989_s20 + $0x134] sm:$0xf0] }
 0x20e   : > { %16569 = vst [vmem:[#allocation109_spill] sm:$0xff] %v12493_v7  ;;  %2441 = vmatmul.bf16.gmra.mxu2 %v16572_v56  ;;  %v9618_v7 = vor.u32 %v10821_v43, %v9617_v58  ;;  %v9746_v40 = vor.u32 %v10853_v18, %v9745_v61  ;;  %v16576_v58 = vld [vmem:[#allocation69_spill] sm:$0xff]  ;;  %v16577_v43 = vld [vmem:[#allocation70_spill] sm:$0xff] }
 0x20f   : > { %2530 = vmatmul.bf16.gmra.mxu3 %v16573_v28 }
 0x210   : > { %2557 = vmatpush.bf16.msra.mxu0 %v9618_v7  ;;  %2646 = vmatpush.bf16.msra.mxu1 %v9746_v40  ;;  %v16579_v7 = vld [vmem:[#allocation72_spill] sm:$0xff] }
 0x211   : > { %v2402_v57 = vpop.f32.mrf.mxu2 }
 0x212   : > { %v2403_v6 = vadd.f32 %v2402_v57, %v2314_v19  ;;  %v2491_v42 = vpop.f32.mrf.mxu3  ;;  %v2226_v5 = vpop.f32.mrf.mxu0 }
 0x213   : > { %v2315_v29 = vpop.f32.mrf.mxu1 }
 0x214   : > { %v12503_v60 = vadd.f32 %v2491_v42, %v2403_v6  ;;  %v2316_v31 = vadd.f32 %v2315_v29, %v2226_v5  ;;  %v16578_v6 = vld [vmem:[#allocation71_spill] sm:$0xff] }
 0x216   : > { %16574 = vst [vmem:[#allocation110_spill] sm:$0xff] %v12503_v60  ;;  %v9985_v60 = vld [vmem:[%s11989_s20 + $0x308] sm:$0xf] }
 0x219   : > { %v2404_v20 = vpop.f32.mrf.mxu2 }
 0x21a   : > { %v2405_v56 = vadd.f32 %v2404_v20, %v2316_v31  ;;  %v2493_v28 = vpop.f32.mrf.mxu3  ;;  %v2229_v63 = vpop.f32.mrf.mxu0  ;;  %v9857_v31 = vld [vmem:[%s11989_s20 + $0x208] sm:$0xf]  ;;  %v10881_v20 = vld [vmem:[%s11989_s20 + $0x214] sm:$0xf0] }
 0x21b   : > { %v2318_v19 = vpop.f32.mrf.mxu1 }
 0x21c   : > { %v12505_v57 = vadd.f32 %v2493_v28, %v2405_v56  ;;  %v2319_v21 = vadd.f32 %v2318_v19, %v2229_v63 }
 0x21d   : > { %2268 = vmatmul.bf16.gmra.mxu0 %v16576_v58  ;;  %2357 = vmatmul.bf16.gmra.mxu1 %v16577_v43  ;;  %v10817_v43 = vld [vmem:[%s11989_s20 + $0x14] sm:$0xf0] }
 0x21e   : > { %16575 = vst [vmem:[#allocation111_spill] sm:$0xff] %v12505_v57  ;;  %2446 = vmatmul.bf16.gmra.mxu2 %v16578_v6 }
 0x21f   : > { %2535 = vmatmul.bf16.gmra.mxu3 %v16579_v7  ;;  %v10913_v7 = vld [vmem:[%s11989_s20 + $0x314] sm:$0xf0] }
 0x221   : > { %v2407_v29 = vpop.f32.mrf.mxu2 }
 0x222   : > { %v2408_v42 = vadd.f32 %v2407_v29, %v2319_v21  ;;  %v2496_v5 = vpop.f32.mrf.mxu3  ;;  %v2231_v61 = vpop.f32.mrf.mxu0  ;;  %v9858_v21 = vor.u32 %v10881_v20, %v9857_v31  ;;  %v9601_v29 = vld [vmem:[%s11989_s20 + $0x8] sm:$0xf] }
 0x223   : > { %v2320_v18 = vpop.f32.mrf.mxu1 }
 0x224   : > { %v12511_v56 = vadd.f32 %v2496_v5, %v2408_v42  ;;  %v2321_v28 = vadd.f32 %v2320_v18, %v2231_v61  ;;  %v9986_v42 = vor.u32 %v10913_v7, %v9985_v60  ;;  %v9729_v5 = vld [vmem:[%s11989_s20 + $0x108] sm:$0xf]  ;;  %v10849_v61 = vld [vmem:[%s11989_s20 + $0x114] sm:$0xf0]  ;;  %2736 = vmatpush.bf16.msra.mxu2 %v9858_v21  ;;  %v9602_v18 = vor.u32 %v10817_v43, %v9601_v29 }
 0x226   : > { %16580 = vst [vmem:[#allocation112_spill] sm:$0xff] %v12511_v56  ;;  %v9730_v56 = vor.u32 %v10849_v61, %v9729_v5  ;;  %2558 = vmatpush.bf16.msra.mxu0 %v9602_v18  ;;  %2825 = vmatpush.bf16.msra.mxu3 %v9986_v42 }
 0x228   : > { %2647 = vmatpush.bf16.msra.mxu1 %v9730_v56 }
 0x229   : > { %v2409_v40 = vpop.f32.mrf.mxu2 }
 0x22a   : > { %v2410_v63 = vadd.f32 %v2409_v40, %v2321_v28  ;;  %v2498_v19 = vpop.f32.mrf.mxu3  ;;  %v2234_v57 = vpop.f32.mrf.mxu0 }
 0x22b   : > { %v2323_v6 = vpop.f32.mrf.mxu1 }
 0x22c   : > { %v12519_v58 = vadd.f32 %v2498_v19, %v2410_v63  ;;  %v2324_v38 = vadd.f32 %v2323_v6, %v2234_v57 }
 0x22d   : > { %2273 = vmatmul.bf16.gmra.mxu0 %v12305_v9  ;;  %2362 = vmatmul.bf16.gmra.mxu1 %v12309_v8 }
 0x22e   : > { %16581 = vst [vmem:[#allocation113_spill] sm:$0xff] %v12519_v58  ;;  %2451 = vmatmul.bf16.gmra.mxu2 %v12311_v22 }
 0x22f   : > { %2540 = vmatmul.bf16.gmra.mxu3 %v12315_v41 }
 0x231   : > { %v2412_v28 = vpop.f32.mrf.mxu2 }
 0x232   : > { %v2413_v40 = vadd.f32 %v2412_v28, %v2324_v38  ;;  %v2501_v57 = vpop.f32.mrf.mxu3  ;;  %v2236_v60 = vpop.f32.mrf.mxu0  ;;  %v16584_v38 = vld [vmem:[#allocation82_spill] sm:$0xff] }
 0x233   : > { %v2325_v6 = vpop.f32.mrf.mxu1 }
 0x234   : > { %v12527_v7 = vadd.f32 %v2501_v57, %v2413_v40  ;;  %v2326_v31 = vadd.f32 %v2325_v6, %v2236_v60 }
 0x236   : > { %16582 = vst [vmem:[#allocation114_spill] sm:$0xff] %v12527_v7  ;;  %v10099_v7 = vld [vmem:[%s11989_s20 + $0x3f8] sm:$0xf0] }
 0x239   : > { %v2414_v20 = vpop.f32.mrf.mxu2 }
 0x23a   : > { %v2415_v43 = vadd.f32 %v2414_v20, %v2326_v31  ;;  %v2503_v63 = vpop.f32.mrf.mxu3  ;;  %v2239_v19 = vpop.f32.mrf.mxu0 }
 0x23b   : > { %v2328_v21 = vpop.f32.mrf.mxu1 }
 0x23c   : > { %v12529_v29 = vadd.f32 %v2503_v63, %v2415_v43  ;;  %v2329_v5 = vadd.f32 %v2328_v21, %v2239_v19  ;;  %v10907_v43 = vld [vmem:[%s11989_s20 + $0x2ec] sm:$0xf]  ;;  %v9971_v63 = vld [vmem:[%s11989_s20 + $0x2f8] sm:$0xf0] }
 0x23d   : > { %2278 = vmatmul.bf16.gmra.mxu0 %v12329_v4  ;;  %2367 = vmatmul.bf16.gmra.mxu1 %v12331_v59  ;;  %v9974_v21 = vor.u32 %v10907_v43, %v9971_v63 }
 0x23e   : > { %16583 = vst [vmem:[#allocation115_spill] sm:$0xff] %v12529_v29  ;;  %2456 = vmatmul.bf16.gmra.mxu2 %v12333_v62  ;;  %v10939_v29 = vld [vmem:[%s11989_s20 + $0x3ec] sm:$0xf] }
 0x23f   : > { %2545 = vmatmul.bf16.gmra.mxu3 %v16584_v38  ;;  %3085 = vmatpush.bf16.msrb.mxu2 %v9974_v21 }
 0x241   : > { %v2417_v56 = vpop.f32.mrf.mxu2 }
 0x242   : > { %v2418_v42 = vadd.f32 %v2417_v56, %v2329_v5  ;;  %v2506_v61 = vpop.f32.mrf.mxu3  ;;  %v2241_v18 = vpop.f32.mrf.mxu0  ;;  %v10102_v56 = vor.u32 %v10939_v29, %v10099_v7 }
 0x243   : > { %v2330_v28 = vpop.f32.mrf.mxu1 }
 0x244   : > { %v12535_v40 = vadd.f32 %v2506_v61, %v2418_v42  ;;  %v2331_v57 = vadd.f32 %v2330_v28, %v2241_v18  ;;  %3174 = vmatpush.bf16.msrb.mxu3 %v10102_v56  ;;  %v10843_v28 = vld [vmem:[%s11989_s20 + $0xec] sm:$0xf] }
 0x246   : > { %16585 = vst [vmem:[#allocation116_spill] sm:$0xff] %v12535_v40 }
 0x249   : > { %v2419_v60 = vpop.f32.mrf.mxu2 }
 0x24a   : > { %v2420_v6 = vadd.f32 %v2419_v60, %v2331_v57  ;;  %v2508_v31 = vpop.f32.mrf.mxu3  ;;  %v2244_v20 = vpop.f32.mrf.mxu0  ;;  %v9715_v57 = vld [vmem:[%s11989_s20 + $0xf8] sm:$0xf0] }
 0x24b   : > { %v2333_v19 = vpop.f32.mrf.mxu1 }
 0x24c   : > { %v12541_v58 = vadd.f32 %v2508_v31, %v2420_v6  ;;  %v2334_v5 = vadd.f32 %v2333_v19, %v2244_v20  ;;  %v9718_v6 = vor.u32 %v10843_v28, %v9715_v57  ;;  %v10875_v31 = vld [vmem:[%s11989_s20 + $0x1ec] sm:$0xf]  ;;  %v9843_v20 = vld [vmem:[%s11989_s20 + $0x1f8] sm:$0xf0] }
 0x24d   : > { %2559 = vmatmul.bf16.vlgmr.msra.gmra.mxu0 %v12065_v47  ;;  %2648 = vmatmul.bf16.vlgmr.msra.gmra.mxu1 %v12069_v51  ;;  %v9846_v7 = vor.u32 %v10875_v31, %v9843_v20 }
 0x24e   : > { %16586 = vst [vmem:[#allocation117_spill] sm:$0xff] %v12541_v58  ;;  %2737 = vmatmul.bf16.vlgmr.msra.gmra.mxu2 %v12071_v52  ;;  %2907 = vmatpush.bf16.msrb.mxu0 %v9718_v6 }
 0x24f   : > { %2826 = vmatmul.bf16.vlgmr.msra.gmra.mxu3 %v12073_v53  ;;  %2996 = vmatpush.bf16.msrb.mxu1 %v9846_v7  ;;  %v10903_v7 = vld [vmem:[%s11989_s20 + $0x2cc] sm:$0xf] }
 0x251   : > { %v2422_v42 = vpop.f32.mrf.mxu2 }
 0x252   : > { %v2423_v61 = vadd.f32 %v2422_v42, %v2334_v5  ;;  %v2511_v18 = vpop.f32.mrf.mxu3  ;;  %v2246_v60 = vpop.f32.mrf.mxu0 }
 0x253   : > { %v2335_v43 = vpop.f32.mrf.mxu1 }
 0x254   : > { %v12551_v63 = vadd.f32 %v2511_v18, %v2423_v61  ;;  %v2336_v29 = vadd.f32 %v2335_v43, %v2246_v60 }
 0x256   : > { %16587 = vst [vmem:[#allocation118_spill] sm:$0xff] %v12551_v63 }
 0x259   : > { %v2424_v19 = vpop.f32.mrf.mxu2 }
 0x25a   : > { %v2425_v21 = vadd.f32 %v2424_v19, %v2336_v29  ;;  %v2513_v58 = vpop.f32.mrf.mxu3  ;;  %v2249_v56 = vpop.f32.mrf.mxu0  ;;  %v9955_v29 = vld [vmem:[%s11989_s20 + $0x2d8] sm:$0xf0] }
 0x25b   : > { %v2338_v40 = vpop.f32.mrf.mxu1 }
 0x25c   : > { %v12553_v5 = vadd.f32 %v2513_v58, %v2425_v21  ;;  %v2339_v42 = vadd.f32 %v2338_v40, %v2249_v56  ;;  %v9958_v21 = vor.u32 %v10903_v7, %v9955_v29  ;;  %v10935_v56 = vld [vmem:[%s11989_s20 + $0x3cc] sm:$0xf] }
 0x25d   : > { %2564 = vmatmul.bf16.gmra.mxu0 %v12087_v12  ;;  %2653 = vmatmul.bf16.gmra.mxu1 %v12089_v13 }
 0x25e   : > { %16588 = vst [vmem:[#allocation119_spill] sm:$0xff] %v12553_v5  ;;  %2742 = vmatmul.bf16.gmra.mxu2 %v12091_v14  ;;  %v10083_v5 = vld [vmem:[%s11989_s20 + $0x3d8] sm:$0xf0] }
 0x25f   : > { %2831 = vmatmul.bf16.gmra.mxu3 %v12093_v15  ;;  %3086 = vmatpush.bf16.msrb.mxu2 %v9958_v21 }
 0x261   : > { %v2427_v61 = vpop.f32.mrf.mxu2 }
 0x262   : > { %v2428_v18 = vadd.f32 %v2427_v61, %v2339_v42  ;;  %v2516_v28 = vpop.f32.mrf.mxu3  ;;  %v2251_v57 = vpop.f32.mrf.mxu0  ;;  %v10086_v61 = vor.u32 %v10935_v56, %v10083_v5 }
 0x263   : > { %v2340_v60 = vpop.f32.mrf.mxu1 }
 0x264   : > { %v12559_v58 = vadd.f32 %v2516_v28, %v2428_v18  ;;  %v2341_v40 = vadd.f32 %v2340_v60, %v2251_v57  ;;  %3175 = vmatpush.bf16.msrb.mxu3 %v10086_v61  ;;  %v10839_v60 = vld [vmem:[%s11989_s20 + $0xcc] sm:$0xf] }
 0x266   : > { %16589 = vst [vmem:[#allocation120_spill] sm:$0xff] %v12559_v58 }
 0x269   : > { %v2429_v6 = vpop.f32.mrf.mxu2 }
 0x26a   : > { %v2430_v31 = vadd.f32 %v2429_v6, %v2341_v40  ;;  %v2518_v20 = vpop.f32.mrf.mxu3  ;;  %v2254_v43 = vpop.f32.mrf.mxu0  ;;  %v9699_v40 = vld [vmem:[%s11989_s20 + $0xd8] sm:$0xf0] }
 0x26b   : > { %v2343_v19 = vpop.f32.mrf.mxu1 }
 0x26c   : > { %v12565_v63 = vadd.f32 %v2518_v20, %v2430_v31  ;;  %v2344_v42 = vadd.f32 %v2343_v19, %v2254_v43  ;;  %v9702_v31 = vor.u32 %v10839_v60, %v9699_v40  ;;  %v10871_v20 = vld [vmem:[%s11989_s20 + $0x1cc] sm:$0xf]  ;;  %v9827_v43 = vld [vmem:[%s11989_s20 + $0x1d8] sm:$0xf0] }
 0x26d   : > { %2569 = vmatmul.bf16.gmra.mxu0 %v12099_v24  ;;  %2658 = vmatmul.bf16.gmra.mxu1 %v12101_v25  ;;  %v9830_v5 = vor.u32 %v10871_v20, %v9827_v43 }
 0x26e   : > { %16590 = vst [vmem:[#allocation121_spill] sm:$0xff] %v12565_v63  ;;  %2747 = vmatmul.bf16.gmra.mxu2 %v12103_v26  ;;  %2908 = vmatpush.bf16.msrb.mxu0 %v9702_v31 }
 0x26f   : > { %2836 = vmatmul.bf16.gmra.mxu3 %v12105_v27  ;;  %2997 = vmatpush.bf16.msrb.mxu1 %v9830_v5  ;;  %v10899_v5 = vld [vmem:[%s11989_s20 + $0x2ac] sm:$0xf] }
 0x271   : > { %v2432_v18 = vpop.f32.mrf.mxu2 }
 0x272   : > { %v2433_v28 = vadd.f32 %v2432_v18, %v2344_v42  ;;  %v2521_v57 = vpop.f32.mrf.mxu3  ;;  %v2256_v6 = vpop.f32.mrf.mxu0 }
 0x273   : > { %v2345_v7 = vpop.f32.mrf.mxu1 }
 0x274   : > { %v12575_v29 = vadd.f32 %v2521_v57, %v2433_v28  ;;  %v2346_v19 = vadd.f32 %v2345_v7, %v2256_v6 }
 0x276   : > { %16591 = vst [vmem:[#allocation122_spill] sm:$0xff] %v12575_v29 }
 0x279   : > { %v2434_v21 = vpop.f32.mrf.mxu2 }
 0x27a   : > { %v2435_v56 = vadd.f32 %v2434_v21, %v2346_v19  ;;  %v2523_v63 = vpop.f32.mrf.mxu3  ;;  %v2259_v61 = vpop.f32.mrf.mxu0  ;;  %v9939_v19 = vld [vmem:[%s11989_s20 + $0x2b8] sm:$0xf0] }
 0x27b   : > { %v2348_v58 = vpop.f32.mrf.mxu1 }
 0x27c   : > { %v12577_v42 = vadd.f32 %v2523_v63, %v2435_v56  ;;  %v2349_v18 = vadd.f32 %v2348_v58, %v2259_v61  ;;  %v9942_v56 = vor.u32 %v10899_v5, %v9939_v19  ;;  %v10931_v61 = vld [vmem:[%s11989_s20 + $0x3ac] sm:$0xf] }
 0x27d   : > { %2574 = vmatmul.bf16.gmra.mxu0 %v12119_v49  ;;  %2663 = vmatmul.bf16.gmra.mxu1 %v12121_v50 }
 0x27e   : > { %16592 = vst [vmem:[#allocation123_spill] sm:$0xff] %v12577_v42  ;;  %2752 = vmatmul.bf16.gmra.mxu2 %v12123_v54  ;;  %v10067_v42 = vld [vmem:[%s11989_s20 + $0x3b8] sm:$0xf0] }
 0x27f   : > { %2841 = vmatmul.bf16.gmra.mxu3 %v12125_v55  ;;  %3087 = vmatpush.bf16.msrb.mxu2 %v9942_v56 }
 0x281   : > { %v2437_v28 = vpop.f32.mrf.mxu2 }
 0x282   : > { %v2438_v57 = vadd.f32 %v2437_v28, %v2349_v18  ;;  %v2526_v60 = vpop.f32.mrf.mxu3  ;;  %v2261_v40 = vpop.f32.mrf.mxu0  ;;  %v10070_v28 = vor.u32 %v10931_v61, %v10067_v42 }
 0x283   : > { %v2350_v6 = vpop.f32.mrf.mxu1 }
 0x284   : > { %v12583_v63 = vadd.f32 %v2526_v60, %v2438_v57  ;;  %v2351_v58 = vadd.f32 %v2350_v6, %v2261_v40  ;;  %3176 = vmatpush.bf16.msrb.mxu3 %v10070_v28  ;;  %v10835_v6 = vld [vmem:[%s11989_s20 + $0xac] sm:$0xf] }
 0x286   : > { %16593 = vst [vmem:[#allocation124_spill] sm:$0xff] %v12583_v63 }
 0x289   : > { %v2439_v31 = vpop.f32.mrf.mxu2 }
 0x28a   : > { %v2440_v20 = vadd.f32 %v2439_v31, %v2351_v58  ;;  %v2528_v43 = vpop.f32.mrf.mxu3  ;;  %v2264_v7 = vpop.f32.mrf.mxu0  ;;  %v9683_v58 = vld [vmem:[%s11989_s20 + $0xb8] sm:$0xf0] }
 0x28b   : > { %v2353_v21 = vpop.f32.mrf.mxu1 }
 0x28c   : > { %v12589_v29 = vadd.f32 %v2528_v43, %v2440_v20  ;;  %v2354_v18 = vadd.f32 %v2353_v21, %v2264_v7  ;;  %v9686_v20 = vor.u32 %v10835_v6, %v9683_v58  ;;  %v10867_v43 = vld [vmem:[%s11989_s20 + $0x1ac] sm:$0xf]  ;;  %v9811_v7 = vld [vmem:[%s11989_s20 + $0x1b8] sm:$0xf0] }
 0x28d   : > { %2579 = vmatmul.bf16.gmra.mxu0 %v12131_v0  ;;  %2668 = vmatmul.bf16.gmra.mxu1 %v12133_v1  ;;  %v9814_v42 = vor.u32 %v10867_v43, %v9811_v7 }
 0x28e   : > { %16594 = vst [vmem:[#allocation125_spill] sm:$0xff] %v12589_v29  ;;  %2757 = vmatmul.bf16.gmra.mxu2 %v12135_v2  ;;  %2909 = vmatpush.bf16.msrb.mxu0 %v9686_v20 }
 0x28f   : > { %2846 = vmatmul.bf16.gmra.mxu3 %v12137_v3  ;;  %2998 = vmatpush.bf16.msrb.mxu1 %v9814_v42  ;;  %v10895_v42 = vld [vmem:[%s11989_s20 + $0x28c] sm:$0xf] }
 0x291   : > { %v2442_v57 = vpop.f32.mrf.mxu2 }
 0x292   : > { %v2443_v60 = vadd.f32 %v2442_v57, %v2354_v18  ;;  %v2531_v40 = vpop.f32.mrf.mxu3  ;;  %v2266_v31 = vpop.f32.mrf.mxu0 }
 0x293   : > { %v2355_v5 = vpop.f32.mrf.mxu1 }
 0x294   : > { %v12599_v19 = vadd.f32 %v2531_v40, %v2443_v60  ;;  %v2356_v21 = vadd.f32 %v2355_v5, %v2266_v31 }
 0x296   : > { %16595 = vst [vmem:[#allocation126_spill] sm:$0xff] %v12599_v19 }
 0x299   : > { %v2444_v56 = vpop.f32.mrf.mxu2 }
 0x29a   : > { %v2445_v61 = vadd.f32 %v2444_v56, %v2356_v21  ;;  %v2533_v29 = vpop.f32.mrf.mxu3  ;;  %v2269_v28 = vpop.f32.mrf.mxu0  ;;  %v9923_v21 = vld [vmem:[%s11989_s20 + $0x298] sm:$0xf0] }
 0x29b   : > { %v2358_v63 = vpop.f32.mrf.mxu1 }
 0x29c   : > { %v12601_v18 = vadd.f32 %v2533_v29, %v2445_v61  ;;  %v2359_v57 = vadd.f32 %v2358_v63, %v2269_v28  ;;  %v9926_v61 = vor.u32 %v10895_v42, %v9923_v21  ;;  %v10927_v28 = vld [vmem:[%s11989_s20 + $0x38c] sm:$0xf] }
 0x29d   : > { %2584 = vmatmul.bf16.gmra.mxu0 %v12151_v32  ;;  %2673 = vmatmul.bf16.gmra.mxu1 %v12153_v33 }
 0x29e   : > { %16596 = vst [vmem:[#allocation127_spill] sm:$0xff] %v12601_v18  ;;  %2762 = vmatmul.bf16.gmra.mxu2 %v12155_v34  ;;  %v10051_v18 = vld [vmem:[%s11989_s20 + $0x398] sm:$0xf0] }
 0x29f   : > { %2851 = vmatmul.bf16.gmra.mxu3 %v12157_v35  ;;  %3088 = vmatpush.bf16.msrb.mxu2 %v9926_v61 }
 0x2a1   : > { %v2447_v60 = vpop.f32.mrf.mxu2 }
 0x2a2   : > { %v2448_v40 = vadd.f32 %v2447_v60, %v2359_v57  ;;  %v2536_v6 = vpop.f32.mrf.mxu3  ;;  %v2271_v58 = vpop.f32.mrf.mxu0  ;;  %v10054_v60 = vor.u32 %v10927_v28, %v10051_v18 }
 0x2a3   : > { %v2360_v31 = vpop.f32.mrf.mxu1 }
 0x2a4   : > { %v12607_v29 = vadd.f32 %v2536_v6, %v2448_v40  ;;  %v2361_v63 = vadd.f32 %v2360_v31, %v2271_v58  ;;  %3177 = vmatpush.bf16.msrb.mxu3 %v10054_v60  ;;  %v10831_v31 = vld [vmem:[%s11989_s20 + $0x8c] sm:$0xf] }
 0x2a6   : > { %16597 = vst [vmem:[#allocation128_spill] sm:$0xff] %v12607_v29 }
 0x2a9   : > { %v2449_v20 = vpop.f32.mrf.mxu2 }
 0x2aa   : > { %v2450_v43 = vadd.f32 %v2449_v20, %v2361_v63  ;;  %v2538_v7 = vpop.f32.mrf.mxu3  ;;  %v2274_v5 = vpop.f32.mrf.mxu0  ;;  %v9667_v63 = vld [vmem:[%s11989_s20 + $0x98] sm:$0xf0] }
 0x2ab   : > { %v2363_v56 = vpop.f32.mrf.mxu1 }
 0x2ac   : > { %v12613_v19 = vadd.f32 %v2538_v7, %v2450_v43  ;;  %v2364_v57 = vadd.f32 %v2363_v56, %v2274_v5  ;;  %v9670_v43 = vor.u32 %v10831_v31, %v9667_v63  ;;  %v10863_v7 = vld [vmem:[%s11989_s20 + $0x18c] sm:$0xf]  ;;  %v9795_v5 = vld [vmem:[%s11989_s20 + $0x198] sm:$0xf0] }
 0x2ad   : > { %2589 = vmatmul.bf16.gmra.mxu0 %v12163_v44  ;;  %2678 = vmatmul.bf16.gmra.mxu1 %v12165_v45  ;;  %v9798_v18 = vor.u32 %v10863_v7, %v9795_v5 }
 0x2ae   : > { %16598 = vst [vmem:[#allocation129_spill] sm:$0xff] %v12613_v19  ;;  %2767 = vmatmul.bf16.gmra.mxu2 %v12167_v46  ;;  %2910 = vmatpush.bf16.msrb.mxu0 %v9670_v43 }
 0x2af   : > { %2856 = vmatmul.bf16.gmra.mxu3 %v12169_v48  ;;  %2999 = vmatpush.bf16.msrb.mxu1 %v9798_v18  ;;  %v10891_v18 = vld [vmem:[%s11989_s20 + $0x26c] sm:$0xf] }
 0x2b1   : > { %v2452_v40 = vpop.f32.mrf.mxu2 }
 0x2b2   : > { %v2453_v6 = vadd.f32 %v2452_v40, %v2364_v57  ;;  %v2541_v58 = vpop.f32.mrf.mxu3  ;;  %v2276_v20 = vpop.f32.mrf.mxu0 }
 0x2b3   : > { %v2365_v42 = vpop.f32.mrf.mxu1 }
 0x2b4   : > { %v12623_v21 = vadd.f32 %v2541_v58, %v2453_v6  ;;  %v2366_v56 = vadd.f32 %v2365_v42, %v2276_v20 }
 0x2b6   : > { %16599 = vst [vmem:[#allocation130_spill] sm:$0xff] %v12623_v21 }
 0x2b9   : > { %v2454_v61 = vpop.f32.mrf.mxu2 }
 0x2ba   : > { %v2455_v28 = vadd.f32 %v2454_v61, %v2366_v56  ;;  %v2543_v19 = vpop.f32.mrf.mxu3  ;;  %v2279_v60 = vpop.f32.mrf.mxu0  ;;  %v9907_v56 = vld [vmem:[%s11989_s20 + $0x278] sm:$0xf0] }
 0x2bb   : > { %v2368_v29 = vpop.f32.mrf.mxu1 }
 0x2bc   : > { %v12625_v57 = vadd.f32 %v2543_v19, %v2455_v28  ;;  %v2369_v40 = vadd.f32 %v2368_v29, %v2279_v60  ;;  %v9910_v28 = vor.u32 %v10891_v18, %v9907_v56  ;;  %v10923_v60 = vld [vmem:[%s11989_s20 + $0x36c] sm:$0xf] }
 0x2bd   : > { %2594 = vmatmul.bf16.gmra.mxu0 %v12179_v10  ;;  %2683 = vmatmul.bf16.gmra.mxu1 %v12181_v11 }
 0x2be   : > { %16600 = vst [vmem:[#allocation131_spill] sm:$0xff] %v12625_v57  ;;  %2772 = vmatmul.bf16.gmra.mxu2 %v12183_v16  ;;  %v10035_v57 = vld [vmem:[%s11989_s20 + $0x378] sm:$0xf0] }
 0x2bf   : > { %2861 = vmatmul.bf16.gmra.mxu3 %v12185_v17  ;;  %3089 = vmatpush.bf16.msrb.mxu2 %v9910_v28 }
 0x2c1   : > { %v2457_v6 = vpop.f32.mrf.mxu2 }
 0x2c2   : > { %v2458_v58 = vadd.f32 %v2457_v6, %v2369_v40  ;;  %v2546_v31 = vpop.f32.mrf.mxu3  ;;  %v2281_v63 = vpop.f32.mrf.mxu0  ;;  %v10038_v6 = vor.u32 %v10923_v60, %v10035_v57 }
 0x2c3   : > { %v2370_v20 = vpop.f32.mrf.mxu1 }
 0x2c4   : > { %v12631_v19 = vadd.f32 %v2546_v31, %v2458_v58  ;;  %v2371_v29 = vadd.f32 %v2370_v20, %v2281_v63  ;;  %3178 = vmatpush.bf16.msrb.mxu3 %v10038_v6  ;;  %v10827_v20 = vld [vmem:[%s11989_s20 + $0x6c] sm:$0xf] }
 0x2c6   : > { %16601 = vst [vmem:[#allocation132_spill] sm:$0xff] %v12631_v19 }
 0x2c9   : > { %v2459_v43 = vpop.f32.mrf.mxu2 }
 0x2ca   : > { %v2460_v7 = vadd.f32 %v2459_v43, %v2371_v29  ;;  %v2548_v5 = vpop.f32.mrf.mxu3  ;;  %v2560_v42 = vpop.f32.mrf.mxu0  ;;  %v9651_v29 = vld [vmem:[%s11989_s20 + $0x78] sm:$0xf0] }
 0x2cb   : > { %v2649_v61 = vpop.f32.mrf.mxu1 }
 0x2cc   : > { %v12637_v21 = vadd.f32 %v2548_v5, %v2460_v7  ;;  %v2650_v40 = vadd.f32 %v2649_v61, %v2560_v42  ;;  %v9654_v7 = vor.u32 %v10827_v20, %v9651_v29  ;;  %v10859_v5 = vld [vmem:[%s11989_s20 + $0x16c] sm:$0xf]  ;;  %v9779_v42 = vld [vmem:[%s11989_s20 + $0x178] sm:$0xf0]  ;;  %v16605_v20 = vld [vmem:[#allocation46_spill] sm:$0xff] }
 0x2cd   : > { %2599 = vmatmul.bf16.gmra.mxu0 %v12191_v30  ;;  %2688 = vmatmul.bf16.gmra.mxu1 %v12193_v36  ;;  %v9782_v57 = vor.u32 %v10859_v5, %v9779_v42 }
 0x2ce   : > { %16602 = vst [vmem:[#allocation133_spill] sm:$0xff] %v12637_v21  ;;  %2777 = vmatmul.bf16.gmra.mxu2 %v12195_v37  ;;  %2911 = vmatpush.bf16.msrb.mxu0 %v9654_v7 }
 0x2cf   : > { %2866 = vmatmul.bf16.gmra.mxu3 %v12197_v39  ;;  %3000 = vmatpush.bf16.msrb.mxu1 %v9782_v57 }
 0x2d1   : > { %v2738_v58 = vpop.f32.mrf.mxu2 }
 0x2d2   : > { %v2739_v31 = vadd.f32 %v2738_v58, %v2650_v40  ;;  %v2827_v63 = vpop.f32.mrf.mxu3  ;;  %v2562_v43 = vpop.f32.mrf.mxu0 }
 0x2d3   : > { %v2651_v18 = vpop.f32.mrf.mxu1 }
 0x2d4   : > { %v12647_v56 = vadd.f32 %v2827_v63, %v2739_v31  ;;  %v2652_v61 = vadd.f32 %v2651_v18, %v2562_v43  ;;  %v16606_v31 = vld [vmem:[#allocation47_spill] sm:$0xff]  ;;  %v16607_v63 = vld [vmem:[#allocation48_spill] sm:$0xff] }
 0x2d6   : > { %16603 = vst [vmem:[#allocation134_spill] sm:$0xff] %v12647_v56 }
 0x2d9   : > { %v2740_v28 = vpop.f32.mrf.mxu2 }
 0x2da   : > { %v2741_v60 = vadd.f32 %v2740_v28, %v2652_v61  ;;  %v2829_v21 = vpop.f32.mrf.mxu3  ;;  %v2565_v6 = vpop.f32.mrf.mxu0 }
 0x2db   : > { %v2654_v19 = vpop.f32.mrf.mxu1 }
 0x2dc   : > { %v12649_v40 = vadd.f32 %v2829_v21, %v2741_v60  ;;  %v2655_v58 = vadd.f32 %v2654_v19, %v2565_v6  ;;  %v10887_v60 = vld [vmem:[%s11989_s20 + $0x24c] sm:$0xf]  ;;  %v9891_v6 = vld [vmem:[%s11989_s20 + $0x258] sm:$0xf0] }
 0x2dd   : > { %2604 = vmatmul.bf16.gmra.mxu0 %v12209_v23  ;;  %2693 = vmatmul.bf16.gmra.mxu1 %v16605_v20  ;;  %v9894_v56 = vor.u32 %v10887_v60, %v9891_v6  ;;  %v10823_v6 = vld [vmem:[%s11989_s20 + $0x4c] sm:$0xf]  ;;  %v16616_v23 = vld [vmem:[#allocation57_spill] sm:$0xff] }
 0x2de   : > { %16604 = vst [vmem:[#allocation135_spill] sm:$0xff] %v12649_v40  ;;  %2782 = vmatmul.bf16.gmra.mxu2 %v16606_v31  ;;  %v10019_v31 = vld [vmem:[%s11989_s20 + $0x358] sm:$0xf0] }
 0x2df   : > { %2871 = vmatmul.bf16.gmra.mxu3 %v16607_v63  ;;  %v10919_v63 = vld [vmem:[%s11989_s20 + $0x34c] sm:$0xf]  ;;  %3090 = vmatpush.bf16.msrb.mxu2 %v9894_v56 }
 0x2e1   : > { %v2743_v29 = vpop.f32.mrf.mxu2 }
 0x2e2   : > { %v2744_v43 = vadd.f32 %v2743_v29, %v2655_v58  ;;  %v2832_v7 = vpop.f32.mrf.mxu3  ;;  %v2567_v5 = vpop.f32.mrf.mxu0  ;;  %v16610_v29 = vld [vmem:[#allocation51_spill] sm:$0xff] }
 0x2e3   : > { %v2656_v42 = vpop.f32.mrf.mxu1 }
 0x2e4   : > { %v12655_v21 = vadd.f32 %v2832_v7, %v2744_v43  ;;  %v2657_v19 = vadd.f32 %v2656_v42, %v2567_v5  ;;  %v10022_v43 = vor.u32 %v10919_v63, %v10019_v31  ;;  %v16611_v7 = vld [vmem:[#allocation52_spill] sm:$0xff]  ;;  %v16612_v5 = vld [vmem:[#allocation53_spill] sm:$0xff]  ;;  %v16613_v42 = vld [vmem:[#allocation54_spill] sm:$0xff] }
 0x2e6   : > { %16608 = vst [vmem:[#allocation136_spill] sm:$0xff] %v12655_v21  ;;  %3179 = vmatpush.bf16.msrb.mxu3 %v10022_v43 }
 0x2e9   : > { %v2745_v18 = vpop.f32.mrf.mxu2 }
 0x2ea   : > { %v2746_v57 = vadd.f32 %v2745_v18, %v2657_v19  ;;  %v2834_v61 = vpop.f32.mrf.mxu3  ;;  %v2570_v28 = vpop.f32.mrf.mxu0 }
 0x2eb   : > { %v2659_v40 = vpop.f32.mrf.mxu1 }
 0x2ec   : > { %v12661_v20 = vadd.f32 %v2834_v61, %v2746_v57  ;;  %v2660_v58 = vadd.f32 %v2659_v40, %v2570_v28  ;;  %v9635_v57 = vld [vmem:[%s11989_s20 + $0x58] sm:$0xf0]  ;;  %v10855_v40 = vld [vmem:[%s11989_s20 + $0x14c] sm:$0xf] }
 0x2ed   : > { %2609 = vmatmul.bf16.gmra.mxu0 %v16610_v29  ;;  %2698 = vmatmul.bf16.gmra.mxu1 %v16611_v7  ;;  %v9763_v28 = vld [vmem:[%s11989_s20 + $0x158] sm:$0xf0] }
 0x2ee   : > { %16609 = vst [vmem:[#allocation137_spill] sm:$0xff] %v12661_v20  ;;  %2787 = vmatmul.bf16.gmra.mxu2 %v16612_v5  ;;  %v9638_v20 = vor.u32 %v10823_v6, %v9635_v57  ;;  %v9766_v56 = vor.u32 %v10855_v40, %v9763_v28  ;;  %v16617_v6 = vld [vmem:[#allocation58_spill] sm:$0xff] }
 0x2ef   : > { %2876 = vmatmul.bf16.gmra.mxu3 %v16613_v42 }
 0x2f0   : > { %2912 = vmatpush.bf16.msrb.mxu0 %v9638_v20  ;;  %3001 = vmatpush.bf16.msrb.mxu1 %v9766_v56 }
 0x2f1   : > { %v2748_v19 = vpop.f32.mrf.mxu2 }
 0x2f2   : > { %v2749_v18 = vadd.f32 %v2748_v19, %v2660_v58  ;;  %v2837_v60 = vpop.f32.mrf.mxu3  ;;  %v2572_v61 = vpop.f32.mrf.mxu0 }
 0x2f3   : > { %v2661_v21 = vpop.f32.mrf.mxu1 }
 0x2f4   : > { %v12671_v29 = vadd.f32 %v2837_v60, %v2749_v18  ;;  %v2662_v31 = vadd.f32 %v2661_v21, %v2572_v61  ;;  %v16618_v18 = vld [vmem:[#allocation59_spill] sm:$0xff]  ;;  %v16619_v60 = vld [vmem:[#allocation60_spill] sm:$0xff] }
 0x2f6   : > { %16614 = vst [vmem:[#allocation138_spill] sm:$0xff] %v12671_v29 }
 0x2f9   : > { %v2750_v63 = vpop.f32.mrf.mxu2 }
 0x2fa   : > { %v2751_v5 = vadd.f32 %v2750_v63, %v2662_v31  ;;  %v2839_v42 = vpop.f32.mrf.mxu3  ;;  %v2575_v43 = vpop.f32.mrf.mxu0  ;;  %v10883_v63 = vld [vmem:[%s11989_s20 + $0x22c] sm:$0xf] }
 0x2fb   : > { %v2664_v7 = vpop.f32.mrf.mxu1 }
 0x2fc   : > { %v12673_v58 = vadd.f32 %v2839_v42, %v2751_v5  ;;  %v2665_v19 = vadd.f32 %v2664_v7, %v2575_v43  ;;  %v9875_v43 = vld [vmem:[%s11989_s20 + $0x238] sm:$0xf0] }
 0x2fd   : > { %2614 = vmatmul.bf16.gmra.mxu0 %v16616_v23  ;;  %2703 = vmatmul.bf16.gmra.mxu1 %v16617_v6  ;;  %v9878_v29 = vor.u32 %v10883_v63, %v9875_v43  ;;  %v10819_v43 = vld [vmem:[%s11989_s20 + $0x2c] sm:$0xf] }
 0x2fe   : > { %16615 = vst [vmem:[#allocation139_spill] sm:$0xff] %v12673_v58  ;;  %2792 = vmatmul.bf16.gmra.mxu2 %v16618_v18  ;;  %v10003_v18 = vld [vmem:[%s11989_s20 + $0x338] sm:$0xf0] }
 0x2ff   : > { %2881 = vmatmul.bf16.gmra.mxu3 %v16619_v60  ;;  %v10915_v60 = vld [vmem:[%s11989_s20 + $0x32c] sm:$0xf]  ;;  %3091 = vmatpush.bf16.msrb.mxu2 %v9878_v29 }
 0x301   : > { %v2753_v20 = vpop.f32.mrf.mxu2 }
 0x302   : > { %v2754_v21 = vadd.f32 %v2753_v20, %v2665_v19  ;;  %v2842_v57 = vpop.f32.mrf.mxu3  ;;  %v2577_v61 = vpop.f32.mrf.mxu0  ;;  %v16622_v20 = vld [vmem:[#allocation63_spill] sm:$0xff] }
 0x303   : > { %v2666_v40 = vpop.f32.mrf.mxu1 }
 0x304   : > { %v12679_v5 = vadd.f32 %v2842_v57, %v2754_v21  ;;  %v2667_v7 = vadd.f32 %v2666_v40, %v2577_v61  ;;  %v10006_v21 = vor.u32 %v10915_v60, %v10003_v18  ;;  %v16623_v57 = vld [vmem:[#allocation64_spill] sm:$0xff]  ;;  %v16624_v61 = vld [vmem:[#allocation65_spill] sm:$0xff]  ;;  %v16625_v40 = vld [vmem:[#allocation66_spill] sm:$0xff] }
 0x306   : > { %16620 = vst [vmem:[#allocation140_spill] sm:$0xff] %v12679_v5  ;;  %3180 = vmatpush.bf16.msrb.mxu3 %v10006_v21 }
 0x309   : > { %v2755_v42 = vpop.f32.mrf.mxu2 }
 0x30a   : > { %v2756_v28 = vadd.f32 %v2755_v42, %v2667_v7  ;;  %v2844_v56 = vpop.f32.mrf.mxu3  ;;  %v2580_v31 = vpop.f32.mrf.mxu0 }
 0x30b   : > { %v2669_v58 = vpop.f32.mrf.mxu1 }
 0x30c   : > { %v12685_v6 = vadd.f32 %v2844_v56, %v2756_v28  ;;  %v2670_v19 = vadd.f32 %v2669_v58, %v2580_v31  ;;  %v9619_v28 = vld [vmem:[%s11989_s20 + $0x38] sm:$0xf0]  ;;  %v10851_v58 = vld [vmem:[%s11989_s20 + $0x12c] sm:$0xf] }
 0x30d   : > { %2619 = vmatmul.bf16.gmra.mxu0 %v16622_v20  ;;  %2708 = vmatmul.bf16.gmra.mxu1 %v16623_v57  ;;  %v9747_v31 = vld [vmem:[%s11989_s20 + $0x138] sm:$0xf0] }
 0x30e   : > { %16621 = vst [vmem:[#allocation141_spill] sm:$0xff] %v12685_v6  ;;  %2797 = vmatmul.bf16.gmra.mxu2 %v16624_v61  ;;  %v9622_v6 = vor.u32 %v10819_v43, %v9619_v28  ;;  %v9750_v29 = vor.u32 %v10851_v58, %v9747_v31  ;;  %v16628_v43 = vld [vmem:[#allocation69_spill] sm:$0xff]  ;;  %v16629_v28 = vld [vmem:[#allocation70_spill] sm:$0xff] }
 0x30f   : > { %2886 = vmatmul.bf16.gmra.mxu3 %v16625_v40 }
 0x310   : > { %2913 = vmatpush.bf16.msrb.mxu0 %v9622_v6  ;;  %3002 = vmatpush.bf16.msrb.mxu1 %v9750_v29  ;;  %v16631_v6 = vld [vmem:[#allocation72_spill] sm:$0xff] }
 0x311   : > { %v2758_v7 = vpop.f32.mrf.mxu2 }
 0x312   : > { %v2759_v42 = vadd.f32 %v2758_v7, %v2670_v19  ;;  %v2847_v63 = vpop.f32.mrf.mxu3  ;;  %v2582_v56 = vpop.f32.mrf.mxu0 }
 0x313   : > { %v2671_v5 = vpop.f32.mrf.mxu1 }
 0x314   : > { %v12695_v20 = vadd.f32 %v2847_v63, %v2759_v42  ;;  %v2672_v18 = vadd.f32 %v2671_v5, %v2582_v56  ;;  %v16630_v42 = vld [vmem:[#allocation71_spill] sm:$0xff] }
 0x316   : > { %16626 = vst [vmem:[#allocation142_spill] sm:$0xff] %v12695_v20  ;;  %v10911_v20 = vld [vmem:[%s11989_s20 + $0x30c] sm:$0xf] }
 0x319   : > { %v2760_v60 = vpop.f32.mrf.mxu2 }
 0x31a   : > { %v2761_v61 = vadd.f32 %v2760_v60, %v2672_v18  ;;  %v2849_v40 = vpop.f32.mrf.mxu3  ;;  %v2585_v21 = vpop.f32.mrf.mxu0  ;;  %v10879_v18 = vld [vmem:[%s11989_s20 + $0x20c] sm:$0xf]  ;;  %v9859_v60 = vld [vmem:[%s11989_s20 + $0x218] sm:$0xf0] }
 0x31b   : > { %v2674_v19 = vpop.f32.mrf.mxu1 }
 0x31c   : > { %v12697_v7 = vadd.f32 %v2849_v40, %v2761_v61  ;;  %v2675_v57 = vadd.f32 %v2674_v19, %v2585_v21 }
 0x31d   : > { %2624 = vmatmul.bf16.gmra.mxu0 %v16628_v43  ;;  %2713 = vmatmul.bf16.gmra.mxu1 %v16629_v28  ;;  %v9603_v28 = vld [vmem:[%s11989_s20 + $0x18] sm:$0xf0] }
 0x31e   : > { %16627 = vst [vmem:[#allocation143_spill] sm:$0xff] %v12697_v7  ;;  %2802 = vmatmul.bf16.gmra.mxu2 %v16630_v42 }
 0x31f   : > { %2891 = vmatmul.bf16.gmra.mxu3 %v16631_v6  ;;  %v9987_v6 = vld [vmem:[%s11989_s20 + $0x318] sm:$0xf0] }
 0x321   : > { %v2763_v5 = vpop.f32.mrf.mxu2 }
 0x322   : > { %v2764_v63 = vadd.f32 %v2763_v5, %v2675_v57  ;;  %v2852_v56 = vpop.f32.mrf.mxu3  ;;  %v2587_v58 = vpop.f32.mrf.mxu0  ;;  %v9862_v57 = vor.u32 %v10879_v18, %v9859_v60  ;;  %v10815_v5 = vld [vmem:[%s11989_s20 + $0xc] sm:$0xf] }
 0x323   : > { %v2676_v31 = vpop.f32.mrf.mxu1 }
 0x324   : > { %v12703_v61 = vadd.f32 %v2852_v56, %v2764_v63  ;;  %v2677_v40 = vadd.f32 %v2676_v31, %v2587_v58  ;;  %v9990_v63 = vor.u32 %v10911_v20, %v9987_v6  ;;  %v10847_v56 = vld [vmem:[%s11989_s20 + $0x10c] sm:$0xf]  ;;  %v9731_v58 = vld [vmem:[%s11989_s20 + $0x118] sm:$0xf0]  ;;  %3092 = vmatpush.bf16.msrb.mxu2 %v9862_v57  ;;  %v9606_v31 = vor.u32 %v10815_v5, %v9603_v28 }
 0x326   : > { %16632 = vst [vmem:[#allocation144_spill] sm:$0xff] %v12703_v61  ;;  %v9734_v61 = vor.u32 %v10847_v56, %v9731_v58  ;;  %2914 = vmatpush.bf16.msrb.mxu0 %v9606_v31  ;;  %3181 = vmatpush.bf16.msrb.mxu3 %v9990_v63 }
 0x328   : > { %3003 = vmatpush.bf16.msrb.mxu1 %v9734_v61 }
 0x329   : > { %v2765_v29 = vpop.f32.mrf.mxu2 }
 0x32a   : > { %v2766_v21 = vadd.f32 %v2765_v29, %v2677_v40  ;;  %v2854_v19 = vpop.f32.mrf.mxu3  ;;  %v2590_v7 = vpop.f32.mrf.mxu0 }
 0x32b   : > { %v2679_v42 = vpop.f32.mrf.mxu1 }
 0x32c   : > { %v12711_v43 = vadd.f32 %v2854_v19, %v2766_v21  ;;  %v2680_v23 = vadd.f32 %v2679_v42, %v2590_v7 }
 0x32d   : > { %2629 = vmatmul.bf16.gmra.mxu0 %v12305_v9  ;;  %2718 = vmatmul.bf16.gmra.mxu1 %v12309_v8 }
 0x32e   : > { %16633 = vst [vmem:[#allocation145_spill] sm:$0xff] %v12711_v43  ;;  %2807 = vmatmul.bf16.gmra.mxu2 %v12311_v22  ;;  %v16656_v43 = vld [vmem:[#allocation45_spill] sm:$0xff] }
 0x32f   : > { %2896 = vmatmul.bf16.gmra.mxu3 %v12315_v41 }
 0x331   : > { %v2768_v40 = vpop.f32.mrf.mxu2 }
 0x332   : > { %v2769_v29 = vadd.f32 %v2768_v40, %v2680_v23  ;;  %v2857_v7 = vpop.f32.mrf.mxu3  ;;  %v2592_v20 = vpop.f32.mrf.mxu0 }
 0x333   : > { %v2681_v42 = vpop.f32.mrf.mxu1 }
 0x334   : > { %v12719_v6 = vadd.f32 %v2857_v7, %v2769_v29  ;;  %v2682_v18 = vadd.f32 %v2681_v42, %v2592_v20 }
 0x336   : > { %16634 = vst [vmem:[#allocation146_spill] sm:$0xff] %v12719_v6 }
 0x339   : > { %v2770_v60 = vpop.f32.mrf.mxu2 }
 0x33a   : > { %v2771_v28 = vadd.f32 %v2770_v60, %v2682_v18  ;;  %v2859_v21 = vpop.f32.mrf.mxu3  ;;  %v2595_v19 = vpop.f32.mrf.mxu0  ;;  %v10473_v60 = vld [vmem:[%s12731_s19 + $0x2e0] sm:$0xf] }
 0x33b   : > { %v2684_v57 = vpop.f32.mrf.mxu1 }
 0x33c   : > { %v12721_v5 = vadd.f32 %v2859_v21, %v2771_v28  ;;  %v2685_v56 = vadd.f32 %v2684_v57, %v2595_v19  ;;  %v11036_v28 = vld [vmem:[%s12731_s19 + $0x2ec] sm:$0xf0]  ;;  %v10601_v57 = vld [vmem:[%s12731_s19 + $0x3e0] sm:$0xf] }
 0x33d   : > { %2634 = vmatmul.bf16.gmra.mxu0 %v12329_v4  ;;  %2723 = vmatmul.bf16.gmra.mxu1 %v12331_v59  ;;  %v10474_v19 = vor.u32 %v11036_v28, %v10473_v60  ;;  %v11004_v28 = vld [vmem:[%s12731_s19 + $0x1ec] sm:$0xf0] }
 0x33e   : > { %16635 = vst [vmem:[#allocation147_spill] sm:$0xff] %v12721_v5  ;;  %2812 = vmatmul.bf16.gmra.mxu2 %v12333_v62 }
 0x33f   : > { %2901 = vmatmul.bf16.gmra.mxu3 %v16584_v38  ;;  %4593 = vmatpush.bf16.msra.mxu2 %v10474_v19 }
 0x341   : > { %v2773_v23 = vpop.f32.mrf.mxu2 }
 0x342   : > { %v2774_v61 = vadd.f32 %v2773_v23, %v2685_v56  ;;  %v2862_v63 = vpop.f32.mrf.mxu3  ;;  %v2597_v58 = vpop.f32.mrf.mxu0  ;;  %v11068_v56 = vld [vmem:[%s12731_s19 + $0x3ec] sm:$0xf0] }
 0x343   : > { %v2686_v31 = vpop.f32.mrf.mxu1 }
 0x344   : > { %v12727_v40 = vadd.f32 %v2862_v63, %v2774_v61  ;;  %v2687_v29 = vadd.f32 %v2686_v31, %v2597_v58  ;;  %v10602_v63 = vor.u32 %v11068_v56, %v10601_v57 }
 0x346   : > { %16636 = vst [vmem:[#allocation148_spill] sm:$0xff] %v12727_v40  ;;  %4682 = vmatpush.bf16.msra.mxu3 %v10602_v63 }
 0x349   : > { %v2775_v7 = vpop.f32.mrf.mxu2 }
 0x34a   : > { %v2776_v20 = vadd.f32 %v2775_v7, %v2687_v29  ;;  %v2864_v42 = vpop.f32.mrf.mxu3  ;;  %v2600_v18 = vpop.f32.mrf.mxu0  ;;  %v10217_v7 = vld [vmem:[%s12731_s19 + $0xe0] sm:$0xf] }
 0x34b   : > { %v2689_v21 = vpop.f32.mrf.mxu1 }
 0x34c   : > { %v12737_v23 = vadd.f32 %v2864_v42, %v2776_v20  ;;  %v2690_v61 = vadd.f32 %v2689_v21, %v2600_v18  ;;  %v10972_v20 = vld [vmem:[%s12731_s19 + $0xec] sm:$0xf0]  ;;  %v10345_v18 = vld [vmem:[%s12731_s19 + $0x1e0] sm:$0xf] }
 0x34d   : > { %2915 = vmatmul.bf16.vlgmr.msrb.gmra.mxu0 %v12065_v47  ;;  %3004 = vmatmul.bf16.vlgmr.msrb.gmra.mxu1 %v12069_v51  ;;  %v10218_v60 = vor.u32 %v10972_v20, %v10217_v7  ;;  %v10346_v19 = vor.u32 %v11004_v28, %v10345_v18 }
 0x34e   : > { %16637 = vst [vmem:[#allocation149_spill] sm:$0xff] %v12737_v23  ;;  %3093 = vmatmul.bf16.vlgmr.msrb.gmra.mxu2 %v12071_v52 }
 0x34f   : > { %3182 = vmatmul.bf16.vlgmr.msrb.gmra.mxu3 %v12073_v53  ;;  %4415 = vmatpush.bf16.msra.mxu0 %v10218_v60 }
 0x350   : > { %4504 = vmatpush.bf16.msra.mxu1 %v10346_v19  ;;  %v11032_v19 = vld [vmem:[%s12731_s19 + $0x2cc] sm:$0xf0] }
 0x351   : > { %v2778_v58 = vpop.f32.mrf.mxu2 }
 0x352   : > { %v2779_v31 = vadd.f32 %v2778_v58, %v2690_v61  ;;  %v2867_v29 = vpop.f32.mrf.mxu3  ;;  %v2602_v42 = vpop.f32.mrf.mxu0 }
 0x353   : > { %v2691_v21 = vpop.f32.mrf.mxu1 }
 0x354   : > { %v12747_v23 = vadd.f32 %v2867_v29, %v2779_v31  ;;  %v2692_v57 = vadd.f32 %v2691_v21, %v2602_v42  ;;  %v10457_v21 = vld [vmem:[%s12731_s19 + $0x2c0] sm:$0xf] }
 0x356   : > { %16638 = vst [vmem:[#allocation150_spill] sm:$0xff] %v12747_v23 }
 0x359   : > { %v2780_v56 = vpop.f32.mrf.mxu2 }
 0x35a   : > { %v2781_v40 = vadd.f32 %v2780_v56, %v2692_v57  ;;  %v2869_v5 = vpop.f32.mrf.mxu3  ;;  %v2605_v63 = vpop.f32.mrf.mxu0  ;;  %v10458_v56 = vor.u32 %v11032_v19, %v10457_v21 }
 0x35b   : > { %v2694_v6 = vpop.f32.mrf.mxu1 }
 0x35c   : > { %v12749_v61 = vadd.f32 %v2869_v5, %v2781_v40  ;;  %v2695_v58 = vadd.f32 %v2694_v6, %v2605_v63  ;;  %v10585_v63 = vld [vmem:[%s12731_s19 + $0x3c0] sm:$0xf]  ;;  %4594 = vmatpush.bf16.msra.mxu2 %v10458_v56 }
 0x35d   : > { %2920 = vmatmul.bf16.gmra.mxu0 %v12087_v12  ;;  %3009 = vmatmul.bf16.gmra.mxu1 %v12089_v13 }
 0x35e   : > { %16639 = vst [vmem:[#allocation151_spill] sm:$0xff] %v12749_v61  ;;  %3098 = vmatmul.bf16.gmra.mxu2 %v12091_v14  ;;  %v11064_v61 = vld [vmem:[%s12731_s19 + $0x3cc] sm:$0xf0] }
 0x35f   : > { %3187 = vmatmul.bf16.gmra.mxu3 %v12093_v15 }
 0x361   : > { %v2783_v31 = vpop.f32.mrf.mxu2 }
 0x362   : > { %v2784_v29 = vadd.f32 %v2783_v31, %v2695_v58  ;;  %v2872_v7 = vpop.f32.mrf.mxu3  ;;  %v2607_v20 = vpop.f32.mrf.mxu0  ;;  %v10586_v31 = vor.u32 %v11064_v61, %v10585_v63 }
 0x363   : > { %v2696_v42 = vpop.f32.mrf.mxu1 }
 0x364   : > { %v12755_v5 = vadd.f32 %v2872_v7, %v2784_v29  ;;  %v2697_v6 = vadd.f32 %v2696_v42, %v2607_v20  ;;  %4683 = vmatpush.bf16.msra.mxu3 %v10586_v31  ;;  %v10201_v42 = vld [vmem:[%s12731_s19 + $0xc0] sm:$0xf] }
 0x366   : > { %16640 = vst [vmem:[#allocation152_spill] sm:$0xff] %v12755_v5 }
 0x369   : > { %v2785_v40 = vpop.f32.mrf.mxu2 }
 0x36a   : > { %v2786_v60 = vadd.f32 %v2785_v40, %v2697_v6  ;;  %v2874_v18 = vpop.f32.mrf.mxu3  ;;  %v2610_v28 = vpop.f32.mrf.mxu0  ;;  %v10968_v6 = vld [vmem:[%s12731_s19 + $0xcc] sm:$0xf0] }
 0x36b   : > { %v2699_v57 = vpop.f32.mrf.mxu1 }
 0x36c   : > { %v12761_v23 = vadd.f32 %v2874_v18, %v2786_v60  ;;  %v2700_v58 = vadd.f32 %v2699_v57, %v2610_v28  ;;  %v10202_v60 = vor.u32 %v10968_v6, %v10201_v42  ;;  %v10329_v18 = vld [vmem:[%s12731_s19 + $0x1c0] sm:$0xf]  ;;  %v11000_v28 = vld [vmem:[%s12731_s19 + $0x1cc] sm:$0xf0] }
 0x36d   : > { %2925 = vmatmul.bf16.gmra.mxu0 %v12099_v24  ;;  %3014 = vmatmul.bf16.gmra.mxu1 %v12101_v25  ;;  %v10330_v61 = vor.u32 %v11000_v28, %v10329_v18 }
 0x36e   : > { %16641 = vst [vmem:[#allocation153_spill] sm:$0xff] %v12761_v23  ;;  %3103 = vmatmul.bf16.gmra.mxu2 %v12103_v26  ;;  %4416 = vmatpush.bf16.msra.mxu0 %v10202_v60 }
 0x36f   : > { %3192 = vmatmul.bf16.gmra.mxu3 %v12105_v27  ;;  %4505 = vmatpush.bf16.msra.mxu1 %v10330_v61  ;;  %v10441_v61 = vld [vmem:[%s12731_s19 + $0x2a0] sm:$0xf] }
 0x371   : > { %v2788_v29 = vpop.f32.mrf.mxu2 }
 0x372   : > { %v2789_v7 = vadd.f32 %v2788_v29, %v2700_v58  ;;  %v2877_v20 = vpop.f32.mrf.mxu3  ;;  %v2612_v40 = vpop.f32.mrf.mxu0 }
 0x373   : > { %v2701_v21 = vpop.f32.mrf.mxu1 }
 0x374   : > { %v12771_v19 = vadd.f32 %v2877_v20, %v2789_v7  ;;  %v2702_v57 = vadd.f32 %v2701_v21, %v2612_v40 }
 0x376   : > { %16642 = vst [vmem:[#allocation154_spill] sm:$0xff] %v12771_v19 }
 0x379   : > { %v2790_v56 = vpop.f32.mrf.mxu2 }
 0x37a   : > { %v2791_v63 = vadd.f32 %v2790_v56, %v2702_v57  ;;  %v2879_v23 = vpop.f32.mrf.mxu3  ;;  %v2615_v31 = vpop.f32.mrf.mxu0  ;;  %v11028_v57 = vld [vmem:[%s12731_s19 + $0x2ac] sm:$0xf0] }
 0x37b   : > { %v2704_v5 = vpop.f32.mrf.mxu1 }
 0x37c   : > { %v12773_v58 = vadd.f32 %v2879_v23, %v2791_v63  ;;  %v2705_v29 = vadd.f32 %v2704_v5, %v2615_v31  ;;  %v10442_v63 = vor.u32 %v11028_v57, %v10441_v61  ;;  %v10569_v31 = vld [vmem:[%s12731_s19 + $0x3a0] sm:$0xf] }
 0x37d   : > { %2930 = vmatmul.bf16.gmra.mxu0 %v12119_v49  ;;  %3019 = vmatmul.bf16.gmra.mxu1 %v12121_v50 }
 0x37e   : > { %16643 = vst [vmem:[#allocation155_spill] sm:$0xff] %v12773_v58  ;;  %3108 = vmatmul.bf16.gmra.mxu2 %v12123_v54  ;;  %v11060_v58 = vld [vmem:[%s12731_s19 + $0x3ac] sm:$0xf0] }
 0x37f   : > { %3197 = vmatmul.bf16.gmra.mxu3 %v12125_v55  ;;  %4595 = vmatpush.bf16.msra.mxu2 %v10442_v63 }
 0x381   : > { %v2793_v7 = vpop.f32.mrf.mxu2 }
 0x382   : > { %v2794_v20 = vadd.f32 %v2793_v7, %v2705_v29  ;;  %v2882_v42 = vpop.f32.mrf.mxu3  ;;  %v2617_v6 = vpop.f32.mrf.mxu0  ;;  %v10570_v7 = vor.u32 %v11060_v58, %v10569_v31 }
 0x383   : > { %v2706_v40 = vpop.f32.mrf.mxu1 }
 0x384   : > { %v12779_v23 = vadd.f32 %v2882_v42, %v2794_v20  ;;  %v2707_v5 = vadd.f32 %v2706_v40, %v2617_v6  ;;  %4684 = vmatpush.bf16.msra.mxu3 %v10570_v7  ;;  %v10185_v40 = vld [vmem:[%s12731_s19 + $0xa0] sm:$0xf] }
 0x386   : > { %16644 = vst [vmem:[#allocation156_spill] sm:$0xff] %v12779_v23 }
 0x389   : > { %v2795_v60 = vpop.f32.mrf.mxu2 }
 0x38a   : > { %v2796_v18 = vadd.f32 %v2795_v60, %v2707_v5  ;;  %v2884_v28 = vpop.f32.mrf.mxu3  ;;  %v2620_v21 = vpop.f32.mrf.mxu0  ;;  %v10964_v5 = vld [vmem:[%s12731_s19 + $0xac] sm:$0xf0] }
 0x38b   : > { %v2709_v56 = vpop.f32.mrf.mxu1 }
 0x38c   : > { %v12785_v19 = vadd.f32 %v2884_v28, %v2796_v18  ;;  %v2710_v29 = vadd.f32 %v2709_v56, %v2620_v21  ;;  %v10186_v18 = vor.u32 %v10964_v5, %v10185_v40  ;;  %v10313_v28 = vld [vmem:[%s12731_s19 + $0x1a0] sm:$0xf]  ;;  %v10996_v21 = vld [vmem:[%s12731_s19 + $0x1ac] sm:$0xf0] }
 0x38d   : > { %2935 = vmatmul.bf16.gmra.mxu0 %v12131_v0  ;;  %3024 = vmatmul.bf16.gmra.mxu1 %v12133_v1  ;;  %v10314_v58 = vor.u32 %v10996_v21, %v10313_v28 }
 0x38e   : > { %16645 = vst [vmem:[#allocation157_spill] sm:$0xff] %v12785_v19  ;;  %3113 = vmatmul.bf16.gmra.mxu2 %v12135_v2  ;;  %4417 = vmatpush.bf16.msra.mxu0 %v10186_v18 }
 0x38f   : > { %3202 = vmatmul.bf16.gmra.mxu3 %v12137_v3  ;;  %4506 = vmatpush.bf16.msra.mxu1 %v10314_v58  ;;  %v10425_v58 = vld [vmem:[%s12731_s19 + $0x280] sm:$0xf] }
 0x391   : > { %v2798_v20 = vpop.f32.mrf.mxu2 }
 0x392   : > { %v2799_v42 = vadd.f32 %v2798_v20, %v2710_v29  ;;  %v2887_v6 = vpop.f32.mrf.mxu3  ;;  %v2622_v60 = vpop.f32.mrf.mxu0 }
 0x393   : > { %v2711_v61 = vpop.f32.mrf.mxu1 }
 0x394   : > { %v12795_v57 = vadd.f32 %v2887_v6, %v2799_v42  ;;  %v2712_v56 = vadd.f32 %v2711_v61, %v2622_v60 }
 0x396   : > { %16646 = vst [vmem:[#allocation158_spill] sm:$0xff] %v12795_v57 }
 0x399   : > { %v2800_v63 = vpop.f32.mrf.mxu2 }
 0x39a   : > { %v2801_v31 = vadd.f32 %v2800_v63, %v2712_v56  ;;  %v2889_v19 = vpop.f32.mrf.mxu3  ;;  %v2625_v7 = vpop.f32.mrf.mxu0  ;;  %v11024_v56 = vld [vmem:[%s12731_s19 + $0x28c] sm:$0xf0] }
 0x39b   : > { %v2714_v23 = vpop.f32.mrf.mxu1 }
 0x39c   : > { %v12797_v29 = vadd.f32 %v2889_v19, %v2801_v31  ;;  %v2715_v20 = vadd.f32 %v2714_v23, %v2625_v7  ;;  %v10426_v31 = vor.u32 %v11024_v56, %v10425_v58  ;;  %v10553_v7 = vld [vmem:[%s12731_s19 + $0x380] sm:$0xf] }
 0x39d   : > { %2940 = vmatmul.bf16.gmra.mxu0 %v12151_v32  ;;  %3029 = vmatmul.bf16.gmra.mxu1 %v12153_v33 }
 0x39e   : > { %16647 = vst [vmem:[#allocation159_spill] sm:$0xff] %v12797_v29  ;;  %3118 = vmatmul.bf16.gmra.mxu2 %v12155_v34  ;;  %v11056_v29 = vld [vmem:[%s12731_s19 + $0x38c] sm:$0xf0] }
 0x39f   : > { %3207 = vmatmul.bf16.gmra.mxu3 %v12157_v35  ;;  %4596 = vmatpush.bf16.msra.mxu2 %v10426_v31 }
 0x3a1   : > { %v2803_v42 = vpop.f32.mrf.mxu2 }
 0x3a2   : > { %v2804_v6 = vadd.f32 %v2803_v42, %v2715_v20  ;;  %v2892_v40 = vpop.f32.mrf.mxu3  ;;  %v2627_v5 = vpop.f32.mrf.mxu0  ;;  %v10554_v42 = vor.u32 %v11056_v29, %v10553_v7 }
 0x3a3   : > { %v2716_v60 = vpop.f32.mrf.mxu1 }
 0x3a4   : > { %v12803_v19 = vadd.f32 %v2892_v40, %v2804_v6  ;;  %v2717_v23 = vadd.f32 %v2716_v60, %v2627_v5  ;;  %4685 = vmatpush.bf16.msra.mxu3 %v10554_v42  ;;  %v10169_v60 = vld [vmem:[%s12731_s19 + $0x80] sm:$0xf] }
 0x3a6   : > { %16648 = vst [vmem:[#allocation160_spill] sm:$0xff] %v12803_v19 }
 0x3a9   : > { %v2805_v18 = vpop.f32.mrf.mxu2 }
 0x3aa   : > { %v2806_v28 = vadd.f32 %v2805_v18, %v2717_v23  ;;  %v2894_v21 = vpop.f32.mrf.mxu3  ;;  %v2630_v61 = vpop.f32.mrf.mxu0  ;;  %v10960_v23 = vld [vmem:[%s12731_s19 + $0x8c] sm:$0xf0] }
 0x3ab   : > { %v2719_v63 = vpop.f32.mrf.mxu1 }
 0x3ac   : > { %v12809_v57 = vadd.f32 %v2894_v21, %v2806_v28  ;;  %v2720_v20 = vadd.f32 %v2719_v63, %v2630_v61  ;;  %v10170_v28 = vor.u32 %v10960_v23, %v10169_v60  ;;  %v10297_v21 = vld [vmem:[%s12731_s19 + $0x180] sm:$0xf]  ;;  %v10992_v61 = vld [vmem:[%s12731_s19 + $0x18c] sm:$0xf0] }
 0x3ad   : > { %2945 = vmatmul.bf16.gmra.mxu0 %v12163_v44  ;;  %3034 = vmatmul.bf16.gmra.mxu1 %v12165_v45  ;;  %v10298_v29 = vor.u32 %v10992_v61, %v10297_v21 }
 0x3ae   : > { %16649 = vst [vmem:[#allocation161_spill] sm:$0xff] %v12809_v57  ;;  %3123 = vmatmul.bf16.gmra.mxu2 %v12167_v46  ;;  %4418 = vmatpush.bf16.msra.mxu0 %v10170_v28 }
 0x3af   : > { %3212 = vmatmul.bf16.gmra.mxu3 %v12169_v48  ;;  %4507 = vmatpush.bf16.msra.mxu1 %v10298_v29  ;;  %v10409_v29 = vld [vmem:[%s12731_s19 + $0x260] sm:$0xf] }
 0x3b1   : > { %v2808_v6 = vpop.f32.mrf.mxu2 }
 0x3b2   : > { %v2809_v40 = vadd.f32 %v2808_v6, %v2720_v20  ;;  %v2897_v5 = vpop.f32.mrf.mxu3  ;;  %v2632_v18 = vpop.f32.mrf.mxu0 }
 0x3b3   : > { %v2721_v58 = vpop.f32.mrf.mxu1 }
 0x3b4   : > { %v12819_v56 = vadd.f32 %v2897_v5, %v2809_v40  ;;  %v2722_v63 = vadd.f32 %v2721_v58, %v2632_v18 }
 0x3b6   : > { %16650 = vst [vmem:[#allocation162_spill] sm:$0xff] %v12819_v56 }
 0x3b9   : > { %v2810_v31 = vpop.f32.mrf.mxu2 }
 0x3ba   : > { %v2811_v7 = vadd.f32 %v2810_v31, %v2722_v63  ;;  %v2899_v57 = vpop.f32.mrf.mxu3  ;;  %v2635_v42 = vpop.f32.mrf.mxu0  ;;  %v11020_v63 = vld [vmem:[%s12731_s19 + $0x26c] sm:$0xf0] }
 0x3bb   : > { %v2724_v19 = vpop.f32.mrf.mxu1 }
 0x3bc   : > { %v12821_v20 = vadd.f32 %v2899_v57, %v2811_v7  ;;  %v2725_v6 = vadd.f32 %v2724_v19, %v2635_v42  ;;  %v10410_v7 = vor.u32 %v11020_v63, %v10409_v29  ;;  %v10537_v42 = vld [vmem:[%s12731_s19 + $0x360] sm:$0xf] }
 0x3bd   : > { %2950 = vmatmul.bf16.gmra.mxu0 %v12179_v10  ;;  %3039 = vmatmul.bf16.gmra.mxu1 %v12181_v11 }
 0x3be   : > { %16651 = vst [vmem:[#allocation163_spill] sm:$0xff] %v12821_v20  ;;  %3128 = vmatmul.bf16.gmra.mxu2 %v12183_v16  ;;  %v11052_v20 = vld [vmem:[%s12731_s19 + $0x36c] sm:$0xf0] }
 0x3bf   : > { %3217 = vmatmul.bf16.gmra.mxu3 %v12185_v17  ;;  %4597 = vmatpush.bf16.msra.mxu2 %v10410_v7 }
 0x3c1   : > { %v2813_v40 = vpop.f32.mrf.mxu2 }
 0x3c2   : > { %v2814_v5 = vadd.f32 %v2813_v40, %v2725_v6  ;;  %v2902_v60 = vpop.f32.mrf.mxu3  ;;  %v2637_v23 = vpop.f32.mrf.mxu0  ;;  %v10538_v40 = vor.u32 %v11052_v20, %v10537_v42 }
 0x3c3   : > { %v2726_v18 = vpop.f32.mrf.mxu1 }
 0x3c4   : > { %v12827_v57 = vadd.f32 %v2902_v60, %v2814_v5  ;;  %v2727_v19 = vadd.f32 %v2726_v18, %v2637_v23  ;;  %4686 = vmatpush.bf16.msra.mxu3 %v10538_v40  ;;  %v10153_v18 = vld [vmem:[%s12731_s19 + $0x60] sm:$0xf] }
 0x3c6   : > { %16652 = vst [vmem:[#allocation164_spill] sm:$0xff] %v12827_v57 }
 0x3c9   : > { %v2815_v28 = vpop.f32.mrf.mxu2 }
 0x3ca   : > { %v2816_v21 = vadd.f32 %v2815_v28, %v2727_v19  ;;  %v2904_v61 = vpop.f32.mrf.mxu3  ;;  %v2916_v58 = vpop.f32.mrf.mxu0  ;;  %v10956_v19 = vld [vmem:[%s12731_s19 + $0x6c] sm:$0xf0] }
 0x3cb   : > { %v3005_v31 = vpop.f32.mrf.mxu1 }
 0x3cc   : > { %v12833_v56 = vadd.f32 %v2904_v61, %v2816_v21  ;;  %v3006_v6 = vadd.f32 %v3005_v31, %v2916_v58  ;;  %v10154_v21 = vor.u32 %v10956_v19, %v10153_v18  ;;  %v10281_v61 = vld [vmem:[%s12731_s19 + $0x160] sm:$0xf]  ;;  %v10988_v58 = vld [vmem:[%s12731_s19 + $0x16c] sm:$0xf0] }
 0x3cd   : > { %2955 = vmatmul.bf16.gmra.mxu0 %v12191_v30  ;;  %3044 = vmatmul.bf16.gmra.mxu1 %v12193_v36  ;;  %v10282_v20 = vor.u32 %v10988_v58, %v10281_v61  ;;  %v16657_v18 = vld [vmem:[#allocation46_spill] sm:$0xff] }
 0x3ce   : > { %16653 = vst [vmem:[#allocation165_spill] sm:$0xff] %v12833_v56  ;;  %3133 = vmatmul.bf16.gmra.mxu2 %v12195_v37  ;;  %4419 = vmatpush.bf16.msra.mxu0 %v10154_v21 }
 0x3cf   : > { %3222 = vmatmul.bf16.gmra.mxu3 %v12197_v39  ;;  %4508 = vmatpush.bf16.msra.mxu1 %v10282_v20 }
 0x3d1   : > { %v3094_v5 = vpop.f32.mrf.mxu2 }
 0x3d2   : > { %v3095_v60 = vadd.f32 %v3094_v5, %v3006_v6  ;;  %v3183_v23 = vpop.f32.mrf.mxu3  ;;  %v2918_v28 = vpop.f32.mrf.mxu0 }
 0x3d3   : > { %v3007_v29 = vpop.f32.mrf.mxu1 }
 0x3d4   : > { %v12843_v63 = vadd.f32 %v3183_v23, %v3095_v60  ;;  %v3008_v31 = vadd.f32 %v3007_v29, %v2918_v28  ;;  %v16658_v60 = vld [vmem:[#allocation47_spill] sm:$0xff]  ;;  %v16659_v23 = vld [vmem:[#allocation48_spill] sm:$0xff] }
 0x3d6   : > { %16654 = vst [vmem:[#allocation166_spill] sm:$0xff] %v12843_v63 }
 0x3d9   : > { %v3096_v7 = vpop.f32.mrf.mxu2 }
 0x3da   : > { %v3097_v42 = vadd.f32 %v3096_v7, %v3008_v31  ;;  %v3185_v56 = vpop.f32.mrf.mxu3  ;;  %v2921_v40 = vpop.f32.mrf.mxu0 }
 0x3db   : > { %v3010_v57 = vpop.f32.mrf.mxu1 }
 0x3dc   : > { %v12845_v6 = vadd.f32 %v3185_v56, %v3097_v42  ;;  %v3011_v5 = vadd.f32 %v3010_v57, %v2921_v40  ;;  %v10393_v42 = vld [vmem:[%s12731_s19 + $0x240] sm:$0xf]  ;;  %v11016_v40 = vld [vmem:[%s12731_s19 + $0x24c] sm:$0xf0] }
 0x3dd   : > { %2960 = vmatmul.bf16.gmra.mxu0 %v16656_v43  ;;  %3049 = vmatmul.bf16.gmra.mxu1 %v16657_v18  ;;  %v10394_v63 = vor.u32 %v11016_v40, %v10393_v42  ;;  %v10137_v40 = vld [vmem:[%s12731_s19 + $0x40] sm:$0xf]  ;;  %v16668_v43 = vld [vmem:[#allocation57_spill] sm:$0xff] }
 0x3de   : > { %16655 = vst [vmem:[#allocation167_spill] sm:$0xff] %v12845_v6  ;;  %3138 = vmatmul.bf16.gmra.mxu2 %v16658_v60  ;;  %v11048_v60 = vld [vmem:[%s12731_s19 + $0x34c] sm:$0xf0] }
 0x3df   : > { %3227 = vmatmul.bf16.gmra.mxu3 %v16659_v23  ;;  %v10521_v23 = vld [vmem:[%s12731_s19 + $0x340] sm:$0xf]  ;;  %4598 = vmatpush.bf16.msra.mxu2 %v10394_v63 }
 0x3e1   : > { %v3099_v19 = vpop.f32.mrf.mxu2 }
 0x3e2   : > { %v3100_v28 = vadd.f32 %v3099_v19, %v3011_v5  ;;  %v3188_v21 = vpop.f32.mrf.mxu3  ;;  %v2923_v61 = vpop.f32.mrf.mxu0  ;;  %v16662_v19 = vld [vmem:[#allocation51_spill] sm:$0xff] }
 0x3e3   : > { %v3012_v58 = vpop.f32.mrf.mxu1 }
 0x3e4   : > { %v12851_v56 = vadd.f32 %v3188_v21, %v3100_v28  ;;  %v3013_v57 = vadd.f32 %v3012_v58, %v2923_v61  ;;  %v10522_v28 = vor.u32 %v11048_v60, %v10521_v23  ;;  %v16663_v21 = vld [vmem:[#allocation52_spill] sm:$0xff]  ;;  %v16664_v61 = vld [vmem:[#allocation53_spill] sm:$0xff]  ;;  %v16665_v58 = vld [vmem:[#allocation54_spill] sm:$0xff] }
 0x3e6   : > { %16660 = vst [vmem:[#allocation168_spill] sm:$0xff] %v12851_v56  ;;  %4687 = vmatpush.bf16.msra.mxu3 %v10522_v28 }
 0x3e9   : > { %v3101_v29 = vpop.f32.mrf.mxu2 }
 0x3ea   : > { %v3102_v20 = vadd.f32 %v3101_v29, %v3013_v57  ;;  %v3190_v31 = vpop.f32.mrf.mxu3  ;;  %v2926_v7 = vpop.f32.mrf.mxu0 }
 0x3eb   : > { %v3015_v6 = vpop.f32.mrf.mxu1 }
 0x3ec   : > { %v12857_v18 = vadd.f32 %v3190_v31, %v3102_v20  ;;  %v3016_v5 = vadd.f32 %v3015_v6, %v2926_v7  ;;  %v10952_v20 = vld [vmem:[%s12731_s19 + $0x4c] sm:$0xf0]  ;;  %v10265_v6 = vld [vmem:[%s12731_s19 + $0x140] sm:$0xf] }
 0x3ed   : > { %2965 = vmatmul.bf16.gmra.mxu0 %v16662_v19  ;;  %3054 = vmatmul.bf16.gmra.mxu1 %v16663_v21  ;;  %v10984_v7 = vld [vmem:[%s12731_s19 + $0x14c] sm:$0xf0] }
 0x3ee   : > { %16661 = vst [vmem:[#allocation169_spill] sm:$0xff] %v12857_v18  ;;  %3143 = vmatmul.bf16.gmra.mxu2 %v16664_v61  ;;  %v10138_v18 = vor.u32 %v10952_v20, %v10137_v40  ;;  %v10266_v63 = vor.u32 %v10984_v7, %v10265_v6  ;;  %v16669_v40 = vld [vmem:[#allocation58_spill] sm:$0xff] }
 0x3ef   : > { %3232 = vmatmul.bf16.gmra.mxu3 %v16665_v58 }
 0x3f0   : > { %4420 = vmatpush.bf16.msra.mxu0 %v10138_v18  ;;  %4509 = vmatpush.bf16.msra.mxu1 %v10266_v63 }
 0x3f1   : > { %v3104_v57 = vpop.f32.mrf.mxu2 }
 0x3f2   : > { %v3105_v29 = vadd.f32 %v3104_v57, %v3016_v5  ;;  %v3193_v42 = vpop.f32.mrf.mxu3  ;;  %v2928_v31 = vpop.f32.mrf.mxu0 }
 0x3f3   : > { %v3017_v56 = vpop.f32.mrf.mxu1 }
 0x3f4   : > { %v12867_v19 = vadd.f32 %v3193_v42, %v3105_v29  ;;  %v3018_v60 = vadd.f32 %v3017_v56, %v2928_v31  ;;  %v16670_v29 = vld [vmem:[#allocation59_spill] sm:$0xff]  ;;  %v16671_v42 = vld [vmem:[#allocation60_spill] sm:$0xff] }
 0x3f6   : > { %16666 = vst [vmem:[#allocation170_spill] sm:$0xff] %v12867_v19 }
 0x3f9   : > { %v3106_v23 = vpop.f32.mrf.mxu2 }
 0x3fa   : > { %v3107_v61 = vadd.f32 %v3106_v23, %v3018_v60  ;;  %v3195_v58 = vpop.f32.mrf.mxu3  ;;  %v2931_v28 = vpop.f32.mrf.mxu0  ;;  %v10377_v23 = vld [vmem:[%s12731_s19 + $0x220] sm:$0xf] }
 0x3fb   : > { %v3020_v21 = vpop.f32.mrf.mxu1 }
 0x3fc   : > { %v12869_v5 = vadd.f32 %v3195_v58, %v3107_v61  ;;  %v3021_v57 = vadd.f32 %v3020_v21, %v2931_v28  ;;  %v11012_v28 = vld [vmem:[%s12731_s19 + $0x22c] sm:$0xf0] }
 0x3fd   : > { %2970 = vmatmul.bf16.gmra.mxu0 %v16668_v43  ;;  %3059 = vmatmul.bf16.gmra.mxu1 %v16669_v40  ;;  %v10378_v19 = vor.u32 %v11012_v28, %v10377_v23  ;;  %v10121_v28 = vld [vmem:[%s12731_s19 + $0x20] sm:$0xf] }
 0x3fe   : > { %16667 = vst [vmem:[#allocation171_spill] sm:$0xff] %v12869_v5  ;;  %3148 = vmatmul.bf16.gmra.mxu2 %v16670_v29  ;;  %v11044_v29 = vld [vmem:[%s12731_s19 + $0x32c] sm:$0xf0] }
 0x3ff   : > { %3237 = vmatmul.bf16.gmra.mxu3 %v16671_v42  ;;  %v10505_v42 = vld [vmem:[%s12731_s19 + $0x320] sm:$0xf]  ;;  %4599 = vmatpush.bf16.msra.mxu2 %v10378_v19 }
 0x401   : > { %v3109_v18 = vpop.f32.mrf.mxu2 }
 0x402   : > { %v3110_v56 = vadd.f32 %v3109_v18, %v3021_v57  ;;  %v3198_v20 = vpop.f32.mrf.mxu3  ;;  %v2933_v31 = vpop.f32.mrf.mxu0  ;;  %v16674_v18 = vld [vmem:[#allocation63_spill] sm:$0xff] }
 0x403   : > { %v3022_v6 = vpop.f32.mrf.mxu1 }
 0x404   : > { %v12875_v61 = vadd.f32 %v3198_v20, %v3110_v56  ;;  %v3023_v21 = vadd.f32 %v3022_v6, %v2933_v31  ;;  %v10506_v56 = vor.u32 %v11044_v29, %v10505_v42  ;;  %v16675_v20 = vld [vmem:[#allocation64_spill] sm:$0xff]  ;;  %v16676_v31 = vld [vmem:[#allocation65_spill] sm:$0xff]  ;;  %v16677_v6 = vld [vmem:[#allocation66_spill] sm:$0xff] }
 0x406   : > { %16672 = vst [vmem:[#allocation172_spill] sm:$0xff] %v12875_v61  ;;  %4688 = vmatpush.bf16.msra.mxu3 %v10506_v56 }
 0x409   : > { %v3111_v58 = vpop.f32.mrf.mxu2 }
 0x40a   : > { %v3112_v7 = vadd.f32 %v3111_v58, %v3023_v21  ;;  %v3200_v63 = vpop.f32.mrf.mxu3  ;;  %v2936_v60 = vpop.f32.mrf.mxu0 }
 0x40b   : > { %v3025_v5 = vpop.f32.mrf.mxu1 }
 0x40c   : > { %v12881_v40 = vadd.f32 %v3200_v63, %v3112_v7  ;;  %v3026_v57 = vadd.f32 %v3025_v5, %v2936_v60  ;;  %v10948_v7 = vld [vmem:[%s12731_s19 + $0x2c] sm:$0xf0]  ;;  %v10249_v5 = vld [vmem:[%s12731_s19 + $0x120] sm:$0xf] }
 0x40d   : > { %2975 = vmatmul.bf16.gmra.mxu0 %v16674_v18  ;;  %3064 = vmatmul.bf16.gmra.mxu1 %v16675_v20  ;;  %v10980_v60 = vld [vmem:[%s12731_s19 + $0x12c] sm:$0xf0] }
 0x40e   : > { %16673 = vst [vmem:[#allocation173_spill] sm:$0xff] %v12881_v40  ;;  %3153 = vmatmul.bf16.gmra.mxu2 %v16676_v31  ;;  %v10122_v40 = vor.u32 %v10948_v7, %v10121_v28  ;;  %v10250_v19 = vor.u32 %v10980_v60, %v10249_v5  ;;  %v16680_v28 = vld [vmem:[#allocation69_spill] sm:$0xff]  ;;  %v16681_v7 = vld [vmem:[#allocation70_spill] sm:$0xff] }
 0x40f   : > { %3242 = vmatmul.bf16.gmra.mxu3 %v16677_v6 }
 0x410   : > { %4421 = vmatpush.bf16.msra.mxu0 %v10122_v40  ;;  %4510 = vmatpush.bf16.msra.mxu1 %v10250_v19  ;;  %v16683_v40 = vld [vmem:[#allocation72_spill] sm:$0xff] }
 0x411   : > { %v3114_v21 = vpop.f32.mrf.mxu2 }
 0x412   : > { %v3115_v58 = vadd.f32 %v3114_v21, %v3026_v57  ;;  %v3203_v23 = vpop.f32.mrf.mxu3  ;;  %v2938_v63 = vpop.f32.mrf.mxu0 }
 0x413   : > { %v3027_v61 = vpop.f32.mrf.mxu1 }
 0x414   : > { %v12891_v18 = vadd.f32 %v3203_v23, %v3115_v58  ;;  %v3028_v29 = vadd.f32 %v3027_v61, %v2938_v63  ;;  %v16682_v58 = vld [vmem:[#allocation71_spill] sm:$0xff] }
 0x416   : > { %16678 = vst [vmem:[#allocation174_spill] sm:$0xff] %v12891_v18  ;;  %v10489_v18 = vld [vmem:[%s12731_s19 + $0x300] sm:$0xf] }
 0x419   : > { %v3116_v42 = vpop.f32.mrf.mxu2 }
 0x41a   : > { %v3117_v31 = vadd.f32 %v3116_v42, %v3028_v29  ;;  %v3205_v6 = vpop.f32.mrf.mxu3  ;;  %v2941_v56 = vpop.f32.mrf.mxu0  ;;  %v10361_v29 = vld [vmem:[%s12731_s19 + $0x200] sm:$0xf]  ;;  %v11008_v42 = vld [vmem:[%s12731_s19 + $0x20c] sm:$0xf0] }
 0x41b   : > { %v3030_v57 = vpop.f32.mrf.mxu1 }
 0x41c   : > { %v12893_v21 = vadd.f32 %v3205_v6, %v3117_v31  ;;  %v3031_v20 = vadd.f32 %v3030_v57, %v2941_v56 }
 0x41d   : > { %2980 = vmatmul.bf16.gmra.mxu0 %v16680_v28  ;;  %3069 = vmatmul.bf16.gmra.mxu1 %v16681_v7  ;;  %v10944_v7 = vld [vmem:[%s12731_s19 + $0xc] sm:$0xf0] }
 0x41e   : > { %16679 = vst [vmem:[#allocation175_spill] sm:$0xff] %v12893_v21  ;;  %3158 = vmatmul.bf16.gmra.mxu2 %v16682_v58 }
 0x41f   : > { %3247 = vmatmul.bf16.gmra.mxu3 %v16683_v40  ;;  %v11040_v40 = vld [vmem:[%s12731_s19 + $0x30c] sm:$0xf0] }
 0x421   : > { %v3119_v61 = vpop.f32.mrf.mxu2 }
 0x422   : > { %v3120_v23 = vadd.f32 %v3119_v61, %v3031_v20  ;;  %v3208_v63 = vpop.f32.mrf.mxu3  ;;  %v2943_v5 = vpop.f32.mrf.mxu0  ;;  %v10362_v20 = vor.u32 %v11008_v42, %v10361_v29  ;;  %v10105_v61 = vld [vmem:[%s12731_s19] sm:$0xf] }
 0x423   : > { %v3032_v60 = vpop.f32.mrf.mxu1 }
 0x424   : > { %v12899_v31 = vadd.f32 %v3208_v63, %v3120_v23  ;;  %v3033_v6 = vadd.f32 %v3032_v60, %v2943_v5  ;;  %v10490_v23 = vor.u32 %v11040_v40, %v10489_v18  ;;  %v10233_v63 = vld [vmem:[%s12731_s19 + $0x100] sm:$0xf]  ;;  %v10976_v5 = vld [vmem:[%s12731_s19 + $0x10c] sm:$0xf0]  ;;  %4600 = vmatpush.bf16.msra.mxu2 %v10362_v20  ;;  %v10106_v60 = vor.u32 %v10944_v7, %v10105_v61 }
 0x426   : > { %16684 = vst [vmem:[#allocation176_spill] sm:$0xff] %v12899_v31  ;;  %v10234_v31 = vor.u32 %v10976_v5, %v10233_v63  ;;  %4422 = vmatpush.bf16.msra.mxu0 %v10106_v60  ;;  %4689 = vmatpush.bf16.msra.mxu3 %v10490_v23 }
 0x428   : > { %4511 = vmatpush.bf16.msra.mxu1 %v10234_v31 }
 0x429   : > { %v3121_v19 = vpop.f32.mrf.mxu2 }
 0x42a   : > { %v3122_v56 = vadd.f32 %v3121_v19, %v3033_v6  ;;  %v3210_v57 = vpop.f32.mrf.mxu3  ;;  %v2946_v21 = vpop.f32.mrf.mxu0 }
 0x42b   : > { %v3035_v58 = vpop.f32.mrf.mxu1 }
 0x42c   : > { %v12907_v28 = vadd.f32 %v3210_v57, %v3122_v56  ;;  %v3036_v43 = vadd.f32 %v3035_v58, %v2946_v21 }
 0x42d   : > { %2985 = vmatmul.bf16.gmra.mxu0 %v12305_v9  ;;  %3074 = vmatmul.bf16.gmra.mxu1 %v12309_v8 }
 0x42e   : > { %16685 = vst [vmem:[#allocation177_spill] sm:$0xff] %v12907_v28  ;;  %3163 = vmatmul.bf16.gmra.mxu2 %v12311_v22 }
 0x42f   : > { %3252 = vmatmul.bf16.gmra.mxu3 %v12315_v41 }
 0x431   : > { %v3124_v6 = vpop.f32.mrf.mxu2 }
 0x432   : > { %v3125_v19 = vadd.f32 %v3124_v6, %v3036_v43  ;;  %v3213_v21 = vpop.f32.mrf.mxu3  ;;  %v2948_v18 = vpop.f32.mrf.mxu0 }
 0x433   : > { %v3037_v58 = vpop.f32.mrf.mxu1 }
 0x434   : > { %v12915_v40 = vadd.f32 %v3213_v21, %v3125_v19  ;;  %v3038_v29 = vadd.f32 %v3037_v58, %v2948_v18 }
 0x436   : > { %16686 = vst [vmem:[#allocation178_spill] sm:$0xff] %v12915_v40 }
 0x439   : > { %v3126_v42 = vpop.f32.mrf.mxu2 }
 0x43a   : > { %v3127_v7 = vadd.f32 %v3126_v42, %v3038_v29  ;;  %v3215_v56 = vpop.f32.mrf.mxu3  ;;  %v2951_v57 = vpop.f32.mrf.mxu0  ;;  %v11034_v42 = vld [vmem:[%s12731_s19 + $0x2e4] sm:$0xf] }
 0x43b   : > { %v3040_v20 = vpop.f32.mrf.mxu1 }
 0x43c   : > { %v12917_v61 = vadd.f32 %v3215_v56, %v3127_v7  ;;  %v3041_v63 = vadd.f32 %v3040_v20, %v2951_v57  ;;  %v10475_v7 = vld [vmem:[%s12731_s19 + $0x2f0] sm:$0xf0]  ;;  %v11066_v20 = vld [vmem:[%s12731_s19 + $0x3e4] sm:$0xf] }
 0x43d   : > { %2990 = vmatmul.bf16.gmra.mxu0 %v12329_v4  ;;  %3079 = vmatmul.bf16.gmra.mxu1 %v12331_v59  ;;  %v10478_v57 = vor.u32 %v11034_v42, %v10475_v7 }
 0x43e   : > { %16687 = vst [vmem:[#allocation179_spill] sm:$0xff] %v12917_v61  ;;  %3168 = vmatmul.bf16.gmra.mxu2 %v12333_v62  ;;  %v10603_v61 = vld [vmem:[%s12731_s19 + $0x3f0] sm:$0xf0] }
 0x43f   : > { %3257 = vmatmul.bf16.gmra.mxu3 %v16584_v38  ;;  %4949 = vmatpush.bf16.msrb.mxu2 %v10478_v57 }
 0x441   : > { %v3129_v43 = vpop.f32.mrf.mxu2 }
 0x442   : > { %v3130_v31 = vadd.f32 %v3129_v43, %v3041_v63  ;;  %v3218_v23 = vpop.f32.mrf.mxu3  ;;  %v2953_v5 = vpop.f32.mrf.mxu0  ;;  %v10606_v43 = vor.u32 %v11066_v20, %v10603_v61 }
 0x443   : > { %v3042_v60 = vpop.f32.mrf.mxu1 }
 0x444   : > { %v12923_v6 = vadd.f32 %v3218_v23, %v3130_v31  ;;  %v3043_v19 = vadd.f32 %v3042_v60, %v2953_v5  ;;  %5038 = vmatpush.bf16.msrb.mxu3 %v10606_v43  ;;  %v10970_v60 = vld [vmem:[%s12731_s19 + $0xe4] sm:$0xf] }
 0x446   : > { %16688 = vst [vmem:[#allocation180_spill] sm:$0xff] %v12923_v6 }
 0x449   : > { %v3131_v21 = vpop.f32.mrf.mxu2 }
 0x44a   : > { %v3132_v18 = vadd.f32 %v3131_v21, %v3043_v19  ;;  %v3220_v58 = vpop.f32.mrf.mxu3  ;;  %v2956_v29 = vpop.f32.mrf.mxu0  ;;  %v10219_v19 = vld [vmem:[%s12731_s19 + $0xf0] sm:$0xf0] }
 0x44b   : > { %v3045_v56 = vpop.f32.mrf.mxu1 }
 0x44c   : > { %v12929_v40 = vadd.f32 %v3220_v58, %v3132_v18  ;;  %v3046_v63 = vadd.f32 %v3045_v56, %v2956_v29  ;;  %v10222_v18 = vor.u32 %v10970_v60, %v10219_v19  ;;  %v11002_v58 = vld [vmem:[%s12731_s19 + $0x1e4] sm:$0xf]  ;;  %v10347_v29 = vld [vmem:[%s12731_s19 + $0x1f0] sm:$0xf0] }
 0x44d   : > { %4423 = vmatmul.bf16.vlgmr.msra.gmra.mxu0 %v12065_v47  ;;  %4512 = vmatmul.bf16.vlgmr.msra.gmra.mxu1 %v12069_v51  ;;  %v10350_v61 = vor.u32 %v11002_v58, %v10347_v29 }
 0x44e   : > { %16689 = vst [vmem:[#allocation181_spill] sm:$0xff] %v12929_v40  ;;  %4601 = vmatmul.bf16.vlgmr.msra.gmra.mxu2 %v12071_v52  ;;  %4771 = vmatpush.bf16.msrb.mxu0 %v10222_v18 }
 0x44f   : > { %4690 = vmatmul.bf16.vlgmr.msra.gmra.mxu3 %v12073_v53  ;;  %4860 = vmatpush.bf16.msrb.mxu1 %v10350_v61  ;;  %v11030_v61 = vld [vmem:[%s12731_s19 + $0x2c4] sm:$0xf] }
 0x451   : > { %v3134_v31 = vpop.f32.mrf.mxu2 }
 0x452   : > { %v3135_v23 = vadd.f32 %v3134_v31, %v3046_v63  ;;  %v3223_v5 = vpop.f32.mrf.mxu3  ;;  %v2958_v21 = vpop.f32.mrf.mxu0 }
 0x453   : > { %v3047_v42 = vpop.f32.mrf.mxu1 }
 0x454   : > { %v12939_v7 = vadd.f32 %v3223_v5, %v3135_v23  ;;  %v3048_v56 = vadd.f32 %v3047_v42, %v2958_v21 }
 0x456   : > { %16690 = vst [vmem:[#allocation182_spill] sm:$0xff] %v12939_v7 }
 0x459   : > { %v3136_v57 = vpop.f32.mrf.mxu2 }
 0x45a   : > { %v3137_v20 = vadd.f32 %v3136_v57, %v3048_v56  ;;  %v3225_v40 = vpop.f32.mrf.mxu3  ;;  %v2961_v43 = vpop.f32.mrf.mxu0  ;;  %v10459_v56 = vld [vmem:[%s12731_s19 + $0x2d0] sm:$0xf0] }
 0x45b   : > { %v3050_v6 = vpop.f32.mrf.mxu1 }
 0x45c   : > { %v12941_v63 = vadd.f32 %v3225_v40, %v3137_v20  ;;  %v3051_v31 = vadd.f32 %v3050_v6, %v2961_v43  ;;  %v10462_v20 = vor.u32 %v11030_v61, %v10459_v56  ;;  %v11062_v43 = vld [vmem:[%s12731_s19 + $0x3c4] sm:$0xf] }
 0x45d   : > { %4428 = vmatmul.bf16.gmra.mxu0 %v12087_v12  ;;  %4517 = vmatmul.bf16.gmra.mxu1 %v12089_v13 }
 0x45e   : > { %16691 = vst [vmem:[#allocation183_spill] sm:$0xff] %v12941_v63  ;;  %4606 = vmatmul.bf16.gmra.mxu2 %v12091_v14  ;;  %v10587_v63 = vld [vmem:[%s12731_s19 + $0x3d0] sm:$0xf0] }
 0x45f   : > { %4695 = vmatmul.bf16.gmra.mxu3 %v12093_v15  ;;  %4950 = vmatpush.bf16.msrb.mxu2 %v10462_v20 }
 0x461   : > { %v3139_v23 = vpop.f32.mrf.mxu2 }
 0x462   : > { %v3140_v5 = vadd.f32 %v3139_v23, %v3051_v31  ;;  %v3228_v60 = vpop.f32.mrf.mxu3  ;;  %v2963_v19 = vpop.f32.mrf.mxu0  ;;  %v10590_v23 = vor.u32 %v11062_v43, %v10587_v63 }
 0x463   : > { %v3052_v21 = vpop.f32.mrf.mxu1 }
 0x464   : > { %v12947_v40 = vadd.f32 %v3228_v60, %v3140_v5  ;;  %v3053_v6 = vadd.f32 %v3052_v21, %v2963_v19  ;;  %5039 = vmatpush.bf16.msrb.mxu3 %v10590_v23  ;;  %v10966_v21 = vld [vmem:[%s12731_s19 + $0xc4] sm:$0xf] }
 0x466   : > { %16692 = vst [vmem:[#allocation184_spill] sm:$0xff] %v12947_v40 }
 0x469   : > { %v3141_v18 = vpop.f32.mrf.mxu2 }
 0x46a   : > { %v3142_v58 = vadd.f32 %v3141_v18, %v3053_v6  ;;  %v3230_v29 = vpop.f32.mrf.mxu3  ;;  %v2966_v42 = vpop.f32.mrf.mxu0  ;;  %v10203_v6 = vld [vmem:[%s12731_s19 + $0xd0] sm:$0xf0] }
 0x46b   : > { %v3055_v57 = vpop.f32.mrf.mxu1 }
 0x46c   : > { %v12953_v7 = vadd.f32 %v3230_v29, %v3142_v58  ;;  %v3056_v31 = vadd.f32 %v3055_v57, %v2966_v42  ;;  %v10206_v58 = vor.u32 %v10966_v21, %v10203_v6  ;;  %v10998_v29 = vld [vmem:[%s12731_s19 + $0x1c4] sm:$0xf]  ;;  %v10331_v42 = vld [vmem:[%s12731_s19 + $0x1d0] sm:$0xf0] }
 0x46d   : > { %4433 = vmatmul.bf16.gmra.mxu0 %v12099_v24  ;;  %4522 = vmatmul.bf16.gmra.mxu1 %v12101_v25  ;;  %v10334_v63 = vor.u32 %v10998_v29, %v10331_v42 }
 0x46e   : > { %16693 = vst [vmem:[#allocation185_spill] sm:$0xff] %v12953_v7  ;;  %4611 = vmatmul.bf16.gmra.mxu2 %v12103_v26  ;;  %4772 = vmatpush.bf16.msrb.mxu0 %v10206_v58 }
 0x46f   : > { %4700 = vmatmul.bf16.gmra.mxu3 %v12105_v27  ;;  %4861 = vmatpush.bf16.msrb.mxu1 %v10334_v63  ;;  %v11026_v63 = vld [vmem:[%s12731_s19 + $0x2a4] sm:$0xf] }
 0x471   : > { %v3144_v5 = vpop.f32.mrf.mxu2 }
 0x472   : > { %v3145_v60 = vadd.f32 %v3144_v5, %v3056_v31  ;;  %v3233_v19 = vpop.f32.mrf.mxu3  ;;  %v2968_v18 = vpop.f32.mrf.mxu0 }
 0x473   : > { %v3057_v61 = vpop.f32.mrf.mxu1 }
 0x474   : > { %v12963_v56 = vadd.f32 %v3233_v19, %v3145_v60  ;;  %v3058_v57 = vadd.f32 %v3057_v61, %v2968_v18 }
 0x476   : > { %16694 = vst [vmem:[#allocation186_spill] sm:$0xff] %v12963_v56 }
 0x479   : > { %v3146_v20 = vpop.f32.mrf.mxu2 }
 0x47a   : > { %v3147_v43 = vadd.f32 %v3146_v20, %v3058_v57  ;;  %v3235_v7 = vpop.f32.mrf.mxu3  ;;  %v2971_v23 = vpop.f32.mrf.mxu0  ;;  %v10443_v57 = vld [vmem:[%s12731_s19 + $0x2b0] sm:$0xf0] }
 0x47b   : > { %v3060_v40 = vpop.f32.mrf.mxu1 }
 0x47c   : > { %v12965_v31 = vadd.f32 %v3235_v7, %v3147_v43  ;;  %v3061_v5 = vadd.f32 %v3060_v40, %v2971_v23  ;;  %v10446_v43 = vor.u32 %v11026_v63, %v10443_v57  ;;  %v11058_v23 = vld [vmem:[%s12731_s19 + $0x3a4] sm:$0xf] }
 0x47d   : > { %4438 = vmatmul.bf16.gmra.mxu0 %v12119_v49  ;;  %4527 = vmatmul.bf16.gmra.mxu1 %v12121_v50 }
 0x47e   : > { %16695 = vst [vmem:[#allocation187_spill] sm:$0xff] %v12965_v31  ;;  %4616 = vmatmul.bf16.gmra.mxu2 %v12123_v54  ;;  %v10571_v31 = vld [vmem:[%s12731_s19 + $0x3b0] sm:$0xf0] }
 0x47f   : > { %4705 = vmatmul.bf16.gmra.mxu3 %v12125_v55  ;;  %4951 = vmatpush.bf16.msrb.mxu2 %v10446_v43 }
 0x481   : > { %v3149_v60 = vpop.f32.mrf.mxu2 }
 0x482   : > { %v3150_v19 = vadd.f32 %v3149_v60, %v3061_v5  ;;  %v3238_v21 = vpop.f32.mrf.mxu3  ;;  %v2973_v6 = vpop.f32.mrf.mxu0  ;;  %v10574_v60 = vor.u32 %v11058_v23, %v10571_v31 }
 0x483   : > { %v3062_v18 = vpop.f32.mrf.mxu1 }
 0x484   : > { %v12971_v7 = vadd.f32 %v3238_v21, %v3150_v19  ;;  %v3063_v40 = vadd.f32 %v3062_v18, %v2973_v6  ;;  %5040 = vmatpush.bf16.msrb.mxu3 %v10574_v60  ;;  %v10962_v18 = vld [vmem:[%s12731_s19 + $0xa4] sm:$0xf] }
 0x486   : > { %16696 = vst [vmem:[#allocation188_spill] sm:$0xff] %v12971_v7 }
 0x489   : > { %v3151_v58 = vpop.f32.mrf.mxu2 }
 0x48a   : > { %v3152_v29 = vadd.f32 %v3151_v58, %v3063_v40  ;;  %v3240_v42 = vpop.f32.mrf.mxu3  ;;  %v2976_v61 = vpop.f32.mrf.mxu0  ;;  %v10187_v40 = vld [vmem:[%s12731_s19 + $0xb0] sm:$0xf0] }
 0x48b   : > { %v3065_v20 = vpop.f32.mrf.mxu1 }
 0x48c   : > { %v12977_v56 = vadd.f32 %v3240_v42, %v3152_v29  ;;  %v3066_v5 = vadd.f32 %v3065_v20, %v2976_v61  ;;  %v10190_v29 = vor.u32 %v10962_v18, %v10187_v40  ;;  %v10994_v42 = vld [vmem:[%s12731_s19 + $0x1a4] sm:$0xf]  ;;  %v10315_v61 = vld [vmem:[%s12731_s19 + $0x1b0] sm:$0xf0] }
 0x48d   : > { %4443 = vmatmul.bf16.gmra.mxu0 %v12131_v0  ;;  %4532 = vmatmul.bf16.gmra.mxu1 %v12133_v1  ;;  %v10318_v31 = vor.u32 %v10994_v42, %v10315_v61  ;;  %v10283_v1 = vld [vmem:[%s12731_s19 + $0x170] sm:$0xf0] }
 0x48e   : > { %16697 = vst [vmem:[#allocation189_spill] sm:$0xff] %v12977_v56  ;;  %4621 = vmatmul.bf16.gmra.mxu2 %v12135_v2  ;;  %4773 = vmatpush.bf16.msrb.mxu0 %v10190_v29  ;;  %v10986_v2 = vld [vmem:[%s12731_s19 + $0x164] sm:$0xf] }
 0x48f   : > { %4710 = vmatmul.bf16.gmra.mxu3 %v12137_v3  ;;  %4862 = vmatpush.bf16.msrb.mxu1 %v10318_v31 }
 0x491   : > { %v3154_v19 = vpop.f32.mrf.mxu2 }
 0x492   : > { %v3155_v21 = vadd.f32 %v3154_v19, %v3066_v5  ;;  %v3243_v6 = vpop.f32.mrf.mxu3  ;;  %v2978_v58 = vpop.f32.mrf.mxu0 }
 0x493   : > { %v3067_v63 = vpop.f32.mrf.mxu1 }
 0x494   : > { %v12987_v57 = vadd.f32 %v3243_v6, %v3155_v21  ;;  %v3068_v20 = vadd.f32 %v3067_v63, %v2978_v58  ;;  %v16700_v58 = vld [vmem:[#allocation44_spill] sm:$0xff] }
 0x496   : > { %16698 = vst [vmem:[#allocation190_spill] sm:$0xff] %v12987_v57  ;;  %v16702_v57 = vld [vmem:[#allocation49_spill] sm:$0xff] }
 0x497   : > { %v10619_v28 = vmul.f32 -1.442695, %v16702_v57 }
 0x499   : > { %v3156_v43 = vpop.f32.mrf.mxu2 }
 0x49a   : > { %v3157_v23 = vadd.f32 %v3156_v43, %v3068_v20  ;;  %v3245_v56 = vpop.f32.mrf.mxu3  ;;  %v2981_v60 = vpop.f32.mrf.mxu0  ;;  %v11022_v43 = vld [vmem:[%s12731_s19 + $0x284] sm:$0xf] }
 0x49b   : > { %v3070_v7 = vpop.f32.mrf.mxu1 }
 0x49c   : > { %v12989_v5 = vadd.f32 %v3245_v56, %v3157_v23  ;;  %v3071_v19 = vadd.f32 %v3070_v7, %v2981_v60  ;;  %v10615_v56 = vmul.f32 -1.442695, %v16700_v58  ;;  %v10427_v23 = vld [vmem:[%s12731_s19 + $0x290] sm:$0xf0] }
 0x49d   : > { %4448 = vmatmul.bf16.gmra.mxu0 %v12151_v32  ;;  %4537 = vmatmul.bf16.gmra.mxu1 %v12153_v33  ;;  %v10954_v33 = vld [vmem:[%s12731_s19 + $0x64] sm:$0xf] }
 0x49e   : > { %16699 = vst [vmem:[#allocation191_spill] sm:$0xff] %v12989_v5  ;;  %4626 = vmatmul.bf16.gmra.mxu2 %v12155_v34  ;;  %11155 = vpow2.f32 %v10615_v56  ;;  %v10430_v5 = vor.u32 %v11022_v43, %v10427_v23  ;;  %v10299_v23 = vld [vmem:[%s12731_s19 + $0x190] sm:$0xf0] }
 0x49f   : > { %4715 = vmatmul.bf16.gmra.mxu3 %v12157_v35  ;;  %11157 = vpow2.f32 %v10619_v28 }
 0x4a0   : > { %4952 = vmatpush.bf16.msrb.mxu2 %v10430_v5  ;;  %v10990_v5 = vld [vmem:[%s12731_s19 + $0x184] sm:$0xf] }
 0x4a1   : > { %v3159_v21 = vpop.f32.mrf.mxu2 }
 0x4a2   : > { %v3160_v6 = vadd.f32 %v3159_v21, %v3071_v19  ;;  %v3248_v18 = vpop.f32.mrf.mxu3  ;;  %v2983_v40 = vpop.f32.mrf.mxu0  ;;  %v11054_v19 = vld [vmem:[%s12731_s19 + $0x384] sm:$0xf]  ;;  %v10555_v21 = vld [vmem:[%s12731_s19 + $0x390] sm:$0xf0] }
 0x4a3   : > { %v3072_v29 = vpop.f32.mrf.mxu1 }
 0x4a4   : > { %v12996_v7 = vadd.f32 %v3248_v18, %v3160_v6  ;;  %v3073_v42 = vadd.f32 %v3072_v29, %v2983_v40  ;;  %v11156_v18 = vpop.eup %11155  ;;  %v10558_v40 = vor.u32 %v11054_v19, %v10555_v21  ;;  %v16704_v19 = vld [vmem:[#allocation50_spill] sm:$0xff] }
 0x4a5   : > { %v13009_v56 = vadd.f32 1.0, %v11156_v18  ;;  %v10623_v21 = vmul.f32 -1.442695, %v16704_v19  ;;  %v10302_v18 = vor.u32 %v10990_v5, %v10299_v23 }
 0x4a6   : > { %16701 = vst [vmem:[#allocation44_spill] sm:$0xff] %v12996_v7  ;;  %5041 = vmatpush.bf16.msrb.mxu3 %v10558_v40  ;;  %v11158_v40 = vpop.eup %11157 }
 0x4a7   : > { %11159 = vrcp.f32 %v13009_v56  ;;  %4863 = vmatpush.bf16.msrb.mxu1 %v10302_v18  ;;  %vm6871_vm1 = vweird.f32 %v13009_v56 }
 0x4a8   : > { %11161 = vpow2.f32 %v10623_v21 }
 0x4a9   : > { %v3161_v61 = vpop.f32.mrf.mxu2 }
 0x4aa   : > { %v3162_v63 = vadd.f32 %v3161_v61, %v3073_v42  ;;  %v3250_v31 = vpop.f32.mrf.mxu3  ;;  %v2986_v20 = vpop.f32.mrf.mxu0 }
 0x4ab   : > { %v3075_v60 = vpop.f32.mrf.mxu1 }
 0x4ac   : > { %v13003_v35 = vadd.f32 %v3250_v31, %v3162_v63  ;;  %v3076_v6 = vadd.f32 %v3075_v60, %v2986_v20  ;;  %v10958_v63 = vld [vmem:[%s12731_s19 + $0x84] sm:$0xf]  ;;  %v10171_v31 = vld [vmem:[%s12731_s19 + $0x90] sm:$0xf0] }
 0x4ad   : > { %4453 = vmatmul.bf16.gmra.mxu0 %v12163_v44  ;;  %4542 = vmatmul.bf16.gmra.mxu1 %v12165_v45  ;;  %v10174_v43 = vor.u32 %v10958_v63, %v10171_v31  ;;  %v13021_v7 = vpop.eup %11159 }
 0x4ae   : > { %16703 = vst [vmem:[#allocation49_spill] sm:$0xff] %v13003_v35  ;;  %4631 = vmatmul.bf16.gmra.mxu2 %v12167_v46  ;;  %v16706_v46 = vld [vmem:[#allocation55_spill] sm:$0xff]  ;;  %vm6872_vm0 = vweird.f32 %v13021_v7 }
 0x4af   : > { %4720 = vmatmul.bf16.gmra.mxu3 %v12169_v48  ;;  %4774 = vmatpush.bf16.msrb.mxu0 %v10174_v43  ;;  %v10627_v45 = vmul.f32 -1.442695, %v16706_v46  ;;  %vm13059_vm2 = vmor %vm6871_vm1, %vm6872_vm0 }
 0x4b1   : > { %v3164_v29 = vpop.f32.mrf.mxu2 }
 0x4b2   : > { %v3165_v42 = vadd.f32 %v3164_v29, %v3076_v6  ;;  %v3253_v61 = vpop.f32.mrf.mxu3  ;;  %v2988_v20 = vpop.f32.mrf.mxu0  ;;  %v13019_v6 = vadd.f32 1.0, %v11158_v40 }
 0x4b3   : > { %v3077_v60 = vpop.f32.mrf.mxu1 }
 0x4b4   : > { %v13017_v35 = vadd.f32 %v3253_v61, %v3165_v42  ;;  %v3078_v28 = vadd.f32 %v3077_v60, %v2988_v20  ;;  %v6867_v61 = vmul.f32 %v13021_v7, %v13009_v56  ;;  %11163 = vrcp.f32 %v13019_v6  ;;  %v11162_v20 = vpop.eup %11161 }
 0x4b5   : > { %11165 = vpow2.f32 %v10627_v45  ;;  %v13033_v5 = vadd.f32 1.0, %v11162_v20  ;;  %vm6931_vm4 = vweird.f32 %v13019_v6 }
 0x4b6   : > { %16705 = vst [vmem:[#allocation50_spill] sm:$0xff] %v13017_v35  ;;  %v6868_v43 = vsub.f32 1.0, %v6867_v61 }
 0x4b7   : > { %11167 = vrcp.f32 %v13033_v5  ;;  %vm6991_vm9 = vweird.f32 %v13033_v5 }
 0x4b9   : > { %v3166_v29 = vpop.f32.mrf.mxu2 }
 0x4ba   : > { %v3167_v63 = vadd.f32 %v3166_v29, %v3078_v28  ;;  %v3255_v31 = vpop.f32.mrf.mxu3  ;;  %v2991_v48 = vpop.f32.mrf.mxu0 }
 0x4bb   : > { %v3080_v44 = vpop.f32.mrf.mxu1  ;;  %v13036_v28 = vpop.eup %11163 }
 0x4bc   : > { %v13024_v34 = vadd.f32 %v3255_v31, %v3167_v63  ;;  %v3081_v42 = vadd.f32 %v3080_v44, %v2991_v48  ;;  %v16708_v44 = vld [vmem:[#allocation56_spill] sm:$0xff]  ;;  %v11166_v45 = vpop.eup %11165  ;;  %v6869_v31 = vmul.f32 %v13021_v7, %v6868_v43  ;;  %v6927_v61 = vmul.f32 %v13036_v28, %v13019_v6 }
 0x4bd   : > { %4458 = vmatmul.bf16.gmra.mxu0 %v12179_v10  ;;  %4547 = vmatmul.bf16.gmra.mxu1 %v12181_v11  ;;  %v10631_v48 = vmul.f32 -1.442695, %v16708_v44  ;;  %vm6932_vm5 = vweird.f32 %v13036_v28 }
 0x4be   : > { %16707 = vst [vmem:[#allocation55_spill] sm:$0xff] %v13024_v34  ;;  %4636 = vmatmul.bf16.gmra.mxu2 %v12183_v16  ;;  %v6870_v20 = vadd.f32 %v13021_v7, %v6869_v31  ;;  %v10411_v34 = vld [vmem:[%s12731_s19 + $0x270] sm:$0xf0]  ;;  %vm13099_vm6 = vmor %vm6931_vm4, %vm6932_vm5 }
 0x4bf   : > { %4725 = vmatmul.bf16.gmra.mxu3 %v12185_v17  ;;  %11169 = vpow2.f32 %v10631_v48  ;;  %v13051_v48 = vpop.eup %11167  ;;  %v11050_v17 = vld [vmem:[%s12731_s19 + $0x364] sm:$0xf]  ;;  %v10539_v16 = vld [vmem:[%s12731_s19 + $0x370] sm:$0xf0] }
 0x4c0   : > { %v10542_v32 = vor.u32 %v11050_v17, %v10539_v16  ;;  %v10395_v17 = vld [vmem:[%s12731_s19 + $0x250] sm:$0xf0]  ;;  %vm6992_vm8 = vweird.f32 %v13051_v48 }
 0x4c1   : > { %v3169_v23 = vpop.f32.mrf.mxu2  ;;  %vm13126_vm10 = vmor %vm6991_vm9, %vm6992_vm8 }
 0x4c2   : > { %v3170_v60 = vadd.f32 %v3169_v23, %v3081_v42  ;;  %v3258_v21 = vpop.f32.mrf.mxu3  ;;  %v2993_v18 = vpop.f32.mrf.mxu0  ;;  %v13044_v42 = vadd.f32 1.0, %v11166_v45  ;;  %v6875_v45 = vand.u32 2147483647, %v13009_v56  ;;  %5042 = vmatpush.bf16.msrb.mxu3 %v10542_v32 }
 0x4c3   : > { %v3082_v40 = vpop.f32.mrf.mxu1 }
 0x4c4   : > { %v13038_v29 = vadd.f32 %v3258_v21, %v3170_v60  ;;  %v3083_v63 = vadd.f32 %v3082_v40, %v2993_v18  ;;  %v6877_v60 = vand.u32 2147483648, %v13009_v56  ;;  %v6928_v21 = vsub.f32 1.0, %v6927_v61 }
 0x4c5   : > { %v11170_v61 = vpop.eup %11169  ;;  %11171 = vrcp.f32 %v13044_v42  ;;  %vm6876_vm3 = vcmp.eq.f32.partialorder %v6875_v45, 8.507059e+37  ;;  %vm7051_vm13 = vweird.f32 %v13044_v42 }
 0x4c6   : > { %16709 = vst [vmem:[#allocation56_spill] sm:$0xff] %v13038_v29  ;;  %v11018_v29 = vld [vmem:[%s12731_s19 + $0x264] sm:$0xf]  ;;  %v6878_v0 = vor.u32 1.1754944e-38, %v6877_v60  ;;  %v10523_v60 = vld [vmem:[%s12731_s19 + $0x350] sm:$0xf0] }
 0x4c7   : > { %v10414_v35 = vor.u32 %v11018_v29, %v10411_v34  ;;  %v10155_v34 = vld [vmem:[%s12731_s19 + $0x70] sm:$0xf0]  ;;  %v6874_v29 = vsel %vm13059_vm2, %v13021_v7, %v6870_v20  ;;  %v10286_v7 = vor.u32 %v10986_v2, %v10283_v1  ;;  %v11046_v20 = vld [vmem:[%s12731_s19 + $0x344] sm:$0xf] }
 0x4c8   : > { %v10158_v3 = vor.u32 %v10954_v33, %v10155_v34  ;;  %v11014_v33 = vld [vmem:[%s12731_s19 + $0x244] sm:$0xf]  ;;  %v6879_v16 = vsel %vm6876_vm3, %v6878_v0, %v6874_v29  ;;  %v10526_v34 = vor.u32 %v11046_v20, %v10523_v60 }
 0x4c9   : > { %v3171_v23 = vpop.f32.mrf.mxu2  ;;  %4953 = vmatpush.bf16.msrb.mxu2 %v10414_v35  ;;  %v13080_v35 = vadd.f32 1.0, %v11170_v61  ;;  %4864 = vmatpush.bf16.msrb.mxu1 %v10286_v7  ;;  %v8786_v32 = vmul.f32 %v6879_v16, %v16700_v58  ;;  %v16714_v29 = vld [vmem:[#allocation62_spill] sm:$0xff] }
 0x4ca   : > { %v3172_v18 = vadd.f32 %v3171_v23, %v3083_v63  ;;  %v3260_v43 = vpop.f32.mrf.mxu3  ;;  %v4424_v40 = vpop.f32.mrf.mxu0  ;;  %v16712_v23 = vld [vmem:[#allocation61_spill] sm:$0xff]  ;;  %4775 = vmatpush.bf16.msrb.mxu0 %v10158_v3  ;;  %v10398_v63 = vor.u32 %v11014_v33, %v10395_v17  ;;  %5043 = vmatpush.bf16.msrb.mxu3 %v10526_v34  ;;  %v10950_v60 = vld [vmem:[%s12731_s19 + $0x44] sm:$0xf] }
 0x4cb   : > { %v4513_v31 = vpop.f32.mrf.mxu1  ;;  %v10635_v11 = vmul.f32 -1.442695, %v16712_v23  ;;  %v13089_v1 = vpop.eup %11171  ;;  %vm7111_vm1 = vweird.f32 %v13080_v35 }
 0x4cc   : > { %v13065_v10 = vadd.f32 %v3260_v43, %v3172_v18  ;;  %v4514_v56 = vadd.f32 %v4513_v31, %v4424_v40  ;;  %v6929_v18 = vmul.f32 %v13036_v28, %v6928_v21  ;;  %v6987_v43 = vmul.f32 %v13051_v48, %v13033_v5 }
 0x4cd   : > { %4463 = vmatmul.bf16.gmra.mxu0 %v12191_v30  ;;  %4552 = vmatmul.bf16.gmra.mxu1 %v12193_v36  ;;  %11173 = vpow2.f32 %v10635_v11  ;;  %v6935_v21 = vand.u32 2147483647, %v13019_v6  ;;  %v6937_v31 = vand.u32 2147483648, %v13019_v6  ;;  %v7047_v58 = vmul.f32 %v13089_v1, %v13044_v42  ;;  %v10139_v6 = vld [vmem:[%s12731_s19 + $0x50] sm:$0xf0] }
 0x4ce   : > { %16713 = vst [vmem:[#allocation61_spill] sm:$0xff] %v13065_v10  ;;  %4641 = vmatmul.bf16.gmra.mxu2 %v12195_v37  ;;  %v6930_v2 = vadd.f32 %v13036_v28, %v6929_v18  ;;  %v6988_v3 = vsub.f32 1.0, %v6987_v43  ;;  %11175 = vrcp.f32 %v13080_v35  ;;  %v10639_v18 = vmul.f32 -1.442695, %v16714_v29 }
 0x4cf   : > { %4730 = vmatmul.bf16.gmra.mxu3 %v12197_v39  ;;  %4954 = vmatpush.bf16.msrb.mxu2 %v10398_v63  ;;  %vm6936_vm7 = vcmp.eq.f32.partialorder %v6935_v21, 8.507059e+37  ;;  %v7048_v34 = vsub.f32 1.0, %v7047_v58  ;;  %v6997_v21 = vand.u32 2147483648, %v13033_v5  ;;  %vm7052_vm12 = vweird.f32 %v13089_v1 }
 0x4d0   : > { %v6934_v16 = vsel %vm13099_vm6, %v13036_v28, %v6930_v2  ;;  %v6989_v17 = vmul.f32 %v13051_v48, %v6988_v3  ;;  %11177 = vpow2.f32 %v10639_v18  ;;  %v16718_v18 = vld [vmem:[#allocation67_spill] sm:$0xff]  ;;  %vm7053_vm14 = vmor %vm7051_vm13, %vm7052_vm12 }
 0x4d1   : > { %v4602_v40 = vpop.f32.mrf.mxu2 }
 0x4d2   : > { %v4603_v45 = vadd.f32 %v4602_v40, %v4514_v56  ;;  %v4691_v0 = vpop.f32.mrf.mxu3  ;;  %v4426_v11 = vpop.f32.mrf.mxu0  ;;  %v10982_v40 = vld [vmem:[%s12731_s19 + $0x144] sm:$0xf]  ;;  %v6990_v2 = vadd.f32 %v13051_v48, %v6989_v17 }
 0x4d3   : > { %v4515_v61 = vpop.f32.mrf.mxu1  ;;  %v11174_v33 = vpop.eup %11173 }
 0x4d4   : > { %v4692_v7 = vadd.f32 %v4691_v0, %v4603_v45  ;;  %v4516_v43 = vadd.f32 %v4515_v61, %v4426_v11  ;;  %v6938_v45 = vor.u32 1.1754944e-38, %v6937_v31  ;;  %v10142_v0 = vor.u32 %v10950_v60, %v10139_v6  ;;  %v10267_v11 = vld [vmem:[%s12731_s19 + $0x150] sm:$0xf0]  ;;  %v13117_v28 = vpop.eup %11175  ;;  %v16721_v6 = vld [vmem:[#allocation45_spill] sm:$0xff] }
 0x4d5   : > { %v10270_v61 = vor.u32 %v10982_v40, %v10267_v11  ;;  %v13115_v10 = vadd.f32 1.0, %v11174_v33  ;;  %v6995_v33 = vand.u32 2147483647, %v13033_v5  ;;  %v6998_v11 = vor.u32 1.1754944e-38, %v6997_v21 }
 0x4d6   : > { %v13109_v20 = vmul.f32 %v8786_v32, %v4692_v7  ;;  %v6939_v63 = vsel %vm6936_vm7, %v6938_v45, %v6934_v16  ;;  %4776 = vmatpush.bf16.msrb.mxu0 %v10142_v0  ;;  %v10643_v7 = vmul.f32 -1.442695, %v16718_v18  ;;  %v11178_v40 = vpop.eup %11177  ;;  %v16723_v45 = vld [vmem:[#allocation46_spill] sm:$0xff]  ;;  %v16724_v0 = vld [vmem:[#allocation47_spill] sm:$0xff]  ;;  %v7055_v21 = vand.u32 2147483647, %v13044_v42 }
 0x4d7   : > { %4865 = vmatpush.bf16.msrb.mxu1 %v10270_v61  ;;  %v8790_v58 = vmul.f32 %v6939_v63, %v16702_v57  ;;  %11179 = vrcp.f32 %v13115_v10  ;;  %v6994_v57 = vsel %vm13126_vm10, %v13051_v48, %v6990_v2  ;;  %v16725_v61 = vld [vmem:[#allocation48_spill] sm:$0xff]  ;;  %vm6996_vm11 = vcmp.eq.f32.partialorder %v6995_v33, 8.507059e+37 }
 0x4d8   : > { %16717 = vst [vmem:[#allocation62_spill] sm:$0xff] %v13109_v20  ;;  %11181 = vpow2.f32 %v10643_v7  ;;  %v6999_v63 = vsel %vm6996_vm11, %v6998_v11, %v6994_v57  ;;  %v7057_v2 = vand.u32 2147483648, %v13044_v42  ;;  %v16726_v7 = vld [vmem:[#allocation68_spill] sm:$0xff]  ;;  %vm7056_vm15 = vcmp.eq.f32.partialorder %v7055_v21, 8.507059e+37 }
 0x4d9   : > { %v4604_v39 = vpop.f32.mrf.mxu2  ;;  %v10647_v33 = vmul.f32 -1.442695, %v16726_v7  ;;  %vm7112_vm0 = vweird.f32 %v13117_v28  ;;  %vm7171_vm5 = vweird.f32 %v13115_v10 }
 0x4da   : > { %v4605_v3 = vadd.f32 %v4604_v39, %v4516_v43  ;;  %v4693_v32 = vpop.f32.mrf.mxu3  ;;  %v4429_v31 = vpop.f32.mrf.mxu0  ;;  %v7049_v39 = vmul.f32 %v13089_v1, %v7048_v34  ;;  %v7107_v43 = vmul.f32 %v13117_v28, %v13080_v35  ;;  %vm13173_vm2 = vmor %vm7111_vm1, %vm7112_vm0 }
 0x4db   : > { %v4518_v56 = vpop.f32.mrf.mxu1 }
 0x4dc   : > { %v4694_v16 = vadd.f32 %v4693_v32, %v4605_v3  ;;  %v4519_v60 = vadd.f32 %v4518_v56, %v4429_v31  ;;  %v7050_v34 = vadd.f32 %v13089_v1, %v7049_v39  ;;  %v7108_v3 = vsub.f32 1.0, %v7107_v43 }
 0x4dd   : > { %4468 = vmatmul.bf16.gmra.mxu0 %v16721_v6  ;;  %4557 = vmatmul.bf16.gmra.mxu1 %v16723_v45  ;;  %v13145_v32 = vadd.f32 1.0, %v11178_v40  ;;  %v8794_v39 = vmul.f32 %v6999_v63, %v16704_v19 }
 0x4de   : > { %v13138_v5 = vmul.f32 %v8790_v58, %v4694_v16  ;;  %4646 = vmatmul.bf16.gmra.mxu2 %v16724_v0  ;;  %v13148_v16 = vpop.eup %11179  ;;  %v7109_v11 = vmul.f32 %v13117_v28, %v7108_v3  ;;  %v7117_v3 = vand.u32 2147483648, %v13080_v35 }
 0x4df   : > { %4735 = vmatmul.bf16.gmra.mxu3 %v16725_v61  ;;  %v11182_v57 = vpop.eup %11181  ;;  %11183 = vrcp.f32 %v13145_v32  ;;  %v7167_v42 = vmul.f32 %v13148_v16, %v13115_v10  ;;  %v16733_v61 = vld [vmem:[#allocation52_spill] sm:$0xff]  ;;  %vm7172_vm4 = vweird.f32 %v13148_v16  ;;  %vm7231_vm9 = vweird.f32 %v13145_v32 }
 0x4e0   : > { %16722 = vst [vmem:[#allocation67_spill] sm:$0xff] %v13138_v5  ;;  %11185 = vpow2.f32 %v10647_v33  ;;  %v13163_v63 = vadd.f32 1.0, %v11182_v57  ;;  %v16730_v57 = vld [vmem:[#allocation73_spill] sm:$0xff]  ;;  %vm13209_vm6 = vmor %vm7171_vm5, %vm7172_vm4 }
 0x4e1   : > { %v4607_v48 = vpop.f32.mrf.mxu2 }
 0x4e2   : > { %v4608_v31 = vadd.f32 %v4607_v48, %v4519_v60  ;;  %v4696_v56 = vpop.f32.mrf.mxu3  ;;  %v4431_v58 = vpop.f32.mrf.mxu0  ;;  %v7054_v60 = vsel %vm7053_vm14, %v13089_v1, %v7050_v34  ;;  %v7058_v48 = vor.u32 1.1754944e-38, %v7057_v2  ;;  %v7115_v1 = vand.u32 2147483647, %v13080_v35  ;;  %v16731_v35 = vld [vmem:[#allocation51_spill] sm:$0xff] }
 0x4e3   : > { %v4520_v17 = vpop.f32.mrf.mxu1  ;;  %v7168_v2 = vsub.f32 1.0, %v7167_v42  ;;  %11187 = vrcp.f32 %v13163_v63  ;;  %v7118_v42 = vor.u32 1.1754944e-38, %v7117_v3  ;;  %vm7291_vm13 = vweird.f32 %v13163_v63 }
 0x4e4   : > { %v4697_v43 = vadd.f32 %v4696_v56, %v4608_v31  ;;  %v4521_v40 = vadd.f32 %v4520_v17, %v4431_v58  ;;  %v7059_v19 = vsel %vm7056_vm15, %v7058_v48, %v7054_v60  ;;  %v7110_v31 = vadd.f32 %v13117_v28, %v7109_v11 }
 0x4e5   : > { %v8798_v21 = vmul.f32 %v7059_v19, %v16706_v46  ;;  %v10651_v60 = vmul.f32 -1.442695, %v16730_v57  ;;  %vm7116_vm3 = vcmp.eq.f32.partialorder %v7115_v1, 8.507059e+37  ;;  %v7169_v19 = vmul.f32 %v13148_v16, %v7168_v2  ;;  %v10507_v2 = vld [vmem:[%s12731_s19 + $0x330] sm:$0xf0] }
 0x4e6   : > { %v13161_v5 = vmul.f32 %v8794_v39, %v4697_v43  ;;  %v13169_v39 = vpop.eup %11183  ;;  %v7114_v46 = vsel %vm13173_vm2, %v13117_v28, %v7110_v31  ;;  %v10379_v28 = vld [vmem:[%s12731_s19 + $0x230] sm:$0xf0]  ;;  %v11042_v31 = vld [vmem:[%s12731_s19 + $0x324] sm:$0xf] }
 0x4e7   : > { %v11186_v48 = vpop.eup %11185  ;;  %v7119_v1 = vsel %vm7116_vm3, %v7118_v42, %v7114_v46  ;;  %11189 = vpow2.f32 %v10651_v60  ;;  %v7175_v60 = vand.u32 2147483647, %v13115_v10  ;;  %vm7232_vm8 = vweird.f32 %v13169_v39 }
 0x4e8   : > { %16727 = vst [vmem:[#allocation68_spill] sm:$0xff] %v13161_v5  ;;  %v8802_v46 = vmul.f32 %v7119_v1, %v16708_v44  ;;  %vm13236_vm10 = vmor %vm7231_vm9, %vm7232_vm8 }
 0x4e9   : > { %v4609_v34 = vpop.f32.mrf.mxu2  ;;  %v13197_v0 = vpop.eup %11187  ;;  %vm7176_vm7 = vcmp.eq.f32.partialorder %v7175_v60, 8.507059e+37  ;;  %v7237_v60 = vand.u32 2147483648, %v13145_v32 }
 0x4ea   : > { %v4610_v56 = vadd.f32 %v4609_v34, %v4521_v40  ;;  %v4698_v58 = vpop.f32.mrf.mxu3  ;;  %v4434_v17 = vpop.f32.mrf.mxu0  ;;  %v7227_v34 = vmul.f32 %v13169_v39, %v13145_v32  ;;  %vm7292_vm12 = vweird.f32 %v13197_v0 }
 0x4eb   : > { %v4523_v33 = vpop.f32.mrf.mxu1  ;;  %vm7293_vm14 = vmor %vm7291_vm13, %vm7292_vm12 }
 0x4ec   : > { %v4699_v40 = vadd.f32 %v4698_v58, %v4610_v56  ;;  %v4524_v11 = vadd.f32 %v4523_v33, %v4434_v17  ;;  %v16734_v56 = vld [vmem:[#allocation53_spill] sm:$0xff]  ;;  %v16735_v58 = vld [vmem:[#allocation54_spill] sm:$0xff]  ;;  %v13194_v33 = vadd.f32 1.0, %v11186_v48  ;;  %v7177_v48 = vand.u32 2147483648, %v13115_v10 }
 0x4ed   : > { %4473 = vmatmul.bf16.gmra.mxu0 %v16731_v35  ;;  %4562 = vmatmul.bf16.gmra.mxu1 %v16733_v61  ;;  %v11010_v17 = vld [vmem:[%s12731_s19 + $0x224] sm:$0xf]  ;;  %v10510_v35 = vor.u32 %v11042_v31, %v10507_v2  ;;  %v11190_v31 = vpop.eup %11189 }
 0x4ee   : > { %v13186_v5 = vmul.f32 %v8798_v21, %v4699_v40  ;;  %4651 = vmatmul.bf16.gmra.mxu2 %v16734_v56  ;;  %v10382_v3 = vor.u32 %v11010_v17, %v10379_v28  ;;  %v7170_v21 = vadd.f32 %v13148_v16, %v7169_v19  ;;  %v7228_v40 = vsub.f32 1.0, %v7227_v34 }
 0x4ef   : > { %4740 = vmatmul.bf16.gmra.mxu3 %v16735_v58  ;;  %11191 = vrcp.f32 %v13194_v33  ;;  %v7287_v28 = vmul.f32 %v13197_v0, %v13163_v63  ;;  %v13225_v6 = vadd.f32 1.0, %v11190_v31  ;;  %v7235_v31 = vand.u32 2147483647, %v13145_v32  ;;  %v16745_v32 = vld [vmem:[#allocation58_spill] sm:$0xff] }
 0x4f0   : > { %16732 = vst [vmem:[#allocation73_spill] sm:$0xff] %v13186_v5  ;;  %4955 = vmatpush.bf16.msrb.mxu2 %v10382_v3  ;;  %5044 = vmatpush.bf16.msrb.mxu3 %v10510_v35  ;;  %v7174_v10 = vsel %vm13209_vm6, %v13148_v16, %v7170_v21  ;;  %v7229_v35 = vmul.f32 %v13169_v39, %v7228_v40  ;;  %v7178_v3 = vor.u32 1.1754944e-38, %v7177_v48  ;;  %vm7351_vm1 = vweird.f32 %v13194_v33 }
 0x4f1   : > { %v4612_v43 = vpop.f32.mrf.mxu2  ;;  %v7288_v45 = vsub.f32 1.0, %v7287_v28  ;;  %vm7236_vm11 = vcmp.eq.f32.partialorder %v7235_v31, 8.507059e+37  ;;  %vm7411_vm5 = vweird.f32 %v13225_v6 }
 0x4f2   : > { %v4613_v5 = vadd.f32 %v4612_v43, %v4524_v11  ;;  %v4701_v58 = vpop.f32.mrf.mxu3  ;;  %v4436_v56 = vpop.f32.mrf.mxu0  ;;  %v16736_v11 = vld [vmem:[#allocation74_spill] sm:$0xff]  ;;  %v10251_v43 = vld [vmem:[%s12731_s19 + $0x130] sm:$0xf0]  ;;  %v7179_v61 = vsel %vm7176_vm7, %v7178_v3, %v7174_v10  ;;  %v7230_v21 = vadd.f32 %v13169_v39, %v7229_v35  ;;  %v16746_v3 = vld [vmem:[#allocation59_spill] sm:$0xff] }
 0x4f3   : > { %v4525_v42 = vpop.f32.mrf.mxu1  ;;  %v10655_v19 = vmul.f32 -1.442695, %v16736_v11  ;;  %v8806_v28 = vmul.f32 %v7179_v61, %v16712_v23 }
 0x4f4   : > { %v4702_v34 = vadd.f32 %v4701_v58, %v4613_v5  ;;  %v4526_v17 = vadd.f32 %v4525_v42, %v4436_v56  ;;  %v10946_v5 = vld [vmem:[%s12731_s19 + $0x24] sm:$0xf]  ;;  %v10123_v56 = vld [vmem:[%s12731_s19 + $0x30] sm:$0xf0]  ;;  %v7234_v23 = vsel %vm13236_vm10, %v13169_v39, %v7230_v21  ;;  %v7297_v21 = vand.u32 2147483648, %v13163_v63 }
 0x4f5   : > { %v10978_v58 = vld [vmem:[%s12731_s19 + $0x124] sm:$0xf]  ;;  %v10126_v2 = vor.u32 %v10946_v5, %v10123_v56  ;;  %11193 = vpow2.f32 %v10655_v19  ;;  %v13227_v16 = vpop.eup %11191  ;;  %v16740_v19 = vld [vmem:[#allocation79_spill] sm:$0xff]  ;;  %v16743_v56 = vld [vmem:[#allocation57_spill] sm:$0xff] }
 0x4f6   : > { %v13219_v1 = vmul.f32 %v8802_v46, %v4702_v34  ;;  %v10254_v42 = vor.u32 %v10978_v58, %v10251_v43  ;;  %v10659_v34 = vmul.f32 -1.442695, %v16740_v19  ;;  %11195 = vrcp.f32 %v13225_v6 }
 0x4f7   : > { %4777 = vmatpush.bf16.msrb.mxu0 %v10126_v2  ;;  %v7238_v2 = vor.u32 1.1754944e-38, %v7237_v60  ;;  %v7295_v60 = vand.u32 2147483647, %v13163_v63  ;;  %vm7352_vm0 = vweird.f32 %v13227_v16 }
 0x4f8   : > { %16739 = vst [vmem:[#allocation74_spill] sm:$0xff] %v13219_v1  ;;  %4866 = vmatpush.bf16.msrb.mxu1 %v10254_v42  ;;  %11197 = vpow2.f32 %v10659_v34  ;;  %v16748_v34 = vld [vmem:[#allocation80_spill] sm:$0xff]  ;;  %vm13283_vm2 = vmor %vm7351_vm1, %vm7352_vm0 }
 0x4f9   : > { %v4614_v20 = vpop.f32.mrf.mxu2  ;;  %v7239_v43 = vsel %vm7236_vm11, %v7238_v2, %v7234_v23  ;;  %v10663_v31 = vmul.f32 -1.442695, %v16748_v34  ;;  %vm7296_vm15 = vcmp.eq.f32.partialorder %v7295_v60, 8.507059e+37 }
 0x4fa   : > { %v4615_v40 = vadd.f32 %v4614_v20, %v4526_v17  ;;  %v4703_v46 = vpop.f32.mrf.mxu3  ;;  %v4439_v48 = vpop.f32.mrf.mxu0  ;;  %v7289_v20 = vmul.f32 %v13197_v0, %v7288_v45  ;;  %v7347_v17 = vmul.f32 %v13227_v16, %v13194_v33  ;;  %v16747_v45 = vld [vmem:[#allocation60_spill] sm:$0xff] }
 0x4fb   : > { %v4528_v44 = vpop.f32.mrf.mxu1  ;;  %v11194_v58 = vpop.eup %11193 }
 0x4fc   : > { %v4704_v10 = vadd.f32 %v4703_v46, %v4615_v40  ;;  %v4529_v5 = vadd.f32 %v4528_v44, %v4439_v48  ;;  %v7290_v42 = vadd.f32 %v13197_v0, %v7289_v20  ;;  %v7348_v40 = vsub.f32 1.0, %v7347_v17 }
 0x4fd   : > { %4478 = vmatmul.bf16.gmra.mxu0 %v16743_v56  ;;  %4567 = vmatmul.bf16.gmra.mxu1 %v16745_v32  ;;  %v13255_v46 = vadd.f32 1.0, %v11194_v58  ;;  %v8810_v20 = vmul.f32 %v7239_v43, %v16714_v29 }
 0x4fe   : > { %v13248_v61 = vmul.f32 %v8806_v28, %v4704_v10  ;;  %4656 = vmatmul.bf16.gmra.mxu2 %v16746_v3  ;;  %v13258_v10 = vpop.eup %11195  ;;  %v7349_v2 = vmul.f32 %v13227_v16, %v7348_v40  ;;  %v7357_v40 = vand.u32 2147483648, %v13194_v33 }
 0x4ff   : > { %4745 = vmatmul.bf16.gmra.mxu3 %v16747_v45  ;;  %v11198_v23 = vpop.eup %11197  ;;  %11199 = vrcp.f32 %v13255_v46  ;;  %v7407_v63 = vmul.f32 %v13258_v10, %v13225_v6  ;;  %v16755_v45 = vld [vmem:[#allocation64_spill] sm:$0xff]  ;;  %vm7412_vm4 = vweird.f32 %v13258_v10  ;;  %vm7471_vm9 = vweird.f32 %v13255_v46 }
 0x500   : > { %16744 = vst [vmem:[#allocation79_spill] sm:$0xff] %v13248_v61  ;;  %11201 = vpow2.f32 %v10663_v31  ;;  %v13273_v43 = vadd.f32 1.0, %v11198_v23  ;;  %v16752_v23 = vld [vmem:[#allocation83_spill] sm:$0xff]  ;;  %vm13319_vm6 = vmor %vm7411_vm5, %vm7412_vm4 }
 0x501   : > { %v4617_v39 = vpop.f32.mrf.mxu2 }
 0x502   : > { %v4618_v48 = vadd.f32 %v4617_v39, %v4529_v5  ;;  %v4706_v44 = vpop.f32.mrf.mxu3  ;;  %v4441_v28 = vpop.f32.mrf.mxu0  ;;  %v7294_v5 = vsel %vm7293_vm14, %v13197_v0, %v7290_v42  ;;  %v7298_v39 = vor.u32 1.1754944e-38, %v7297_v21  ;;  %v7355_v0 = vand.u32 2147483647, %v13194_v33  ;;  %v16753_v33 = vld [vmem:[#allocation63_spill] sm:$0xff] }
 0x503   : > { %v4530_v35 = vpop.f32.mrf.mxu1  ;;  %v7408_v21 = vsub.f32 1.0, %v7407_v63  ;;  %11203 = vrcp.f32 %v13273_v43  ;;  %v7358_v63 = vor.u32 1.1754944e-38, %v7357_v40  ;;  %vm7531_vm13 = vweird.f32 %v13273_v43 }
 0x504   : > { %v4707_v17 = vadd.f32 %v4706_v44, %v4618_v48  ;;  %v4531_v58 = vadd.f32 %v4530_v35, %v4441_v28  ;;  %v7299_v29 = vsel %vm7296_vm15, %v7298_v39, %v7294_v5  ;;  %v7350_v48 = vadd.f32 %v13227_v16, %v7349_v2 }
 0x505   : > { %v8814_v60 = vmul.f32 %v7299_v29, %v16718_v18  ;;  %v10667_v5 = vmul.f32 -1.442695, %v16752_v23  ;;  %vm7356_vm3 = vcmp.eq.f32.partialorder %v7355_v0, 8.507059e+37  ;;  %v7409_v29 = vmul.f32 %v13258_v10, %v7408_v21  ;;  %v10491_v21 = vld [vmem:[%s12731_s19 + $0x310] sm:$0xf0] }
 0x506   : > { %v13271_v61 = vmul.f32 %v8810_v20, %v4707_v17  ;;  %v13279_v20 = vpop.eup %11199  ;;  %v7354_v18 = vsel %vm13283_vm2, %v13227_v16, %v7350_v48  ;;  %v10363_v16 = vld [vmem:[%s12731_s19 + $0x210] sm:$0xf0]  ;;  %v11038_v48 = vld [vmem:[%s12731_s19 + $0x304] sm:$0xf] }
 0x507   : > { %v11202_v39 = vpop.eup %11201  ;;  %v7359_v0 = vsel %vm7356_vm3, %v7358_v63, %v7354_v18  ;;  %11205 = vpow2.f32 %v10667_v5  ;;  %v7415_v5 = vand.u32 2147483647, %v13225_v6  ;;  %vm7472_vm8 = vweird.f32 %v13279_v20 }
 0x508   : > { %16749 = vst [vmem:[#allocation80_spill] sm:$0xff] %v13271_v61  ;;  %v8818_v18 = vmul.f32 %v7359_v0, %v16726_v7  ;;  %vm13346_vm10 = vmor %vm7471_vm9, %vm7472_vm8 }
 0x509   : > { %v4619_v42 = vpop.f32.mrf.mxu2  ;;  %v13307_v3 = vpop.eup %11203  ;;  %vm7416_vm7 = vcmp.eq.f32.partialorder %v7415_v5, 8.507059e+37  ;;  %v7477_v5 = vand.u32 2147483648, %v13255_v46 }
 0x50a   : > { %v4620_v44 = vadd.f32 %v4619_v42, %v4531_v58  ;;  %v4708_v28 = vpop.f32.mrf.mxu3  ;;  %v4444_v35 = vpop.f32.mrf.mxu0  ;;  %v7467_v42 = vmul.f32 %v13279_v20, %v13255_v46  ;;  %vm7532_vm12 = vweird.f32 %v13307_v3 }
 0x50b   : > { %v4533_v31 = vpop.f32.mrf.mxu1  ;;  %vm7533_vm14 = vmor %vm7531_vm13, %vm7532_vm12 }
 0x50c   : > { %v4709_v58 = vadd.f32 %v4708_v28, %v4620_v44  ;;  %v4534_v2 = vadd.f32 %v4533_v31, %v4444_v35  ;;  %v16756_v44 = vld [vmem:[#allocation65_spill] sm:$0xff]  ;;  %v16757_v28 = vld [vmem:[#allocation66_spill] sm:$0xff]  ;;  %v13304_v31 = vadd.f32 1.0, %v11202_v39  ;;  %v7417_v39 = vand.u32 2147483648, %v13225_v6 }
 0x50d   : > { %4483 = vmatmul.bf16.gmra.mxu0 %v16753_v33  ;;  %4572 = vmatmul.bf16.gmra.mxu1 %v16755_v45  ;;  %v11006_v35 = vld [vmem:[%s12731_s19 + $0x204] sm:$0xf]  ;;  %v10494_v33 = vor.u32 %v11038_v48, %v10491_v21  ;;  %v11206_v48 = vpop.eup %11205 }
 0x50e   : > { %v13296_v61 = vmul.f32 %v8814_v60, %v4709_v58  ;;  %4661 = vmatmul.bf16.gmra.mxu2 %v16756_v44  ;;  %v10366_v40 = vor.u32 %v11006_v35, %v10363_v16  ;;  %v7410_v60 = vadd.f32 %v13258_v10, %v7409_v29  ;;  %v7468_v58 = vsub.f32 1.0, %v7467_v42 }
 0x50f   : > { %4750 = vmatmul.bf16.gmra.mxu3 %v16757_v28  ;;  %11207 = vrcp.f32 %v13304_v31  ;;  %v7527_v16 = vmul.f32 %v13307_v3, %v13273_v43  ;;  %v13335_v56 = vadd.f32 1.0, %v11206_v48  ;;  %v7475_v48 = vand.u32 2147483647, %v13255_v46  ;;  %v16766_v46 = vld [vmem:[#allocation70_spill] sm:$0xff] }
 0x510   : > { %16754 = vst [vmem:[#allocation83_spill] sm:$0xff] %v13296_v61  ;;  %4956 = vmatpush.bf16.msrb.mxu2 %v10366_v40  ;;  %5045 = vmatpush.bf16.msrb.mxu3 %v10494_v33  ;;  %v7414_v6 = vsel %vm13319_vm6, %v13258_v10, %v7410_v60  ;;  %v7469_v33 = vmul.f32 %v13279_v20, %v7468_v58  ;;  %v7418_v40 = vor.u32 1.1754944e-38, %v7417_v39  ;;  %vm7591_vm1 = vweird.f32 %v13304_v31 }
 0x511   : > { %v4622_v17 = vpop.f32.mrf.mxu2  ;;  %v7528_v32 = vsub.f32 1.0, %v7527_v16  ;;  %vm7476_vm11 = vcmp.eq.f32.partialorder %v7475_v48, 8.507059e+37  ;;  %vm7651_vm5 = vweird.f32 %v13335_v56 }
 0x512   : > { %v4623_v61 = vadd.f32 %v4622_v17, %v4534_v2  ;;  %v4711_v28 = vpop.f32.mrf.mxu3  ;;  %v4446_v44 = vpop.f32.mrf.mxu0  ;;  %v16758_v2 = vld [vmem:[#allocation84_spill] sm:$0xff]  ;;  %v7419_v45 = vsel %vm7416_vm7, %v7418_v40, %v7414_v6  ;;  %v7470_v60 = vadd.f32 %v13279_v20, %v7469_v33  ;;  %v16767_v40 = vld [vmem:[#allocation71_spill] sm:$0xff] }
 0x513   : > { %v4535_v63 = vpop.f32.mrf.mxu1  ;;  %v10671_v29 = vmul.f32 -1.442695, %v16758_v2  ;;  %v10235_v17 = vld [vmem:[%s12731_s19 + $0x110] sm:$0xf0]  ;;  %v8822_v16 = vmul.f32 %v7419_v45, %v16730_v57 }
 0x514   : > { %v4712_v42 = vadd.f32 %v4711_v28, %v4623_v61  ;;  %v4536_v35 = vadd.f32 %v4535_v63, %v4446_v44  ;;  %v10942_v61 = vld [vmem:[%s12731_s19 + $0x4] sm:$0xf]  ;;  %v10107_v44 = vld [vmem:[%s12731_s19 + $0x10] sm:$0xf0]  ;;  %v7474_v57 = vsel %vm13346_vm10, %v13279_v20, %v7470_v60  ;;  %v7537_v60 = vand.u32 2147483648, %v13273_v43 }
 0x515   : > { %v10974_v28 = vld [vmem:[%s12731_s19 + $0x104] sm:$0xf]  ;;  %v10110_v21 = vor.u32 %v10942_v61, %v10107_v44  ;;  %11209 = vpow2.f32 %v10671_v29  ;;  %v13337_v10 = vpop.eup %11207  ;;  %v16761_v29 = vld [vmem:[#allocation85_spill] sm:$0xff] }
 0x516   : > { %v13329_v0 = vmul.f32 %v8818_v18, %v4712_v42  ;;  %v10238_v63 = vor.u32 %v10974_v28, %v10235_v17  ;;  %v10675_v42 = vmul.f32 -1.442695, %v16761_v29  ;;  %11211 = vrcp.f32 %v13335_v56  ;;  %v16764_v44 = vld [vmem:[#allocation69_spill] sm:$0xff] }
 0x517   : > { %4778 = vmatpush.bf16.msrb.mxu0 %v10110_v21  ;;  %v7478_v21 = vor.u32 1.1754944e-38, %v7477_v5  ;;  %v7535_v5 = vand.u32 2147483647, %v13273_v43  ;;  %vm7592_vm0 = vweird.f32 %v13337_v10 }
 0x518   : > { %4867 = vmatpush.bf16.msrb.mxu1 %v10238_v63  ;;  %11213 = vpow2.f32 %v10675_v42  ;;  %v16769_v42 = vld [vmem:[#allocation86_spill] sm:$0xff]  ;;  %vm13393_vm2 = vmor %vm7591_vm1, %vm7592_vm0 }
 0x519   : > { %v4624_v1 = vpop.f32.mrf.mxu2  ;;  %v7479_v17 = vsel %vm7476_vm11, %v7478_v21, %v7474_v57  ;;  %v10679_v48 = vmul.f32 -1.442695, %v16769_v42  ;;  %vm7536_vm15 = vcmp.eq.f32.partialorder %v7535_v5, 8.507059e+37 }
 0x51a   : > { %v4625_v58 = vadd.f32 %v4624_v1, %v4536_v35  ;;  %v4713_v18 = vpop.f32.mrf.mxu3  ;;  %v4449_v39 = vpop.f32.mrf.mxu0  ;;  %v7529_v1 = vmul.f32 %v13307_v3, %v7528_v32  ;;  %v7587_v35 = vmul.f32 %v13337_v10, %v13304_v31  ;;  %v16768_v32 = vld [vmem:[#allocation72_spill] sm:$0xff] }
 0x51b   : > { %v4538_v7 = vpop.f32.mrf.mxu1  ;;  %v11210_v28 = vpop.eup %11209 }
 0x51c   : > { %v4714_v6 = vadd.f32 %v4713_v18, %v4625_v58  ;;  %v4539_v61 = vadd.f32 %v4538_v7, %v4449_v39  ;;  %v7530_v63 = vadd.f32 %v13307_v3, %v7529_v1  ;;  %v7588_v58 = vsub.f32 1.0, %v7587_v35 }
 0x51d   : > { %4488 = vmatmul.bf16.gmra.mxu0 %v16764_v44  ;;  %4577 = vmatmul.bf16.gmra.mxu1 %v16766_v46  ;;  %v13365_v18 = vadd.f32 1.0, %v11210_v28  ;;  %v8826_v1 = vmul.f32 %v7479_v17, %v16736_v11 }
 0x51e   : > { %v13358_v45 = vmul.f32 %v8822_v16, %v4714_v6  ;;  %4666 = vmatmul.bf16.gmra.mxu2 %v16767_v40  ;;  %v13368_v6 = vpop.eup %11211  ;;  %v7589_v21 = vmul.f32 %v13337_v10, %v7588_v58  ;;  %v7597_v58 = vand.u32 2147483648, %v13304_v31 }
 0x51f   : > { %4755 = vmatmul.bf16.gmra.mxu3 %v16768_v32  ;;  %v11214_v57 = vpop.eup %11213  ;;  %11215 = vrcp.f32 %v13365_v18  ;;  %v7647_v43 = vmul.f32 %v13368_v6, %v13335_v56  ;;  %vm7652_vm4 = vweird.f32 %v13368_v6  ;;  %vm7711_vm9 = vweird.f32 %v13365_v18 }
 0x520   : > { %16765 = vst [vmem:[#allocation84_spill] sm:$0xff] %v13358_v45  ;;  %11217 = vpow2.f32 %v10679_v48  ;;  %v13383_v17 = vadd.f32 1.0, %v11214_v57  ;;  %v16773_v57 = vld [vmem:[#allocation87_spill] sm:$0xff]  ;;  %vm13429_vm6 = vmor %vm7651_vm5, %vm7652_vm4 }
 0x521   : > { %v4627_v20 = vpop.f32.mrf.mxu2 }
 0x522   : > { %v4628_v39 = vadd.f32 %v4627_v20, %v4539_v61  ;;  %v4716_v7 = vpop.f32.mrf.mxu3  ;;  %v4451_v16 = vpop.f32.mrf.mxu0  ;;  %v7534_v61 = vsel %vm7533_vm14, %v13307_v3, %v7530_v63  ;;  %v7538_v20 = vor.u32 1.1754944e-38, %v7537_v60  ;;  %v7595_v3 = vand.u32 2147483647, %v13304_v31 }
 0x523   : > { %v4540_v33 = vpop.f32.mrf.mxu1  ;;  %v7648_v60 = vsub.f32 1.0, %v7647_v43  ;;  %11219 = vrcp.f32 %v13383_v17  ;;  %v7598_v31 = vor.u32 1.1754944e-38, %v7597_v58  ;;  %vm7771_vm13 = vweird.f32 %v13383_v17 }
 0x524   : > { %v4717_v35 = vadd.f32 %v4716_v7, %v4628_v39  ;;  %v4541_v28 = vadd.f32 %v4540_v33, %v4451_v16  ;;  %v7539_v11 = vsel %vm7536_vm15, %v7538_v20, %v7534_v61  ;;  %v7590_v39 = vadd.f32 %v13337_v10, %v7589_v21 }
 0x525   : > { %v8830_v5 = vmul.f32 %v7539_v11, %v16740_v19  ;;  %v10683_v61 = vmul.f32 -1.442695, %v16773_v57  ;;  %vm7596_vm3 = vcmp.eq.f32.partialorder %v7595_v3, 8.507059e+37  ;;  %v7649_v43 = vmul.f32 %v13368_v6, %v7648_v60  ;;  %v11069_v60 = vld [vmem:[%s12731_s19 + $0x3f4] sm:$0xf0] }
 0x526   : > { %v13381_v45 = vmul.f32 %v8826_v1, %v4717_v35  ;;  %v13389_v1 = vpop.eup %11215  ;;  %v7594_v19 = vsel %vm13393_vm2, %v13337_v10, %v7590_v39  ;;  %v11037_v10 = vld [vmem:[%s12731_s19 + $0x2f4] sm:$0xf0]  ;;  %v10609_v39 = vld [vmem:[%s12731_s19 + $0x3e8] sm:$0xf] }
 0x527   : > { %v11218_v20 = vpop.eup %11217  ;;  %v7707_v11 = vmul.f32 %v13389_v1, %v13365_v18  ;;  %v7599_v3 = vsel %vm7596_vm3, %v7598_v31, %v7594_v19  ;;  %11221 = vpow2.f32 %v10683_v61  ;;  %v7655_v61 = vand.u32 2147483647, %v13335_v56 }
 0x528   : > { %16770 = vst [vmem:[#allocation85_spill] sm:$0xff] %v13381_v45  ;;  %v8834_v19 = vmul.f32 %v7599_v3, %v16748_v34  ;;  %vm7712_vm8 = vweird.f32 %v13389_v1 }
 0x529   : > { %v4629_v63 = vpop.f32.mrf.mxu2  ;;  %v13417_v35 = vpop.eup %11219  ;;  %vm7656_vm7 = vcmp.eq.f32.partialorder %v7655_v61, 8.507059e+37  ;;  %v7717_v61 = vand.u32 2147483648, %v13365_v18  ;;  %vm13456_vm10 = vmor %vm7711_vm9, %vm7712_vm8 }
 0x52a   : > { %v4630_v7 = vadd.f32 %v4629_v63, %v4541_v28  ;;  %v4718_v16 = vpop.f32.mrf.mxu3  ;;  %v4454_v33 = vpop.f32.mrf.mxu0  ;;  %vm7772_vm12 = vweird.f32 %v13417_v35 }
 0x52b   : > { %v4543_v48 = vpop.f32.mrf.mxu1  ;;  %vm7773_vm14 = vmor %vm7771_vm13, %vm7772_vm12 }
 0x52c   : > { %v4719_v28 = vadd.f32 %v4718_v16, %v4630_v7  ;;  %v4544_v21 = vadd.f32 %v4543_v48, %v4454_v33  ;;  %v10481_v7 = vld [vmem:[%s12731_s19 + $0x2e8] sm:$0xf]  ;;  %v13414_v16 = vadd.f32 1.0, %v11218_v20  ;;  %v10610_v48 = vor.u32 %v11069_v60, %v10609_v39 }
 0x52d   : > { %4493 = vmatmul.bf16.gmra.mxu0 %v12305_v9  ;;  %4582 = vmatmul.bf16.gmra.mxu1 %v12309_v8  ;;  %v10482_v58 = vor.u32 %v11037_v10, %v10481_v7  ;;  %v7657_v20 = vand.u32 2147483648, %v13335_v56  ;;  %v7767_v10 = vmul.f32 %v13417_v35, %v13383_v17  ;;  %v11222_v39 = vpop.eup %11221 }
 0x52e   : > { %v13406_v63 = vmul.f32 %v8830_v5, %v4719_v28  ;;  %4671 = vmatmul.bf16.gmra.mxu2 %v12311_v22  ;;  %v7650_v5 = vadd.f32 %v13368_v6, %v7649_v43  ;;  %v7708_v28 = vsub.f32 1.0, %v7707_v11  ;;  %5394 = vmatpush.bf16.msra.mxu3 %v10610_v48  ;;  %11223 = vrcp.f32 %v13414_v16  ;;  %v11005_v48 = vld [vmem:[%s12731_s19 + $0x1f4] sm:$0xf0] }
 0x52f   : > { %4760 = vmatmul.bf16.gmra.mxu3 %v12315_v41  ;;  %5305 = vmatpush.bf16.msra.mxu2 %v10482_v58  ;;  %v7658_v60 = vor.u32 1.1754944e-38, %v7657_v20  ;;  %v7768_v9 = vsub.f32 1.0, %v7767_v10  ;;  %v13445_v45 = vadd.f32 1.0, %v11222_v39  ;;  %v7715_v39 = vand.u32 2147483647, %v13365_v18 }
 0x530   : > { %16774 = vst [vmem:[#allocation69_spill] sm:$0xff] %v13406_v63  ;;  %v7654_v56 = vsel %vm13429_vm6, %v13368_v6, %v7650_v5  ;;  %v7709_v3 = vmul.f32 %v13389_v1, %v7708_v28  ;;  %v7718_v18 = vor.u32 1.1754944e-38, %v7717_v61  ;;  %v16781_v61 = vld [vmem:[#allocation90_spill] sm:$0xff]  ;;  %vm7831_vm1 = vweird.f32 %v13414_v16 }
 0x531   : > { %v4632_v33 = vpop.f32.mrf.mxu2  ;;  %v7659_v8 = vsel %vm7656_vm7, %v7658_v60, %v7654_v56  ;;  %vm7716_vm11 = vcmp.eq.f32.partialorder %v7715_v39, 8.507059e+37  ;;  %vm7891_vm5 = vweird.f32 %v13445_v45 }
 0x532   : > { %v4633_v63 = vadd.f32 %v4632_v33, %v4544_v21  ;;  %v4721_v41 = vpop.f32.mrf.mxu3  ;;  %v4456_v22 = vpop.f32.mrf.mxu0  ;;  %v16775_v21 = vld [vmem:[#allocation88_spill] sm:$0xff]  ;;  %v7710_v5 = vadd.f32 %v13389_v1, %v7709_v3  ;;  %v8838_v10 = vmul.f32 %v7659_v8, %v16752_v23 }
 0x533   : > { %v4545_v31 = vpop.f32.mrf.mxu1  ;;  %v10687_v43 = vmul.f32 -1.442695, %v16775_v21 }
 0x534   : > { %v4722_v11 = vadd.f32 %v4721_v41, %v4633_v63  ;;  %v4546_v7 = vadd.f32 %v4545_v31, %v4456_v22  ;;  %v10225_v41 = vld [vmem:[%s12731_s19 + $0xe8] sm:$0xf]  ;;  %v10973_v22 = vld [vmem:[%s12731_s19 + $0xf4] sm:$0xf0]  ;;  %v13447_v6 = vpop.eup %11223  ;;  %v7714_v8 = vsel %vm13456_vm10, %v13389_v1, %v7710_v5 }
 0x535   : > { %v10353_v63 = vld [vmem:[%s12731_s19 + $0x1e8] sm:$0xf]  ;;  %v10226_v33 = vor.u32 %v10973_v22, %v10225_v41  ;;  %11225 = vpow2.f32 %v10687_v43  ;;  %v16778_v43 = vld [vmem:[#allocation89_spill] sm:$0xff]  ;;  %vm7832_vm0 = vweird.f32 %v13447_v6 }
 0x536   : > { %v13439_v58 = vmul.f32 %v8834_v19, %v4722_v11  ;;  %v10354_v31 = vor.u32 %v11005_v48, %v10353_v63  ;;  %v10691_v11 = vmul.f32 -1.442695, %v16778_v43  ;;  %11227 = vrcp.f32 %v13445_v45  ;;  %vm13503_vm2 = vmor %vm7831_vm1, %vm7832_vm0 }
 0x537   : > { %5127 = vmatpush.bf16.msra.mxu0 %v10226_v33  ;;  %v7777_v48 = vand.u32 2147483648, %v13383_v17 }
 0x538   : > { %5216 = vmatpush.bf16.msra.mxu1 %v10354_v31  ;;  %11229 = vpow2.f32 %v10691_v11  ;;  %v10695_v11 = vmul.f32 -1.442695, %v16781_v61 }
 0x539   : > { %v4634_v32 = vpop.f32.mrf.mxu2 }
 0x53a   : > { %v4635_v28 = vadd.f32 %v4634_v32, %v4546_v7  ;;  %v4723_v19 = vpop.f32.mrf.mxu3  ;;  %v4459_v20 = vpop.f32.mrf.mxu0  ;;  %v7769_v32 = vmul.f32 %v13417_v35, %v7768_v9  ;;  %v7827_v7 = vmul.f32 %v13447_v6, %v13414_v16  ;;  %v7719_v9 = vsel %vm7716_vm11, %v7718_v18, %v7714_v8 }
 0x53b   : > { %v4548_v34 = vpop.f32.mrf.mxu1  ;;  %v11226_v22 = vpop.eup %11225 }
 0x53c   : > { %v4724_v56 = vadd.f32 %v4723_v19, %v4635_v28  ;;  %v4549_v41 = vadd.f32 %v4548_v34, %v4459_v20  ;;  %v7770_v63 = vadd.f32 %v13417_v35, %v7769_v32  ;;  %v7828_v60 = vsub.f32 1.0, %v7827_v7  ;;  %v13478_v19 = vpop.eup %11227 }
 0x53d   : > { %4498 = vmatmul.bf16.gmra.mxu0 %v12329_v4  ;;  %4587 = vmatmul.bf16.gmra.mxu1 %v12331_v59  ;;  %v13475_v33 = vadd.f32 1.0, %v11226_v22  ;;  %v7775_v20 = vand.u32 2147483647, %v13383_v17  ;;  %v7778_v7 = vor.u32 1.1754944e-38, %v7777_v48  ;;  %v7887_v17 = vmul.f32 %v13478_v19, %v13445_v45 }
 0x53e   : > { %v13468_v23 = vmul.f32 %v8838_v10, %v4724_v56  ;;  %4676 = vmatmul.bf16.gmra.mxu2 %v12333_v62  ;;  %v8842_v10 = vmul.f32 %v7719_v9, %v16758_v2  ;;  %v11230_v3 = vpop.eup %11229  ;;  %v7829_v32 = vmul.f32 %v13447_v6, %v7828_v60  ;;  %vm7892_vm4 = vweird.f32 %v13478_v19 }
 0x53f   : > { %4765 = vmatmul.bf16.gmra.mxu3 %v16584_v38  ;;  %11231 = vrcp.f32 %v13475_v33  ;;  %vm7776_vm15 = vcmp.eq.f32.partialorder %v7775_v20, 8.507059e+37  ;;  %v13493_v8 = vadd.f32 1.0, %v11230_v3  ;;  %v7888_v60 = vsub.f32 1.0, %v7887_v17  ;;  %v10465_v17 = vld [vmem:[%s12731_s19 + $0x2c8] sm:$0xf]  ;;  %vm13539_vm6 = vmor %vm7891_vm5, %vm7892_vm4 }
 0x540   : > { %11233 = vpow2.f32 %v10695_v11  ;;  %v7830_v18 = vadd.f32 %v13447_v6, %v7829_v32  ;;  %vm7951_vm9 = vweird.f32 %v13475_v33 }
 0x541   : > { %v4637_v1 = vpop.f32.mrf.mxu2  ;;  %11235 = vrcp.f32 %v13493_v8  ;;  %vm8011_vm13 = vweird.f32 %v13493_v8 }
 0x542   : > { %v4638_v31 = vadd.f32 %v4637_v1, %v4549_v41  ;;  %v4726_v5 = vpop.f32.mrf.mxu3  ;;  %v4461_v28 = vpop.f32.mrf.mxu0  ;;  %v7774_v41 = vsel %vm7773_vm14, %v13417_v35, %v7770_v63  ;;  %v7835_v35 = vand.u32 2147483647, %v13414_v16  ;;  %v7837_v63 = vand.u32 2147483648, %v13414_v16 }
 0x543   : > { %v4550_v34 = vpop.f32.mrf.mxu1  ;;  %v7779_v2 = vsel %vm7776_vm15, %v7778_v7, %v7774_v41  ;;  %v7889_v41 = vmul.f32 %v13478_v19, %v7888_v60 }
 0x544   : > { %v4727_v39 = vadd.f32 %v4726_v5, %v4638_v31  ;;  %v4551_v56 = vadd.f32 %v4550_v34, %v4461_v28  ;;  %v8846_v28 = vmul.f32 %v7779_v2, %v16761_v29  ;;  %v16784_v34 = vld [vmem:[#allocation91_spill] sm:$0xff]  ;;  %v7834_v29 = vsel %vm13503_vm2, %v13447_v6, %v7830_v18  ;;  %v11033_v6 = vld [vmem:[%s12731_s19 + $0x2d4] sm:$0xf0] }
 0x545   : > { %v13499_v5 = vpop.eup %11231  ;;  %vm7836_vm3 = vcmp.eq.f32.partialorder %v7835_v35, 8.507059e+37  ;;  %v7838_v16 = vor.u32 1.1754944e-38, %v7837_v63  ;;  %v10593_v2 = vld [vmem:[%s12731_s19 + $0x3c8] sm:$0xf]  ;;  %v11065_v63 = vld [vmem:[%s12731_s19 + $0x3d4] sm:$0xf0] }
 0x546   : > { %v13491_v22 = vmul.f32 %v8842_v10, %v4727_v39  ;;  %v10699_v10 = vmul.f32 -1.442695, %v16784_v34  ;;  %v11234_v3 = vpop.eup %11233  ;;  %v7947_v32 = vmul.f32 %v13499_v5, %v13475_v33  ;;  %vm7952_vm8 = vweird.f32 %v13499_v5 }
 0x547   : > { %v7839_v18 = vsel %vm7836_vm3, %v7838_v16, %v7834_v29  ;;  %v13524_v35 = vadd.f32 1.0, %v11234_v3  ;;  %v7897_v3 = vand.u32 2147483648, %v13445_v45  ;;  %vm13566_vm10 = vmor %vm7951_vm9, %vm7952_vm8 }
 0x548   : > { %11237 = vpow2.f32 %v10699_v10  ;;  %v8850_v29 = vmul.f32 %v7839_v18, %v16769_v42  ;;  %v7895_v10 = vand.u32 2147483647, %v13445_v45 }
 0x549   : > { %v4639_v9 = vpop.f32.mrf.mxu2  ;;  %11239 = vrcp.f32 %v13524_v35  ;;  %vm8071_vm1 = vweird.f32 %v13524_v35 }
 0x54a   : > { %v4640_v1 = vadd.f32 %v4639_v9, %v4551_v56  ;;  %v4728_v48 = vpop.f32.mrf.mxu3  ;;  %v4464_v31 = vpop.f32.mrf.mxu0  ;;  %v10466_v9 = vor.u32 %v11033_v6, %v10465_v17  ;;  %vm7896_vm7 = vcmp.eq.f32.partialorder %v7895_v10, 8.507059e+37  ;;  %v7957_v10 = vand.u32 2147483648, %v13475_v33 }
 0x54b   : > { %v4553_v20 = vpop.f32.mrf.mxu1 }
 0x54c   : > { %v4729_v39 = vadd.f32 %v4728_v48, %v4640_v1  ;;  %v4554_v56 = vadd.f32 %v4553_v20, %v4464_v31  ;;  %v10594_v1 = vor.u32 %v11065_v63, %v10593_v2  ;;  %v13527_v48 = vpop.eup %11235  ;;  %v7890_v31 = vadd.f32 %v13478_v19, %v7889_v41  ;;  %5306 = vmatpush.bf16.msra.mxu2 %v10466_v9  ;;  %v10209_v63 = vld [vmem:[%s12731_s19 + $0xc8] sm:$0xf] }
 0x54d   : > { %4779 = vmatmul.bf16.vlgmr.msrb.gmra.mxu0 %v12065_v47  ;;  %4868 = vmatmul.bf16.vlgmr.msrb.gmra.mxu1 %v12069_v51  ;;  %v8007_v6 = vmul.f32 %v13527_v48, %v13493_v8  ;;  %vm8012_vm12 = vweird.f32 %v13527_v48 }
 0x54e   : > { %v13516_v7 = vmul.f32 %v8846_v28, %v4729_v39  ;;  %4957 = vmatmul.bf16.vlgmr.msrb.gmra.mxu2 %v12071_v52  ;;  %v7948_v28 = vsub.f32 1.0, %v7947_v32  ;;  %5395 = vmatpush.bf16.msra.mxu3 %v10594_v1  ;;  %v11238_v2 = vpop.eup %11237  ;;  %v7894_v45 = vsel %vm13539_vm6, %v13478_v19, %v7890_v31  ;;  %v10337_v1 = vld [vmem:[%s12731_s19 + $0x1c8] sm:$0xf]  ;;  %vm8013_vm14 = vmor %vm8011_vm13, %vm8012_vm12 }
 0x54f   : > { %5046 = vmatmul.bf16.vlgmr.msrb.gmra.mxu3 %v12073_v53  ;;  %v8008_v53 = vsub.f32 1.0, %v8007_v6  ;;  %v13555_v52 = vadd.f32 1.0, %v11238_v2  ;;  %v13557_v19 = vpop.eup %11239  ;;  %v7955_v2 = vand.u32 2147483647, %v13475_v33 }
 0x550   : > { %16785 = vst [vmem:[#allocation70_spill] sm:$0xff] %v13516_v7  ;;  %v7949_v18 = vmul.f32 %v13499_v5, %v7948_v28  ;;  %vm8072_vm0 = vweird.f32 %v13557_v19 }
 0x551   : > { %v4642_v60 = vpop.f32.mrf.mxu2  ;;  %vm7956_vm11 = vcmp.eq.f32.partialorder %v7955_v2, 8.507059e+37  ;;  %vm13613_vm2 = vmor %vm8071_vm1, %vm8072_vm0  ;;  %vm8131_vm5 = vweird.f32 %v13555_v52 }
 0x552   : > { %v4643_v20 = vadd.f32 %v4642_v60, %v4554_v56  ;;  %v4731_v11 = vpop.f32.mrf.mxu3  ;;  %v4466_v39 = vpop.f32.mrf.mxu0  ;;  %v16786_v56 = vld [vmem:[#allocation92_spill] sm:$0xff]  ;;  %v10969_v60 = vld [vmem:[%s12731_s19 + $0xd4] sm:$0xf0]  ;;  %v7950_v31 = vadd.f32 %v13499_v5, %v7949_v18 }
 0x553   : > { %v4555_v16 = vpop.f32.mrf.mxu1  ;;  %v10703_v41 = vmul.f32 -1.442695, %v16786_v56 }
 0x554   : > { %v4732_v32 = vadd.f32 %v4731_v11, %v4643_v20  ;;  %v4556_v17 = vadd.f32 %v4555_v16, %v4466_v39  ;;  %v7898_v20 = vor.u32 1.1754944e-38, %v7897_v3  ;;  %v10210_v11 = vor.u32 %v10969_v60, %v10209_v63  ;;  %v11001_v39 = vld [vmem:[%s12731_s19 + $0x1d4] sm:$0xf0] }
 0x555   : > { %11241 = vpow2.f32 %v10703_v41  ;;  %v10338_v16 = vor.u32 %v11001_v39, %v10337_v1  ;;  %v16789_v41 = vld [vmem:[#allocation93_spill] sm:$0xff]  ;;  %v8017_v39 = vand.u32 2147483648, %v13493_v8 }
 0x556   : > { %v13549_v9 = vmul.f32 %v8850_v29, %v4732_v32  ;;  %v7899_v7 = vsel %vm7896_vm7, %v7898_v20, %v7894_v45  ;;  %5128 = vmatpush.bf16.msra.mxu0 %v10210_v11  ;;  %v10707_v32 = vmul.f32 -1.442695, %v16789_v41  ;;  %11243 = vrcp.f32 %v13555_v52 }
 0x557   : > { %5217 = vmatpush.bf16.msra.mxu1 %v10338_v16  ;;  %v8854_v6 = vmul.f32 %v7899_v7, %v16773_v57  ;;  %v7954_v57 = vsel %vm13566_vm10, %v13499_v5, %v7950_v31  ;;  %v7958_v7 = vor.u32 1.1754944e-38, %v7957_v10  ;;  %v16792_v10 = vld [vmem:[#allocation94_spill] sm:$0xff] }
 0x558   : > { %11245 = vpow2.f32 %v10707_v32  ;;  %v10711_v32 = vmul.f32 -1.442695, %v16792_v10 }
 0x559   : > { %v4644_v51 = vpop.f32.mrf.mxu2 }
 0x55a   : > { %v4645_v28 = vadd.f32 %v4644_v51, %v4556_v17  ;;  %v4733_v29 = vpop.f32.mrf.mxu3  ;;  %v4469_v3 = vpop.f32.mrf.mxu0  ;;  %v8009_v51 = vmul.f32 %v13527_v48, %v8008_v53  ;;  %v8067_v17 = vmul.f32 %v13557_v19, %v13524_v35  ;;  %v7959_v53 = vsel %vm7956_vm11, %v7958_v7, %v7954_v57 }
 0x55b   : > { %v4558_v42 = vpop.f32.mrf.mxu1  ;;  %v11242_v60 = vpop.eup %11241 }
 0x55c   : > { %v4734_v45 = vadd.f32 %v4733_v29, %v4645_v28  ;;  %v4559_v63 = vadd.f32 %v4558_v42, %v4469_v3  ;;  %v8010_v1 = vadd.f32 %v13527_v48, %v8009_v51  ;;  %v8068_v20 = vsub.f32 1.0, %v8067_v17  ;;  %v13588_v29 = vpop.eup %11243 }
 0x55d   : > { %4784 = vmatmul.bf16.gmra.mxu0 %v12087_v12  ;;  %4873 = vmatmul.bf16.gmra.mxu1 %v12089_v13  ;;  %v13585_v11 = vadd.f32 1.0, %v11242_v60  ;;  %v8015_v3 = vand.u32 2147483647, %v13493_v8  ;;  %v8018_v17 = vor.u32 1.1754944e-38, %v8017_v39  ;;  %v8127_v8 = vmul.f32 %v13588_v29, %v13555_v52 }
 0x55e   : > { %v13578_v33 = vmul.f32 %v8854_v6, %v4734_v45  ;;  %4962 = vmatmul.bf16.gmra.mxu2 %v12091_v14  ;;  %v8858_v6 = vmul.f32 %v7959_v53, %v16775_v21  ;;  %v11246_v18 = vpop.eup %11245  ;;  %v8069_v51 = vmul.f32 %v13557_v19, %v8068_v20  ;;  %vm8132_vm4 = vweird.f32 %v13588_v29 }
 0x55f   : > { %5051 = vmatmul.bf16.gmra.mxu3 %v12093_v15  ;;  %11247 = vrcp.f32 %v13585_v11  ;;  %vm8016_vm15 = vcmp.eq.f32.partialorder %v8015_v3, 8.507059e+37  ;;  %v13603_v57 = vadd.f32 1.0, %v11246_v18  ;;  %v8128_v20 = vsub.f32 1.0, %v8127_v8  ;;  %v10449_v8 = vld [vmem:[%s12731_s19 + $0x2a8] sm:$0xf]  ;;  %vm13649_vm6 = vmor %vm8131_vm5, %vm8132_vm4 }
 0x560   : > { %11249 = vpow2.f32 %v10711_v32  ;;  %v8070_v7 = vadd.f32 %v13557_v19, %v8069_v51  ;;  %vm8191_vm9 = vweird.f32 %v13585_v11 }
 0x561   : > { %v4647_v5 = vpop.f32.mrf.mxu2  ;;  %11251 = vrcp.f32 %v13603_v57  ;;  %vm8251_vm13 = vweird.f32 %v13603_v57 }
 0x562   : > { %v4648_v16 = vadd.f32 %v4647_v5, %v4559_v63  ;;  %v4736_v31 = vpop.f32.mrf.mxu3  ;;  %v4471_v28 = vpop.f32.mrf.mxu0  ;;  %v8014_v63 = vsel %vm8013_vm14, %v13527_v48, %v8010_v1  ;;  %v8075_v48 = vand.u32 2147483647, %v13524_v35  ;;  %v8077_v1 = vand.u32 2147483648, %v13524_v35 }
 0x563   : > { %v4560_v42 = vpop.f32.mrf.mxu1  ;;  %v8019_v21 = vsel %vm8016_vm15, %v8018_v17, %v8014_v63  ;;  %v8129_v63 = vmul.f32 %v13588_v29, %v8128_v20 }
 0x564   : > { %v4737_v2 = vadd.f32 %v4736_v31, %v4648_v16  ;;  %v4561_v45 = vadd.f32 %v4560_v42, %v4471_v28  ;;  %v8862_v28 = vmul.f32 %v8019_v21, %v16778_v43  ;;  %v16795_v42 = vld [vmem:[#allocation95_spill] sm:$0xff]  ;;  %v8074_v43 = vsel %vm13613_vm2, %v13557_v19, %v8070_v7  ;;  %v11029_v19 = vld [vmem:[%s12731_s19 + $0x2b4] sm:$0xf0] }
 0x565   : > { %v13609_v31 = vpop.eup %11247  ;;  %vm8076_vm3 = vcmp.eq.f32.partialorder %v8075_v48, 8.507059e+37  ;;  %v8078_v35 = vor.u32 1.1754944e-38, %v8077_v1  ;;  %v10577_v21 = vld [vmem:[%s12731_s19 + $0x3a8] sm:$0xf]  ;;  %v11061_v1 = vld [vmem:[%s12731_s19 + $0x3b4] sm:$0xf0] }
 0x566   : > { %v13601_v60 = vmul.f32 %v8858_v6, %v4737_v2  ;;  %v10715_v6 = vmul.f32 -1.442695, %v16795_v42  ;;  %v11250_v18 = vpop.eup %11249  ;;  %v8187_v51 = vmul.f32 %v13609_v31, %v13585_v11  ;;  %vm8192_vm8 = vweird.f32 %v13609_v31 }
 0x567   : > { %v8079_v7 = vsel %vm8076_vm3, %v8078_v35, %v8074_v43  ;;  %v13634_v48 = vadd.f32 1.0, %v11250_v18  ;;  %v8137_v18 = vand.u32 2147483648, %v13555_v52  ;;  %vm13676_vm10 = vmor %vm8191_vm9, %vm8192_vm8 }
 0x568   : > { %11253 = vpow2.f32 %v10715_v6  ;;  %v8866_v43 = vmul.f32 %v8079_v7, %v16781_v61  ;;  %v8135_v6 = vand.u32 2147483647, %v13555_v52 }
 0x569   : > { %v4649_v53 = vpop.f32.mrf.mxu2  ;;  %11255 = vrcp.f32 %v13634_v48  ;;  %vm8311_vm1 = vweird.f32 %v13634_v48 }
 0x56a   : > { %v4650_v5 = vadd.f32 %v4649_v53, %v4561_v45  ;;  %v4738_v39 = vpop.f32.mrf.mxu3  ;;  %v4474_v16 = vpop.f32.mrf.mxu0  ;;  %v10450_v53 = vor.u32 %v11029_v19, %v10449_v8  ;;  %vm8136_vm7 = vcmp.eq.f32.partialorder %v8135_v6, 8.507059e+37  ;;  %v8197_v6 = vand.u32 2147483648, %v13585_v11 }
 0x56b   : > { %v4563_v3 = vpop.f32.mrf.mxu1 }
 0x56c   : > { %v4739_v2 = vadd.f32 %v4738_v39, %v4650_v5  ;;  %v4564_v45 = vadd.f32 %v4563_v3, %v4474_v16  ;;  %v10578_v5 = vor.u32 %v11061_v1, %v10577_v21  ;;  %v13637_v39 = vpop.eup %11251  ;;  %v8130_v16 = vadd.f32 %v13588_v29, %v8129_v63  ;;  %5307 = vmatpush.bf16.msra.mxu2 %v10450_v53  ;;  %v10193_v1 = vld [vmem:[%s12731_s19 + $0xa8] sm:$0xf] }
 0x56d   : > { %4789 = vmatmul.bf16.gmra.mxu0 %v12099_v24  ;;  %4878 = vmatmul.bf16.gmra.mxu1 %v12101_v25  ;;  %v8247_v19 = vmul.f32 %v13637_v39, %v13603_v57  ;;  %vm8252_vm12 = vweird.f32 %v13637_v39 }
 0x56e   : > { %v13626_v17 = vmul.f32 %v8862_v28, %v4739_v2  ;;  %4967 = vmatmul.bf16.gmra.mxu2 %v12103_v26  ;;  %v8188_v28 = vsub.f32 1.0, %v8187_v51  ;;  %5396 = vmatpush.bf16.msra.mxu3 %v10578_v5  ;;  %v11254_v21 = vpop.eup %11253  ;;  %v8134_v52 = vsel %vm13649_vm6, %v13588_v29, %v8130_v16  ;;  %v10321_v5 = vld [vmem:[%s12731_s19 + $0x1a8] sm:$0xf]  ;;  %vm8253_vm14 = vmor %vm8251_vm13, %vm8252_vm12 }
 0x56f   : > { %5056 = vmatmul.bf16.gmra.mxu3 %v12105_v27  ;;  %v8248_v27 = vsub.f32 1.0, %v8247_v19  ;;  %v13665_v26 = vadd.f32 1.0, %v11254_v21  ;;  %v13667_v29 = vpop.eup %11255  ;;  %v8195_v21 = vand.u32 2147483647, %v13585_v11 }
 0x570   : > { %16796 = vst [vmem:[#allocation71_spill] sm:$0xff] %v13626_v17  ;;  %v8189_v7 = vmul.f32 %v13609_v31, %v8188_v28  ;;  %vm8312_vm0 = vweird.f32 %v13667_v29 }
 0x571   : > { %v4652_v20 = vpop.f32.mrf.mxu2  ;;  %vm8196_vm11 = vcmp.eq.f32.partialorder %v8195_v21, 8.507059e+37  ;;  %vm13723_vm2 = vmor %vm8311_vm1, %vm8312_vm0  ;;  %vm8371_vm5 = vweird.f32 %v13665_v26 }
 0x572   : > { %v4653_v3 = vadd.f32 %v4652_v20, %v4564_v45  ;;  %v4741_v32 = vpop.f32.mrf.mxu3  ;;  %v4476_v2 = vpop.f32.mrf.mxu0  ;;  %v16797_v45 = vld [vmem:[#allocation96_spill] sm:$0xff]  ;;  %v10965_v20 = vld [vmem:[%s12731_s19 + $0xb4] sm:$0xf0]  ;;  %v8190_v16 = vadd.f32 %v13609_v31, %v8189_v7 }
 0x573   : > { %v4565_v35 = vpop.f32.mrf.mxu1  ;;  %v10719_v63 = vmul.f32 -1.442695, %v16797_v45 }
 0x574   : > { %v4742_v51 = vadd.f32 %v4741_v32, %v4653_v3  ;;  %v4566_v8 = vadd.f32 %v4565_v35, %v4476_v2  ;;  %v8138_v3 = vor.u32 1.1754944e-38, %v8137_v18  ;;  %v10194_v32 = vor.u32 %v10965_v20, %v10193_v1  ;;  %v10997_v2 = vld [vmem:[%s12731_s19 + $0x1b4] sm:$0xf0] }
 0x575   : > { %11257 = vpow2.f32 %v10719_v63  ;;  %v10322_v35 = vor.u32 %v10997_v2, %v10321_v5  ;;  %v16800_v63 = vld [vmem:[#allocation97_spill] sm:$0xff]  ;;  %v8257_v2 = vand.u32 2147483648, %v13603_v57 }
 0x576   : > { %v13659_v53 = vmul.f32 %v8866_v43, %v4742_v51  ;;  %v8139_v17 = vsel %vm8136_vm7, %v8138_v3, %v8134_v52  ;;  %5129 = vmatpush.bf16.msra.mxu0 %v10194_v32  ;;  %v10723_v51 = vmul.f32 -1.442695, %v16800_v63  ;;  %11259 = vrcp.f32 %v13665_v26 }
 0x577   : > { %5218 = vmatpush.bf16.msra.mxu1 %v10322_v35  ;;  %v8870_v19 = vmul.f32 %v8139_v17, %v16784_v34  ;;  %v8194_v34 = vsel %vm13676_vm10, %v13609_v31, %v8190_v16  ;;  %v8198_v17 = vor.u32 1.1754944e-38, %v8197_v6  ;;  %v16804_v6 = vld [vmem:[#allocation98_spill] sm:$0xff] }
 0x578   : > { %11261 = vpow2.f32 %v10723_v51  ;;  %v10727_v51 = vmul.f32 -1.442695, %v16804_v6 }
 0x579   : > { %v4654_v25 = vpop.f32.mrf.mxu2 }
 0x57a   : > { %v4655_v28 = vadd.f32 %v4654_v25, %v4566_v8  ;;  %v4743_v43 = vpop.f32.mrf.mxu3  ;;  %v4479_v18 = vpop.f32.mrf.mxu0  ;;  %v8249_v25 = vmul.f32 %v13637_v39, %v8248_v27  ;;  %v8307_v8 = vmul.f32 %v13667_v29, %v13634_v48  ;;  %v8199_v27 = vsel %vm8196_vm11, %v8198_v17, %v8194_v34 }
 0x57b   : > { %v4568_v61 = vpop.f32.mrf.mxu1  ;;  %v11258_v20 = vpop.eup %11257 }
 0x57c   : > { %v4744_v52 = vadd.f32 %v4743_v43, %v4655_v28  ;;  %v4569_v1 = vadd.f32 %v4568_v61, %v4479_v18  ;;  %v8250_v5 = vadd.f32 %v13637_v39, %v8249_v25  ;;  %v8308_v3 = vsub.f32 1.0, %v8307_v8  ;;  %v13698_v43 = vpop.eup %11259 }
 0x57d   : > { %4794 = vmatmul.bf16.gmra.mxu0 %v12119_v49  ;;  %4883 = vmatmul.bf16.gmra.mxu1 %v12121_v50  ;;  %v13695_v32 = vadd.f32 1.0, %v11258_v20  ;;  %v8255_v18 = vand.u32 2147483647, %v13603_v57  ;;  %v8258_v8 = vor.u32 1.1754944e-38, %v8257_v2  ;;  %v8367_v57 = vmul.f32 %v13698_v43, %v13665_v26 }
 0x57e   : > { %v13688_v11 = vmul.f32 %v8870_v19, %v4744_v52  ;;  %4972 = vmatmul.bf16.gmra.mxu2 %v12123_v54  ;;  %v8874_v19 = vmul.f32 %v8199_v27, %v16786_v56  ;;  %v11262_v7 = vpop.eup %11261  ;;  %v8309_v25 = vmul.f32 %v13667_v29, %v8308_v3  ;;  %vm8372_vm4 = vweird.f32 %v13698_v43 }
 0x57f   : > { %5061 = vmatmul.bf16.gmra.mxu3 %v12125_v55  ;;  %11263 = vrcp.f32 %v13695_v32  ;;  %vm8256_vm15 = vcmp.eq.f32.partialorder %v8255_v18, 8.507059e+37  ;;  %v13713_v34 = vadd.f32 1.0, %v11262_v7  ;;  %v8368_v3 = vsub.f32 1.0, %v8367_v57  ;;  %vm13759_vm6 = vmor %vm8371_vm5, %vm8372_vm4 }
 0x580   : > { %16803 = vst [vmem:[#allocation86_spill] sm:$0xff] %v13688_v11  ;;  %11265 = vpow2.f32 %v10727_v51  ;;  %v8310_v17 = vadd.f32 %v13667_v29, %v8309_v25  ;;  %vm8431_vm9 = vweird.f32 %v13695_v32 }
 0x581   : > { %v4657_v31 = vpop.f32.mrf.mxu2  ;;  %11267 = vrcp.f32 %v13713_v34  ;;  %v8369_v25 = vmul.f32 %v13698_v43, %v8368_v3  ;;  %v11057_v3 = vld [vmem:[%s12731_s19 + $0x394] sm:$0xf0]  ;;  %vm8491_vm13 = vweird.f32 %v13713_v34 }
 0x582   : > { %v4658_v35 = vadd.f32 %v4657_v31, %v4569_v1  ;;  %v4746_v16 = vpop.f32.mrf.mxu3  ;;  %v4481_v28 = vpop.f32.mrf.mxu0  ;;  %v8254_v1 = vsel %vm8253_vm14, %v13637_v39, %v8250_v5  ;;  %v8315_v39 = vand.u32 2147483647, %v13634_v48  ;;  %v8317_v5 = vand.u32 2147483648, %v13634_v48  ;;  %v16809_v48 = vld [vmem:[#allocation24_spill] sm:$0xff] }
 0x583   : > { %v4570_v61 = vpop.f32.mrf.mxu1  ;;  %v8259_v56 = vsel %vm8256_vm15, %v8258_v8, %v8254_v1 }
 0x584   : > { %v4747_v21 = vadd.f32 %v4746_v16, %v4658_v35  ;;  %v4571_v52 = vadd.f32 %v4570_v61, %v4481_v28  ;;  %v8878_v28 = vmul.f32 %v8259_v56, %v16789_v41  ;;  %v16808_v61 = vld [vmem:[#allocation99_spill] sm:$0xff]  ;;  %v8314_v41 = vsel %vm13723_vm2, %v13667_v29, %v8310_v17  ;;  %v16811_v56 = vld [vmem:[#allocation25_spill] sm:$0xff] }
 0x585   : > { %v13719_v16 = vpop.eup %11263  ;;  %vm8316_vm3 = vcmp.eq.f32.partialorder %v8315_v39, 8.507059e+37  ;;  %v8318_v1 = vor.u32 1.1754944e-38, %v8317_v5  ;;  %v11025_v29 = vld [vmem:[%s12731_s19 + $0x294] sm:$0xf0]  ;;  %v10561_v17 = vld [vmem:[%s12731_s19 + $0x388] sm:$0xf] }
 0x586   : > { %v13711_v20 = vmul.f32 %v8874_v19, %v4747_v21  ;;  %v10731_v19 = vmul.f32 -1.442695, %v16808_v61  ;;  %v11266_v7 = vpop.eup %11265  ;;  %v8427_v8 = vmul.f32 %v13719_v16, %v13695_v32  ;;  %v10562_v51 = vor.u32 %v11057_v3, %v10561_v17 }
 0x587   : > { %v8319_v39 = vsel %vm8316_vm3, %v8318_v1, %v8314_v41  ;;  %vm8432_vm8 = vweird.f32 %v13719_v16 }
 0x588   : > { %16805 = vst [vmem:[#allocation87_spill] sm:$0xff] %v13711_v20  ;;  %11269 = vpow2.f32 %v10731_v19  ;;  %v8882_v41 = vmul.f32 %v8319_v39, %v16792_v10  ;;  %v8375_v19 = vand.u32 2147483647, %v13665_v26  ;;  %5397 = vmatpush.bf16.msra.mxu3 %v10562_v51  ;;  %v10993_v51 = vld [vmem:[%s12731_s19 + $0x194] sm:$0xf0]  ;;  %vm13786_vm10 = vmor %vm8431_vm9, %vm8432_vm8 }
 0x589   : > { %v4659_v27 = vpop.f32.mrf.mxu2 }
 0x58a   : > { %v4660_v31 = vadd.f32 %v4659_v27, %v4571_v52  ;;  %v4748_v2 = vpop.f32.mrf.mxu3  ;;  %v4484_v35 = vpop.f32.mrf.mxu0  ;;  %v16812_v27 = vld [vmem:[#allocation26_spill] sm:$0xff]  ;;  %vm8376_vm7 = vcmp.eq.f32.partialorder %v8375_v19, 8.507059e+37  ;;  %v8437_v19 = vand.u32 2147483648, %v13695_v32 }
 0x58b   : > { %v4573_v18 = vpop.f32.mrf.mxu1 }
 0x58c   : > { %v4749_v21 = vadd.f32 %v4748_v2, %v4660_v31  ;;  %v4574_v52 = vadd.f32 %v4573_v18, %v4484_v35  ;;  %v16813_v31 = vld [vmem:[#allocation27_spill] sm:$0xff]  ;;  %v13744_v35 = vadd.f32 1.0, %v11266_v7  ;;  %v8377_v7 = vand.u32 2147483648, %v13665_v26 }
 0x58d   : > { %4799 = vmatmul.bf16.gmra.mxu0 %v16809_v48  ;;  %4888 = vmatmul.bf16.gmra.mxu1 %v16811_v56  ;;  %v10433_v2 = vld [vmem:[%s12731_s19 + $0x288] sm:$0xf]  ;;  %v13747_v48 = vpop.eup %11267 }
 0x58e   : > { %v13736_v57 = vmul.f32 %v8878_v28, %v4749_v21  ;;  %4977 = vmatmul.bf16.gmra.mxu2 %v16812_v27  ;;  %v10434_v5 = vor.u32 %v11025_v29, %v10433_v2  ;;  %v8370_v28 = vadd.f32 %v13698_v43, %v8369_v25  ;;  %v8428_v21 = vsub.f32 1.0, %v8427_v8  ;;  %v11270_v17 = vpop.eup %11269 }
 0x58f   : > { %5066 = vmatmul.bf16.gmra.mxu3 %v16813_v31  ;;  %11271 = vrcp.f32 %v13744_v35  ;;  %v8487_v29 = vmul.f32 %v13747_v48, %v13713_v34  ;;  %v8378_v3 = vor.u32 1.1754944e-38, %v8377_v7  ;;  %v13775_v11 = vadd.f32 1.0, %v11270_v17 }
 0x590   : > { %16810 = vst [vmem:[#allocation88_spill] sm:$0xff] %v13736_v57  ;;  %5308 = vmatpush.bf16.msra.mxu2 %v10434_v5  ;;  %v8374_v26 = vsel %vm13759_vm6, %v13698_v43, %v8370_v28  ;;  %v8429_v39 = vmul.f32 %v13719_v16, %v8428_v21  ;;  %v8435_v17 = vand.u32 2147483647, %v13695_v32  ;;  %vm8492_vm12 = vweird.f32 %v13747_v48 }
 0x591   : > { %v4662_v18 = vpop.f32.mrf.mxu2  ;;  %v8379_v56 = vsel %vm8376_vm7, %v8378_v3, %v8374_v26  ;;  %v8488_v20 = vsub.f32 1.0, %v8487_v29  ;;  %v16823_v3 = vld [vmem:[#allocation30_spill] sm:$0xff]  ;;  %vm8493_vm14 = vmor %vm8491_vm13, %vm8492_vm12  ;;  %vm8551_vm1 = vweird.f32 %v13744_v35  ;;  %vm8611_vm5 = vweird.f32 %v13775_v11 }
 0x592   : > { %v4663_v57 = vadd.f32 %v4662_v18, %v4574_v52  ;;  %v4751_v31 = vpop.f32.mrf.mxu3  ;;  %v4486_v27 = vpop.f32.mrf.mxu0  ;;  %v16814_v52 = vld [vmem:[#allocation100_spill] sm:$0xff]  ;;  %v8430_v28 = vadd.f32 %v13719_v16, %v8429_v39  ;;  %v8886_v29 = vmul.f32 %v8379_v56, %v16795_v42  ;;  %v16822_v56 = vld [vmem:[#allocation29_spill] sm:$0xff]  ;;  %vm8436_vm11 = vcmp.eq.f32.partialorder %v8435_v17, 8.507059e+37 }
 0x593   : > { %v4575_v1 = vpop.f32.mrf.mxu1  ;;  %v10735_v25 = vmul.f32 -1.442695, %v16814_v52 }
 0x594   : > { %v4752_v8 = vadd.f32 %v4751_v31, %v4663_v57  ;;  %v4576_v2 = vadd.f32 %v4575_v1, %v4486_v27  ;;  %v10177_v57 = vld [vmem:[%s12731_s19 + $0x88] sm:$0xf]  ;;  %v10961_v27 = vld [vmem:[%s12731_s19 + $0x94] sm:$0xf0]  ;;  %v8434_v42 = vsel %vm13786_vm10, %v13719_v16, %v8430_v28  ;;  %v8497_v28 = vand.u32 2147483648, %v13713_v34 }
 0x595   : > { %v10305_v31 = vld [vmem:[%s12731_s19 + $0x188] sm:$0xf]  ;;  %v10178_v18 = vor.u32 %v10961_v27, %v10177_v57  ;;  %11273 = vpow2.f32 %v10735_v25  ;;  %v13777_v43 = vpop.eup %11271  ;;  %v16817_v25 = vld [vmem:[#allocation101_spill] sm:$0xff]  ;;  %v16820_v27 = vld [vmem:[#allocation28_spill] sm:$0xff] }
 0x596   : > { %v13769_v5 = vmul.f32 %v8882_v41, %v4752_v8  ;;  %v10306_v1 = vor.u32 %v10993_v51, %v10305_v31  ;;  %v10739_v8 = vmul.f32 -1.442695, %v16817_v25  ;;  %11275 = vrcp.f32 %v13775_v11 }
 0x597   : > { %5130 = vmatpush.bf16.msra.mxu0 %v10178_v18  ;;  %v8438_v18 = vor.u32 1.1754944e-38, %v8437_v19  ;;  %v8495_v19 = vand.u32 2147483647, %v13713_v34  ;;  %vm8552_vm0 = vweird.f32 %v13777_v43 }
 0x598   : > { %5219 = vmatpush.bf16.msra.mxu1 %v10306_v1  ;;  %11277 = vpow2.f32 %v10739_v8  ;;  %v16825_v8 = vld [vmem:[#allocation102_spill] sm:$0xff]  ;;  %vm13833_vm2 = vmor %vm8551_vm1, %vm8552_vm0 }
 0x599   : > { %v4664_v55 = vpop.f32.mrf.mxu2  ;;  %v8439_v51 = vsel %vm8436_vm11, %v8438_v18, %v8434_v42  ;;  %v10616_v17 = vmul.f32 -1.442695, %v16825_v8  ;;  %vm8496_vm15 = vcmp.eq.f32.partialorder %v8495_v19, 8.507059e+37  ;;  %v8555_v19 = vand.u32 2147483647, %v13744_v35 }
 0x59a   : > { %v4665_v21 = vadd.f32 %v4664_v55, %v4576_v2  ;;  %v4753_v41 = vpop.f32.mrf.mxu3  ;;  %v4489_v7 = vpop.f32.mrf.mxu0  ;;  %v8489_v55 = vmul.f32 %v13747_v48, %v8488_v20  ;;  %v8547_v2 = vmul.f32 %v13777_v43, %v13744_v35  ;;  %v16824_v20 = vld [vmem:[#allocation31_spill] sm:$0xff] }
 0x59b   : > { %v4578_v10 = vpop.f32.mrf.mxu1  ;;  %v11274_v31 = vpop.eup %11273  ;;  %vm8556_vm3 = vcmp.eq.f32.partialorder %v8555_v19, 8.507059e+37  ;;  %v8615_v19 = vand.u32 2147483647, %v13775_v11 }
 0x59c   : > { %v4754_v26 = vadd.f32 %v4753_v41, %v4665_v21  ;;  %v4579_v57 = vadd.f32 %v4578_v10, %v4489_v7  ;;  %v8490_v1 = vadd.f32 %v13747_v48, %v8489_v55  ;;  %v8548_v21 = vsub.f32 1.0, %v8547_v2 }
 0x59d   : > { %4804 = vmatmul.bf16.gmra.mxu0 %v16820_v27  ;;  %4893 = vmatmul.bf16.gmra.mxu1 %v16822_v56  ;;  %v13805_v41 = vadd.f32 1.0, %v11274_v31  ;;  %v8890_v55 = vmul.f32 %v8439_v51, %v16797_v45  ;;  %vm8616_vm7 = vcmp.eq.f32.partialorder %v8615_v19, 8.507059e+37  ;;  %v10289_v19 = vld [vmem:[%s12731_s19 + $0x168] sm:$0xf]  ;;  %v16840_v27 = vld [vmem:[#allocation36_spill] sm:$0xff] }
 0x59e   : > { %v13798_v32 = vmul.f32 %v8886_v29, %v4754_v26  ;;  %4982 = vmatmul.bf16.gmra.mxu2 %v16823_v3  ;;  %v13808_v26 = vpop.eup %11275  ;;  %v8549_v18 = vmul.f32 %v13777_v43, %v8548_v21 }
 0x59f   : > { %5071 = vmatmul.bf16.gmra.mxu3 %v16824_v20  ;;  %v11278_v42 = vpop.eup %11277  ;;  %11279 = vrcp.f32 %v13805_v41  ;;  %v8607_v34 = vmul.f32 %v13808_v26, %v13775_v11  ;;  %v16832_v20 = vld [vmem:[#allocation33_spill] sm:$0xff]  ;;  %vm8612_vm4 = vweird.f32 %v13808_v26  ;;  %vm8671_vm9 = vweird.f32 %v13805_v41 }
 0x5a0   : > { %16821 = vst [vmem:[#allocation89_spill] sm:$0xff] %v13798_v32  ;;  %11281 = vpow2.f32 %v10616_v17  ;;  %v13823_v51 = vadd.f32 1.0, %v11278_v42  ;;  %vm8613_vm6 = vmor %vm8611_vm5, %vm8612_vm4 }
 0x5a1   : > { %v4667_v16 = vpop.f32.mrf.mxu2  ;;  %v8608_v21 = vsub.f32 1.0, %v8607_v34 }
 0x5a2   : > { %v4668_v7 = vadd.f32 %v4667_v16, %v4579_v57  ;;  %v4756_v10 = vpop.f32.mrf.mxu3  ;;  %v4491_v29 = vpop.f32.mrf.mxu0  ;;  %v8494_v57 = vsel %vm8493_vm14, %v13747_v48, %v8490_v1  ;;  %v8498_v16 = vor.u32 1.1754944e-38, %v8497_v28  ;;  %v8557_v1 = vand.u32 2147483648, %v13744_v35  ;;  %v16830_v35 = vld [vmem:[#allocation32_spill] sm:$0xff] }
 0x5a3   : > { %v4580_v39 = vpop.f32.mrf.mxu1  ;;  %11283 = vrcp.f32 %v13823_v51  ;;  %vm8731_vm13 = vweird.f32 %v13823_v51 }
 0x5a4   : > { %v4757_v2 = vadd.f32 %v4756_v10, %v4668_v7  ;;  %v4581_v31 = vadd.f32 %v4580_v39, %v4491_v29  ;;  %v8499_v45 = vsel %vm8496_vm15, %v8498_v16, %v8494_v57  ;;  %v8550_v7 = vadd.f32 %v13777_v43, %v8549_v18 }
 0x5a5   : > { %v13828_v39 = vpop.eup %11279  ;;  %v8558_v34 = vor.u32 1.1754944e-38, %v8557_v1 }
 0x5a6   : > { %v13821_v32 = vmul.f32 %v8890_v55, %v4757_v2  ;;  %v8894_v55 = vmul.f32 %v8499_v45, %v16800_v63  ;;  %v11282_v16 = vpop.eup %11281  ;;  %v8554_v63 = vsel %vm13833_vm2, %v13777_v43, %v8550_v7  ;;  %v8609_v45 = vmul.f32 %v13808_v26, %v8608_v21  ;;  %v10545_v43 = vld [vmem:[%s12731_s19 + $0x368] sm:$0xf]  ;;  %v11053_v21 = vld [vmem:[%s12731_s19 + $0x374] sm:$0xf0] }
 0x5a7   : > { %v13854_v7 = vadd.f32 1.0, %v11282_v16  ;;  %v8559_v2 = vsel %vm8556_vm3, %v8558_v34, %v8554_v63  ;;  %v10546_v3 = vor.u32 %v11053_v21, %v10545_v43  ;;  %v16835_v16 = vld [vmem:[#allocation104_spill] sm:$0xff]  ;;  %vm8672_vm8 = vweird.f32 %v13828_v39 }
 0x5a8   : > { %16826 = vst [vmem:[#allocation90_spill] sm:$0xff] %v13821_v32  ;;  %v10624_v63 = vmul.f32 -1.442695, %v16835_v16  ;;  %vm13892_vm10 = vmor %vm8671_vm9, %vm8672_vm8 }
 0x5a9   : > { %v4669_v48 = vpop.f32.mrf.mxu2  ;;  %5398 = vmatpush.bf16.msra.mxu3 %v10546_v3  ;;  %vm6886_vm1 = vweird.f32 %v13854_v7 }
 0x5aa   : > { %v4670_v10 = vadd.f32 %v4669_v48, %v4581_v31  ;;  %v4758_v28 = vpop.f32.mrf.mxu3  ;;  %v4494_v29 = vpop.f32.mrf.mxu0  ;;  %v16829_v31 = vld [vmem:[#allocation103_spill] sm:$0xff]  ;;  %v8667_v48 = vmul.f32 %v13828_v39, %v13805_v41 }
 0x5ab   : > { %v4583_v17 = vpop.f32.mrf.mxu1  ;;  %v10620_v42 = vmul.f32 -1.442695, %v16829_v31 }
 0x5ac   : > { %v4759_v57 = vadd.f32 %v4758_v28, %v4670_v10  ;;  %v4584_v18 = vadd.f32 %v4583_v17, %v4494_v29  ;;  %v16833_v10 = vld [vmem:[#allocation34_spill] sm:$0xff]  ;;  %v16834_v28 = vld [vmem:[#allocation35_spill] sm:$0xff]  ;;  %v11021_v17 = vld [vmem:[%s12731_s19 + $0x274] sm:$0xf0] }
 0x5ad   : > { %4809 = vmatmul.bf16.gmra.mxu0 %v16830_v35  ;;  %4898 = vmatmul.bf16.gmra.mxu1 %v16832_v20  ;;  %v10417_v29 = vld [vmem:[%s12731_s19 + $0x268] sm:$0xf]  ;;  %11285 = vpow2.f32 %v10620_v42  ;;  %v8617_v42 = vand.u32 2147483648, %v13775_v11 }
 0x5ae   : > { %v13846_v32 = vmul.f32 %v8894_v55, %v4759_v57  ;;  %4987 = vmatmul.bf16.gmra.mxu2 %v16833_v10  ;;  %v10418_v1 = vor.u32 %v11021_v17, %v10417_v29  ;;  %v13857_v55 = vpop.eup %11283  ;;  %v8610_v57 = vadd.f32 %v13808_v26, %v8609_v45  ;;  %v8898_v29 = vmul.f32 %v8559_v2, %v16804_v6 }
 0x5af   : > { %5076 = vmatmul.bf16.gmra.mxu3 %v16834_v28  ;;  %11287 = vrcp.f32 %v13854_v7  ;;  %v8618_v6 = vor.u32 1.1754944e-38, %v8617_v42  ;;  %v10161_v42 = vld [vmem:[%s12731_s19 + $0x68] sm:$0xf]  ;;  %vm8732_vm12 = vweird.f32 %v13857_v55 }
 0x5b0   : > { %16831 = vst [vmem:[#allocation91_spill] sm:$0xff] %v13846_v32  ;;  %v8668_v32 = vsub.f32 1.0, %v8667_v48  ;;  %5309 = vmatpush.bf16.msra.mxu2 %v10418_v1  ;;  %v8614_v17 = vsel %vm8613_vm6, %v13808_v26, %v8610_v57  ;;  %11289 = vpow2.f32 %v10624_v63  ;;  %v10957_v63 = vld [vmem:[%s12731_s19 + $0x74] sm:$0xf0]  ;;  %vm8733_vm14 = vmor %vm8731_vm13, %vm8732_vm12 }
 0x5b1   : > { %v4672_v35 = vpop.f32.mrf.mxu2  ;;  %v8619_v3 = vsel %vm8616_vm7, %v8618_v6, %v8614_v17  ;;  %v10989_v17 = vld [vmem:[%s12731_s19 + $0x174] sm:$0xf0] }
 0x5b2   : > { %v4673_v28 = vadd.f32 %v4672_v35, %v4584_v18  ;;  %v4761_v10 = vpop.f32.mrf.mxu3  ;;  %v4496_v20 = vpop.f32.mrf.mxu0  ;;  %v8727_v18 = vmul.f32 %v13857_v55, %v13823_v51  ;;  %v8669_v11 = vmul.f32 %v13828_v39, %v8668_v32  ;;  %v8902_v6 = vmul.f32 %v8619_v3, %v16808_v61 }
 0x5b3   : > { %v4585_v34 = vpop.f32.mrf.mxu1  ;;  %v11286_v35 = vpop.eup %11285  ;;  %v10290_v56 = vor.u32 %v10989_v17, %v10289_v19 }
 0x5b4   : > { %v4762_v45 = vadd.f32 %v4761_v10, %v4673_v28  ;;  %v4586_v48 = vadd.f32 %v4585_v34, %v4496_v20  ;;  %v8675_v20 = vand.u32 2147483647, %v13805_v41  ;;  %v8728_v10 = vsub.f32 1.0, %v8727_v18 }
 0x5b5   : > { %v13876_v28 = vadd.f32 1.0, %v11286_v35  ;;  %v13878_v21 = vpop.eup %11287  ;;  %v8670_v32 = vadd.f32 %v13828_v39, %v8669_v11  ;;  %v8677_v34 = vand.u32 2147483648, %v13805_v41  ;;  %v10162_v35 = vor.u32 %v10957_v63, %v10161_v42  ;;  %v16844_v63 = vld [vmem:[#allocation39_spill] sm:$0xff]  ;;  %5220 = vmatpush.bf16.msra.mxu1 %v10290_v56 }
 0x5b6   : > { %v13873_v43 = vmul.f32 %v8898_v29, %v4762_v45  ;;  %v16837_v29 = vld [vmem:[#allocation105_spill] sm:$0xff]  ;;  %v6882_v41 = vmul.f32 %v13878_v21, %v13854_v7  ;;  %v8729_v3 = vmul.f32 %v13857_v55, %v8728_v10  ;;  %vm8676_vm11 = vcmp.eq.f32.partialorder %v8675_v20, 8.507059e+37 }
 0x5b7   : > { %v10628_v45 = vmul.f32 -1.442695, %v16837_v29  ;;  %11291 = vrcp.f32 %v13876_v28  ;;  %v8674_v61 = vsel %vm13892_vm10, %v13828_v39, %v8670_v32  ;;  %v8678_v42 = vor.u32 1.1754944e-38, %v8677_v34  ;;  %5131 = vmatpush.bf16.msra.mxu0 %v10162_v35 }
 0x5b8   : > { %16836 = vst [vmem:[#allocation92_spill] sm:$0xff] %v13873_v43  ;;  %v6883_v17 = vsub.f32 1.0, %v6882_v41  ;;  %v8730_v10 = vadd.f32 %v13857_v55, %v8729_v3  ;;  %v8735_v34 = vand.u32 2147483647, %v13823_v51  ;;  %v8737_v20 = vand.u32 2147483648, %v13823_v51 }
 0x5b9   : > { %v4674_v1 = vpop.f32.mrf.mxu2  ;;  %11293 = vpow2.f32 %v10628_v45  ;;  %v16845_v45 = vld [vmem:[#allocation106_spill] sm:$0xff]  ;;  %vm6887_vm0 = vweird.f32 %v13878_v21  ;;  %vm6946_vm5 = vweird.f32 %v13876_v28 }
 0x5ba   : > { %v4675_v26 = vadd.f32 %v4674_v1, %v4586_v48  ;;  %v4763_v2 = vpop.f32.mrf.mxu3  ;;  %v4499_v57 = vpop.f32.mrf.mxu0  ;;  %v10632_v56 = vmul.f32 -1.442695, %v16845_v45  ;;  %v6884_v3 = vmul.f32 %v13878_v21, %v6883_v17  ;;  %vm8736_vm15 = vcmp.eq.f32.partialorder %v8735_v34, 8.507059e+37  ;;  %vm13939_vm2 = vmor %vm6886_vm1, %vm6887_vm0 }
 0x5bb   : > { %v4588_v18 = vpop.f32.mrf.mxu1  ;;  %v11290_v48 = vpop.eup %11289  ;;  %v6892_v34 = vand.u32 2147483648, %v13854_v7 }
 0x5bc   : > { %v4764_v11 = vadd.f32 %v4763_v2, %v4675_v26  ;;  %v4589_v43 = vadd.f32 %v4588_v18, %v4499_v57  ;;  %v16842_v2 = vld [vmem:[#allocation37_spill] sm:$0xff]  ;;  %v16843_v57 = vld [vmem:[#allocation38_spill] sm:$0xff]  ;;  %v13909_v19 = vadd.f32 1.0, %v11290_v48  ;;  %v8679_v18 = vsel %vm8676_vm11, %v8678_v42, %v8674_v61 }
 0x5bd   : > { %4814 = vmatmul.bf16.gmra.mxu0 %v16840_v27  ;;  %4903 = vmatmul.bf16.gmra.mxu1 %v16842_v2  ;;  %v13913_v1 = vpop.eup %11291  ;;  %v8906_v48 = vmul.f32 %v8679_v18, %v16814_v52  ;;  %v8734_v42 = vsel %vm8733_vm14, %v13857_v55, %v8730_v10 }
 0x5be   : > { %v13904_v26 = vmul.f32 %v8902_v6, %v4764_v11  ;;  %4992 = vmatmul.bf16.gmra.mxu2 %v16843_v57  ;;  %11295 = vrcp.f32 %v13909_v19  ;;  %v6942_v51 = vmul.f32 %v13913_v1, %v13876_v28  ;;  %vm6947_vm4 = vweird.f32 %v13913_v1 }
 0x5bf   : > { %5081 = vmatmul.bf16.gmra.mxu3 %v16844_v63  ;;  %11297 = vpow2.f32 %v10632_v56  ;;  %vm6948_vm6 = vmor %vm6946_vm5, %vm6947_vm4  ;;  %vm7006_vm9 = vweird.f32 %v13909_v19  ;;  %v16858_v63 = vld [vmem:[#allocation46_spill] sm:$0xff] }
 0x5c0   : > { %16841 = vst [vmem:[#allocation93_spill] sm:$0xff] %v13904_v26  ;;  %v8738_v26 = vor.u32 1.1754944e-38, %v8737_v20  ;;  %v6943_v17 = vsub.f32 1.0, %v6942_v51  ;;  %v6890_v20 = vand.u32 2147483647, %v13854_v7 }
 0x5c1   : > { %v4677_v39 = vpop.f32.mrf.mxu2 }
 0x5c2   : > { %v4678_v32 = vadd.f32 %v4677_v39, %v4589_v43  ;;  %v4766_v6 = vpop.f32.mrf.mxu3  ;;  %v4501_v11 = vpop.f32.mrf.mxu0  ;;  %v8739_v18 = vsel %vm8736_vm15, %v8738_v26, %v8734_v42  ;;  %vm6891_vm3 = vcmp.eq.f32.partialorder %v6890_v20, 8.507059e+37  ;;  %v10401_v20 = vld [vmem:[%s12731_s19 + $0x248] sm:$0xf] }
 0x5c3   : > { %v4590_v35 = vpop.f32.mrf.mxu1  ;;  %v11294_v43 = vpop.eup %11293  ;;  %v8910_v26 = vmul.f32 %v8739_v18, %v16817_v25  ;;  %v6944_v25 = vmul.f32 %v13913_v1, %v6943_v17  ;;  %v6950_v17 = vand.u32 2147483647, %v13876_v28 }
 0x5c4   : > { %v4767_v41 = vadd.f32 %v4766_v6, %v4678_v32  ;;  %v4591_v61 = vadd.f32 %v4590_v35, %v4501_v11  ;;  %v13929_v52 = vadd.f32 1.0, %v11294_v43  ;;  %v6885_v32 = vadd.f32 %v13878_v21, %v6884_v3  ;;  %v13933_v11 = vpop.eup %11295 }
 0x5c5   : > { %v11298_v3 = vpop.eup %11297  ;;  %v7002_v7 = vmul.f32 %v13933_v11, %v13909_v19  ;;  %vm6951_vm7 = vcmp.eq.f32.partialorder %v6950_v17, 8.507059e+37  ;;  %vm7007_vm8 = vweird.f32 %v13933_v11 }
 0x5c6   : > { %v13927_v39 = vmul.f32 %v8906_v48, %v4767_v41  ;;  %11299 = vrcp.f32 %v13929_v52  ;;  %v16849_v41 = vld [vmem:[#allocation107_spill] sm:$0xff]  ;;  %v6889_v42 = vsel %vm13939_vm2, %v13878_v21, %v6885_v32  ;;  %v13957_v21 = vadd.f32 1.0, %v11298_v3  ;;  %v11017_v3 = vld [vmem:[%s12731_s19 + $0x254] sm:$0xf0]  ;;  %vm14000_vm10 = vmor %vm7006_vm9, %vm7007_vm8 }
 0x5c7   : > { %v10636_v43 = vmul.f32 -1.442695, %v16849_v41  ;;  %vm7066_vm13 = vweird.f32 %v13929_v52 }
 0x5c8   : > { %16846 = vst [vmem:[#allocation94_spill] sm:$0xff] %v13927_v39  ;;  %vm7126_vm1 = vweird.f32 %v13957_v21 }
 0x5c9   : > { %v4679_v6 = vpop.f32.mrf.mxu2  ;;  %11301 = vpow2.f32 %v10636_v43  ;;  %v6952_v43 = vand.u32 2147483648, %v13876_v28 }
 0x5ca   : > { %v4680_v55 = vadd.f32 %v4679_v6, %v4591_v61  ;;  %v4768_v10 = vpop.f32.mrf.mxu3  ;;  %v4780_v35 = vpop.f32.mrf.mxu0  ;;  %v6893_v6 = vor.u32 1.1754944e-38, %v6892_v34  ;;  %11303 = vrcp.f32 %v13957_v21 }
 0x5cb   : > { %v4869_v56 = vpop.f32.mrf.mxu1 }
 0x5cc   : > { %v4769_v61 = vadd.f32 %v4768_v10, %v4680_v55  ;;  %v4870_v18 = vadd.f32 %v4869_v56, %v4780_v35  ;;  %v16851_v55 = vld [vmem:[#allocation43_spill] sm:$0xff]  ;;  %v6894_v32 = vsel %vm6891_vm3, %v6893_v6, %v6889_v42  ;;  %v7003_v10 = vsub.f32 1.0, %v7002_v7  ;;  %v13960_v56 = vpop.eup %11299  ;;  %v16852_v42 = vld [vmem:[#allocation108_spill] sm:$0xff] }
 0x5cd   : > { %4819 = vmatmul.bf16.gmra.mxu0 %v12191_v30  ;;  %4908 = vmatmul.bf16.gmra.mxu1 %v12193_v36  ;;  %v10640_v7 = vmul.f32 -1.442695, %v16852_v42  ;;  %v7062_v28 = vmul.f32 %v13960_v56, %v13929_v52  ;;  %vm7067_vm12 = vweird.f32 %v13960_v56 }
 0x5ce   : > { %v13952_v51 = vmul.f32 %v8910_v26, %v4769_v61  ;;  %4997 = vmatmul.bf16.gmra.mxu2 %v12195_v37  ;;  %v6945_v26 = vadd.f32 %v13913_v1, %v6944_v25  ;;  %v11049_v37 = vld [vmem:[%s12731_s19 + $0x354] sm:$0xf0]  ;;  %v8787_v25 = vmul.f32 %v6894_v32, %v16825_v8  ;;  %v7004_v36 = vmul.f32 %v13933_v11, %v7003_v10  ;;  %vm7068_vm14 = vmor %vm7066_vm13, %vm7067_vm12 }
 0x5cf   : > { %5086 = vmatmul.bf16.gmra.mxu3 %v16851_v55  ;;  %v10402_v55 = vor.u32 %v11017_v3, %v10401_v20  ;;  %v11302_v30 = vpop.eup %11301  ;;  %v6953_v8 = vor.u32 1.1754944e-38, %v6952_v43  ;;  %11305 = vpow2.f32 %v10640_v7 }
 0x5d0   : > { %16850 = vst [vmem:[#allocation95_spill] sm:$0xff] %v13952_v51  ;;  %v10529_v51 = vld [vmem:[%s12731_s19 + $0x348] sm:$0xf]  ;;  %v6949_v20 = vsel %vm6948_vm6, %v13913_v1, %v6945_v26  ;;  %v13985_v26 = vpop.eup %11303 }
 0x5d1   : > { %v4958_v35 = vpop.f32.mrf.mxu2  ;;  %5310 = vmatpush.bf16.msra.mxu2 %v10402_v55  ;;  %v6954_v10 = vsel %vm6951_vm7, %v6953_v8, %v6949_v20  ;;  %v7063_v55 = vsub.f32 1.0, %v7062_v28  ;;  %v10985_v28 = vld [vmem:[%s12731_s19 + $0x154] sm:$0xf0]  ;;  %vm7127_vm0 = vweird.f32 %v13985_v26 }
 0x5d2   : > { %v4959_v34 = vadd.f32 %v4958_v35, %v4870_v18  ;;  %v5047_v48 = vpop.f32.mrf.mxu3  ;;  %v4782_v61 = vpop.f32.mrf.mxu0  ;;  %v10530_v35 = vor.u32 %v11049_v37, %v10529_v51  ;;  %v16853_v37 = vld [vmem:[#allocation62_spill] sm:$0xff]  ;;  %v8791_v20 = vmul.f32 %v6954_v10, %v16829_v31  ;;  %v16856_v8 = vld [vmem:[#allocation109_spill] sm:$0xff]  ;;  %vm14045_vm2 = vmor %vm7126_vm1, %vm7127_vm0 }
 0x5d3   : > { %v4871_v6 = vpop.f32.mrf.mxu1  ;;  %v16857_v31 = vld [vmem:[#allocation45_spill] sm:$0xff]  ;;  %v7064_v10 = vmul.f32 %v13960_v56, %v7063_v55 }
 0x5d4   : > { %v5048_v18 = vadd.f32 %v5047_v48, %v4959_v34  ;;  %5399 = vmatpush.bf16.msra.mxu3 %v10530_v35  ;;  %v4872_v32 = vadd.f32 %v4871_v6, %v4782_v61  ;;  %v7005_v34 = vadd.f32 %v13933_v11, %v7004_v36  ;;  %v13983_v48 = vadd.f32 1.0, %v11302_v30  ;;  %v10273_v61 = vld [vmem:[%s12731_s19 + $0x148] sm:$0xf] }
 0x5d5   : > { %v7010_v36 = vand.u32 2147483647, %v13909_v19  ;;  %v7012_v30 = vand.u32 2147483648, %v13909_v19 }
 0x5d6   : > { %v8915_v3 = vmul.f32 %v8787_v25, %v5048_v18  ;;  %v10145_v25 = vld [vmem:[%s12731_s19 + $0x48] sm:$0xf]  ;;  %v10953_v18 = vld [vmem:[%s12731_s19 + $0x54] sm:$0xf0]  ;;  %v7009_v19 = vsel %vm14000_vm10, %v13933_v11, %v7005_v34  ;;  %11307 = vrcp.f32 %v13983_v48  ;;  %vm7186_vm5 = vweird.f32 %v13983_v48 }
 0x5d7   : > { %v10146_v35 = vor.u32 %v10953_v18, %v10145_v25  ;;  %v7122_v25 = vmul.f32 %v13985_v26, %v13957_v21  ;;  %vm7011_vm11 = vcmp.eq.f32.partialorder %v7010_v36, 8.507059e+37  ;;  %v16861_v34 = vld [vmem:[#allocation67_spill] sm:$0xff]  ;;  %v7072_v36 = vand.u32 2147483648, %v13929_v52 }
 0x5d8   : > { %v9042_v51 = vpack.c.bf16 %v8915_v3, %v16853_v37  ;;  %v10644_v37 = vmul.f32 -1.442695, %v16856_v8 }
 0x5d9   : > { %v4960_v1 = vpop.f32.mrf.mxu2  ;;  %5132 = vmatpush.bf16.msra.mxu0 %v10146_v35  ;;  %v7123_v55 = vsub.f32 1.0, %v7122_v25  ;;  %v16862_v35 = vld [vmem:[#allocation110_spill] sm:$0xff] }
 0x5da   : > { %9106 = vst [vmem:[%s13987_s23] sm:$0xff] %v9042_v51  ;;  %v4961_v17 = vadd.f32 %v4960_v1, %v4872_v32  ;;  %v5049_v43 = vpop.f32.mrf.mxu3  ;;  %v4785_v7 = vpop.f32.mrf.mxu0  ;;  %v10274_v32 = vor.u32 %v10985_v28, %v10273_v61  ;;  %v16860_v61 = vld [vmem:[#allocation48_spill] sm:$0xff]  ;;  %11309 = vpow2.f32 %v10644_v37  ;;  %v10648_v37 = vmul.f32 -1.442695, %v16862_v35 }
 0x5db   : > { %v4874_v6 = vpop.f32.mrf.mxu1  ;;  %v11306_v1 = vpop.eup %11305 }
 0x5dc   : > { %v5050_v51 = vadd.f32 %v5049_v43, %v4961_v17  ;;  %v4875_v39 = vadd.f32 %v4874_v6, %v4785_v7  ;;  %v16859_v17 = vld [vmem:[#allocation47_spill] sm:$0xff]  ;;  %v7013_v43 = vor.u32 1.1754944e-38, %v7012_v30  ;;  %v14016_v11 = vadd.f32 1.0, %v11306_v1  ;;  %5221 = vmatpush.bf16.msra.mxu1 %v10274_v32 }
 0x5dd   : > { %4824 = vmatmul.bf16.gmra.mxu0 %v16857_v31  ;;  %4913 = vmatmul.bf16.gmra.mxu1 %v16858_v63  ;;  %v7065_v7 = vadd.f32 %v13960_v56, %v7064_v10  ;;  %v16878_v31 = vld [vmem:[#allocation58_spill] sm:$0xff] }
 0x5de   : > { %v8919_v18 = vmul.f32 %v8791_v20, %v5050_v51  ;;  %5002 = vmatmul.bf16.gmra.mxu2 %v16859_v17  ;;  %v7014_v3 = vsel %vm7011_vm11, %v7013_v43, %v7009_v19  ;;  %v7070_v19 = vand.u32 2147483647, %v13929_v52  ;;  %11311 = vrcp.f32 %v14016_v11 }
 0x5df   : > { %5091 = vmatmul.bf16.gmra.mxu3 %v16860_v61  ;;  %v14022_v61 = vpop.eup %11307  ;;  %v8795_v1 = vmul.f32 %v7014_v3, %v16835_v16  ;;  %11313 = vpow2.f32 %v10648_v37  ;;  %v16863_v16 = vld [vmem:[#allocation68_spill] sm:$0xff]  ;;  %v7132_v37 = vand.u32 2147483648, %v13957_v21  ;;  %vm7246_vm9 = vweird.f32 %v14016_v11 }
 0x5e0   : > { %v9044_v28 = vpack.c.bf16 %v8919_v18, %v16861_v34  ;;  %v11310_v10 = vpop.eup %11309  ;;  %v7069_v18 = vsel %vm7068_vm14, %v13960_v56, %v7065_v7  ;;  %v7182_v43 = vmul.f32 %v14022_v61, %v13983_v48  ;;  %vm7071_vm15 = vcmp.eq.f32.partialorder %v7070_v19, 8.507059e+37 }
 0x5e1   : > { %v4963_v20 = vpop.f32.mrf.mxu2  ;;  %vm7187_vm4 = vweird.f32 %v14022_v61 }
 0x5e2   : > { %9108 = vst [vmem:[%s13987_s23 + $0x10] sm:$0xff] %v9044_v28  ;;  %v4964_v6 = vadd.f32 %v4963_v20, %v4875_v39  ;;  %v5052_v30 = vpop.f32.mrf.mxu3  ;;  %v4787_v51 = vpop.f32.mrf.mxu0  ;;  %v7124_v39 = vmul.f32 %v13985_v26, %v7123_v55  ;;  %v7073_v28 = vor.u32 1.1754944e-38, %v7072_v36  ;;  %v14037_v55 = vadd.f32 1.0, %v11310_v10  ;;  %vm7188_vm6 = vmor %vm7186_vm5, %vm7187_vm4 }
 0x5e3   : > { %v4876_v32 = vpop.f32.mrf.mxu1  ;;  %v7183_v56 = vsub.f32 1.0, %v7182_v43 }
 0x5e4   : > { %v5053_v25 = vadd.f32 %v5052_v30, %v4964_v6  ;;  %v4877_v52 = vadd.f32 %v4876_v32, %v4787_v51  ;;  %v7074_v20 = vsel %vm7071_vm15, %v7073_v28, %v7069_v18  ;;  %v7125_v6 = vadd.f32 %v13985_v26, %v7124_v39  ;;  %v14039_v17 = vpop.eup %11311  ;;  %v16866_v39 = vld [vmem:[#allocation111_spill] sm:$0xff] }
 0x5e5   : > { %v8799_v32 = vmul.f32 %v7074_v20, %v16837_v29  ;;  %v10652_v10 = vmul.f32 -1.442695, %v16866_v39  ;;  %v11314_v43 = vpop.eup %11313  ;;  %v7242_v28 = vmul.f32 %v14039_v17, %v14016_v11  ;;  %11315 = vrcp.f32 %v14037_v55  ;;  %v16867_v29 = vld [vmem:[#allocation51_spill] sm:$0xff]  ;;  %v16869_v20 = vld [vmem:[#allocation53_spill] sm:$0xff] }
 0x5e6   : > { %v8923_v34 = vmul.f32 %v8795_v1, %v5053_v25  ;;  %v7130_v25 = vand.u32 2147483647, %v13957_v21  ;;  %v16868_v21 = vld [vmem:[#allocation52_spill] sm:$0xff]  ;;  %vm7247_vm8 = vweird.f32 %v14039_v17  ;;  %vm7306_vm13 = vweird.f32 %v14037_v55 }
 0x5e7   : > { %11317 = vpow2.f32 %v10652_v10  ;;  %v10385_v10 = vld [vmem:[%s12731_s19 + $0x228] sm:$0xf]  ;;  %vm14104_vm10 = vmor %vm7246_vm9, %vm7247_vm8 }
 0x5e8   : > { %v9046_v3 = vpack.c.bf16 %v8923_v34, %v16863_v16  ;;  %v7129_v34 = vsel %vm14045_vm2, %v13985_v26, %v7125_v6  ;;  %v7184_v16 = vmul.f32 %v14022_v61, %v7183_v56  ;;  %vm7131_vm3 = vcmp.eq.f32.partialorder %v7130_v25, 8.507059e+37  ;;  %v16871_v6 = vld [vmem:[#allocation73_spill] sm:$0xff] }
 0x5e9   : > { %v4965_v30 = vpop.f32.mrf.mxu2  ;;  %v14062_v26 = vadd.f32 1.0, %v11314_v43  ;;  %v7190_v56 = vand.u32 2147483647, %v13983_v48 }
 0x5ea   : > { %9110 = vst [vmem:[%s13987_s23 + $0x20] sm:$0xff] %v9046_v3  ;;  %v4966_v7 = vadd.f32 %v4965_v30, %v4877_v52  ;;  %v5054_v1 = vpop.f32.mrf.mxu3  ;;  %v4790_v36 = vpop.f32.mrf.mxu0  ;;  %v7133_v30 = vor.u32 1.1754944e-38, %v7132_v37  ;;  %v7192_v37 = vand.u32 2147483648, %v13983_v48 }
 0x5eb   : > { %v4879_v51 = vpop.f32.mrf.mxu1  ;;  %11319 = vrcp.f32 %v14062_v26  ;;  %vm7191_vm7 = vcmp.eq.f32.partialorder %v7190_v56, 8.507059e+37  ;;  %vm7366_vm1 = vweird.f32 %v14062_v26 }
 0x5ec   : > { %v5055_v18 = vadd.f32 %v5054_v1, %v4966_v7  ;;  %v4880_v52 = vadd.f32 %v4879_v51, %v4790_v36  ;;  %v16870_v7 = vld [vmem:[#allocation54_spill] sm:$0xff]  ;;  %v7134_v19 = vsel %vm7131_vm3, %v7133_v30, %v7129_v34  ;;  %v7243_v36 = vsub.f32 1.0, %v7242_v28  ;;  %v16872_v34 = vld [vmem:[#allocation112_spill] sm:$0xff] }
 0x5ed   : > { %4829 = vmatmul.bf16.gmra.mxu0 %v16867_v29  ;;  %4918 = vmatmul.bf16.gmra.mxu1 %v16868_v21  ;;  %v10656_v28 = vmul.f32 -1.442695, %v16872_v34  ;;  %v8803_v21 = vmul.f32 %v7134_v19, %v16845_v45  ;;  %v7193_v45 = vor.u32 1.1754944e-38, %v7192_v37  ;;  %v16873_v19 = vld [vmem:[#allocation74_spill] sm:$0xff] }
 0x5ee   : > { %v8927_v3 = vmul.f32 %v8799_v32, %v5055_v18  ;;  %5007 = vmatmul.bf16.gmra.mxu2 %v16869_v20  ;;  %v7185_v32 = vadd.f32 %v14022_v61, %v7184_v16  ;;  %v10513_v20 = vld [vmem:[%s12731_s19 + $0x328] sm:$0xf]  ;;  %v11045_v16 = vld [vmem:[%s12731_s19 + $0x334] sm:$0xf0] }
 0x5ef   : > { %5096 = vmatmul.bf16.gmra.mxu3 %v16870_v7  ;;  %v11013_v7 = vld [vmem:[%s12731_s19 + $0x234] sm:$0xf0]  ;;  %11321 = vpow2.f32 %v10656_v28 }
 0x5f0   : > { %v9048_v1 = vpack.c.bf16 %v8927_v3, %v16871_v6  ;;  %v14072_v3 = vpop.eup %11315  ;;  %v10386_v6 = vor.u32 %v11013_v7, %v10385_v10  ;;  %v7189_v48 = vsel %vm7188_vm6, %v14022_v61, %v7185_v32 }
 0x5f1   : > { %v4968_v51 = vpop.f32.mrf.mxu2  ;;  %v11318_v29 = vpop.eup %11317  ;;  %v7302_v7 = vmul.f32 %v14072_v3, %v14037_v55  ;;  %vm7307_vm12 = vweird.f32 %v14072_v3 }
 0x5f2   : > { %9112 = vst [vmem:[%s13987_s23 + $0x30] sm:$0xff] %v9048_v1  ;;  %v4969_v25 = vadd.f32 %v4968_v51, %v4880_v52  ;;  %v5057_v18 = vpop.f32.mrf.mxu3  ;;  %v4792_v43 = vpop.f32.mrf.mxu0  ;;  %v10514_v52 = vor.u32 %v11045_v16, %v10513_v20  ;;  %v7244_v51 = vmul.f32 %v14039_v17, %v7243_v36  ;;  %5311 = vmatpush.bf16.msra.mxu2 %v10386_v6  ;;  %v7250_v20 = vand.u32 2147483647, %v14016_v11  ;;  %vm7308_vm14 = vmor %vm7306_vm13, %vm7307_vm12 }
 0x5f3   : > { %v4881_v30 = vpop.f32.mrf.mxu1  ;;  %v14090_v61 = vadd.f32 1.0, %v11318_v29  ;;  %v14092_v32 = vpop.eup %11319  ;;  %v7303_v37 = vsub.f32 1.0, %v7302_v7 }
 0x5f4   : > { %v5058_v1 = vadd.f32 %v5057_v18, %v4969_v25  ;;  %5400 = vmatpush.bf16.msra.mxu3 %v10514_v52  ;;  %v4882_v36 = vadd.f32 %v4881_v30, %v4792_v43  ;;  %v7194_v18 = vsel %vm7191_vm7, %v7193_v45, %v7189_v48  ;;  %v7245_v6 = vadd.f32 %v14039_v17, %v7244_v51  ;;  %v10949_v52 = vld [vmem:[%s12731_s19 + $0x34] sm:$0xf0]  ;;  %v10257_v48 = vld [vmem:[%s12731_s19 + $0x128] sm:$0xf] }
 0x5f5   : > { %v7252_v43 = vand.u32 2147483648, %v14016_v11  ;;  %v8807_v29 = vmul.f32 %v7194_v18, %v16849_v41  ;;  %v16876_v45 = vld [vmem:[#allocation113_spill] sm:$0xff]  ;;  %11323 = vrcp.f32 %v14090_v61  ;;  %v7304_v18 = vmul.f32 %v14072_v3, %v7303_v37 }
 0x5f6   : > { %v8931_v10 = vmul.f32 %v8803_v21, %v5058_v1  ;;  %v10129_v1 = vld [vmem:[%s12731_s19 + $0x28] sm:$0xf]  ;;  %v7249_v11 = vsel %vm14104_vm10, %v14039_v17, %v7245_v6  ;;  %v16877_v41 = vld [vmem:[#allocation57_spill] sm:$0xff]  ;;  %vm7251_vm11 = vcmp.eq.f32.partialorder %v7250_v20, 8.507059e+37  ;;  %v7312_v20 = vand.u32 2147483648, %v14037_v55 }
 0x5f7   : > { %v10130_v51 = vor.u32 %v10949_v52, %v10129_v1  ;;  %v7362_v1 = vmul.f32 %v14092_v32, %v14062_v26  ;;  %v16881_v6 = vld [vmem:[#allocation79_spill] sm:$0xff]  ;;  %vm7367_vm0 = vweird.f32 %v14092_v32  ;;  %vm7426_vm5 = vweird.f32 %v14090_v61 }
 0x5f8   : > { %v9050_v25 = vpack.c.bf16 %v8931_v10, %v16873_v19  ;;  %v10981_v10 = vld [vmem:[%s12731_s19 + $0x134] sm:$0xf0]  ;;  %v10660_v19 = vmul.f32 -1.442695, %v16876_v45  ;;  %vm14149_vm2 = vmor %vm7366_vm1, %vm7367_vm0 }
 0x5f9   : > { %v4970_v21 = vpop.f32.mrf.mxu2  ;;  %5133 = vmatpush.bf16.msra.mxu0 %v10130_v51  ;;  %v7363_v37 = vsub.f32 1.0, %v7362_v1  ;;  %v16882_v51 = vld [vmem:[#allocation114_spill] sm:$0xff] }
 0x5fa   : > { %9114 = vst [vmem:[%s13987_s23 + $0x40] sm:$0xff] %v9050_v25  ;;  %v4971_v56 = vadd.f32 %v4970_v21, %v4882_v36  ;;  %v5059_v28 = vpop.f32.mrf.mxu3  ;;  %v4795_v16 = vpop.f32.mrf.mxu0  ;;  %v10258_v36 = vor.u32 %v10981_v10, %v10257_v48  ;;  %v16880_v48 = vld [vmem:[#allocation60_spill] sm:$0xff]  ;;  %11325 = vpow2.f32 %v10660_v19  ;;  %v10664_v19 = vmul.f32 -1.442695, %v16882_v51 }
 0x5fb   : > { %v4884_v30 = vpop.f32.mrf.mxu1  ;;  %v11322_v21 = vpop.eup %11321 }
 0x5fc   : > { %v5060_v25 = vadd.f32 %v5059_v28, %v4971_v56  ;;  %v4885_v63 = vadd.f32 %v4884_v30, %v4795_v16  ;;  %v16879_v56 = vld [vmem:[#allocation59_spill] sm:$0xff]  ;;  %v7253_v28 = vor.u32 1.1754944e-38, %v7252_v43  ;;  %v14120_v17 = vadd.f32 1.0, %v11322_v21  ;;  %5222 = vmatpush.bf16.msra.mxu1 %v10258_v36 }
 0x5fd   : > { %4834 = vmatmul.bf16.gmra.mxu0 %v16877_v41  ;;  %4923 = vmatmul.bf16.gmra.mxu1 %v16878_v31  ;;  %v7305_v16 = vadd.f32 %v14072_v3, %v7304_v18 }
 0x5fe   : > { %v8935_v52 = vmul.f32 %v8807_v29, %v5060_v25  ;;  %5012 = vmatmul.bf16.gmra.mxu2 %v16879_v56  ;;  %v7254_v7 = vsel %vm7251_vm11, %v7253_v28, %v7249_v11  ;;  %v7310_v11 = vand.u32 2147483647, %v14037_v55  ;;  %11327 = vrcp.f32 %v14120_v17 }
 0x5ff   : > { %5101 = vmatmul.bf16.gmra.mxu3 %v16880_v48  ;;  %v14126_v48 = vpop.eup %11323  ;;  %v8811_v21 = vmul.f32 %v7254_v7, %v16852_v42  ;;  %11329 = vpow2.f32 %v10664_v19  ;;  %v16883_v42 = vld [vmem:[#allocation80_spill] sm:$0xff]  ;;  %v7372_v19 = vand.u32 2147483648, %v14062_v26  ;;  %vm7486_vm9 = vweird.f32 %v14120_v17 }
 0x600   : > { %v9052_v10 = vpack.c.bf16 %v8935_v52, %v16881_v6  ;;  %v11326_v18 = vpop.eup %11325  ;;  %v7309_v52 = vsel %vm7308_vm14, %v14072_v3, %v7305_v16  ;;  %v7422_v28 = vmul.f32 %v14126_v48, %v14090_v61  ;;  %vm7311_vm15 = vcmp.eq.f32.partialorder %v7310_v11, 8.507059e+37 }
 0x601   : > { %v4973_v29 = vpop.f32.mrf.mxu2  ;;  %vm7427_vm4 = vweird.f32 %v14126_v48 }
 0x602   : > { %9116 = vst [vmem:[%s13987_s23 + $0x50] sm:$0xff] %v9052_v10  ;;  %v4974_v30 = vadd.f32 %v4973_v29, %v4885_v63  ;;  %v5062_v43 = vpop.f32.mrf.mxu3  ;;  %v4797_v25 = vpop.f32.mrf.mxu0  ;;  %v7364_v63 = vmul.f32 %v14092_v32, %v7363_v37  ;;  %v7313_v10 = vor.u32 1.1754944e-38, %v7312_v20  ;;  %v14141_v37 = vadd.f32 1.0, %v11326_v18  ;;  %vm7428_vm6 = vmor %vm7426_vm5, %vm7427_vm4 }
 0x603   : > { %v4886_v36 = vpop.f32.mrf.mxu1  ;;  %v7423_v3 = vsub.f32 1.0, %v7422_v28 }
 0x604   : > { %v5063_v1 = vadd.f32 %v5062_v43, %v4974_v30  ;;  %v4887_v55 = vadd.f32 %v4886_v36, %v4797_v25  ;;  %v7314_v29 = vsel %vm7311_vm15, %v7313_v10, %v7309_v52  ;;  %v7365_v30 = vadd.f32 %v14092_v32, %v7364_v63  ;;  %v14143_v56 = vpop.eup %11327  ;;  %v16886_v63 = vld [vmem:[#allocation115_spill] sm:$0xff] }
 0x605   : > { %v8815_v36 = vmul.f32 %v7314_v29, %v16856_v8  ;;  %v10668_v18 = vmul.f32 -1.442695, %v16886_v63  ;;  %v11330_v28 = vpop.eup %11329  ;;  %v7482_v10 = vmul.f32 %v14143_v56, %v14120_v17  ;;  %11331 = vrcp.f32 %v14141_v37  ;;  %v16887_v8 = vld [vmem:[#allocation63_spill] sm:$0xff]  ;;  %v16889_v29 = vld [vmem:[#allocation65_spill] sm:$0xff] }
 0x606   : > { %v8939_v6 = vmul.f32 %v8811_v21, %v5063_v1  ;;  %v7370_v1 = vand.u32 2147483647, %v14062_v26  ;;  %v16888_v26 = vld [vmem:[#allocation64_spill] sm:$0xff]  ;;  %vm7487_vm8 = vweird.f32 %v14143_v56  ;;  %vm7546_vm13 = vweird.f32 %v14141_v37 }
 0x607   : > { %11333 = vpow2.f32 %v10668_v18  ;;  %v10369_v18 = vld [vmem:[%s12731_s19 + $0x208] sm:$0xf]  ;;  %vm14208_vm10 = vmor %vm7486_vm9, %vm7487_vm8 }
 0x608   : > { %v9054_v7 = vpack.c.bf16 %v8939_v6, %v16883_v42  ;;  %v7369_v6 = vsel %vm14149_vm2, %v14092_v32, %v7365_v30  ;;  %v7424_v42 = vmul.f32 %v14126_v48, %v7423_v3  ;;  %vm7371_vm3 = vcmp.eq.f32.partialorder %v7370_v1, 8.507059e+37  ;;  %v16891_v30 = vld [vmem:[#allocation83_spill] sm:$0xff] }
 0x609   : > { %v4975_v43 = vpop.f32.mrf.mxu2  ;;  %v14166_v32 = vadd.f32 1.0, %v11330_v28  ;;  %v7430_v3 = vand.u32 2147483647, %v14090_v61 }
 0x60a   : > { %9118 = vst [vmem:[%s13987_s23 + $0x60] sm:$0xff] %v9054_v7  ;;  %v4976_v16 = vadd.f32 %v4975_v43, %v4887_v55  ;;  %v5064_v21 = vpop.f32.mrf.mxu3  ;;  %v4800_v20 = vpop.f32.mrf.mxu0  ;;  %v7373_v43 = vor.u32 1.1754944e-38, %v7372_v19  ;;  %v7432_v19 = vand.u32 2147483648, %v14090_v61 }
 0x60b   : > { %v4889_v25 = vpop.f32.mrf.mxu1  ;;  %11335 = vrcp.f32 %v14166_v32  ;;  %vm7431_vm7 = vcmp.eq.f32.partialorder %v7430_v3, 8.507059e+37  ;;  %vm7606_vm1 = vweird.f32 %v14166_v32 }
 0x60c   : > { %v5065_v52 = vadd.f32 %v5064_v21, %v4976_v16  ;;  %v4890_v55 = vadd.f32 %v4889_v25, %v4800_v20  ;;  %v16890_v16 = vld [vmem:[#allocation66_spill] sm:$0xff]  ;;  %v7374_v11 = vsel %vm7371_vm3, %v7373_v43, %v7369_v6  ;;  %v7483_v20 = vsub.f32 1.0, %v7482_v10  ;;  %v16892_v6 = vld [vmem:[#allocation116_spill] sm:$0xff] }
 0x60d   : > { %4839 = vmatmul.bf16.gmra.mxu0 %v16887_v8  ;;  %4928 = vmatmul.bf16.gmra.mxu1 %v16888_v26  ;;  %v10672_v10 = vmul.f32 -1.442695, %v16892_v6  ;;  %v8819_v26 = vmul.f32 %v7374_v11, %v16862_v35  ;;  %v7433_v35 = vor.u32 1.1754944e-38, %v7432_v19 }
 0x60e   : > { %v8943_v7 = vmul.f32 %v8815_v36, %v5065_v52  ;;  %5017 = vmatmul.bf16.gmra.mxu2 %v16889_v29  ;;  %v7425_v36 = vadd.f32 %v14126_v48, %v7424_v42  ;;  %v10497_v29 = vld [vmem:[%s12731_s19 + $0x308] sm:$0xf]  ;;  %v11041_v42 = vld [vmem:[%s12731_s19 + $0x314] sm:$0xf0] }
 0x60f   : > { %5106 = vmatmul.bf16.gmra.mxu3 %v16890_v16  ;;  %v11009_v16 = vld [vmem:[%s12731_s19 + $0x214] sm:$0xf0]  ;;  %11337 = vpow2.f32 %v10672_v10 }
 0x610   : > { %v9056_v21 = vpack.c.bf16 %v8943_v7, %v16891_v30  ;;  %v14176_v7 = vpop.eup %11331  ;;  %v10370_v30 = vor.u32 %v11009_v16, %v10369_v18  ;;  %v7429_v61 = vsel %vm7428_vm6, %v14126_v48, %v7425_v36 }
 0x611   : > { %v4978_v25 = vpop.f32.mrf.mxu2  ;;  %v11334_v8 = vpop.eup %11333  ;;  %v7542_v16 = vmul.f32 %v14176_v7, %v14141_v37  ;;  %vm7547_vm12 = vweird.f32 %v14176_v7 }
 0x612   : > { %9120 = vst [vmem:[%s13987_s23 + $0x70] sm:$0xff] %v9056_v21  ;;  %v4979_v1 = vadd.f32 %v4978_v25, %v4890_v55  ;;  %v5067_v52 = vpop.f32.mrf.mxu3  ;;  %v4802_v28 = vpop.f32.mrf.mxu0  ;;  %v10498_v55 = vor.u32 %v11041_v42, %v10497_v29  ;;  %v7484_v25 = vmul.f32 %v14143_v56, %v7483_v20  ;;  %5312 = vmatpush.bf16.msra.mxu2 %v10370_v30  ;;  %v7490_v29 = vand.u32 2147483647, %v14120_v17  ;;  %v10113_v42 = vld [vmem:[%s12731_s19 + $0x8] sm:$0xf]  ;;  %vm7548_vm14 = vmor %vm7546_vm13, %vm7547_vm12 }
 0x613   : > { %v4891_v43 = vpop.f32.mrf.mxu1  ;;  %v14194_v48 = vadd.f32 1.0, %v11334_v8  ;;  %v14196_v36 = vpop.eup %11335  ;;  %v7543_v19 = vsub.f32 1.0, %v7542_v16  ;;  %v16895_v16 = vld [vmem:[#allocation117_spill] sm:$0xff] }
 0x614   : > { %v5068_v21 = vadd.f32 %v5067_v52, %v4979_v1  ;;  %5401 = vmatpush.bf16.msra.mxu3 %v10498_v55  ;;  %v4892_v20 = vadd.f32 %v4891_v43, %v4802_v28  ;;  %v7434_v1 = vsel %vm7431_vm7, %v7433_v35, %v7429_v61  ;;  %v7485_v52 = vadd.f32 %v14143_v56, %v7484_v25  ;;  %v10241_v55 = vld [vmem:[%s12731_s19 + $0x108] sm:$0xf]  ;;  %v10977_v25 = vld [vmem:[%s12731_s19 + $0x114] sm:$0xf0] }
 0x615   : > { %v7492_v28 = vand.u32 2147483648, %v14120_v17  ;;  %v8823_v8 = vmul.f32 %v7434_v1, %v16866_v39  ;;  %11339 = vrcp.f32 %v14194_v48  ;;  %v7544_v39 = vmul.f32 %v14176_v7, %v7543_v19 }
 0x616   : > { %v8947_v18 = vmul.f32 %v8819_v26, %v5068_v21  ;;  %v7489_v17 = vsel %vm14208_vm10, %v14143_v56, %v7485_v52  ;;  %vm7491_vm11 = vcmp.eq.f32.partialorder %v7490_v29, 8.507059e+37  ;;  %v16897_v52 = vld [vmem:[#allocation84_spill] sm:$0xff]  ;;  %v7552_v29 = vand.u32 2147483648, %v14141_v37 }
 0x617   : > { %vm7607_vm0 = vweird.f32 %v14196_v36  ;;  %vm7666_vm5 = vweird.f32 %v14194_v48 }
 0x618   : > { %v9058_v11 = vpack.c.bf16 %v8947_v18, %v13329_v0  ;;  %v10945_v0 = vld [vmem:[%s12731_s19 + $0x14] sm:$0xf0]  ;;  %v10676_v18 = vmul.f32 -1.442695, %v16895_v16  ;;  %vm14253_vm2 = vmor %vm7606_vm1, %vm7607_vm0 }
 0x619   : > { %v4980_v26 = vpop.f32.mrf.mxu2  ;;  %v10114_v21 = vor.u32 %v10945_v0, %v10113_v42 }
 0x61a   : > { %9122 = vst [vmem:[%s13987_s23 + $0x80] sm:$0xff] %v9058_v11  ;;  %v4981_v3 = vadd.f32 %v4980_v26, %v4892_v20  ;;  %v5069_v10 = vpop.f32.mrf.mxu3  ;;  %v4805_v30 = vpop.f32.mrf.mxu0  ;;  %v10242_v11 = vor.u32 %v10977_v25, %v10241_v55  ;;  %v7602_v26 = vmul.f32 %v14196_v36, %v14166_v32  ;;  %11341 = vpow2.f32 %v10676_v18 }
 0x61b   : > { %v4894_v43 = vpop.f32.mrf.mxu1  ;;  %v11338_v20 = vpop.eup %11337  ;;  %5134 = vmatpush.bf16.msra.mxu0 %v10114_v21  ;;  %v16898_v21 = vld [vmem:[#allocation118_spill] sm:$0xff] }
 0x61c   : > { %v5070_v35 = vadd.f32 %v5069_v10, %v4981_v3  ;;  %v4895_v42 = vadd.f32 %v4894_v43, %v4805_v30  ;;  %v7493_v3 = vor.u32 1.1754944e-38, %v7492_v28  ;;  %v16896_v10 = vld [vmem:[#allocation72_spill] sm:$0xff]  ;;  %v14224_v56 = vadd.f32 1.0, %v11338_v20  ;;  %5223 = vmatpush.bf16.msra.mxu1 %v10242_v11  ;;  %v14230_v61 = vpop.eup %11339 }
 0x61d   : > { %4844 = vmatmul.bf16.gmra.mxu0 %v16764_v44  ;;  %4933 = vmatmul.bf16.gmra.mxu1 %v16766_v46  ;;  %v7603_v19 = vsub.f32 1.0, %v7602_v26  ;;  %v7545_v30 = vadd.f32 %v14176_v7, %v7544_v39  ;;  %v10680_v18 = vmul.f32 -1.442695, %v16898_v21  ;;  %v7550_v20 = vand.u32 2147483647, %v14141_v37 }
 0x61e   : > { %v8951_v1 = vmul.f32 %v8823_v8, %v5070_v35  ;;  %5022 = vmatmul.bf16.gmra.mxu2 %v16767_v40  ;;  %v7494_v55 = vsel %vm7491_vm11, %v7493_v3, %v7489_v17  ;;  %11343 = vrcp.f32 %v14224_v56  ;;  %vm7667_vm4 = vweird.f32 %v14230_v61 }
 0x61f   : > { %5111 = vmatmul.bf16.gmra.mxu3 %v16896_v10  ;;  %v8827_v11 = vmul.f32 %v7494_v55, %v16872_v34  ;;  %v7604_v26 = vmul.f32 %v14196_v36, %v7603_v19  ;;  %11345 = vpow2.f32 %v10680_v18  ;;  %vm7551_vm15 = vcmp.eq.f32.partialorder %v7550_v20, 8.507059e+37  ;;  %v16899_v34 = vld [vmem:[#allocation85_spill] sm:$0xff]  ;;  %vm7668_vm6 = vmor %vm7666_vm5, %vm7667_vm4 }
 0x620   : > { %v9060_v0 = vpack.c.bf16 %v8951_v1, %v16897_v52  ;;  %v11342_v39 = vpop.eup %11341  ;;  %v7549_v1 = vsel %vm7548_vm14, %v14176_v7, %v7545_v30  ;;  %v7553_v52 = vor.u32 1.1754944e-38, %v7552_v29  ;;  %v7612_v18 = vand.u32 2147483648, %v14166_v32 }
 0x621   : > { %v4983_v25 = vpop.f32.mrf.mxu2  ;;  %v14245_v19 = vadd.f32 1.0, %v11342_v39  ;;  %vm7726_vm9 = vweird.f32 %v14224_v56 }
 0x622   : > { %9124 = vst [vmem:[%s13987_s23 + $0x90] sm:$0xff] %v9060_v0  ;;  %v4984_v43 = vadd.f32 %v4983_v25, %v4895_v42  ;;  %v5072_v28 = vpop.f32.mrf.mxu3  ;;  %v4807_v8 = vpop.f32.mrf.mxu0  ;;  %v7662_v42 = vmul.f32 %v14230_v61, %v14194_v48  ;;  %v7554_v55 = vsel %vm7551_vm15, %v7553_v52, %v7549_v1  ;;  %v7605_v25 = vadd.f32 %v14196_v36, %v7604_v26  ;;  %v16902_v26 = vld [vmem:[#allocation119_spill] sm:$0xff] }
 0x623   : > { %v4896_v35 = vpop.f32.mrf.mxu1  ;;  %v10684_v39 = vmul.f32 -1.442695, %v16902_v26  ;;  %11347 = vrcp.f32 %v14245_v19  ;;  %vm7786_vm13 = vweird.f32 %v14245_v19 }
 0x624   : > { %v5073_v17 = vadd.f32 %v5072_v28, %v4984_v43  ;;  %v4897_v37 = vadd.f32 %v4896_v35, %v4807_v8  ;;  %v14247_v28 = vpop.eup %11343  ;;  %v7663_v7 = vsub.f32 1.0, %v7662_v42  ;;  %v8831_v35 = vmul.f32 %v7554_v55, %v16876_v45  ;;  %v16903_v45 = vld [vmem:[#allocation75_spill] sm:$0xff]  ;;  %v16905_v55 = vld [vmem:[#allocation77_spill] sm:$0xff] }
 0x625   : > { %v11346_v42 = vpop.eup %11345  ;;  %v7722_v52 = vmul.f32 %v14247_v28, %v14224_v56  ;;  %11349 = vpow2.f32 %v10684_v39  ;;  %v11035_v39 = vld [vmem:[%s12731_s19 + $0x2ec] sm:$0xf]  ;;  %vm7727_vm8 = vweird.f32 %v14247_v28 }
 0x626   : > { %v8955_v3 = vmul.f32 %v8827_v11, %v5073_v17  ;;  %v7610_v17 = vand.u32 2147483647, %v14166_v32  ;;  %v16904_v32 = vld [vmem:[#allocation76_spill] sm:$0xff]  ;;  %vm14312_vm10 = vmor %vm7726_vm9, %vm7727_vm8 }
 0x628   : > { %v9062_v0 = vpack.c.bf16 %v8955_v3, %v16899_v34  ;;  %v7609_v3 = vsel %vm14253_vm2, %v14196_v36, %v7605_v25  ;;  %v7664_v34 = vmul.f32 %v14230_v61, %v7663_v7  ;;  %vm7611_vm3 = vcmp.eq.f32.partialorder %v7610_v17, 8.507059e+37  ;;  %v16907_v25 = vld [vmem:[#allocation69_spill] sm:$0xff] }
 0x629   : > { %v4985_v43 = vpop.f32.mrf.mxu2  ;;  %v14270_v36 = vadd.f32 1.0, %v11346_v42  ;;  %v7670_v7 = vand.u32 2147483647, %v14194_v48 }
 0x62a   : > { %9126 = vst [vmem:[%s13987_s23 + $0xa0] sm:$0xff] %v9062_v0  ;;  %v4986_v30 = vadd.f32 %v4985_v43, %v4897_v37  ;;  %v5074_v11 = vpop.f32.mrf.mxu3  ;;  %v4810_v29 = vpop.f32.mrf.mxu0  ;;  %v7613_v43 = vor.u32 1.1754944e-38, %v7612_v18  ;;  %v7672_v18 = vand.u32 2147483648, %v14194_v48 }
 0x62b   : > { %v4899_v8 = vpop.f32.mrf.mxu1  ;;  %11351 = vrcp.f32 %v14270_v36  ;;  %vm7671_vm7 = vcmp.eq.f32.partialorder %v7670_v7, 8.507059e+37  ;;  %vm7846_vm1 = vweird.f32 %v14270_v36 }
 0x62c   : > { %v5075_v1 = vadd.f32 %v5074_v11, %v4986_v30  ;;  %v4900_v37 = vadd.f32 %v4899_v8, %v4810_v29  ;;  %v16906_v30 = vld [vmem:[#allocation78_spill] sm:$0xff]  ;;  %v7614_v20 = vsel %vm7611_vm3, %v7613_v43, %v7609_v3  ;;  %v7723_v29 = vsub.f32 1.0, %v7722_v52  ;;  %v16908_v3 = vld [vmem:[#allocation120_spill] sm:$0xff] }
 0x62d   : > { %4849 = vmatmul.bf16.gmra.mxu0 %v16903_v45  ;;  %4938 = vmatmul.bf16.gmra.mxu1 %v16904_v32  ;;  %v10688_v52 = vmul.f32 -1.442695, %v16908_v3  ;;  %v8835_v32 = vmul.f32 %v7614_v20, %v16882_v51  ;;  %v7673_v51 = vor.u32 1.1754944e-38, %v7672_v18 }
 0x62e   : > { %v8959_v0 = vmul.f32 %v8831_v35, %v5075_v1  ;;  %5027 = vmatmul.bf16.gmra.mxu2 %v16905_v55  ;;  %v7665_v35 = vadd.f32 %v14230_v61, %v7664_v34  ;;  %v11067_v55 = vld [vmem:[%s12731_s19 + $0x3ec] sm:$0xf]  ;;  %v10611_v34 = vld [vmem:[%s12731_s19 + $0x3f8] sm:$0xf0] }
 0x62f   : > { %5116 = vmatmul.bf16.gmra.mxu3 %v16906_v30  ;;  %v10483_v30 = vld [vmem:[%s12731_s19 + $0x2f8] sm:$0xf0]  ;;  %11353 = vpow2.f32 %v10688_v52 }
 0x630   : > { %v9064_v11 = vpack.c.bf16 %v8959_v0, %v16907_v25  ;;  %v14280_v0 = vpop.eup %11347  ;;  %v10486_v25 = vor.u32 %v11035_v39, %v10483_v30  ;;  %v7669_v48 = vsel %vm7668_vm6, %v14230_v61, %v7665_v35 }
 0x631   : > { %v4988_v8 = vpop.f32.mrf.mxu2  ;;  %v11350_v45 = vpop.eup %11349  ;;  %v7782_v30 = vmul.f32 %v14280_v0, %v14245_v19  ;;  %vm7787_vm12 = vweird.f32 %v14280_v0 }
 0x632   : > { %9128 = vst [vmem:[%s13987_s23 + $0xb0] sm:$0xff] %v9064_v11  ;;  %v4989_v17 = vadd.f32 %v4988_v8, %v4900_v37  ;;  %v5077_v1 = vpop.f32.mrf.mxu3  ;;  %v4812_v42 = vpop.f32.mrf.mxu0  ;;  %v10614_v37 = vor.u32 %v11067_v55, %v10611_v34  ;;  %v7724_v8 = vmul.f32 %v14247_v28, %v7723_v29  ;;  %5661 = vmatpush.bf16.msrb.mxu2 %v10486_v25  ;;  %v7730_v55 = vand.u32 2147483647, %v14224_v56  ;;  %v10971_v34 = vld [vmem:[%s12731_s19 + $0xec] sm:$0xf]  ;;  %vm7788_vm14 = vmor %vm7786_vm13, %vm7787_vm12 }
 0x633   : > { %v4901_v43 = vpop.f32.mrf.mxu1  ;;  %v14298_v61 = vadd.f32 1.0, %v11350_v45  ;;  %v14300_v35 = vpop.eup %11351  ;;  %v7783_v18 = vsub.f32 1.0, %v7782_v30  ;;  %v16911_v30 = vld [vmem:[#allocation121_spill] sm:$0xff] }
 0x634   : > { %v5078_v11 = vadd.f32 %v5077_v1, %v4989_v17  ;;  %5750 = vmatpush.bf16.msrb.mxu3 %v10614_v37  ;;  %v4902_v29 = vadd.f32 %v4901_v43, %v4812_v42  ;;  %v7674_v17 = vsel %vm7671_vm7, %v7673_v51, %v7669_v48  ;;  %v7725_v1 = vadd.f32 %v14247_v28, %v7724_v8  ;;  %v11003_v37 = vld [vmem:[%s12731_s19 + $0x1ec] sm:$0xf]  ;;  %v10355_v8 = vld [vmem:[%s12731_s19 + $0x1f8] sm:$0xf0] }
 0x635   : > { %v7732_v42 = vand.u32 2147483648, %v14224_v56  ;;  %v8839_v45 = vmul.f32 %v7674_v17, %v16886_v63  ;;  %11355 = vrcp.f32 %v14298_v61  ;;  %v7784_v63 = vmul.f32 %v14280_v0, %v7783_v18 }
 0x636   : > { %v8963_v39 = vmul.f32 %v8835_v32, %v5078_v11  ;;  %v7729_v56 = vsel %vm14312_vm10, %v14247_v28, %v7725_v1  ;;  %vm7731_vm11 = vcmp.eq.f32.partialorder %v7730_v55, 8.507059e+37  ;;  %v7792_v55 = vand.u32 2147483648, %v14245_v19 }
 0x637   : > { %vm7847_vm0 = vweird.f32 %v14300_v35  ;;  %vm7906_vm5 = vweird.f32 %v14298_v61 }
 0x638   : > { %v9066_v20 = vpack.c.bf16 %v8963_v39, %v13439_v58  ;;  %v10227_v58 = vld [vmem:[%s12731_s19 + $0xf8] sm:$0xf0]  ;;  %v10692_v39 = vmul.f32 -1.442695, %v16911_v30  ;;  %vm14357_vm2 = vmor %vm7846_vm1, %vm7847_vm0 }
 0x639   : > { %v4990_v32 = vpop.f32.mrf.mxu2  ;;  %v10230_v11 = vor.u32 %v10971_v34, %v10227_v58 }
 0x63a   : > { %9130 = vst [vmem:[%s13987_s23 + $0xc0] sm:$0xff] %v9066_v20  ;;  %v4991_v7 = vadd.f32 %v4990_v32, %v4902_v29  ;;  %v5079_v52 = vpop.f32.mrf.mxu3  ;;  %v4815_v25 = vpop.f32.mrf.mxu0  ;;  %v10358_v20 = vor.u32 %v11003_v37, %v10355_v8  ;;  %v7842_v32 = vmul.f32 %v14300_v35, %v14270_v36  ;;  %11357 = vpow2.f32 %v10692_v39 }
 0x63b   : > { %v4904_v43 = vpop.f32.mrf.mxu1  ;;  %v11354_v29 = vpop.eup %11353  ;;  %5483 = vmatpush.bf16.msrb.mxu0 %v10230_v11  ;;  %v16912_v11 = vld [vmem:[#allocation122_spill] sm:$0xff]  ;;  %v7790_v39 = vand.u32 2147483647, %v14245_v19 }
 0x63c   : > { %v5080_v51 = vadd.f32 %v5079_v52, %v4991_v7  ;;  %v4905_v34 = vadd.f32 %v4904_v43, %v4815_v25  ;;  %v7733_v7 = vor.u32 1.1754944e-38, %v7732_v42  ;;  %v14328_v28 = vadd.f32 1.0, %v11354_v29  ;;  %5572 = vmatpush.bf16.msrb.mxu1 %v10358_v20  ;;  %v14334_v8 = vpop.eup %11355 }
 0x63d   : > { %4854 = vmatmul.bf16.gmra.mxu0 %v12329_v4  ;;  %4943 = vmatmul.bf16.gmra.mxu1 %v12331_v59  ;;  %v7843_v18 = vsub.f32 1.0, %v7842_v32  ;;  %v7785_v25 = vadd.f32 %v14280_v0, %v7784_v63  ;;  %v7902_v32 = vmul.f32 %v14334_v8, %v14298_v61  ;;  %vm7791_vm15 = vcmp.eq.f32.partialorder %v7790_v39, 8.507059e+37 }
 0x63e   : > { %v8967_v17 = vmul.f32 %v8839_v45, %v5080_v51  ;;  %5032 = vmatmul.bf16.gmra.mxu2 %v12333_v62  ;;  %v7734_v52 = vsel %vm7731_vm11, %v7733_v7, %v7729_v56  ;;  %11359 = vrcp.f32 %v14328_v28  ;;  %vm7907_vm4 = vweird.f32 %v14334_v8 }
 0x63f   : > { %5121 = vmatmul.bf16.gmra.mxu3 %v16584_v38  ;;  %v8843_v48 = vmul.f32 %v7734_v52, %v16892_v6  ;;  %v7844_v20 = vmul.f32 %v14300_v35, %v7843_v18  ;;  %v7789_v56 = vsel %vm7788_vm14, %v14280_v0, %v7785_v25  ;;  %v7903_v0 = vsub.f32 1.0, %v7902_v32  ;;  %vm7908_vm6 = vmor %vm7906_vm5, %vm7907_vm4 }
 0x640   : > { %v9068_v1 = vpack.c.bf16 %v8967_v17, %v13468_v23  ;;  %v10696_v23 = vmul.f32 -1.442695, %v16912_v11  ;;  %v11358_v29 = vpop.eup %11357  ;;  %v7793_v17 = vor.u32 1.1754944e-38, %v7792_v55  ;;  %v11031_v55 = vld [vmem:[%s12731_s19 + $0x2cc] sm:$0xf]  ;;  %vm7966_vm9 = vweird.f32 %v14328_v28 }
 0x641   : > { %v4993_v58 = vpop.f32.mrf.mxu2  ;;  %v7845_v7 = vadd.f32 %v14300_v35, %v7844_v20 }
 0x642   : > { %9132 = vst [vmem:[%s13987_s23 + $0xd0] sm:$0xff] %v9068_v1  ;;  %v4994_v43 = vadd.f32 %v4993_v58, %v4905_v34  ;;  %v5082_v42 = vpop.f32.mrf.mxu3  ;;  %v4817_v37 = vpop.f32.mrf.mxu0  ;;  %11361 = vpow2.f32 %v10696_v23  ;;  %v7794_v34 = vsel %vm7791_vm15, %v7793_v17, %v7789_v56  ;;  %v14349_v1 = vadd.f32 1.0, %v11358_v29 }
 0x643   : > { %v4906_v45 = vpop.f32.mrf.mxu1  ;;  %v7850_v23 = vand.u32 2147483647, %v14270_v36  ;;  %v7849_v20 = vsel %vm14357_vm2, %v14300_v35, %v7845_v7 }
 0x644   : > { %v5083_v51 = vadd.f32 %v5082_v42, %v4994_v43  ;;  %v4907_v19 = vadd.f32 %v4906_v45, %v4817_v37  ;;  %v14351_v18 = vpop.eup %11359  ;;  %v8847_v37 = vmul.f32 %v7794_v34, %v16895_v16  ;;  %v16915_v45 = vld [vmem:[#allocation123_spill] sm:$0xff]  ;;  %11363 = vrcp.f32 %v14349_v1 }
 0x645   : > { %v7962_v29 = vmul.f32 %v14351_v18, %v14328_v28  ;;  %v7904_v16 = vmul.f32 %v14334_v8, %v7903_v0  ;;  %vm7851_vm3 = vcmp.eq.f32.partialorder %v7850_v23, 8.507059e+37  ;;  %v10467_v23 = vld [vmem:[%s12731_s19 + $0x2d8] sm:$0xf0]  ;;  %vm7967_vm8 = vweird.f32 %v14351_v18 }
 0x646   : > { %v8971_v63 = vmul.f32 %v8843_v48, %v5083_v51  ;;  %v10700_v48 = vmul.f32 -1.442695, %v16915_v45  ;;  %vm14416_vm10 = vmor %vm7966_vm9, %vm7967_vm8  ;;  %vm8026_vm13 = vweird.f32 %v14349_v1 }
 0x647   : > { %v7963_v0 = vsub.f32 1.0, %v7962_v29  ;;  %v10470_v29 = vor.u32 %v11031_v55, %v10467_v23 }
 0x648   : > { %v9070_v6 = vpack.c.bf16 %v8971_v63, %v13491_v22  ;;  %v7852_v22 = vand.u32 2147483648, %v14270_v36  ;;  %v11362_v51 = vpop.eup %11361  ;;  %v16916_v36 = vld [vmem:[#allocation14_spill] sm:$0xff]  ;;  %v16917_v63 = vld [vmem:[#allocation15_spill] sm:$0xff]  ;;  %11365 = vpow2.f32 %v10700_v48 }
 0x649   : > { %v4995_v52 = vpop.f32.mrf.mxu2  ;;  %v14374_v35 = vadd.f32 1.0, %v11362_v51  ;;  %5662 = vmatpush.bf16.msrb.mxu2 %v10470_v29 }
 0x64a   : > { %9134 = vst [vmem:[%s13987_s23 + $0xe0] sm:$0xff] %v9070_v6  ;;  %v4996_v58 = vadd.f32 %v4995_v52, %v4907_v19  ;;  %v5084_v25 = vpop.f32.mrf.mxu3  ;;  %v4820_v43 = vpop.f32.mrf.mxu0  ;;  %v7853_v17 = vor.u32 1.1754944e-38, %v7852_v22  ;;  %v16918_v6 = vld [vmem:[#allocation16_spill] sm:$0xff]  ;;  %v16919_v19 = vld [vmem:[#allocation70_spill] sm:$0xff]  ;;  %v7910_v52 = vand.u32 2147483647, %v14298_v61 }
 0x64b   : > { %v4909_v42 = vpop.f32.mrf.mxu1  ;;  %v14384_v48 = vpop.eup %11363  ;;  %11367 = vrcp.f32 %v14374_v35  ;;  %vm8086_vm1 = vweird.f32 %v14374_v35 }
 0x64c   : > { %v5085_v39 = vadd.f32 %v5084_v25, %v4996_v58  ;;  %v4910_v32 = vadd.f32 %v4909_v42, %v4820_v43  ;;  %v7854_v7 = vsel %vm7851_vm3, %v7853_v17, %v7849_v20  ;;  %v7905_v25 = vadd.f32 %v14334_v8, %v7904_v16  ;;  %v10595_v16 = vld [vmem:[%s12731_s19 + $0x3d8] sm:$0xf0] }
 0x64d   : > { %5135 = vmatmul.bf16.vlgmr.msra.gmra.mxu0 %v12065_v47  ;;  %5224 = vmatmul.bf16.vlgmr.msra.gmra.mxu1 %v16916_v36  ;;  %v7912_v43 = vand.u32 2147483648, %v14298_v61  ;;  %v8851_v17 = vmul.f32 %v7854_v7, %v16898_v21  ;;  %v8022_v55 = vmul.f32 %v14384_v48, %v14349_v1  ;;  %vm7911_vm7 = vcmp.eq.f32.partialorder %v7910_v52, 8.507059e+37 }
 0x64e   : > { %v8975_v56 = vmul.f32 %v8847_v37, %v5085_v39  ;;  %5313 = vmatmul.bf16.vlgmr.msra.gmra.mxu2 %v16917_v63  ;;  %v16920_v39 = vld [vmem:[#allocation124_spill] sm:$0xff]  ;;  %v7909_v61 = vsel %vm7908_vm6, %v14334_v8, %v7905_v25  ;;  %v7970_v7 = vand.u32 2147483647, %v14328_v28  ;;  %vm8027_vm12 = vweird.f32 %v14384_v48 }
 0x64f   : > { %5402 = vmatmul.bf16.vlgmr.msra.gmra.mxu3 %v16918_v6  ;;  %v10704_v51 = vmul.f32 -1.442695, %v16920_v39  ;;  %v7913_v21 = vor.u32 1.1754944e-38, %v7912_v43  ;;  %vm8028_vm14 = vmor %vm8026_vm13, %vm8027_vm12 }
 0x650   : > { %v9072_v34 = vpack.c.bf16 %v8975_v56, %v16919_v19  ;;  %v11063_v56 = vld [vmem:[%s12731_s19 + $0x3cc] sm:$0xf]  ;;  %vm7971_vm11 = vcmp.eq.f32.partialorder %v7970_v7, 8.507059e+37  ;;  %v8032_v7 = vand.u32 2147483648, %v14349_v1 }
 0x651   : > { %v4998_v58 = vpop.f32.mrf.mxu2  ;;  %11369 = vpow2.f32 %v10704_v51  ;;  %v8023_v51 = vsub.f32 1.0, %v8022_v55  ;;  %v16923_v55 = vld [vmem:[#allocation125_spill] sm:$0xff] }
 0x652   : > { %9136 = vst [vmem:[%s13987_s23 + $0xf0] sm:$0xff] %v9072_v34  ;;  %v4999_v22 = vadd.f32 %v4998_v58, %v4910_v32  ;;  %v5087_v42 = vpop.f32.mrf.mxu3  ;;  %v4822_v37 = vpop.f32.mrf.mxu0  ;;  %v10598_v32 = vor.u32 %v11063_v56, %v10595_v16  ;;  %v7964_v34 = vmul.f32 %v14351_v18, %v7963_v0 }
 0x653   : > { %v4911_v20 = vpop.f32.mrf.mxu1  ;;  %v11366_v58 = vpop.eup %11365 }
 0x654   : > { %v5088_v19 = vadd.f32 %v5087_v42, %v4999_v22  ;;  %5751 = vmatpush.bf16.msrb.mxu3 %v10598_v32  ;;  %v4912_v0 = vadd.f32 %v4911_v20, %v4822_v37  ;;  %v7914_v42 = vsel %vm7911_vm7, %v7913_v21, %v7909_v61  ;;  %v7965_v29 = vadd.f32 %v14351_v18, %v7964_v34  ;;  %v14404_v43 = vpop.eup %11367  ;;  %v10999_v32 = vld [vmem:[%s12731_s19 + $0x1cc] sm:$0xf]  ;;  %v10339_v34 = vld [vmem:[%s12731_s19 + $0x1d8] sm:$0xf0] }
 0x655   : > { %v14402_v8 = vadd.f32 1.0, %v11366_v58  ;;  %v7972_v37 = vand.u32 2147483648, %v14328_v28  ;;  %v8855_v58 = vmul.f32 %v7914_v42, %v16902_v26  ;;  %v8024_v26 = vmul.f32 %v14384_v48, %v8023_v51 }
 0x656   : > { %v8979_v23 = vmul.f32 %v8851_v17, %v5088_v19  ;;  %v10967_v17 = vld [vmem:[%s12731_s19 + $0xcc] sm:$0xf]  ;;  %v7969_v28 = vsel %vm14416_vm10, %v14351_v18, %v7965_v29  ;;  %vm8087_vm0 = vweird.f32 %v14404_v43 }
 0x657   : > { %11371 = vrcp.f32 %v14402_v8  ;;  %vm14461_vm2 = vmor %vm8086_vm1, %vm8087_vm0  ;;  %vm8146_vm5 = vweird.f32 %v14402_v8 }
 0x658   : > { %v9074_v22 = vpack.c.bf16 %v8979_v23, %v13549_v9  ;;  %v10211_v9 = vld [vmem:[%s12731_s19 + $0xd8] sm:$0xf0]  ;;  %v10708_v23 = vmul.f32 -1.442695, %v16923_v55 }
 0x659   : > { %v5000_v25 = vpop.f32.mrf.mxu2  ;;  %v10214_v19 = vor.u32 %v10967_v17, %v10211_v9 }
 0x65a   : > { %9138 = vst [vmem:[%s13987_s23 + $0x100] sm:$0xff] %v9074_v22  ;;  %v5001_v52 = vadd.f32 %v5000_v25, %v4912_v0  ;;  %v5089_v56 = vpop.f32.mrf.mxu3  ;;  %v4825_v16 = vpop.f32.mrf.mxu0  ;;  %v10342_v22 = vor.u32 %v10999_v32, %v10339_v34  ;;  %v8082_v25 = vmul.f32 %v14404_v43, %v14374_v35  ;;  %11373 = vpow2.f32 %v10708_v23 }
 0x65b   : > { %v4914_v20 = vpop.f32.mrf.mxu1  ;;  %v11370_v0 = vpop.eup %11369  ;;  %5484 = vmatpush.bf16.msrb.mxu0 %v10214_v19  ;;  %v16924_v19 = vld [vmem:[#allocation126_spill] sm:$0xff]  ;;  %v8030_v23 = vand.u32 2147483647, %v14349_v1 }
 0x65c   : > { %v5090_v21 = vadd.f32 %v5089_v56, %v5001_v52  ;;  %v4915_v17 = vadd.f32 %v4914_v20, %v4825_v16  ;;  %v7973_v52 = vor.u32 1.1754944e-38, %v7972_v37  ;;  %v14432_v18 = vadd.f32 1.0, %v11370_v0  ;;  %5573 = vmatpush.bf16.msrb.mxu1 %v10342_v22 }
 0x65d   : > { %5140 = vmatmul.bf16.gmra.mxu0 %v12087_v12  ;;  %5229 = vmatmul.bf16.gmra.mxu1 %v12089_v13  ;;  %v8083_v51 = vsub.f32 1.0, %v8082_v25  ;;  %v8025_v16 = vadd.f32 %v14384_v48, %v8024_v26  ;;  %v14438_v34 = vpop.eup %11371  ;;  %vm8031_vm15 = vcmp.eq.f32.partialorder %v8030_v23, 8.507059e+37 }
 0x65e   : > { %v8983_v42 = vmul.f32 %v8855_v58, %v5090_v21  ;;  %5318 = vmatmul.bf16.gmra.mxu2 %v12091_v14  ;;  %v7974_v56 = vsel %vm7971_vm11, %v7973_v52, %v7969_v28  ;;  %11375 = vrcp.f32 %v14432_v18  ;;  %v8142_v25 = vmul.f32 %v14438_v34, %v14402_v8 }
 0x65f   : > { %5407 = vmatmul.bf16.gmra.mxu3 %v12093_v15  ;;  %v8859_v61 = vmul.f32 %v7974_v56, %v16908_v3  ;;  %v8084_v22 = vmul.f32 %v14404_v43, %v8083_v51  ;;  %v8029_v28 = vsel %vm8028_vm14, %v14384_v48, %v8025_v16  ;;  %vm8147_vm4 = vweird.f32 %v14438_v34 }
 0x660   : > { %v9076_v29 = vpack.c.bf16 %v8983_v42, %v13578_v33  ;;  %v10712_v33 = vmul.f32 -1.442695, %v16924_v19  ;;  %v11374_v0 = vpop.eup %11373  ;;  %v8033_v42 = vor.u32 1.1754944e-38, %v8032_v7  ;;  %v8143_v48 = vsub.f32 1.0, %v8142_v25  ;;  %v11027_v7 = vld [vmem:[%s12731_s19 + $0x2ac] sm:$0xf]  ;;  %vm8148_vm6 = vmor %vm8146_vm5, %vm8147_vm4 }
 0x661   : > { %v5003_v9 = vpop.f32.mrf.mxu2  ;;  %v8085_v52 = vadd.f32 %v14404_v43, %v8084_v22  ;;  %vm8206_vm9 = vweird.f32 %v14432_v18 }
 0x662   : > { %9140 = vst [vmem:[%s13987_s23 + $0x110] sm:$0xff] %v9076_v29  ;;  %v5004_v20 = vadd.f32 %v5003_v9, %v4915_v17  ;;  %v5092_v37 = vpop.f32.mrf.mxu3  ;;  %v4827_v32 = vpop.f32.mrf.mxu0  ;;  %11377 = vpow2.f32 %v10712_v33  ;;  %v8034_v17 = vsel %vm8031_vm15, %v8033_v42, %v8029_v28  ;;  %v14453_v29 = vadd.f32 1.0, %v11374_v0 }
 0x663   : > { %v4916_v58 = vpop.f32.mrf.mxu1  ;;  %v8090_v33 = vand.u32 2147483647, %v14374_v35  ;;  %v8089_v22 = vsel %vm14461_vm2, %v14404_v43, %v8085_v52 }
 0x664   : > { %v5093_v21 = vadd.f32 %v5092_v37, %v5004_v20  ;;  %v4917_v1 = vadd.f32 %v4916_v58, %v4827_v32  ;;  %v14455_v51 = vpop.eup %11375  ;;  %v8863_v32 = vmul.f32 %v8034_v17, %v16911_v30  ;;  %v16927_v58 = vld [vmem:[#allocation127_spill] sm:$0xff]  ;;  %11379 = vrcp.f32 %v14453_v29 }
 0x665   : > { %v8202_v0 = vmul.f32 %v14455_v51, %v14432_v18  ;;  %v8144_v30 = vmul.f32 %v14438_v34, %v8143_v48  ;;  %vm8091_vm3 = vcmp.eq.f32.partialorder %v8090_v33, 8.507059e+37  ;;  %v10451_v33 = vld [vmem:[%s12731_s19 + $0x2b8] sm:$0xf0]  ;;  %vm8207_vm8 = vweird.f32 %v14455_v51 }
 0x666   : > { %v8987_v26 = vmul.f32 %v8859_v61, %v5093_v21  ;;  %v10716_v61 = vmul.f32 -1.442695, %v16927_v58  ;;  %vm14520_vm10 = vmor %vm8206_vm9, %vm8207_vm8  ;;  %vm8266_vm13 = vweird.f32 %v14453_v29 }
 0x667   : > { %v8203_v48 = vsub.f32 1.0, %v8202_v0  ;;  %v10454_v0 = vor.u32 %v11027_v7, %v10451_v33 }
 0x668   : > { %v9078_v3 = vpack.c.bf16 %v8987_v26, %v13601_v60  ;;  %v8092_v60 = vand.u32 2147483648, %v14374_v35  ;;  %v11378_v21 = vpop.eup %11377  ;;  %v16928_v35 = vld [vmem:[#allocation17_spill] sm:$0xff]  ;;  %v16929_v26 = vld [vmem:[#allocation18_spill] sm:$0xff]  ;;  %11381 = vpow2.f32 %v10716_v61 }
 0x669   : > { %v5005_v56 = vpop.f32.mrf.mxu2  ;;  %v14478_v43 = vadd.f32 1.0, %v11378_v21  ;;  %5663 = vmatpush.bf16.msrb.mxu2 %v10454_v0 }
 0x66a   : > { %9142 = vst [vmem:[%s13987_s23 + $0x120] sm:$0xff] %v9078_v3  ;;  %v5006_v9 = vadd.f32 %v5005_v56, %v4917_v1  ;;  %v5094_v16 = vpop.f32.mrf.mxu3  ;;  %v4830_v20 = vpop.f32.mrf.mxu0  ;;  %v8093_v42 = vor.u32 1.1754944e-38, %v8092_v60  ;;  %v16930_v3 = vld [vmem:[#allocation19_spill] sm:$0xff]  ;;  %v8150_v56 = vand.u32 2147483647, %v14402_v8 }
 0x66b   : > { %v4919_v37 = vpop.f32.mrf.mxu1  ;;  %v16931_v1 = vld [vmem:[#allocation71_spill] sm:$0xff]  ;;  %v14488_v61 = vpop.eup %11379  ;;  %11383 = vrcp.f32 %v14478_v43  ;;  %vm8326_vm1 = vweird.f32 %v14478_v43 }
 0x66c   : > { %v5095_v23 = vadd.f32 %v5094_v16, %v5006_v9  ;;  %v4920_v25 = vadd.f32 %v4919_v37, %v4830_v20  ;;  %v8094_v52 = vsel %vm8091_vm3, %v8093_v42, %v8089_v22  ;;  %v8145_v16 = vadd.f32 %v14438_v34, %v8144_v30  ;;  %v10579_v30 = vld [vmem:[%s12731_s19 + $0x3b8] sm:$0xf0] }
 0x66d   : > { %5145 = vmatmul.bf16.gmra.mxu0 %v12099_v24  ;;  %5234 = vmatmul.bf16.gmra.mxu1 %v16928_v35  ;;  %v8152_v20 = vand.u32 2147483648, %v14402_v8  ;;  %v8867_v42 = vmul.f32 %v8094_v52, %v16912_v11  ;;  %v8262_v7 = vmul.f32 %v14488_v61, %v14453_v29  ;;  %vm8151_vm7 = vcmp.eq.f32.partialorder %v8150_v56, 8.507059e+37 }
 0x66e   : > { %v8991_v28 = vmul.f32 %v8863_v32, %v5095_v23  ;;  %5323 = vmatmul.bf16.gmra.mxu2 %v16929_v26  ;;  %v16932_v23 = vld [vmem:[#allocation128_spill] sm:$0xff]  ;;  %v8149_v8 = vsel %vm8148_vm6, %v14438_v34, %v8145_v16  ;;  %v8210_v52 = vand.u32 2147483647, %v14432_v18  ;;  %vm8267_vm12 = vweird.f32 %v14488_v61 }
 0x66f   : > { %5412 = vmatmul.bf16.gmra.mxu3 %v16930_v3  ;;  %v10720_v21 = vmul.f32 -1.442695, %v16932_v23  ;;  %v8153_v11 = vor.u32 1.1754944e-38, %v8152_v20  ;;  %vm8268_vm14 = vmor %vm8266_vm13, %vm8267_vm12 }
 0x670   : > { %v9080_v17 = vpack.c.bf16 %v8991_v28, %v16931_v1  ;;  %v11059_v28 = vld [vmem:[%s12731_s19 + $0x3ac] sm:$0xf]  ;;  %vm8211_vm11 = vcmp.eq.f32.partialorder %v8210_v52, 8.507059e+37  ;;  %v8272_v52 = vand.u32 2147483648, %v14453_v29 }
 0x671   : > { %v5008_v9 = vpop.f32.mrf.mxu2  ;;  %11385 = vpow2.f32 %v10720_v21  ;;  %v8263_v21 = vsub.f32 1.0, %v8262_v7  ;;  %v16935_v7 = vld [vmem:[#allocation129_spill] sm:$0xff] }
 0x672   : > { %9144 = vst [vmem:[%s13987_s23 + $0x130] sm:$0xff] %v9080_v17  ;;  %v5009_v60 = vadd.f32 %v5008_v9, %v4920_v25  ;;  %v5097_v37 = vpop.f32.mrf.mxu3  ;;  %v4832_v32 = vpop.f32.mrf.mxu0  ;;  %v10582_v25 = vor.u32 %v11059_v28, %v10579_v30  ;;  %v8204_v17 = vmul.f32 %v14455_v51, %v8203_v48 }
 0x673   : > { %v4921_v22 = vpop.f32.mrf.mxu1  ;;  %v11382_v9 = vpop.eup %11381 }
 0x674   : > { %v5098_v1 = vadd.f32 %v5097_v37, %v5009_v60  ;;  %5752 = vmatpush.bf16.msrb.mxu3 %v10582_v25  ;;  %v4922_v48 = vadd.f32 %v4921_v22, %v4832_v32  ;;  %v8154_v37 = vsel %vm8151_vm7, %v8153_v11, %v8149_v8  ;;  %v8205_v0 = vadd.f32 %v14455_v51, %v8204_v17  ;;  %v14508_v20 = vpop.eup %11383  ;;  %v10995_v25 = vld [vmem:[%s12731_s19 + $0x1ac] sm:$0xf]  ;;  %v10323_v17 = vld [vmem:[%s12731_s19 + $0x1b8] sm:$0xf0] }
 0x675   : > { %v14506_v34 = vadd.f32 1.0, %v11382_v9  ;;  %v8212_v32 = vand.u32 2147483648, %v14432_v18  ;;  %v8871_v9 = vmul.f32 %v8154_v37, %v16915_v45  ;;  %v8264_v45 = vmul.f32 %v14488_v61, %v8263_v21 }
 0x676   : > { %v8995_v33 = vmul.f32 %v8867_v42, %v5098_v1  ;;  %v10963_v42 = vld [vmem:[%s12731_s19 + $0xac] sm:$0xf]  ;;  %v8209_v18 = vsel %vm14520_vm10, %v14455_v51, %v8205_v0  ;;  %v16937_v0 = vld [vmem:[#allocation86_spill] sm:$0xff]  ;;  %vm8327_vm0 = vweird.f32 %v14508_v20 }
 0x677   : > { %11387 = vrcp.f32 %v14506_v34  ;;  %vm14569_vm2 = vmor %vm8326_vm1, %vm8327_vm0  ;;  %vm8386_vm5 = vweird.f32 %v14506_v34 }
 0x678   : > { %v9082_v60 = vpack.c.bf16 %v8995_v33, %v13659_v53  ;;  %v10195_v53 = vld [vmem:[%s12731_s19 + $0xb8] sm:$0xf0]  ;;  %v10724_v33 = vmul.f32 -1.442695, %v16935_v7 }
 0x679   : > { %v5010_v16 = vpop.f32.mrf.mxu2  ;;  %v10198_v1 = vor.u32 %v10963_v42, %v10195_v53 }
 0x67a   : > { %9146 = vst [vmem:[%s13987_s23 + $0x140] sm:$0xff] %v9082_v60  ;;  %v5011_v56 = vadd.f32 %v5010_v16, %v4922_v48  ;;  %v5099_v28 = vpop.f32.mrf.mxu3  ;;  %v4835_v30 = vpop.f32.mrf.mxu0  ;;  %v10326_v60 = vor.u32 %v10995_v25, %v10323_v17  ;;  %v8322_v16 = vmul.f32 %v14508_v20, %v14478_v43  ;;  %11389 = vpow2.f32 %v10724_v33 }
 0x67b   : > { %v4924_v22 = vpop.f32.mrf.mxu1  ;;  %v11386_v48 = vpop.eup %11385  ;;  %5485 = vmatpush.bf16.msrb.mxu0 %v10198_v1  ;;  %v16938_v1 = vld [vmem:[#allocation130_spill] sm:$0xff] }
 0x67c   : > { %v5100_v11 = vadd.f32 %v5099_v28, %v5011_v56  ;;  %v4925_v42 = vadd.f32 %v4924_v22, %v4835_v30  ;;  %v8213_v56 = vor.u32 1.1754944e-38, %v8212_v32  ;;  %v16936_v28 = vld [vmem:[#allocation23_spill] sm:$0xff]  ;;  %v14536_v51 = vadd.f32 1.0, %v11386_v48  ;;  %5574 = vmatpush.bf16.msrb.mxu1 %v10326_v60 }
 0x67d   : > { %5150 = vmatmul.bf16.gmra.mxu0 %v12119_v49  ;;  %5239 = vmatmul.bf16.gmra.mxu1 %v12121_v50  ;;  %v8323_v21 = vsub.f32 1.0, %v8322_v16  ;;  %v8265_v30 = vadd.f32 %v14488_v61, %v8264_v45  ;;  %v14542_v8 = vpop.eup %11387  ;;  %v10728_v33 = vmul.f32 -1.442695, %v16938_v1  ;;  %v8270_v48 = vand.u32 2147483647, %v14453_v29 }
 0x67e   : > { %v8999_v37 = vmul.f32 %v8871_v9, %v5100_v11  ;;  %5328 = vmatmul.bf16.gmra.mxu2 %v12123_v54  ;;  %v8214_v25 = vsel %vm8211_vm11, %v8213_v56, %v8209_v18  ;;  %11391 = vrcp.f32 %v14536_v51  ;;  %vm8387_vm4 = vweird.f32 %v14542_v8  ;;  %v16954_v54 = vld [vmem:[#allocation30_spill] sm:$0xff] }
 0x67f   : > { %5417 = vmatmul.bf16.gmra.mxu3 %v16936_v28  ;;  %v8875_v60 = vmul.f32 %v8214_v25, %v16920_v39  ;;  %v8324_v16 = vmul.f32 %v14508_v20, %v8323_v21  ;;  %11393 = vpow2.f32 %v10728_v33  ;;  %vm8271_vm15 = vcmp.eq.f32.partialorder %v8270_v48, 8.507059e+37  ;;  %v16939_v39 = vld [vmem:[#allocation87_spill] sm:$0xff]  ;;  %vm8388_vm6 = vmor %vm8386_vm5, %vm8387_vm4  ;;  %v16953_v28 = vld [vmem:[#allocation29_spill] sm:$0xff] }
 0x680   : > { %v9084_v53 = vpack.c.bf16 %v8999_v37, %v16937_v0  ;;  %v11390_v45 = vpop.eup %11389  ;;  %v8269_v37 = vsel %vm8268_vm14, %v14488_v61, %v8265_v30  ;;  %v8273_v0 = vor.u32 1.1754944e-38, %v8272_v52  ;;  %v8332_v30 = vand.u32 2147483648, %v14478_v43 }
 0x681   : > { %v5013_v17 = vpop.f32.mrf.mxu2  ;;  %v14557_v21 = vadd.f32 1.0, %v11390_v45  ;;  %vm8446_vm9 = vweird.f32 %v14536_v51 }
 0x682   : > { %9148 = vst [vmem:[%s13987_s23 + $0x150] sm:$0xff] %v9084_v53  ;;  %v5014_v22 = vadd.f32 %v5013_v17, %v4925_v42  ;;  %v5102_v32 = vpop.f32.mrf.mxu3  ;;  %v4837_v9 = vpop.f32.mrf.mxu0  ;;  %v8382_v42 = vmul.f32 %v14542_v8, %v14506_v34  ;;  %v8274_v25 = vsel %vm8271_vm15, %v8273_v0, %v8269_v37  ;;  %v8325_v17 = vadd.f32 %v14508_v20, %v8324_v16  ;;  %v16943_v0 = vld [vmem:[#allocation24_spill] sm:$0xff] }
 0x683   : > { %v4926_v11 = vpop.f32.mrf.mxu1  ;;  %v8879_v16 = vmul.f32 %v8274_v25, %v16923_v55  ;;  %11395 = vrcp.f32 %v14557_v21  ;;  %v8333_v55 = vor.u32 1.1754944e-38, %v8332_v30  ;;  %v16944_v25 = vld [vmem:[#allocation25_spill] sm:$0xff]  ;;  %vm8506_vm13 = vweird.f32 %v14557_v21 }
 0x684   : > { %v5103_v18 = vadd.f32 %v5102_v32, %v5014_v22  ;;  %v4927_v29 = vadd.f32 %v4926_v11, %v4837_v9  ;;  %v14559_v61 = vpop.eup %11391  ;;  %v8383_v32 = vsub.f32 1.0, %v8382_v42  ;;  %v8330_v9 = vand.u32 2147483647, %v14478_v43  ;;  %v16940_v11 = vld [vmem:[#allocation131_spill] sm:$0xff] }
 0x685   : > { %v10732_v48 = vmul.f32 -1.442695, %v16940_v11  ;;  %v11394_v42 = vpop.eup %11393  ;;  %v8442_v43 = vmul.f32 %v14559_v61, %v14536_v51  ;;  %vm8447_vm8 = vweird.f32 %v14559_v61 }
 0x686   : > { %v9003_v56 = vmul.f32 %v8875_v60, %v5103_v18  ;;  %vm8331_vm3 = vcmp.eq.f32.partialorder %v8330_v9, 8.507059e+37  ;;  %vm14627_vm10 = vmor %vm8446_vm9, %vm8447_vm8 }
 0x687   : > { %11397 = vpow2.f32 %v10732_v48  ;;  %v8443_v45 = vsub.f32 1.0, %v8442_v43  ;;  %v8392_v43 = vand.u32 2147483648, %v14506_v34 }
 0x688   : > { %v9086_v53 = vpack.c.bf16 %v9003_v56, %v16939_v39  ;;  %v8329_v56 = vsel %vm14569_vm2, %v14508_v20, %v8325_v17  ;;  %v8384_v39 = vmul.f32 %v14542_v8, %v8383_v32  ;;  %v16946_v20 = vld [vmem:[#allocation27_spill] sm:$0xff]  ;;  %v8390_v32 = vand.u32 2147483647, %v14506_v34 }
 0x689   : > { %v5015_v22 = vpop.f32.mrf.mxu2  ;;  %v8334_v17 = vsel %vm8331_vm3, %v8333_v55, %v8329_v56  ;;  %v10435_v56 = vld [vmem:[%s12731_s19 + $0x298] sm:$0xf0] }
 0x68a   : > { %9150 = vst [vmem:[%s13987_s23 + $0x160] sm:$0xff] %v9086_v53  ;;  %v5016_v52 = vadd.f32 %v5015_v22, %v4927_v29  ;;  %v5104_v33 = vpop.f32.mrf.mxu3  ;;  %v4840_v60 = vpop.f32.mrf.mxu0  ;;  %v16945_v22 = vld [vmem:[#allocation26_spill] sm:$0xff]  ;;  %v8883_v55 = vmul.f32 %v8334_v17, %v16924_v19  ;;  %v8444_v19 = vmul.f32 %v14559_v61, %v8443_v45  ;;  %vm8391_vm7 = vcmp.eq.f32.partialorder %v8390_v32, 8.507059e+37 }
 0x68b   : > { %v4929_v18 = vpop.f32.mrf.mxu1 }
 0x68c   : > { %v5105_v37 = vadd.f32 %v5104_v33, %v5016_v52  ;;  %v4930_v29 = vadd.f32 %v4929_v18, %v4840_v60  ;;  %v14584_v52 = vadd.f32 1.0, %v11394_v42  ;;  %v16947_v33 = vld [vmem:[#allocation88_spill] sm:$0xff]  ;;  %v8385_v18 = vadd.f32 %v14542_v8, %v8384_v39  ;;  %v14593_v42 = vpop.eup %11395  ;;  %v10563_v39 = vld [vmem:[%s12731_s19 + $0x398] sm:$0xf0] }
 0x68d   : > { %5155 = vmatmul.bf16.gmra.mxu0 %v16943_v0  ;;  %5244 = vmatmul.bf16.gmra.mxu1 %v16944_v25  ;;  %v11398_v25 = vpop.eup %11397  ;;  %v8502_v34 = vmul.f32 %v14593_v42, %v14557_v21  ;;  %vm8507_vm12 = vweird.f32 %v14593_v42 }
 0x68e   : > { %v9007_v53 = vmul.f32 %v8879_v16, %v5105_v37  ;;  %5333 = vmatmul.bf16.gmra.mxu2 %v16945_v22  ;;  %v11023_v37 = vld [vmem:[%s12731_s19 + $0x28c] sm:$0xf]  ;;  %11399 = vrcp.f32 %v14584_v52  ;;  %v8389_v17 = vsel %vm8388_vm6, %v14542_v8, %v8385_v18  ;;  %v8445_v8 = vadd.f32 %v14559_v61, %v8444_v19  ;;  %vm8508_vm14 = vmor %vm8506_vm13, %vm8507_vm12 }
 0x68f   : > { %5422 = vmatmul.bf16.gmra.mxu3 %v16946_v20  ;;  %v11055_v20 = vld [vmem:[%s12731_s19 + $0x38c] sm:$0xf]  ;;  %vm8566_vm1 = vweird.f32 %v14584_v52 }
 0x690   : > { %v9088_v30 = vpack.c.bf16 %v9007_v53, %v16947_v33  ;;  %v10438_v33 = vor.u32 %v11023_v37, %v10435_v56  ;;  %v10566_v22 = vor.u32 %v11055_v20, %v10563_v39  ;;  %v8393_v56 = vor.u32 1.1754944e-38, %v8392_v43 }
 0x691   : > { %v5018_v60 = vpop.f32.mrf.mxu2  ;;  %v14609_v20 = vadd.f32 1.0, %v11398_v25 }
 0x692   : > { %9152 = vst [vmem:[%s13987_s23 + $0x170] sm:$0xff] %v9088_v30  ;;  %v5019_v9 = vadd.f32 %v5018_v60, %v4930_v29  ;;  %v5107_v48 = vpop.f32.mrf.mxu3  ;;  %v4842_v16 = vpop.f32.mrf.mxu0  ;;  %v16948_v30 = vld [vmem:[#allocation132_spill] sm:$0xff]  ;;  %5664 = vmatpush.bf16.msrb.mxu2 %v10438_v33  ;;  %5753 = vmatpush.bf16.msrb.mxu3 %v10566_v22  ;;  %v8394_v33 = vsel %vm8391_vm7, %v8393_v56, %v8389_v17  ;;  %v8452_v22 = vand.u32 2147483648, %v14536_v51  ;;  %v10991_v17 = vld [vmem:[%s12731_s19 + $0x18c] sm:$0xf] }
 0x693   : > { %v4931_v53 = vpop.f32.mrf.mxu1  ;;  %v10736_v29 = vmul.f32 -1.442695, %v16948_v30  ;;  %v8887_v56 = vmul.f32 %v8394_v33, %v16927_v58  ;;  %vm8626_vm5 = vweird.f32 %v14609_v20 }
 0x694   : > { %v5108_v60 = vadd.f32 %v5107_v48, %v5019_v9  ;;  %v8450_v9 = vand.u32 2147483647, %v14536_v51  ;;  %v4932_v48 = vadd.f32 %v4931_v53, %v4842_v16  ;;  %v14615_v18 = vpop.eup %11399  ;;  %v16949_v16 = vld [vmem:[#allocation133_spill] sm:$0xff]  ;;  %v8449_v51 = vsel %vm14627_vm10, %v14559_v61, %v8445_v8 }
 0x695   : > { %11401 = vpow2.f32 %v10736_v29  ;;  %v10959_v29 = vld [vmem:[%s12731_s19 + $0x8c] sm:$0xf]  ;;  %v10740_v53 = vmul.f32 -1.442695, %v16949_v16  ;;  %v16956_v61 = vld [vmem:[#allocation89_spill] sm:$0xff]  ;;  %vm8567_vm0 = vweird.f32 %v14615_v18 }
 0x696   : > { %v9011_v37 = vmul.f32 %v8883_v55, %v5108_v60  ;;  %v8503_v55 = vsub.f32 1.0, %v8502_v34  ;;  %11403 = vrcp.f32 %v14609_v20  ;;  %vm8451_vm11 = vcmp.eq.f32.partialorder %v8450_v9, 8.507059e+37  ;;  %vm14672_vm2 = vmor %vm8566_vm1, %vm8567_vm0 }
 0x697   : > { %11405 = vpow2.f32 %v10740_v53 }
 0x698   : > { %v9090_v45 = vpack.c.bf16 %v9011_v37, %v13769_v5  ;;  %v10179_v5 = vld [vmem:[%s12731_s19 + $0x98] sm:$0xf0]  ;;  %v8504_v33 = vmul.f32 %v14593_v42, %v8503_v55 }
 0x699   : > { %v5020_v32 = vpop.f32.mrf.mxu2  ;;  %v10182_v19 = vor.u32 %v10959_v29, %v10179_v5  ;;  %v10307_v37 = vld [vmem:[%s12731_s19 + $0x198] sm:$0xf0]  ;;  %v16952_v29 = vld [vmem:[#allocation28_spill] sm:$0xff] }
 0x69a   : > { %9154 = vst [vmem:[%s13987_s23 + $0x180] sm:$0xff] %v9090_v45  ;;  %v5021_v25 = vadd.f32 %v5020_v32, %v4932_v48  ;;  %v5109_v43 = vpop.f32.mrf.mxu3  ;;  %v4845_v39 = vpop.f32.mrf.mxu0  ;;  %v10310_v48 = vor.u32 %v10991_v17, %v10307_v37  ;;  %v8562_v32 = vmul.f32 %v14615_v18, %v14584_v52 }
 0x69b   : > { %v4934_v60 = vpop.f32.mrf.mxu1  ;;  %v11402_v58 = vpop.eup %11401  ;;  %5486 = vmatpush.bf16.msrb.mxu0 %v10182_v19 }
 0x69c   : > { %v5110_v45 = vadd.f32 %v5109_v43, %v5021_v25  ;;  %v4935_v0 = vadd.f32 %v4934_v60, %v4845_v39  ;;  %v8453_v25 = vor.u32 1.1754944e-38, %v8452_v22  ;;  %v16955_v43 = vld [vmem:[#allocation31_spill] sm:$0xff]  ;;  %5575 = vmatpush.bf16.msrb.mxu1 %v10310_v48  ;;  %v8563_v37 = vsub.f32 1.0, %v8562_v32  ;;  %v14645_v39 = vpop.eup %11403  ;;  %v16957_v22 = vld [vmem:[#allocation134_spill] sm:$0xff] }
 0x69d   : > { %5160 = vmatmul.bf16.gmra.mxu0 %v16952_v29  ;;  %5249 = vmatmul.bf16.gmra.mxu1 %v16953_v28  ;;  %v14643_v34 = vadd.f32 1.0, %v11402_v58  ;;  %v8505_v60 = vadd.f32 %v14593_v42, %v8504_v33  ;;  %v10617_v53 = vmul.f32 -1.442695, %v16957_v22  ;;  %v8510_v32 = vand.u32 2147483647, %v14557_v21 }
 0x69e   : > { %v9015_v5 = vmul.f32 %v8887_v56, %v5110_v45  ;;  %5338 = vmatmul.bf16.gmra.mxu2 %v16954_v54  ;;  %v8454_v17 = vsel %vm8451_vm11, %v8453_v25, %v8449_v51  ;;  %v8512_v45 = vand.u32 2147483648, %v14557_v21  ;;  %v8564_v33 = vmul.f32 %v14615_v18, %v8563_v37  ;;  %v16958_v21 = vld [vmem:[#allocation90_spill] sm:$0xff] }
 0x69f   : > { %5427 = vmatmul.bf16.gmra.mxu3 %v16955_v43  ;;  %v8891_v51 = vmul.f32 %v8454_v17, %v16932_v23  ;;  %11407 = vrcp.f32 %v14643_v34  ;;  %v8509_v25 = vsel %vm8508_vm14, %v14593_v42, %v8505_v60  ;;  %vm8511_vm15 = vcmp.eq.f32.partialorder %v8510_v32, 8.507059e+37  ;;  %v11019_v32 = vld [vmem:[%s12731_s19 + $0x26c] sm:$0xf] }
 0x6a0   : > { %v9092_v8 = vpack.c.bf16 %v9015_v5, %v16956_v61  ;;  %v11406_v5 = vpop.eup %11405  ;;  %11409 = vpow2.f32 %v10617_v53  ;;  %v8513_v23 = vor.u32 1.1754944e-38, %v8512_v45  ;;  %v8565_v37 = vadd.f32 %v14615_v18, %v8564_v33 }
 0x6a1   : > { %v5023_v55 = vpop.f32.mrf.mxu2  ;;  %v8570_v53 = vand.u32 2147483647, %v14584_v52  ;;  %v8572_v45 = vand.u32 2147483648, %v14584_v52  ;;  %v16962_v52 = vld [vmem:[#allocation32_spill] sm:$0xff]  ;;  %vm8627_vm4 = vweird.f32 %v14645_v39  ;;  %vm8686_vm9 = vweird.f32 %v14643_v34 }
 0x6a2   : > { %9156 = vst [vmem:[%s13987_s23 + $0x190] sm:$0xff] %v9092_v8  ;;  %v5024_v56 = vadd.f32 %v5023_v55, %v4935_v0  ;;  %v5112_v19 = vpop.f32.mrf.mxu3  ;;  %v4847_v9 = vpop.f32.mrf.mxu0  ;;  %v8622_v0 = vmul.f32 %v14645_v39, %v14609_v20  ;;  %v14660_v8 = vadd.f32 1.0, %v11406_v5  ;;  %v8569_v33 = vsel %vm14672_vm2, %v14615_v18, %v8565_v37  ;;  %v16966_v18 = vld [vmem:[#allocation91_spill] sm:$0xff]  ;;  %vm14708_vm6 = vmor %vm8626_vm5, %vm8627_vm4 }
 0x6a3   : > { %v4936_v48 = vpop.f32.mrf.mxu1  ;;  %vm8571_vm3 = vcmp.eq.f32.partialorder %v8570_v53, 8.507059e+37  ;;  %v8630_v37 = vand.u32 2147483647, %v14609_v20 }
 0x6a4   : > { %v5113_v58 = vadd.f32 %v5112_v19, %v5024_v56  ;;  %v4937_v55 = vadd.f32 %v4936_v48, %v4847_v9  ;;  %v8514_v56 = vsel %vm8511_vm15, %v8513_v23, %v8509_v25  ;;  %v8623_v19 = vsub.f32 1.0, %v8622_v0  ;;  %v16963_v23 = vld [vmem:[#allocation33_spill] sm:$0xff] }
 0x6a5   : > { %v14666_v60 = vpop.eup %11407  ;;  %11411 = vrcp.f32 %v14660_v8  ;;  %vm8631_vm7 = vcmp.eq.f32.partialorder %v8630_v37, 8.507059e+37  ;;  %vm8746_vm13 = vweird.f32 %v14660_v8 }
 0x6a6   : > { %v9019_v61 = vmul.f32 %v8891_v51, %v5113_v58  ;;  %v11410_v48 = vpop.eup %11409  ;;  %v8895_v51 = vmul.f32 %v8514_v56, %v16935_v7  ;;  %v8624_v0 = vmul.f32 %v14645_v39, %v8623_v19  ;;  %v8682_v7 = vmul.f32 %v14666_v60, %v14643_v34 }
 0x6a7   : > { %vm8687_vm8 = vweird.f32 %v14666_v60 }
 0x6a8   : > { %v9094_v17 = vpack.c.bf16 %v9019_v61, %v16958_v21  ;;  %v16964_v21 = vld [vmem:[#allocation34_spill] sm:$0xff]  ;;  %vm14737_vm10 = vmor %vm8686_vm9, %vm8687_vm8 }
 0x6a9   : > { %v5025_v43 = vpop.f32.mrf.mxu2 }
 0x6aa   : > { %9158 = vst [vmem:[%s13987_s23 + $0x1a0] sm:$0xff] %v9094_v17  ;;  %v5026_v54 = vadd.f32 %v5025_v43, %v4937_v55  ;;  %v5114_v28 = vpop.f32.mrf.mxu3  ;;  %v4850_v42 = vpop.f32.mrf.mxu0  ;;  %v16961_v43 = vld [vmem:[#allocation135_spill] sm:$0xff]  ;;  %v8573_v17 = vor.u32 1.1754944e-38, %v8572_v45  ;;  %v8625_v45 = vadd.f32 %v14645_v39, %v8624_v0 }
 0x6ab   : > { %v4939_v9 = vpop.f32.mrf.mxu1  ;;  %v10621_v58 = vmul.f32 -1.442695, %v16961_v43  ;;  %v11051_v0 = vld [vmem:[%s12731_s19 + $0x36c] sm:$0xf] }
 0x6ac   : > { %v5115_v5 = vadd.f32 %v5114_v28, %v5026_v54  ;;  %v4940_v61 = vadd.f32 %v4939_v9, %v4850_v42  ;;  %v14687_v54 = vadd.f32 1.0, %v11410_v48  ;;  %v16965_v28 = vld [vmem:[#allocation35_spill] sm:$0xff]  ;;  %v8574_v56 = vsel %vm8571_vm3, %v8573_v17, %v8569_v33  ;;  %v14692_v42 = vpop.eup %11411  ;;  %v10547_v17 = vld [vmem:[%s12731_s19 + $0x378] sm:$0xf0] }
 0x6ad   : > { %5165 = vmatmul.bf16.gmra.mxu0 %v16962_v52  ;;  %5254 = vmatmul.bf16.gmra.mxu1 %v16963_v23  ;;  %11413 = vpow2.f32 %v10621_v58  ;;  %v8683_v9 = vsub.f32 1.0, %v8682_v7  ;;  %v10419_v58 = vld [vmem:[%s12731_s19 + $0x278] sm:$0xf0]  ;;  %v8899_v7 = vmul.f32 %v8574_v56, %v16938_v1  ;;  %v8629_v1 = vsel %vm14708_vm6, %v14645_v39, %v8625_v45  ;;  %v16970_v52 = vld [vmem:[#allocation92_spill] sm:$0xff] }
 0x6ae   : > { %v9023_v25 = vmul.f32 %v8895_v51, %v5115_v5  ;;  %5343 = vmatmul.bf16.gmra.mxu2 %v16964_v21  ;;  %v8632_v5 = vand.u32 2147483648, %v14609_v20  ;;  %11415 = vrcp.f32 %v14687_v54  ;;  %v10291_v23 = vld [vmem:[%s12731_s19 + $0x178] sm:$0xf0]  ;;  %vm8747_vm12 = vweird.f32 %v14692_v42 }
 0x6af   : > { %5432 = vmatmul.bf16.gmra.mxu3 %v16965_v28  ;;  %v8684_v56 = vmul.f32 %v14666_v60, %v8683_v9  ;;  %vm8748_vm14 = vmor %vm8746_vm13, %vm8747_vm12  ;;  %vm6901_vm1 = vweird.f32 %v14687_v54 }
 0x6b0   : > { %v9096_v55 = vpack.c.bf16 %v9023_v25, %v16966_v18  ;;  %v10422_v25 = vor.u32 %v11019_v32, %v10419_v58  ;;  %v8742_v32 = vmul.f32 %v14692_v42, %v14660_v8  ;;  %v8633_v28 = vor.u32 1.1754944e-38, %v8632_v5 }
 0x6b1   : > { %v5028_v19 = vpop.f32.mrf.mxu2 }
 0x6b2   : > { %9160 = vst [vmem:[%s13987_s23 + $0x1b0] sm:$0xff] %v9096_v55  ;;  %v5029_v48 = vadd.f32 %v5028_v19, %v4940_v61  ;;  %v5117_v51 = vpop.f32.mrf.mxu3  ;;  %v4852_v53 = vpop.f32.mrf.mxu0  ;;  %v16967_v61 = vld [vmem:[#allocation136_spill] sm:$0xff]  ;;  %v10550_v19 = vor.u32 %v11051_v0, %v10547_v17  ;;  %5665 = vmatpush.bf16.msrb.mxu2 %v10422_v25  ;;  %v10163_v0 = vld [vmem:[%s12731_s19 + $0x78] sm:$0xf0]  ;;  %v10987_v17 = vld [vmem:[%s12731_s19 + $0x16c] sm:$0xf]  ;;  %v8634_v39 = vsel %vm8631_vm7, %v8633_v28, %v8629_v1 }
 0x6b3   : > { %v4941_v33 = vpop.f32.mrf.mxu1  ;;  %v10625_v18 = vmul.f32 -1.442695, %v16967_v61  ;;  %v11414_v58 = vpop.eup %11413  ;;  %v10294_v50 = vor.u32 %v10987_v17, %v10291_v23  ;;  %v8743_v45 = vsub.f32 1.0, %v8742_v32  ;;  %v8692_v23 = vand.u32 2147483648, %v14643_v34 }
 0x6b4   : > { %v5118_v55 = vadd.f32 %v5117_v51, %v5029_v48  ;;  %5754 = vmatpush.bf16.msrb.mxu3 %v10550_v19  ;;  %v10955_v51 = vld [vmem:[%s12731_s19 + $0x6c] sm:$0xf]  ;;  %v4942_v29 = vadd.f32 %v4941_v33, %v4852_v53  ;;  %v14723_v49 = vpop.eup %11415  ;;  %v14725_v9 = vadd.f32 1.0, %v11414_v58  ;;  %v8903_v53 = vmul.f32 %v8634_v39, %v16940_v11  ;;  %v16971_v33 = vld [vmem:[#allocation137_spill] sm:$0xff] }
 0x6b5   : > { %v10166_v21 = vor.u32 %v10955_v51, %v10163_v0  ;;  %11417 = vpow2.f32 %v10625_v18  ;;  %5576 = vmatpush.bf16.msrb.mxu1 %v10294_v50  ;;  %v10629_v19 = vmul.f32 -1.442695, %v16971_v33  ;;  %v8744_v50 = vmul.f32 %v14692_v42, %v8743_v45  ;;  %v16975_v51 = vld [vmem:[#allocation93_spill] sm:$0xff] }
 0x6b6   : > { %v9027_v48 = vmul.f32 %v8899_v7, %v5118_v55  ;;  %v8685_v55 = vadd.f32 %v14666_v60, %v8684_v56  ;;  %11419 = vrcp.f32 %v14725_v9  ;;  %v8693_v1 = vor.u32 1.1754944e-38, %v8692_v23  ;;  %v16974_v56 = vld [vmem:[#allocation39_spill] sm:$0xff] }
 0x6b7   : > { %5487 = vmatpush.bf16.msrb.mxu0 %v10166_v21  ;;  %v6897_v21 = vmul.f32 %v14723_v49, %v14687_v54  ;;  %11421 = vpow2.f32 %v10629_v19  ;;  %v8752_v45 = vand.u32 2147483648, %v14660_v8  ;;  %vm6902_vm0 = vweird.f32 %v14723_v49 }
 0x6b8   : > { %v9098_v25 = vpack.c.bf16 %v9027_v48, %v16970_v52  ;;  %v8690_v52 = vand.u32 2147483647, %v14643_v34  ;;  %v8689_v11 = vsel %vm14737_vm10, %v14666_v60, %v8685_v55  ;;  %vm14782_vm2 = vmor %vm6901_vm1, %vm6902_vm0  ;;  %vm6961_vm5 = vweird.f32 %v14725_v9 }
 0x6b9   : > { %v5030_v7 = vpop.f32.mrf.mxu2  ;;  %v6898_v48 = vsub.f32 1.0, %v6897_v21 }
 0x6ba   : > { %9162 = vst [vmem:[%s13987_s23 + $0x1c0] sm:$0xff] %v9098_v25  ;;  %v5031_v37 = vadd.f32 %v5030_v7, %v4942_v29  ;;  %v5119_v5 = vpop.f32.mrf.mxu3  ;;  %v4855_v18 = vpop.f32.mrf.mxu0  ;;  %vm8691_vm11 = vcmp.eq.f32.partialorder %v8690_v52, 8.507059e+37  ;;  %v8745_v25 = vadd.f32 %v14692_v42, %v8744_v50  ;;  %v16976_v52 = vld [vmem:[#allocation138_spill] sm:$0xff]  ;;  %v8753_v50 = vor.u32 1.1754944e-38, %v8752_v45 }
 0x6bb   : > { %v4944_v28 = vpop.f32.mrf.mxu1  ;;  %v11418_v34 = vpop.eup %11417  ;;  %v8694_v17 = vsel %vm8691_vm11, %v8693_v1, %v8689_v11  ;;  %v10633_v23 = vmul.f32 -1.442695, %v16976_v52  ;;  %v6899_v21 = vmul.f32 %v14723_v49, %v6898_v48 }
 0x6bc   : > { %v5120_v20 = vadd.f32 %v5119_v5, %v5031_v37  ;;  %v4945_v58 = vadd.f32 %v4944_v28, %v4855_v18  ;;  %v14753_v60 = vadd.f32 1.0, %v11418_v34  ;;  %v14757_v5 = vpop.eup %11419  ;;  %v8750_v18 = vand.u32 2147483647, %v14660_v8 }
 0x6bd   : > { %5170 = vmatmul.bf16.gmra.mxu0 %v16840_v27  ;;  %5259 = vmatmul.bf16.gmra.mxu1 %v16842_v2  ;;  %v11422_v29 = vpop.eup %11421  ;;  %v6957_v34 = vmul.f32 %v14757_v5, %v14725_v9  ;;  %v6900_v11 = vadd.f32 %v14723_v49, %v6899_v21  ;;  %vm6962_vm4 = vweird.f32 %v14757_v5 }
 0x6be   : > { %v9031_v32 = vmul.f32 %v8903_v53, %v5120_v20  ;;  %5348 = vmatmul.bf16.gmra.mxu2 %v16843_v57  ;;  %v8907_v53 = vmul.f32 %v8694_v17, %v16948_v30  ;;  %v8749_v20 = vsel %vm8748_vm14, %v14692_v42, %v8745_v25  ;;  %11423 = vrcp.f32 %v14753_v60  ;;  %vm14818_vm6 = vmor %vm6961_vm5, %vm6962_vm4 }
 0x6bf   : > { %5437 = vmatmul.bf16.gmra.mxu3 %v16974_v56  ;;  %vm8751_vm15 = vcmp.eq.f32.partialorder %v8750_v18, 8.507059e+37  ;;  %11425 = vpow2.f32 %v10633_v23  ;;  %v6907_v42 = vand.u32 2147483648, %v14687_v54  ;;  %v14772_v48 = vadd.f32 1.0, %v11422_v29  ;;  %v16980_v23 = vld [vmem:[#allocation139_spill] sm:$0xff] }
 0x6c0   : > { %v9100_v0 = vpack.c.bf16 %v9031_v32, %v16975_v51  ;;  %v8754_v30 = vsel %vm8751_vm15, %v8753_v50, %v8749_v20  ;;  %v16977_v32 = vld [vmem:[#allocation94_spill] sm:$0xff]  ;;  %v6958_v17 = vsub.f32 1.0, %v6957_v34  ;;  %v16981_v20 = vld [vmem:[#allocation40_spill] sm:$0xff]  ;;  %v16982_v34 = vld [vmem:[#allocation41_spill] sm:$0xff]  ;;  %vm7021_vm9 = vweird.f32 %v14753_v60 }
 0x6c1   : > { %v5033_v39 = vpop.f32.mrf.mxu2  ;;  %11427 = vrcp.f32 %v14772_v48  ;;  %vm7081_vm13 = vweird.f32 %v14772_v48 }
 0x6c2   : > { %9164 = vst [vmem:[%s13987_s23 + $0x1d0] sm:$0xff] %v9100_v0  ;;  %v5034_v7 = vadd.f32 %v5033_v39, %v4945_v58  ;;  %v5122_v55 = vpop.f32.mrf.mxu3  ;;  %v4857_v37 = vpop.f32.mrf.mxu0  ;;  %v6905_v0 = vand.u32 2147483647, %v14687_v54  ;;  %v6904_v54 = vsel %vm14782_vm2, %v14723_v49, %v6900_v11  ;;  %v6959_v29 = vmul.f32 %v14757_v5, %v6958_v17  ;;  %v16984_v11 = vld [vmem:[#allocation43_spill] sm:$0xff] }
 0x6c3   : > { %v4946_v28 = vpop.f32.mrf.mxu1 }
 0x6c4   : > { %v5123_v19 = vadd.f32 %v5122_v55, %v5034_v7  ;;  %v4947_v1 = vadd.f32 %v4946_v28, %v4857_v37  ;;  %v14777_v7 = vpop.eup %11423  ;;  %v8911_v55 = vmul.f32 %v8754_v30, %v16949_v16  ;;  %v10637_v28 = vmul.f32 -1.442695, %v16980_v23 }
 0x6c5   : > { %v6908_v16 = vor.u32 1.1754944e-38, %v6907_v42  ;;  %vm6906_vm3 = vcmp.eq.f32.partialorder %v6905_v0, 8.507059e+37  ;;  %v7017_v49 = vmul.f32 %v14777_v7, %v14753_v60  ;;  %vm7022_vm8 = vweird.f32 %v14777_v7 }
 0x6c6   : > { %v9035_v8 = vmul.f32 %v8907_v53, %v5123_v19  ;;  %v11426_v19 = vpop.eup %11425  ;;  %11429 = vpow2.f32 %v10637_v28  ;;  %vm7023_vm10 = vmor %vm7021_vm9, %vm7022_vm8 }
 0x6c7   : > { %v6909_v30 = vsel %vm6906_vm3, %v6908_v16, %v6904_v54  ;;  %v14801_v42 = vadd.f32 1.0, %v11426_v19  ;;  %v7018_v37 = vsub.f32 1.0, %v7017_v49  ;;  %v14808_v16 = vpop.eup %11427  ;;  %v6965_v19 = vand.u32 2147483647, %v14725_v9 }
 0x6c8   : > { %v9102_v58 = vpack.c.bf16 %v9035_v8, %v16977_v32  ;;  %v16983_v8 = vld [vmem:[#allocation42_spill] sm:$0xff]  ;;  %v11015_v32 = vld [vmem:[%s12731_s19 + $0x24c] sm:$0xf]  ;;  %v8788_v28 = vmul.f32 %v6909_v30, %v16957_v22  ;;  %vm7082_vm12 = vweird.f32 %v14808_v16 }
 0x6c9   : > { %v5035_v51 = vpop.f32.mrf.mxu2  ;;  %11431 = vrcp.f32 %v14801_v42  ;;  %vm6966_vm7 = vcmp.eq.f32.partialorder %v6965_v19, 8.507059e+37  ;;  %v7025_v19 = vand.u32 2147483647, %v14753_v60  ;;  %vm7083_vm14 = vmor %vm7081_vm13, %vm7082_vm12  ;;  %vm7141_vm1 = vweird.f32 %v14801_v42 }
 0x6ca   : > { %9166 = vst [vmem:[%s13987_s23 + $0x1e0] sm:$0xff] %v9102_v58  ;;  %v5036_v25 = vadd.f32 %v5035_v51, %v4947_v1  ;;  %v5124_v39 = vpop.f32.mrf.mxu3  ;;  %v5136_v45 = vpop.f32.mrf.mxu0  ;;  %v10403_v58 = vld [vmem:[%s12731_s19 + $0x258] sm:$0xf0]  ;;  %v11047_v1 = vld [vmem:[%s12731_s19 + $0x34c] sm:$0xf] }
 0x6cb   : > { %v5225_v18 = vpop.f32.mrf.mxu1  ;;  %v16985_v51 = vld [vmem:[#allocation95_spill] sm:$0xff]  ;;  %v10406_v17 = vor.u32 %v11015_v32, %v10403_v58  ;;  %vm7026_vm11 = vcmp.eq.f32.partialorder %v7025_v19, 8.507059e+37  ;;  %v16996_v19 = vld [vmem:[#allocation142_spill] sm:$0xff] }
 0x6cc   : > { %v5125_v53 = vadd.f32 %v5124_v39, %v5036_v25  ;;  %v5226_v21 = vadd.f32 %v5225_v18, %v5136_v45  ;;  %v10531_v25 = vld [vmem:[%s12731_s19 + $0x358] sm:$0xf0]  ;;  %v11430_v30 = vpop.eup %11429 }
 0x6cd   : > { %5175 = vmatmul.bf16.gmra.mxu0 %v16981_v20  ;;  %5264 = vmatmul.bf16.gmra.mxu1 %v16982_v34  ;;  %v10534_v45 = vor.u32 %v11047_v1, %v10531_v25  ;;  %v7019_v1 = vmul.f32 %v14777_v7, %v7018_v37  ;;  %v10147_v25 = vld [vmem:[%s12731_s19 + $0x58] sm:$0xf0] }
 0x6ce   : > { %v9039_v50 = vmul.f32 %v8911_v55, %v5125_v53  ;;  %5353 = vmatmul.bf16.gmra.mxu2 %v16983_v8  ;;  %v6960_v55 = vadd.f32 %v14757_v5, %v6959_v29  ;;  %v6967_v29 = vand.u32 2147483648, %v14725_v9 }
 0x6cf   : > { %5442 = vmatmul.bf16.gmra.mxu3 %v16984_v11  ;;  %5666 = vmatpush.bf16.msrb.mxu2 %v10406_v17  ;;  %v10951_v17 = vld [vmem:[%s12731_s19 + $0x4c] sm:$0xf]  ;;  %v14834_v11 = vadd.f32 1.0, %v11430_v30  ;;  %v7020_v37 = vadd.f32 %v14777_v7, %v7019_v1 }
 0x6d0   : > { %v9104_v0 = vpack.c.bf16 %v9039_v50, %v16985_v51  ;;  %5755 = vmatpush.bf16.msrb.mxu3 %v10534_v45  ;;  %v6964_v9 = vsel %vm14818_vm6, %v14757_v5, %v6960_v55  ;;  %v7077_v51 = vmul.f32 %v14808_v16, %v14772_v48  ;;  %v6968_v45 = vor.u32 1.1754944e-38, %v6967_v29  ;;  %v14836_v55 = vpop.eup %11431 }
 0x6d1   : > { %v5314_v39 = vpop.f32.mrf.mxu2  ;;  %vm7142_vm0 = vweird.f32 %v14836_v55  ;;  %vm7201_vm5 = vweird.f32 %v14834_v11 }
 0x6d2   : > { %9168 = vst [vmem:[%s13987_s23 + $0x1f0] sm:$0xff] %v9104_v0  ;;  %v5315_v18 = vadd.f32 %v5314_v39, %v5226_v21  ;;  %v5403_v54 = vpop.f32.mrf.mxu3  ;;  %v5138_v53 = vpop.f32.mrf.mxu0  ;;  %v16986_v21 = vld [vmem:[#allocation140_spill] sm:$0xff]  ;;  %v10983_v39 = vld [vmem:[%s12731_s19 + $0x14c] sm:$0xf]  ;;  %vm14884_vm2 = vmor %vm7141_vm1, %vm7142_vm0 }
 0x6d3   : > { %v5227_v50 = vpop.f32.mrf.mxu1  ;;  %v10641_v49 = vmul.f32 -1.442695, %v16986_v21 }
 0x6d4   : > { %v5404_v32 = vadd.f32 %v5403_v54, %v5315_v18  ;;  %v5228_v58 = vadd.f32 %v5227_v50, %v5138_v53  ;;  %v10150_v18 = vor.u32 %v10951_v17, %v10147_v25  ;;  %v10275_v54 = vld [vmem:[%s12731_s19 + $0x158] sm:$0xf0]  ;;  %v6969_v50 = vsel %vm6966_vm7, %v6968_v45, %v6964_v9 }
 0x6d5   : > { %11433 = vpow2.f32 %v10641_v49  ;;  %v10278_v53 = vor.u32 %v10983_v39, %v10275_v54  ;;  %v7027_v49 = vand.u32 2147483648, %v14753_v60  ;;  %v8792_v9 = vmul.f32 %v6969_v50, %v16961_v43  ;;  %v16990_v17 = vld [vmem:[#allocation141_spill] sm:$0xff]  ;;  %v16993_v43 = vld [vmem:[#allocation46_spill] sm:$0xff] }
 0x6d6   : > { %v14828_v0 = vmul.f32 %v8788_v28, %v5404_v32  ;;  %5488 = vmatpush.bf16.msrb.mxu0 %v10150_v18  ;;  %v7078_v28 = vsub.f32 1.0, %v7077_v51  ;;  %v10645_v25 = vmul.f32 -1.442695, %v16990_v17  ;;  %11435 = vrcp.f32 %v14834_v11  ;;  %v16991_v51 = vld [vmem:[#allocation45_spill] sm:$0xff] }
 0x6d7   : > { %5577 = vmatpush.bf16.msrb.mxu1 %v10278_v53  ;;  %v7024_v18 = vsel %vm7023_vm10, %v14777_v7, %v7020_v37  ;;  %v16994_v53 = vld [vmem:[#allocation47_spill] sm:$0xff]  ;;  %v7028_v50 = vor.u32 1.1754944e-38, %v7027_v49  ;;  %v7087_v49 = vand.u32 2147483648, %v14772_v48 }
 0x6d8   : > { %16989 = vst [vmem:[#allocation96_spill] sm:$0xff] %v14828_v0  ;;  %v7079_v60 = vmul.f32 %v14808_v16, %v7078_v28  ;;  %11437 = vpow2.f32 %v10645_v25  ;;  %v10649_v25 = vmul.f32 -1.442695, %v16996_v19 }
 0x6d9   : > { %v5316_v5 = vpop.f32.mrf.mxu2 }
 0x6da   : > { %v5317_v32 = vadd.f32 %v5316_v5, %v5228_v58  ;;  %v5405_v22 = vpop.f32.mrf.mxu3  ;;  %v5141_v29 = vpop.f32.mrf.mxu0  ;;  %v7137_v58 = vmul.f32 %v14836_v55, %v14801_v42  ;;  %v16995_v5 = vld [vmem:[#allocation48_spill] sm:$0xff]  ;;  %v7080_v7 = vadd.f32 %v14808_v16, %v7079_v60 }
 0x6db   : > { %v5230_v30 = vpop.f32.mrf.mxu1  ;;  %v11434_v45 = vpop.eup %11433 }
 0x6dc   : > { %v5406_v39 = vadd.f32 %v5405_v22, %v5317_v32  ;;  %v5231_v1 = vadd.f32 %v5230_v30, %v5141_v29  ;;  %v7029_v32 = vsel %vm7026_vm11, %v7028_v50, %v7024_v18  ;;  %v7138_v22 = vsub.f32 1.0, %v7137_v58 }
 0x6dd   : > { %5180 = vmatmul.bf16.gmra.mxu0 %v16991_v51  ;;  %5269 = vmatmul.bf16.gmra.mxu1 %v16993_v43  ;;  %v14856_v29 = vadd.f32 1.0, %v11434_v45  ;;  %v8796_v58 = vmul.f32 %v7029_v32, %v16967_v61  ;;  %v7085_v45 = vand.u32 2147483647, %v14772_v48  ;;  %v7088_v43 = vor.u32 1.1754944e-38, %v7087_v49 }
 0x6de   : > { %v14851_v54 = vmul.f32 %v8792_v9, %v5406_v39  ;;  %5358 = vmatmul.bf16.gmra.mxu2 %v16994_v53  ;;  %v14860_v39 = vpop.eup %11435  ;;  %v7145_v61 = vand.u32 2147483647, %v14801_v42 }
 0x6df   : > { %5447 = vmatmul.bf16.gmra.mxu3 %v16995_v5  ;;  %11439 = vrcp.f32 %v14856_v29  ;;  %v7197_v5 = vmul.f32 %v14860_v39, %v14834_v11  ;;  %vm7086_vm15 = vcmp.eq.f32.partialorder %v7085_v45, 8.507059e+37  ;;  %vm7202_vm4 = vweird.f32 %v14860_v39 }
 0x6e0   : > { %16992 = vst [vmem:[#allocation97_spill] sm:$0xff] %v14851_v54  ;;  %v7084_v54 = vsel %vm7083_vm14, %v14808_v16, %v7080_v7  ;;  %11441 = vpow2.f32 %v10649_v25  ;;  %v7147_v16 = vand.u32 2147483648, %v14801_v42  ;;  %v17000_v25 = vld [vmem:[#allocation143_spill] sm:$0xff]  ;;  %vm7146_vm3 = vcmp.eq.f32.partialorder %v7145_v61, 8.507059e+37  ;;  %v10387_v61 = vld [vmem:[%s12731_s19 + $0x238] sm:$0xf0]  ;;  %vm14920_vm6 = vmor %vm7201_vm5, %vm7202_vm4 }
 0x6e1   : > { %v5319_v30 = vpop.f32.mrf.mxu2  ;;  %v7089_v48 = vsel %vm7086_vm15, %v7088_v43, %v7084_v54  ;;  %v7198_v7 = vsub.f32 1.0, %v7197_v5  ;;  %v10653_v45 = vmul.f32 -1.442695, %v17000_v25  ;;  %vm7261_vm9 = vweird.f32 %v14856_v29 }
 0x6e2   : > { %v5320_v37 = vadd.f32 %v5319_v30, %v5231_v1  ;;  %v5408_v28 = vpop.f32.mrf.mxu3  ;;  %v5143_v9 = vpop.f32.mrf.mxu0  ;;  %v7139_v1 = vmul.f32 %v14836_v55, %v7138_v22  ;;  %v8800_v54 = vmul.f32 %v7089_v48, %v16971_v33  ;;  %v17001_v33 = vld [vmem:[#allocation51_spill] sm:$0xff]  ;;  %v7148_v42 = vor.u32 1.1754944e-38, %v7147_v16 }
 0x6e3   : > { %v5232_v18 = vpop.f32.mrf.mxu1  ;;  %v11438_v30 = vpop.eup %11437 }
 0x6e4   : > { %v5409_v50 = vadd.f32 %v5408_v28, %v5320_v37  ;;  %v5233_v60 = vadd.f32 %v5232_v18, %v5143_v9  ;;  %v7140_v32 = vadd.f32 %v14836_v55, %v7139_v1  ;;  %v14877_v22 = vadd.f32 1.0, %v11438_v30 }
 0x6e5   : > { %v7199_v30 = vmul.f32 %v14860_v39, %v7198_v7  ;;  %v10515_v7 = vld [vmem:[%s12731_s19 + $0x338] sm:$0xf0] }
 0x6e6   : > { %v14872_v53 = vmul.f32 %v8796_v58, %v5409_v50  ;;  %v14880_v58 = vpop.eup %11439  ;;  %v7144_v1 = vsel %vm14884_vm2, %v14836_v55, %v7140_v32  ;;  %11443 = vrcp.f32 %v14877_v22  ;;  %v11011_v55 = vld [vmem:[%s12731_s19 + $0x22c] sm:$0xf]  ;;  %vm7321_vm13 = vweird.f32 %v14877_v22 }
 0x6e7   : > { %v7257_v48 = vmul.f32 %v14880_v58, %v14856_v29  ;;  %v11043_v32 = vld [vmem:[%s12731_s19 + $0x32c] sm:$0xf]  ;;  %11445 = vpow2.f32 %v10653_v45  ;;  %v10390_v16 = vor.u32 %v11011_v55, %v10387_v61  ;;  %v7205_v45 = vand.u32 2147483647, %v14834_v11 }
 0x6e8   : > { %16997 = vst [vmem:[#allocation98_spill] sm:$0xff] %v14872_v53  ;;  %v10518_v53 = vor.u32 %v11043_v32, %v10515_v7  ;;  %v10259_v7 = vld [vmem:[%s12731_s19 + $0x138] sm:$0xf0]  ;;  %vm7262_vm8 = vweird.f32 %v14880_v58 }
 0x6e9   : > { %v5321_v37 = vpop.f32.mrf.mxu2  ;;  %5667 = vmatpush.bf16.msrb.mxu2 %v10390_v16  ;;  %vm7206_vm7 = vcmp.eq.f32.partialorder %v7205_v45, 8.507059e+37  ;;  %v7265_v45 = vand.u32 2147483647, %v14856_v29  ;;  %vm7263_vm10 = vmor %vm7261_vm9, %vm7262_vm8 }
 0x6ea   : > { %v5322_v28 = vadd.f32 %v5321_v37, %v5233_v60  ;;  %v5410_v9 = vpop.f32.mrf.mxu3  ;;  %v5146_v18 = vpop.f32.mrf.mxu0  ;;  %5756 = vmatpush.bf16.msrb.mxu3 %v10518_v53 }
 0x6eb   : > { %v5235_v49 = vpop.f32.mrf.mxu1  ;;  %v11442_v60 = vpop.eup %11441  ;;  %vm7266_vm11 = vcmp.eq.f32.partialorder %v7265_v45, 8.507059e+37  ;;  %v17013_v45 = vld [vmem:[#allocation146_spill] sm:$0xff] }
 0x6ec   : > { %v5411_v50 = vadd.f32 %v5410_v9, %v5322_v28  ;;  %v5236_v5 = vadd.f32 %v5235_v49, %v5146_v18  ;;  %v17003_v28 = vld [vmem:[#allocation52_spill] sm:$0xff]  ;;  %v17004_v9 = vld [vmem:[#allocation53_spill] sm:$0xff]  ;;  %v17005_v18 = vld [vmem:[#allocation54_spill] sm:$0xff]  ;;  %v7149_v49 = vsel %vm7146_vm3, %v7148_v42, %v7144_v1  ;;  %v14905_v43 = vadd.f32 1.0, %v11442_v60 }
 0x6ed   : > { %5185 = vmatmul.bf16.gmra.mxu0 %v17001_v33  ;;  %5274 = vmatmul.bf16.gmra.mxu1 %v17003_v28  ;;  %v8804_v1 = vmul.f32 %v7149_v49, %v16976_v52  ;;  %v7207_v60 = vand.u32 2147483648, %v14834_v11 }
 0x6ee   : > { %v14897_v37 = vmul.f32 %v8800_v54, %v5411_v50  ;;  %5363 = vmatmul.bf16.gmra.mxu2 %v17004_v9  ;;  %v7200_v54 = vadd.f32 %v14860_v39, %v7199_v30  ;;  %v7258_v50 = vsub.f32 1.0, %v7257_v48  ;;  %11447 = vrcp.f32 %v14905_v43 }
 0x6ef   : > { %5452 = vmatmul.bf16.gmra.mxu3 %v17005_v18  ;;  %v14910_v18 = vpop.eup %11443  ;;  %v7208_v49 = vor.u32 1.1754944e-38, %v7207_v60  ;;  %vm7381_vm1 = vweird.f32 %v14905_v43 }
 0x6f0   : > { %17002 = vst [vmem:[#allocation99_spill] sm:$0xff] %v14897_v37  ;;  %v11446_v55 = vpop.eup %11445  ;;  %v7204_v11 = vsel %vm14920_vm6, %v14860_v39, %v7200_v54  ;;  %v7259_v53 = vmul.f32 %v14880_v58, %v7258_v50  ;;  %v7317_v61 = vmul.f32 %v14910_v18, %v14877_v22  ;;  %vm7322_vm12 = vweird.f32 %v14910_v18 }
 0x6f1   : > { %v5324_v33 = vpop.f32.mrf.mxu2  ;;  %v7209_v51 = vsel %vm7206_vm7, %v7208_v49, %v7204_v11  ;;  %v14936_v0 = vadd.f32 1.0, %v11446_v55  ;;  %vm7323_vm14 = vmor %vm7321_vm13, %vm7322_vm12 }
 0x6f2   : > { %v5325_v37 = vadd.f32 %v5324_v33, %v5236_v5  ;;  %v5413_v9 = vpop.f32.mrf.mxu3  ;;  %v5148_v28 = vpop.f32.mrf.mxu0  ;;  %v17006_v5 = vld [vmem:[#allocation144_spill] sm:$0xff]  ;;  %v7260_v50 = vadd.f32 %v14880_v58, %v7259_v53  ;;  %v8808_v11 = vmul.f32 %v7209_v51, %v16980_v23  ;;  %v17011_v23 = vld [vmem:[#allocation59_spill] sm:$0xff] }
 0x6f3   : > { %v5237_v42 = vpop.f32.mrf.mxu1  ;;  %v10657_v33 = vmul.f32 -1.442695, %v17006_v5  ;;  %vm7441_vm5 = vweird.f32 %v14936_v0 }
 0x6f4   : > { %v5414_v30 = vadd.f32 %v5413_v9, %v5325_v37  ;;  %v5238_v48 = vadd.f32 %v5237_v42, %v5148_v28  ;;  %v10947_v37 = vld [vmem:[%s12731_s19 + $0x2c] sm:$0xf]  ;;  %v10131_v28 = vld [vmem:[%s12731_s19 + $0x38] sm:$0xf0]  ;;  %v14938_v54 = vpop.eup %11447  ;;  %v7264_v49 = vsel %vm7263_vm10, %v14880_v58, %v7260_v50 }
 0x6f5   : > { %v10979_v9 = vld [vmem:[%s12731_s19 + $0x12c] sm:$0xf]  ;;  %v10134_v16 = vor.u32 %v10947_v37, %v10131_v28  ;;  %11449 = vpow2.f32 %v10657_v33  ;;  %v7267_v33 = vand.u32 2147483648, %v14856_v29  ;;  %v17009_v37 = vld [vmem:[#allocation145_spill] sm:$0xff]  ;;  %vm7382_vm0 = vweird.f32 %v14938_v54 }
 0x6f6   : > { %v14930_v32 = vmul.f32 %v8804_v1, %v5414_v30  ;;  %v10262_v42 = vor.u32 %v10979_v9, %v10259_v7  ;;  %v7318_v1 = vsub.f32 1.0, %v7317_v61  ;;  %v10661_v28 = vmul.f32 -1.442695, %v17009_v37  ;;  %v17012_v7 = vld [vmem:[#allocation60_spill] sm:$0xff]  ;;  %vm14986_vm2 = vmor %vm7381_vm1, %vm7382_vm0 }
 0x6f7   : > { %5489 = vmatpush.bf16.msrb.mxu0 %v10134_v16  ;;  %11451 = vrcp.f32 %v14936_v0  ;;  %v7268_v51 = vor.u32 1.1754944e-38, %v7267_v33  ;;  %v7327_v33 = vand.u32 2147483648, %v14877_v22 }
 0x6f8   : > { %5578 = vmatpush.bf16.msrb.mxu1 %v10262_v42  ;;  %v7319_v29 = vmul.f32 %v14910_v18, %v7318_v1  ;;  %11453 = vpow2.f32 %v10661_v28 }
 0x6f9   : > { %v5326_v39 = vpop.f32.mrf.mxu2  ;;  %v7269_v42 = vsel %vm7266_vm11, %v7268_v51, %v7264_v49 }
 0x6fa   : > { %v5327_v30 = vadd.f32 %v5326_v39, %v5238_v48  ;;  %v5415_v52 = vpop.f32.mrf.mxu3  ;;  %v5151_v60 = vpop.f32.mrf.mxu0  ;;  %v7377_v48 = vmul.f32 %v14938_v54, %v14905_v43  ;;  %v7320_v58 = vadd.f32 %v14910_v18, %v7319_v29 }
 0x6fb   : > { %v5240_v55 = vpop.f32.mrf.mxu1  ;;  %v11450_v61 = vpop.eup %11449 }
 0x6fc   : > { %v5416_v9 = vadd.f32 %v5415_v52, %v5327_v30  ;;  %v5241_v53 = vadd.f32 %v5240_v55, %v5151_v60  ;;  %v7378_v39 = vsub.f32 1.0, %v7377_v48  ;;  %v14958_v30 = vadd.f32 1.0, %v11450_v61 }
 0x6fd   : > { %5190 = vmatmul.bf16.gmra.mxu0 %v16877_v41  ;;  %5279 = vmatmul.bf16.gmra.mxu1 %v16878_v31  ;;  %v14962_v55 = vpop.eup %11451  ;;  %v7325_v48 = vand.u32 2147483647, %v14877_v22  ;;  %v7324_v51 = vsel %vm7323_vm14, %v14910_v18, %v7320_v58  ;;  %v7387_v18 = vand.u32 2147483648, %v14905_v43 }
 0x6fe   : > { %v14953_v16 = vmul.f32 %v8808_v11, %v5416_v9  ;;  %5368 = vmatmul.bf16.gmra.mxu2 %v17011_v23  ;;  %v10665_v11 = vmul.f32 -1.442695, %v17013_v45  ;;  %v8812_v9 = vmul.f32 %v7269_v42, %v16986_v21  ;;  %11455 = vrcp.f32 %v14958_v30  ;;  %v11454_v29 = vpop.eup %11453 }
 0x6ff   : > { %5457 = vmatmul.bf16.gmra.mxu3 %v17012_v7  ;;  %v7328_v7 = vor.u32 1.1754944e-38, %v7327_v33  ;;  %vm7326_vm15 = vcmp.eq.f32.partialorder %v7325_v48, 8.507059e+37  ;;  %v7385_v21 = vand.u32 2147483647, %v14905_v43  ;;  %v17017_v48 = vld [vmem:[#allocation147_spill] sm:$0xff]  ;;  %v7388_v43 = vor.u32 1.1754944e-38, %v7387_v18 }
 0x700   : > { %17010 = vst [vmem:[#allocation100_spill] sm:$0xff] %v14953_v16  ;;  %11457 = vpow2.f32 %v10665_v11  ;;  %vm7442_vm4 = vweird.f32 %v14962_v55  ;;  %vm7501_vm9 = vweird.f32 %v14958_v30 }
 0x701   : > { %v5329_v52 = vpop.f32.mrf.mxu2  ;;  %v7329_v22 = vsel %vm7326_vm15, %v7328_v7, %v7324_v51  ;;  %vm7386_vm3 = vcmp.eq.f32.partialorder %v7385_v21, 8.507059e+37  ;;  %v10371_v21 = vld [vmem:[%s12731_s19 + $0x218] sm:$0xf0]  ;;  %vm15022_vm6 = vmor %vm7441_vm5, %vm7442_vm4 }
 0x702   : > { %v5330_v50 = vadd.f32 %v5329_v52, %v5241_v53  ;;  %v5418_v1 = vpop.f32.mrf.mxu3  ;;  %v5153_v60 = vpop.f32.mrf.mxu0  ;;  %v7379_v53 = vmul.f32 %v14938_v54, %v7378_v39  ;;  %v7437_v52 = vmul.f32 %v14962_v55, %v14936_v0  ;;  %v14979_v39 = vadd.f32 1.0, %v11454_v29 }
 0x703   : > { %v5242_v28 = vpop.f32.mrf.mxu1  ;;  %v8816_v7 = vmul.f32 %v7329_v22, %v16990_v17  ;;  %v17018_v17 = vld [vmem:[#allocation63_spill] sm:$0xff] }
 0x704   : > { %v5419_v61 = vadd.f32 %v5418_v1, %v5330_v50  ;;  %v5243_v49 = vadd.f32 %v5242_v28, %v5153_v60  ;;  %v7380_v42 = vadd.f32 %v14938_v54, %v7379_v53  ;;  %v7438_v58 = vsub.f32 1.0, %v7437_v52 }
 0x705   : > { %11459 = vrcp.f32 %v14979_v39  ;;  %vm7561_vm13 = vweird.f32 %v14979_v39 }
 0x706   : > { %v14974_v16 = vmul.f32 %v8812_v9, %v5419_v61  ;;  %v14982_v9 = vpop.eup %11455  ;;  %v10669_v61 = vmul.f32 -1.442695, %v17017_v48  ;;  %v7384_v51 = vsel %vm14986_vm2, %v14938_v54, %v7380_v42  ;;  %v7439_v52 = vmul.f32 %v14962_v55, %v7438_v58  ;;  %v11007_v54 = vld [vmem:[%s12731_s19 + $0x20c] sm:$0xf]  ;;  %v10499_v58 = vld [vmem:[%s12731_s19 + $0x318] sm:$0xf0] }
 0x707   : > { %v11458_v29 = vpop.eup %11457  ;;  %v7497_v22 = vmul.f32 %v14982_v9, %v14958_v30  ;;  %v11039_v42 = vld [vmem:[%s12731_s19 + $0x30c] sm:$0xf]  ;;  %v10374_v18 = vor.u32 %v11007_v54, %v10371_v21  ;;  %vm7502_vm8 = vweird.f32 %v14982_v9 }
 0x708   : > { %17014 = vst [vmem:[#allocation101_spill] sm:$0xff] %v14974_v16  ;;  %v15007_v11 = vadd.f32 1.0, %v11458_v29  ;;  %11461 = vpow2.f32 %v10669_v61  ;;  %v10502_v16 = vor.u32 %v11039_v42, %v10499_v58  ;;  %v7445_v61 = vand.u32 2147483647, %v14936_v0  ;;  %v10243_v58 = vld [vmem:[%s12731_s19 + $0x118] sm:$0xf0]  ;;  %vm7503_vm10 = vmor %vm7501_vm9, %vm7502_vm8 }
 0x709   : > { %v5331_v50 = vpop.f32.mrf.mxu2  ;;  %5668 = vmatpush.bf16.msrb.mxu2 %v10374_v18  ;;  %v7447_v29 = vand.u32 2147483648, %v14936_v0 }
 0x70a   : > { %v5332_v1 = vadd.f32 %v5331_v50, %v5243_v49  ;;  %v5420_v60 = vpop.f32.mrf.mxu3  ;;  %v5156_v28 = vpop.f32.mrf.mxu0  ;;  %5757 = vmatpush.bf16.msrb.mxu3 %v10502_v16  ;;  %11463 = vrcp.f32 %v15007_v11  ;;  %vm7446_vm7 = vcmp.eq.f32.partialorder %v7445_v61, 8.507059e+37  ;;  %v7505_v61 = vand.u32 2147483647, %v14958_v30 }
 0x70b   : > { %v5245_v33 = vpop.f32.mrf.mxu1  ;;  %vm7621_vm1 = vweird.f32 %v15007_v11 }
 0x70c   : > { %v5421_v53 = vadd.f32 %v5420_v60, %v5332_v1  ;;  %v5246_v49 = vadd.f32 %v5245_v33, %v5156_v28  ;;  %v17020_v1 = vld [vmem:[#allocation64_spill] sm:$0xff]  ;;  %v17021_v60 = vld [vmem:[#allocation65_spill] sm:$0xff]  ;;  %v17022_v28 = vld [vmem:[#allocation66_spill] sm:$0xff]  ;;  %v7389_v33 = vsel %vm7386_vm3, %v7388_v43, %v7384_v51  ;;  %vm7506_vm11 = vcmp.eq.f32.partialorder %v7505_v61, 8.507059e+37 }
 0x70d   : > { %5195 = vmatmul.bf16.gmra.mxu0 %v17018_v17  ;;  %5284 = vmatmul.bf16.gmra.mxu1 %v17020_v1  ;;  %v8820_v51 = vmul.f32 %v7389_v33, %v16996_v19  ;;  %v7448_v33 = vor.u32 1.1754944e-38, %v7447_v29  ;;  %v17027_v61 = vld [vmem:[#allocation150_spill] sm:$0xff] }
 0x70e   : > { %v14999_v50 = vmul.f32 %v8816_v7, %v5421_v53  ;;  %5373 = vmatmul.bf16.gmra.mxu2 %v17021_v60  ;;  %v7440_v7 = vadd.f32 %v14962_v55, %v7439_v52  ;;  %v7498_v53 = vsub.f32 1.0, %v7497_v22 }
 0x70f   : > { %5462 = vmatmul.bf16.gmra.mxu3 %v17022_v28  ;;  %v15012_v28 = vpop.eup %11459 }
 0x710   : > { %17019 = vst [vmem:[#allocation102_spill] sm:$0xff] %v14999_v50  ;;  %v11462_v54 = vpop.eup %11461  ;;  %v7444_v0 = vsel %vm15022_vm6, %v14962_v55, %v7440_v7  ;;  %v7499_v16 = vmul.f32 %v14982_v9, %v7498_v53  ;;  %v7557_v21 = vmul.f32 %v15012_v28, %v14979_v39  ;;  %vm7562_vm12 = vweird.f32 %v15012_v28 }
 0x711   : > { %v5334_v17 = vpop.f32.mrf.mxu2  ;;  %v7449_v23 = vsel %vm7446_vm7, %v7448_v33, %v7444_v0  ;;  %v15038_v31 = vadd.f32 1.0, %v11462_v54  ;;  %v15040_v7 = vpop.eup %11463  ;;  %vm7563_vm14 = vmor %vm7561_vm13, %vm7562_vm12 }
 0x712   : > { %v5335_v50 = vadd.f32 %v5334_v17, %v5246_v49  ;;  %v5423_v60 = vpop.f32.mrf.mxu3  ;;  %v5158_v1 = vpop.f32.mrf.mxu0  ;;  %v17023_v49 = vld [vmem:[#allocation148_spill] sm:$0xff]  ;;  %v7500_v53 = vadd.f32 %v14982_v9, %v7499_v16  ;;  %v8824_v0 = vmul.f32 %v7449_v23, %v17000_v25  ;;  %vm7622_vm0 = vweird.f32 %v15040_v7 }
 0x713   : > { %v5247_v43 = vpop.f32.mrf.mxu1  ;;  %v10673_v17 = vmul.f32 -1.442695, %v17023_v49  ;;  %vm15088_vm2 = vmor %vm7621_vm1, %vm7622_vm0  ;;  %vm7681_vm5 = vweird.f32 %v15038_v31 }
 0x714   : > { %v5424_v52 = vadd.f32 %v5423_v60, %v5335_v50  ;;  %v5248_v22 = vadd.f32 %v5247_v43, %v5158_v1  ;;  %v10943_v50 = vld [vmem:[%s12731_s19 + $0xc] sm:$0xf]  ;;  %v10115_v1 = vld [vmem:[%s12731_s19 + $0x18] sm:$0xf0]  ;;  %v7504_v33 = vsel %vm7503_vm10, %v14982_v9, %v7500_v53 }
 0x715   : > { %v10975_v60 = vld [vmem:[%s12731_s19 + $0x10c] sm:$0xf]  ;;  %v10118_v18 = vor.u32 %v10943_v50, %v10115_v1  ;;  %11465 = vpow2.f32 %v10673_v17  ;;  %v7507_v17 = vand.u32 2147483648, %v14958_v30  ;;  %v17026_v50 = vld [vmem:[#allocation149_spill] sm:$0xff] }
 0x716   : > { %v15032_v42 = vmul.f32 %v8820_v51, %v5424_v52  ;;  %v10246_v43 = vor.u32 %v10975_v60, %v10243_v58  ;;  %v7558_v51 = vsub.f32 1.0, %v7557_v21  ;;  %v10677_v1 = vmul.f32 -1.442695, %v17026_v50 }
 0x717   : > { %5490 = vmatpush.bf16.msrb.mxu0 %v10118_v18  ;;  %11467 = vrcp.f32 %v15038_v31  ;;  %v7508_v25 = vor.u32 1.1754944e-38, %v7507_v17  ;;  %v10681_v17 = vmul.f32 -1.442695, %v17027_v61 }
 0x718   : > { %5579 = vmatpush.bf16.msrb.mxu1 %v10246_v43  ;;  %v7559_v30 = vmul.f32 %v15012_v28, %v7558_v51  ;;  %11469 = vpow2.f32 %v10677_v1  ;;  %v7565_v1 = vand.u32 2147483647, %v14979_v39 }
 0x719   : > { %v5336_v55 = vpop.f32.mrf.mxu2  ;;  %v7509_v23 = vsel %vm7506_vm11, %v7508_v25, %v7504_v33 }
 0x71a   : > { %v5337_v52 = vadd.f32 %v5336_v55, %v5248_v22  ;;  %v5425_v19 = vpop.f32.mrf.mxu3  ;;  %v5161_v29 = vpop.f32.mrf.mxu0  ;;  %v7617_v22 = vmul.f32 %v15040_v7, %v15007_v11  ;;  %v7560_v9 = vadd.f32 %v15012_v28, %v7559_v30  ;;  %vm7566_vm15 = vcmp.eq.f32.partialorder %v7565_v1, 8.507059e+37 }
 0x71b   : > { %v5250_v54 = vpop.f32.mrf.mxu1  ;;  %v11466_v21 = vpop.eup %11465 }
 0x71c   : > { %v5426_v60 = vadd.f32 %v5425_v19, %v5337_v52  ;;  %v5251_v16 = vadd.f32 %v5250_v54, %v5161_v29  ;;  %v7618_v58 = vsub.f32 1.0, %v7617_v22  ;;  %v15060_v43 = vadd.f32 1.0, %v11466_v21 }
 0x71d   : > { %5200 = vmatmul.bf16.gmra.mxu0 %v16764_v44  ;;  %5289 = vmatmul.bf16.gmra.mxu1 %v16766_v46  ;;  %v15064_v19 = vpop.eup %11467  ;;  %v7567_v29 = vand.u32 2147483648, %v14979_v39  ;;  %v7564_v33 = vsel %vm7563_vm14, %v15012_v28, %v7560_v9 }
 0x71e   : > { %v15055_v18 = vmul.f32 %v8824_v0, %v5426_v60  ;;  %5378 = vmatmul.bf16.gmra.mxu2 %v16767_v40  ;;  %v8828_v0 = vmul.f32 %v7509_v23, %v17006_v5  ;;  %11471 = vrcp.f32 %v15060_v43  ;;  %v11470_v21 = vpop.eup %11469  ;;  %v7677_v30 = vmul.f32 %v15064_v19, %v15038_v31 }
 0x71f   : > { %5467 = vmatmul.bf16.gmra.mxu3 %v16896_v10  ;;  %11473 = vpow2.f32 %v10681_v17  ;;  %v15080_v23 = vadd.f32 1.0, %v11470_v21  ;;  %vm7682_vm4 = vweird.f32 %v15064_v19  ;;  %vm7741_vm9 = vweird.f32 %v15060_v43 }
 0x720   : > { %vm7683_vm6 = vmor %vm7681_vm5, %vm7682_vm4 }
 0x721   : > { %v5339_v55 = vpop.f32.mrf.mxu2  ;;  %11475 = vrcp.f32 %v15080_v23  ;;  %vm7801_vm13 = vweird.f32 %v15080_v23 }
 0x722   : > { %v5340_v53 = vadd.f32 %v5339_v55, %v5251_v16  ;;  %v5428_v51 = vpop.f32.mrf.mxu3  ;;  %v5163_v52 = vpop.f32.mrf.mxu0  ;;  %v7619_v16 = vmul.f32 %v15040_v7, %v7618_v58  ;;  %v7568_v55 = vor.u32 1.1754944e-38, %v7567_v29  ;;  %v7625_v29 = vand.u32 2147483647, %v15007_v11 }
 0x723   : > { %v5252_v54 = vpop.f32.mrf.mxu1 }
 0x724   : > { %v5429_v60 = vadd.f32 %v5428_v51, %v5340_v53  ;;  %v5253_v22 = vadd.f32 %v5252_v54, %v5163_v52  ;;  %v7569_v5 = vsel %vm7566_vm15, %v7568_v55, %v7564_v33  ;;  %v7620_v39 = vadd.f32 %v15040_v7, %v7619_v16  ;;  %v15083_v54 = vpop.eup %11471  ;;  %v17032_v55 = vld [vmem:[#allocation75_spill] sm:$0xff] }
 0x725   : > { %v7627_v53 = vand.u32 2147483648, %v15007_v11  ;;  %v7678_v51 = vsub.f32 1.0, %v7677_v30  ;;  %vm7626_vm3 = vcmp.eq.f32.partialorder %v7625_v29, 8.507059e+37  ;;  %v7685_v29 = vand.u32 2147483647, %v15038_v31 }
 0x726   : > { %v15076_v25 = vmul.f32 %v8828_v0, %v5429_v60  ;;  %v8832_v0 = vmul.f32 %v7569_v5, %v17009_v37  ;;  %v17031_v60 = vld [vmem:[#allocation151_spill] sm:$0xff]  ;;  %v7624_v30 = vsel %vm15088_vm2, %v15040_v7, %v7620_v39  ;;  %v7737_v5 = vmul.f32 %v15083_v54, %v15060_v43 }
 0x727   : > { %v10685_v16 = vmul.f32 -1.442695, %v17031_v60  ;;  %v7628_v11 = vor.u32 1.1754944e-38, %v7627_v53  ;;  %v7679_v37 = vmul.f32 %v15064_v19, %v7678_v51  ;;  %vm7686_vm7 = vcmp.eq.f32.partialorder %v7685_v29, 8.507059e+37 }
 0x728   : > { %17028 = vst [vmem:[#allocation103_spill] sm:$0xff] %v15076_v25  ;;  %v17034_v25 = vld [vmem:[#allocation76_spill] sm:$0xff]  ;;  %v7738_v51 = vsub.f32 1.0, %v7737_v5  ;;  %vm7742_vm8 = vweird.f32 %v15083_v54  ;;  %v7747_v29 = vand.u32 2147483648, %v15060_v43 }
 0x729   : > { %v5341_v58 = vpop.f32.mrf.mxu2  ;;  %v7629_v7 = vsel %vm7626_vm3, %v7628_v11, %v7624_v30  ;;  %11477 = vpow2.f32 %v10685_v16  ;;  %v7680_v53 = vadd.f32 %v15064_v19, %v7679_v37  ;;  %v17037_v30 = vld [vmem:[#allocation152_spill] sm:$0xff]  ;;  %vm7743_vm10 = vmor %vm7741_vm9, %vm7742_vm8 }
 0x72a   : > { %v5342_v28 = vadd.f32 %v5341_v58, %v5253_v22  ;;  %v5430_v9 = vpop.f32.mrf.mxu3  ;;  %v5166_v52 = vpop.f32.mrf.mxu0  ;;  %v10689_v11 = vmul.f32 -1.442695, %v17037_v30 }
 0x72b   : > { %v5255_v17 = vpop.f32.mrf.mxu1  ;;  %v11474_v22 = vpop.eup %11473 }
 0x72c   : > { %v5431_v21 = vadd.f32 %v5430_v9, %v5342_v28  ;;  %v5256_v33 = vadd.f32 %v5255_v17, %v5166_v52  ;;  %v17035_v28 = vld [vmem:[#allocation77_spill] sm:$0xff]  ;;  %v17036_v9 = vld [vmem:[#allocation78_spill] sm:$0xff]  ;;  %v15106_v39 = vadd.f32 1.0, %v11474_v22  ;;  %v7687_v22 = vand.u32 2147483648, %v15038_v31 }
 0x72d   : > { %5205 = vmatmul.bf16.gmra.mxu0 %v17032_v55  ;;  %5294 = vmatmul.bf16.gmra.mxu1 %v17034_v25 }
 0x72e   : > { %v15101_v58 = vmul.f32 %v8832_v0, %v5431_v21  ;;  %5383 = vmatmul.bf16.gmra.mxu2 %v17035_v28  ;;  %v15110_v21 = vpop.eup %11475  ;;  %11479 = vrcp.f32 %v15106_v39  ;;  %v7688_v31 = vor.u32 1.1754944e-38, %v7687_v22  ;;  %vm7861_vm1 = vweird.f32 %v15106_v39 }
 0x72f   : > { %5472 = vmatmul.bf16.gmra.mxu3 %v17036_v9  ;;  %11481 = vpow2.f32 %v10689_v11  ;;  %vm7802_vm12 = vweird.f32 %v15110_v21 }
 0x730   : > { %17033 = vst [vmem:[#allocation104_spill] sm:$0xff] %v15101_v58  ;;  %v8836_v58 = vmul.f32 %v7629_v7, %v17013_v45  ;;  %v7739_v45 = vmul.f32 %v15083_v54, %v7738_v51  ;;  %v7797_v7 = vmul.f32 %v15110_v21, %v15080_v23  ;;  %vm7803_vm14 = vmor %vm7801_vm13, %vm7802_vm12 }
 0x731   : > { %v5344_v52 = vpop.f32.mrf.mxu2 }
 0x732   : > { %v5345_v17 = vadd.f32 %v5344_v52, %v5256_v33  ;;  %v5433_v0 = vpop.f32.mrf.mxu3  ;;  %v5168_v1 = vpop.f32.mrf.mxu0  ;;  %v7684_v52 = vsel %vm7683_vm6, %v15064_v19, %v7680_v53  ;;  %v7798_v19 = vsub.f32 1.0, %v7797_v7 }
 0x733   : > { %v5257_v16 = vpop.f32.mrf.mxu1  ;;  %v11478_v33 = vpop.eup %11477  ;;  %v7689_v28 = vsel %vm7686_vm7, %v7688_v31, %v7684_v52 }
 0x734   : > { %v5434_v37 = vadd.f32 %v5433_v0, %v5345_v17  ;;  %v5258_v5 = vadd.f32 %v5257_v16, %v5168_v1  ;;  %v15126_v25 = vadd.f32 1.0, %v11478_v33  ;;  %v15128_v0 = vpop.eup %11479  ;;  %v7740_v1 = vadd.f32 %v15083_v54, %v7739_v45 }
 0x735   : > { %v8840_v11 = vmul.f32 %v7689_v28, %v17017_v48  ;;  %v7857_v45 = vmul.f32 %v15128_v0, %v15106_v39  ;;  %v7748_v48 = vor.u32 1.1754944e-38, %v7747_v29  ;;  %v7807_v29 = vand.u32 2147483648, %v15080_v23 }
 0x736   : > { %v15124_v9 = vmul.f32 %v8836_v58, %v5434_v37  ;;  %v7745_v58 = vand.u32 2147483647, %v15060_v43  ;;  %v17038_v37 = vld [vmem:[#allocation153_spill] sm:$0xff]  ;;  %11483 = vrcp.f32 %v15126_v25  ;;  %v7744_v7 = vsel %vm7743_vm10, %v15083_v54, %v7740_v1 }
 0x737   : > { %v10693_v33 = vmul.f32 -1.442695, %v17038_v37  ;;  %v7799_v43 = vmul.f32 %v15110_v21, %v7798_v19  ;;  %vm7862_vm0 = vweird.f32 %v15128_v0  ;;  %vm7921_vm5 = vweird.f32 %v15126_v25 }
 0x738   : > { %vm7746_vm11 = vcmp.eq.f32.partialorder %v7745_v58, 8.507059e+37  ;;  %v17040_v58 = vld [vmem:[#allocation154_spill] sm:$0xff]  ;;  %vm15176_vm2 = vmor %vm7861_vm1, %vm7862_vm0 }
 0x739   : > { %v5346_v17 = vpop.f32.mrf.mxu2  ;;  %11485 = vpow2.f32 %v10693_v33  ;;  %v7749_v28 = vsel %vm7746_vm11, %v7748_v48, %v7744_v7  ;;  %v7800_v54 = vadd.f32 %v15110_v21, %v7799_v43  ;;  %v10697_v33 = vmul.f32 -1.442695, %v17040_v58 }
 0x73a   : > { %v5347_v53 = vadd.f32 %v5346_v17, %v5258_v5  ;;  %v5435_v51 = vpop.f32.mrf.mxu3  ;;  %v5171_v16 = vpop.f32.mrf.mxu0 }
 0x73b   : > { %v5260_v22 = vpop.f32.mrf.mxu1  ;;  %v11482_v5 = vpop.eup %11481 }
 0x73c   : > { %v5436_v52 = vadd.f32 %v5435_v51, %v5347_v53  ;;  %v5261_v31 = vadd.f32 %v5260_v22, %v5171_v16  ;;  %v7858_v53 = vsub.f32 1.0, %v7857_v45  ;;  %v15148_v51 = vadd.f32 1.0, %v11482_v5 }
 0x73d   : > { %5210 = vmatmul.bf16.gmra.mxu0 %v12329_v4  ;;  %5299 = vmatmul.bf16.gmra.mxu1 %v12331_v59  ;;  %v8844_v45 = vmul.f32 %v7749_v28, %v17023_v49  ;;  %v7805_v5 = vand.u32 2147483647, %v15080_v23 }
 0x73e   : > { %v15143_v17 = vmul.f32 %v8840_v11, %v5436_v52  ;;  %5388 = vmatmul.bf16.gmra.mxu2 %v12333_v62  ;;  %v15152_v11 = vpop.eup %11483  ;;  %11487 = vrcp.f32 %v15148_v51  ;;  %v7808_v62 = vor.u32 1.1754944e-38, %v7807_v29  ;;  %v7865_v29 = vand.u32 2147483647, %v15106_v39 }
 0x73f   : > { %5477 = vmatmul.bf16.gmra.mxu3 %v16584_v38  ;;  %v11486_v48 = vpop.eup %11485  ;;  %11489 = vpow2.f32 %v10697_v33  ;;  %vm7806_vm15 = vcmp.eq.f32.partialorder %v7805_v5, 8.507059e+37  ;;  %v17043_v5 = vld [vmem:[#allocation155_spill] sm:$0xff]  ;;  %vm7922_vm4 = vweird.f32 %v15152_v11  ;;  %vm7981_vm9 = vweird.f32 %v15148_v51 }
 0x740   : > { %17039 = vst [vmem:[#allocation105_spill] sm:$0xff] %v15143_v17  ;;  %v7917_v17 = vmul.f32 %v15152_v11, %v15126_v25  ;;  %v15168_v28 = vadd.f32 1.0, %v11486_v48  ;;  %vm7866_vm3 = vcmp.eq.f32.partialorder %v7865_v29, 8.507059e+37  ;;  %vm7923_vm6 = vmor %vm7921_vm5, %vm7922_vm4 }
 0x741   : > { %v5349_v16 = vpop.f32.mrf.mxu2 }
 0x742   : > { %v5350_v1 = vadd.f32 %v5349_v16, %v5261_v31  ;;  %v5438_v19 = vpop.f32.mrf.mxu3  ;;  %v5173_v22 = vpop.f32.mrf.mxu0  ;;  %v7859_v31 = vmul.f32 %v15128_v0, %v7858_v53  ;;  %v7804_v16 = vsel %vm7803_vm14, %v15110_v21, %v7800_v54  ;;  %11491 = vrcp.f32 %v15168_v28 }
 0x743   : > { %v5262_v52 = vpop.f32.mrf.mxu1  ;;  %v7809_v49 = vsel %vm7806_vm15, %v7808_v62, %v7804_v16  ;;  %vm8041_vm13 = vweird.f32 %v15168_v28 }
 0x744   : > { %v5439_v7 = vadd.f32 %v5438_v19, %v5350_v1  ;;  %v5263_v43 = vadd.f32 %v5262_v52, %v5173_v22  ;;  %v7860_v23 = vadd.f32 %v15128_v0, %v7859_v31  ;;  %v7867_v1 = vand.u32 2147483648, %v15106_v39  ;;  %v15171_v52 = vpop.eup %11487 }
 0x745   : > { %v7918_v19 = vsub.f32 1.0, %v7917_v17  ;;  %v8848_v33 = vmul.f32 %v7809_v49, %v17026_v50  ;;  %v7977_v16 = vmul.f32 %v15171_v52, %v15148_v51  ;;  %vm7982_vm8 = vweird.f32 %v15171_v52 }
 0x746   : > { %v15164_v38 = vmul.f32 %v8844_v45, %v5439_v7  ;;  %v10701_v7 = vmul.f32 -1.442695, %v17043_v5  ;;  %v7864_v48 = vsel %vm15176_vm2, %v15128_v0, %v7860_v23  ;;  %v7868_v39 = vor.u32 1.1754944e-38, %v7867_v1  ;;  %vm7983_vm10 = vmor %vm7981_vm9, %vm7982_vm8 }
 0x747   : > { %v7919_v50 = vmul.f32 %v15152_v11, %v7918_v19  ;;  %v7978_v1 = vsub.f32 1.0, %v7977_v16 }
 0x748   : > { %v7869_v0 = vsel %vm7866_vm3, %v7868_v39, %v7864_v48  ;;  %11493 = vpow2.f32 %v10701_v7 }
 0x749   : > { %v5351_v53 = vpop.f32.mrf.mxu2 }
 0x74a   : > { %v5352_v21 = vadd.f32 %v5351_v53, %v5263_v43  ;;  %v5440_v54 = vpop.f32.mrf.mxu3  ;;  %v5176_v22 = vpop.f32.mrf.mxu0  ;;  %v7920_v53 = vadd.f32 %v15152_v11, %v7919_v50 }
 0x74b   : > { %v5265_v62 = vpop.f32.mrf.mxu1  ;;  %v11490_v43 = vpop.eup %11489 }
 0x74c   : > { %v5441_v31 = vadd.f32 %v5440_v54, %v5352_v21  ;;  %v5266_v17 = vadd.f32 %v5265_v62, %v5176_v22  ;;  %v15194_v23 = vadd.f32 1.0, %v11490_v43  ;;  %v15198_v22 = vpop.eup %11491  ;;  %v17044_v62 = vld [vmem:[#allocation156_spill] sm:$0xff] }
 0x74d   : > { %5491 = vmatmul.bf16.vlgmr.msrb.gmra.mxu0 %v12065_v47  ;;  %5580 = vmatmul.bf16.vlgmr.msrb.gmra.mxu1 %v16916_v36  ;;  %v8852_v36 = vmul.f32 %v7869_v0, %v17027_v61  ;;  %v7979_v61 = vmul.f32 %v15171_v52, %v7978_v1  ;;  %v8037_v43 = vmul.f32 %v15198_v22, %v15168_v28  ;;  %vm8042_vm12 = vweird.f32 %v15198_v22 }
 0x74e   : > { %v15189_v49 = vmul.f32 %v8848_v33, %v5441_v31  ;;  %5669 = vmatmul.bf16.vlgmr.msrb.gmra.mxu2 %v16917_v63  ;;  %v7925_v63 = vand.u32 2147483647, %v15126_v25  ;;  %11495 = vrcp.f32 %v15194_v23  ;;  %v10705_v33 = vmul.f32 -1.442695, %v17044_v62  ;;  %v11494_v31 = vpop.eup %11493  ;;  %vm8043_vm14 = vmor %vm8041_vm13, %vm8042_vm12 }
 0x74f   : > { %5758 = vmatmul.bf16.vlgmr.msrb.gmra.mxu3 %v16918_v6  ;;  %v7927_v6 = vand.u32 2147483648, %v15126_v25  ;;  %v15214_v50 = vadd.f32 1.0, %v11494_v31  ;;  %vm8101_vm1 = vweird.f32 %v15194_v23 }
 0x750   : > { %vm7926_vm7 = vcmp.eq.f32.partialorder %v7925_v63, 8.507059e+37  ;;  %11497 = vpow2.f32 %v10705_v33 }
 0x751   : > { %v5354_v47 = vpop.f32.mrf.mxu2  ;;  %v7928_v25 = vor.u32 1.1754944e-38, %v7927_v6  ;;  %v17045_v6 = vld [vmem:[#allocation157_spill] sm:$0xff]  ;;  %11499 = vrcp.f32 %v15214_v50  ;;  %vm8161_vm5 = vweird.f32 %v15214_v50 }
 0x752   : > { %v5355_v19 = vadd.f32 %v5354_v47, %v5266_v17  ;;  %v5443_v21 = vpop.f32.mrf.mxu3  ;;  %v5178_v54 = vpop.f32.mrf.mxu0  ;;  %v7924_v17 = vsel %vm7923_vm6, %v15152_v11, %v7920_v53  ;;  %v7980_v47 = vadd.f32 %v15171_v52, %v7979_v61  ;;  %v8038_v11 = vsub.f32 1.0, %v8037_v43 }
 0x753   : > { %v5267_v29 = vpop.f32.mrf.mxu1  ;;  %v7929_v39 = vsel %vm7926_vm7, %v7928_v25, %v7924_v17 }
 0x754   : > { %v5444_v45 = vadd.f32 %v5443_v21, %v5355_v19  ;;  %v5268_v7 = vadd.f32 %v5267_v29, %v5178_v54  ;;  %v15216_v0 = vpop.eup %11495  ;;  %v7985_v21 = vand.u32 2147483647, %v15148_v51  ;;  %v7987_v54 = vand.u32 2147483648, %v15148_v51 }
 0x755   : > { %v8856_v63 = vmul.f32 %v7929_v39, %v17031_v60  ;;  %v10709_v29 = vmul.f32 -1.442695, %v17045_v6  ;;  %v8097_v31 = vmul.f32 %v15216_v0, %v15194_v23  ;;  %v7984_v17 = vsel %vm7983_vm10, %v15171_v52, %v7980_v47 }
 0x756   : > { %v15212_v48 = vmul.f32 %v8852_v36, %v5444_v45  ;;  %v8039_v51 = vmul.f32 %v15198_v22, %v8038_v11  ;;  %v7988_v60 = vor.u32 1.1754944e-38, %v7987_v54  ;;  %vm7986_vm11 = vcmp.eq.f32.partialorder %v7985_v21, 8.507059e+37 }
 0x757   : > { %11501 = vpow2.f32 %v10709_v29  ;;  %v8098_v25 = vsub.f32 1.0, %v8097_v31  ;;  %v8045_v21 = vand.u32 2147483647, %v15168_v28  ;;  %vm8102_vm0 = vweird.f32 %v15216_v0 }
 0x758   : > { %v7989_v43 = vsel %vm7986_vm11, %v7988_v60, %v7984_v17  ;;  %v8040_v52 = vadd.f32 %v15198_v22, %v8039_v51  ;;  %v8107_v60 = vand.u32 2147483648, %v15194_v23  ;;  %vm15264_vm2 = vmor %vm8101_vm1, %vm8102_vm0 }
 0x759   : > { %v5356_v16 = vpop.f32.mrf.mxu2  ;;  %vm8046_vm15 = vcmp.eq.f32.partialorder %v8045_v21, 8.507059e+37 }
 0x75a   : > { %v5357_v53 = vadd.f32 %v5356_v16, %v5268_v7  ;;  %v5445_v1 = vpop.f32.mrf.mxu3  ;;  %v5181_v19 = vpop.f32.mrf.mxu0 }
 0x75b   : > { %v5270_v36 = vpop.f32.mrf.mxu1  ;;  %v11498_v7 = vpop.eup %11497 }
 0x75c   : > { %v5446_v33 = vadd.f32 %v5445_v1, %v5357_v53  ;;  %v5271_v45 = vadd.f32 %v5270_v36, %v5181_v19  ;;  %v15236_v39 = vadd.f32 1.0, %v11498_v7  ;;  %v8860_v19 = vmul.f32 %v7989_v43, %v17037_v30 }
 0x75d   : > { %5496 = vmatmul.bf16.gmra.mxu0 %v12087_v12  ;;  %5585 = vmatmul.bf16.gmra.mxu1 %v12089_v13  ;;  %v15240_v13 = vpop.eup %11499 }
 0x75e   : > { %v15231_v61 = vmul.f32 %v8856_v63, %v5446_v33  ;;  %5674 = vmatmul.bf16.gmra.mxu2 %v12091_v14  ;;  %v8047_v14 = vand.u32 2147483648, %v15168_v28  ;;  %v8099_v63 = vmul.f32 %v15216_v0, %v8098_v25  ;;  %11503 = vrcp.f32 %v15236_v39  ;;  %v11502_v29 = vpop.eup %11501 }
 0x75f   : > { %5763 = vmatmul.bf16.gmra.mxu3 %v12093_v15  ;;  %v17046_v15 = vld [vmem:[#allocation158_spill] sm:$0xff]  ;;  %v8044_v33 = vsel %vm8043_vm14, %v15198_v22, %v8040_v52  ;;  %v15256_v17 = vadd.f32 1.0, %v11502_v29  ;;  %vm8162_vm4 = vweird.f32 %v15240_v13  ;;  %vm8221_vm9 = vweird.f32 %v15236_v39 }
 0x760   : > { %v10713_v53 = vmul.f32 -1.442695, %v17046_v15  ;;  %v8048_v7 = vor.u32 1.1754944e-38, %v8047_v14  ;;  %v8100_v28 = vadd.f32 %v15216_v0, %v8099_v63  ;;  %vm8163_vm6 = vmor %vm8161_vm5, %vm8162_vm4 }
 0x761   : > { %v5359_v12 = vpop.f32.mrf.mxu2  ;;  %vm8281_vm13 = vweird.f32 %v15256_v17 }
 0x762   : > { %v5360_v16 = vadd.f32 %v5359_v12, %v5271_v45  ;;  %v5448_v47 = vpop.f32.mrf.mxu3  ;;  %v5183_v11 = vpop.f32.mrf.mxu0  ;;  %v8157_v45 = vmul.f32 %v15240_v13, %v15214_v50  ;;  %11505 = vpow2.f32 %v10713_v53  ;;  %v8049_v30 = vsel %vm8046_vm15, %v8048_v7, %v8044_v33  ;;  %v17049_v53 = vld [vmem:[#allocation159_spill] sm:$0xff] }
 0x763   : > { %v5272_v1 = vpop.f32.mrf.mxu1  ;;  %11507 = vrcp.f32 %v15256_v17 }
 0x764   : > { %v5449_v54 = vadd.f32 %v5448_v47, %v5360_v16  ;;  %v5273_v36 = vadd.f32 %v5272_v1, %v5183_v11  ;;  %v8158_v43 = vsub.f32 1.0, %v8157_v45  ;;  %v15259_v52 = vpop.eup %11503  ;;  %v8105_v16 = vand.u32 2147483647, %v15194_v23 }
 0x765   : > { %v8864_v11 = vmul.f32 %v8049_v30, %v17038_v37  ;;  %v10717_v1 = vmul.f32 -1.442695, %v17049_v53  ;;  %v8108_v23 = vor.u32 1.1754944e-38, %v8107_v60  ;;  %v8217_v63 = vmul.f32 %v15259_v52, %v15236_v39 }
 0x766   : > { %v15252_v31 = vmul.f32 %v8860_v19, %v5449_v54  ;;  %v8159_v37 = vmul.f32 %v15240_v13, %v8158_v43  ;;  %vm8106_vm3 = vcmp.eq.f32.partialorder %v8105_v16, 8.507059e+37  ;;  %vm8222_vm8 = vweird.f32 %v15259_v52 }
 0x767   : > { %11509 = vpow2.f32 %v10717_v1  ;;  %v8218_v7 = vsub.f32 1.0, %v8217_v63  ;;  %vm8223_vm10 = vmor %vm8221_vm9, %vm8222_vm8 }
 0x768   : > { %v11506_v54 = vpop.eup %11505  ;;  %v8160_v45 = vadd.f32 %v15240_v13, %v8159_v37 }
 0x769   : > { %v5361_v51 = vpop.f32.mrf.mxu2  ;;  %v15282_v33 = vadd.f32 1.0, %v11506_v54  ;;  %v15286_v60 = vpop.eup %11507 }
 0x76a   : > { %v5362_v22 = vadd.f32 %v5361_v51, %v5273_v36  ;;  %v5450_v25 = vpop.f32.mrf.mxu3  ;;  %v5186_v12 = vpop.f32.mrf.mxu0  ;;  %v8104_v36 = vsel %vm15264_vm2, %v15216_v0, %v8100_v28  ;;  %v8277_v14 = vmul.f32 %v15286_v60, %v15256_v17  ;;  %vm8282_vm12 = vweird.f32 %v15286_v60 }
 0x76b   : > { %v5275_v47 = vpop.f32.mrf.mxu1  ;;  %v8109_v0 = vsel %vm8106_vm3, %v8108_v23, %v8104_v36  ;;  %11511 = vrcp.f32 %v15282_v33  ;;  %vm8283_vm14 = vmor %vm8281_vm13, %vm8282_vm12  ;;  %vm8341_vm1 = vweird.f32 %v15282_v33 }
 0x76c   : > { %v5451_v19 = vadd.f32 %v5450_v25, %v5362_v22  ;;  %v5276_v21 = vadd.f32 %v5275_v47, %v5186_v12  ;;  %v17050_v22 = vld [vmem:[#allocation160_spill] sm:$0xff] }
 0x76d   : > { %5501 = vmatmul.bf16.gmra.mxu0 %v12099_v24  ;;  %5590 = vmatmul.bf16.gmra.mxu1 %v16928_v35  ;;  %v8868_v35 = vmul.f32 %v8109_v0, %v17040_v58  ;;  %v10721_v25 = vmul.f32 -1.442695, %v17050_v22  ;;  %v11510_v47 = vpop.eup %11509  ;;  %v8219_v58 = vmul.f32 %v15259_v52, %v8218_v7 }
 0x76e   : > { %v15277_v29 = vmul.f32 %v8864_v11, %v5451_v19  ;;  %5679 = vmatmul.bf16.gmra.mxu2 %v16929_v26  ;;  %v8165_v26 = vand.u32 2147483647, %v15214_v50  ;;  %v8164_v11 = vsel %vm8163_vm6, %v15240_v13, %v8160_v45  ;;  %v8278_v13 = vsub.f32 1.0, %v8277_v14 }
 0x76f   : > { %5768 = vmatmul.bf16.gmra.mxu3 %v16930_v3  ;;  %v8167_v3 = vand.u32 2147483648, %v15214_v50  ;;  %11513 = vpow2.f32 %v10721_v25  ;;  %v8220_v23 = vadd.f32 %v15259_v52, %v8219_v58  ;;  %v8227_v45 = vand.u32 2147483648, %v15236_v39  ;;  %v17055_v58 = vld [vmem:[#allocation23_spill] sm:$0xff] }
 0x770   : > { %vm8166_vm7 = vcmp.eq.f32.partialorder %v8165_v26, 8.507059e+37 }
 0x771   : > { %v5364_v24 = vpop.f32.mrf.mxu2  ;;  %v8168_v50 = vor.u32 1.1754944e-38, %v8167_v3  ;;  %v15304_v36 = vpop.eup %11511 }
 0x772   : > { %v5365_v30 = vadd.f32 %v5364_v24, %v5276_v21  ;;  %v5453_v28 = vpop.f32.mrf.mxu3  ;;  %v5188_v51 = vpop.f32.mrf.mxu0  ;;  %v15302_v21 = vadd.f32 1.0, %v11510_v47  ;;  %v8225_v24 = vand.u32 2147483647, %v15236_v39  ;;  %v8337_v3 = vmul.f32 %v15304_v36, %v15282_v33  ;;  %v17054_v47 = vld [vmem:[#allocation22_spill] sm:$0xff] }
 0x773   : > { %v5277_v43 = vpop.f32.mrf.mxu1  ;;  %v8169_v19 = vsel %vm8166_vm7, %v8168_v50, %v8164_v11  ;;  %v8279_v39 = vmul.f32 %v15286_v60, %v8278_v13  ;;  %v8228_v11 = vor.u32 1.1754944e-38, %v8227_v45  ;;  %vm8342_vm0 = vweird.f32 %v15304_v36 }
 0x774   : > { %v5454_v12 = vadd.f32 %v5453_v28, %v5365_v30  ;;  %v5278_v16 = vadd.f32 %v5277_v43, %v5188_v51  ;;  %v8872_v30 = vmul.f32 %v8169_v19, %v17043_v5  ;;  %v17051_v28 = vld [vmem:[#allocation161_spill] sm:$0xff]  ;;  %11515 = vrcp.f32 %v15302_v21  ;;  %v17052_v43 = vld [vmem:[#allocation20_spill] sm:$0xff]  ;;  %vm15352_vm2 = vmor %vm8341_vm1, %vm8342_vm0 }
 0x775   : > { %v10725_v51 = vmul.f32 -1.442695, %v17051_v28  ;;  %v11514_v25 = vpop.eup %11513  ;;  %v17053_v5 = vld [vmem:[#allocation21_spill] sm:$0xff]  ;;  %vm8226_vm11 = vcmp.eq.f32.partialorder %v8225_v24, 8.507059e+37  ;;  %v8338_v50 = vsub.f32 1.0, %v8337_v3  ;;  %v17056_v24 = vld [vmem:[#allocation162_spill] sm:$0xff]  ;;  %vm8401_vm5 = vweird.f32 %v15302_v21 }
 0x776   : > { %v15300_v1 = vmul.f32 %v8868_v35, %v5454_v12  ;;  %v8224_v12 = vsel %vm8223_vm10, %v15259_v52, %v8220_v23  ;;  %v15324_v19 = vadd.f32 1.0, %v11514_v25  ;;  %v8280_v52 = vadd.f32 %v15286_v60, %v8279_v39 }
 0x777   : > { %11517 = vpow2.f32 %v10725_v51  ;;  %v8229_v14 = vsel %vm8226_vm11, %v8228_v11, %v8224_v12  ;;  %v10729_v45 = vmul.f32 -1.442695, %v17056_v24  ;;  %v8285_v51 = vand.u32 2147483647, %v15256_v17 }
 0x778   : > { %11519 = vrcp.f32 %v15324_v19  ;;  %v8284_v25 = vsel %vm8283_vm14, %v15286_v60, %v8280_v52  ;;  %vm8461_vm9 = vweird.f32 %v15324_v19 }
 0x779   : > { %v5366_v54 = vpop.f32.mrf.mxu2  ;;  %11521 = vpow2.f32 %v10729_v45  ;;  %vm8286_vm15 = vcmp.eq.f32.partialorder %v8285_v51, 8.507059e+37  ;;  %v17059_v45 = vld [vmem:[#allocation163_spill] sm:$0xff] }
 0x77a   : > { %v5367_v37 = vadd.f32 %v5366_v54, %v5278_v16  ;;  %v5455_v63 = vpop.f32.mrf.mxu3  ;;  %v5191_v0 = vpop.f32.mrf.mxu0 }
 0x77b   : > { %v5280_v7 = vpop.f32.mrf.mxu1 }
 0x77c   : > { %v5456_v35 = vadd.f32 %v5455_v63, %v5367_v37  ;;  %v5281_v26 = vadd.f32 %v5280_v7, %v5191_v0  ;;  %v15328_v63 = vpop.eup %11515  ;;  %v8287_v0 = vand.u32 2147483648, %v15256_v17 }
 0x77d   : > { %5506 = vmatmul.bf16.gmra.mxu0 %v17052_v43  ;;  %5595 = vmatmul.bf16.gmra.mxu1 %v17053_v5  ;;  %v11518_v43 = vpop.eup %11517  ;;  %v8397_v12 = vmul.f32 %v15328_v63, %v15302_v21  ;;  %vm8402_vm4 = vweird.f32 %v15328_v63 }
 0x77e   : > { %v15319_v16 = vmul.f32 %v8872_v30, %v5456_v35  ;;  %5684 = vmatmul.bf16.gmra.mxu2 %v17054_v47  ;;  %v8876_v30 = vmul.f32 %v8229_v14, %v17044_v62  ;;  %v8288_v5 = vor.u32 1.1754944e-38, %v8287_v0  ;;  %v15344_v47 = vadd.f32 1.0, %v11518_v43  ;;  %v15347_v52 = vpop.eup %11519  ;;  %vm8403_vm6 = vmor %vm8401_vm5, %vm8402_vm4 }
 0x77f   : > { %5773 = vmatmul.bf16.gmra.mxu3 %v17055_v58  ;;  %v8347_v58 = vand.u32 2147483648, %v15282_v33  ;;  %v8398_v14 = vsub.f32 1.0, %v8397_v12  ;;  %v8457_v43 = vmul.f32 %v15347_v52, %v15324_v19  ;;  %v17061_v12 = vld [vmem:[#allocation25_spill] sm:$0xff]  ;;  %v8407_v0 = vand.u32 2147483648, %v15302_v21 }
 0x780   : > { %v8289_v62 = vsel %vm8286_vm15, %v8288_v5, %v8284_v25  ;;  %11523 = vrcp.f32 %v15344_v47  ;;  %v17062_v5 = vld [vmem:[#allocation26_spill] sm:$0xff]  ;;  %vm8462_vm8 = vweird.f32 %v15347_v52  ;;  %vm8521_vm13 = vweird.f32 %v15344_v47 }
 0x781   : > { %v5369_v54 = vpop.f32.mrf.mxu2  ;;  %vm8463_vm10 = vmor %vm8461_vm9, %vm8462_vm8 }
 0x782   : > { %v5370_v23 = vadd.f32 %v5369_v54, %v5281_v26  ;;  %v5458_v13 = vpop.f32.mrf.mxu3  ;;  %v5193_v37 = vpop.f32.mrf.mxu0  ;;  %v8339_v26 = vmul.f32 %v15304_v36, %v8338_v50 }
 0x783   : > { %v5282_v7 = vpop.f32.mrf.mxu1 }
 0x784   : > { %v5459_v35 = vadd.f32 %v5458_v13, %v5370_v23  ;;  %v5283_v3 = vadd.f32 %v5282_v7, %v5193_v37  ;;  %v8340_v17 = vadd.f32 %v15304_v36, %v8339_v26  ;;  %v8345_v23 = vand.u32 2147483647, %v15282_v33  ;;  %v17060_v26 = vld [vmem:[#allocation24_spill] sm:$0xff] }
 0x785   : > { %v8880_v37 = vmul.f32 %v8289_v62, %v17045_v6  ;;  %v10733_v7 = vmul.f32 -1.442695, %v17059_v45  ;;  %v8348_v33 = vor.u32 1.1754944e-38, %v8347_v58  ;;  %v8399_v6 = vmul.f32 %v15328_v63, %v8398_v14  ;;  %v17063_v62 = vld [vmem:[#allocation27_spill] sm:$0xff] }
 0x786   : > { %v15340_v39 = vmul.f32 %v8876_v30, %v5459_v35  ;;  %v11522_v35 = vpop.eup %11521  ;;  %vm8346_vm3 = vcmp.eq.f32.partialorder %v8345_v23, 8.507059e+37  ;;  %v8458_v14 = vsub.f32 1.0, %v8457_v43  ;;  %v8405_v23 = vand.u32 2147483647, %v15302_v21 }
 0x787   : > { %11525 = vpow2.f32 %v10733_v7  ;;  %v8400_v58 = vadd.f32 %v15328_v63, %v8399_v6  ;;  %v8408_v21 = vor.u32 1.1754944e-38, %v8407_v0  ;;  %v17065_v0 = vld [vmem:[#allocation165_spill] sm:$0xff] }
 0x788   : > { %vm8406_vm7 = vcmp.eq.f32.partialorder %v8405_v23, 8.507059e+37 }
 0x789   : > { %v5371_v11 = vpop.f32.mrf.mxu2 }
 0x78a   : > { %v5372_v60 = vadd.f32 %v5371_v11, %v5283_v3  ;;  %v5460_v50 = vpop.f32.mrf.mxu3  ;;  %v5196_v54 = vpop.f32.mrf.mxu0  ;;  %v8344_v3 = vsel %vm15352_vm2, %v15304_v36, %v8340_v17  ;;  %v15370_v17 = vadd.f32 1.0, %v11522_v35 }
 0x78b   : > { %v5285_v13 = vpop.f32.mrf.mxu1  ;;  %v8349_v36 = vsel %vm8346_vm3, %v8348_v33, %v8344_v3  ;;  %v8404_v33 = vsel %vm8403_vm6, %v15328_v63, %v8400_v58 }
 0x78c   : > { %v5461_v30 = vadd.f32 %v5460_v50, %v5372_v60  ;;  %v5286_v51 = vadd.f32 %v5285_v13, %v5196_v54  ;;  %v15374_v13 = vpop.eup %11523  ;;  %11527 = vrcp.f32 %v15370_v17  ;;  %vm8581_vm1 = vweird.f32 %v15370_v17 }
 0x78d   : > { %5511 = vmatmul.bf16.gmra.mxu0 %v17060_v26  ;;  %5600 = vmatmul.bf16.gmra.mxu1 %v17061_v12  ;;  %v8517_v6 = vmul.f32 %v15374_v13, %v15344_v47  ;;  %v8409_v12 = vsel %vm8406_vm7, %v8408_v21, %v8404_v33  ;;  %v17068_v21 = vld [vmem:[#allocation30_spill] sm:$0xff]  ;;  %vm8522_vm12 = vweird.f32 %v15374_v13 }
 0x78e   : > { %v15365_v25 = vmul.f32 %v8880_v37, %v5461_v30  ;;  %5689 = vmatmul.bf16.gmra.mxu2 %v17062_v5  ;;  %v8884_v37 = vmul.f32 %v8349_v36, %v17046_v15  ;;  %v17064_v30 = vld [vmem:[#allocation164_spill] sm:$0xff]  ;;  %v8459_v15 = vmul.f32 %v15347_v52, %v8458_v14  ;;  %v8888_v23 = vmul.f32 %v8409_v12, %v17049_v53  ;;  %v17067_v53 = vld [vmem:[#allocation29_spill] sm:$0xff]  ;;  %vm8523_vm14 = vmor %vm8521_vm13, %vm8522_vm12 }
 0x78f   : > { %5778 = vmatmul.bf16.gmra.mxu3 %v17063_v62  ;;  %v10737_v35 = vmul.f32 -1.442695, %v17064_v30  ;;  %v8518_v63 = vsub.f32 1.0, %v8517_v6 }
 0x791   : > { %v5374_v11 = vpop.f32.mrf.mxu2  ;;  %11529 = vpow2.f32 %v10737_v35 }
 0x792   : > { %v5375_v60 = vadd.f32 %v5374_v11, %v5286_v51  ;;  %v5463_v50 = vpop.f32.mrf.mxu3  ;;  %v5198_v54 = vpop.f32.mrf.mxu0  ;;  %v8460_v11 = vadd.f32 %v15347_v52, %v8459_v15 }
 0x793   : > { %v5287_v7 = vpop.f32.mrf.mxu1  ;;  %v11526_v51 = vpop.eup %11525 }
 0x794   : > { %v5464_v3 = vadd.f32 %v5463_v50, %v5375_v60  ;;  %v5288_v26 = vadd.f32 %v5287_v7, %v5198_v54  ;;  %v15390_v5 = vadd.f32 1.0, %v11526_v51  ;;  %v15392_v36 = vpop.eup %11527  ;;  %v8465_v50 = vand.u32 2147483647, %v15324_v19 }
 0x795   : > { %v8467_v54 = vand.u32 2147483648, %v15324_v19  ;;  %v10741_v7 = vmul.f32 -1.442695, %v17065_v0  ;;  %v8577_v51 = vmul.f32 %v15392_v36, %v15370_v17  ;;  %v8464_v15 = vsel %vm8463_vm10, %v15347_v52, %v8460_v11 }
 0x796   : > { %v15388_v43 = vmul.f32 %v8884_v37, %v5464_v3  ;;  %11531 = vrcp.f32 %v15390_v5  ;;  %v8519_v19 = vmul.f32 %v15374_v13, %v8518_v63  ;;  %vm8466_vm11 = vcmp.eq.f32.partialorder %v8465_v50, 8.507059e+37  ;;  %v17070_v50 = vld [vmem:[#allocation166_spill] sm:$0xff] }
 0x797   : > { %v11530_v33 = vpop.eup %11529  ;;  %v8468_v12 = vor.u32 1.1754944e-38, %v8467_v54  ;;  %11533 = vpow2.f32 %v10741_v7  ;;  %v8527_v54 = vand.u32 2147483648, %v15344_v47  ;;  %v10618_v7 = vmul.f32 -1.442695, %v17070_v50 }
 0x798   : > { %v8520_v52 = vadd.f32 %v15374_v13, %v8519_v19  ;;  %vm8582_vm0 = vweird.f32 %v15392_v36  ;;  %vm8641_vm5 = vweird.f32 %v15390_v5 }
 0x799   : > { %v5376_v62 = vpop.f32.mrf.mxu2  ;;  %vm15440_vm2 = vmor %vm8581_vm1, %vm8582_vm0 }
 0x79a   : > { %v5377_v58 = vadd.f32 %v5376_v62, %v5288_v26  ;;  %v5465_v14 = vpop.f32.mrf.mxu3  ;;  %v5201_v60 = vpop.f32.mrf.mxu0  ;;  %v17066_v26 = vld [vmem:[#allocation28_spill] sm:$0xff]  ;;  %v17069_v62 = vld [vmem:[#allocation31_spill] sm:$0xff] }
 0x79b   : > { %v5290_v37 = vpop.f32.mrf.mxu1 }
 0x79c   : > { %v5466_v35 = vadd.f32 %v5465_v14, %v5377_v58  ;;  %v5291_v3 = vadd.f32 %v5290_v37, %v5201_v60  ;;  %v8469_v58 = vsel %vm8466_vm11, %v8468_v12, %v8464_v15  ;;  %v8578_v14 = vsub.f32 1.0, %v8577_v51 }
 0x79d   : > { %5516 = vmatmul.bf16.gmra.mxu0 %v17066_v26  ;;  %5605 = vmatmul.bf16.gmra.mxu1 %v17067_v53  ;;  %v15412_v60 = vadd.f32 1.0, %v11530_v33  ;;  %v8892_v51 = vmul.f32 %v8469_v58, %v17050_v22  ;;  %v8525_v33 = vand.u32 2147483647, %v15344_v47 }
 0x79e   : > { %v15407_v6 = vmul.f32 %v8888_v23, %v5466_v35  ;;  %5694 = vmatmul.bf16.gmra.mxu2 %v17068_v21  ;;  %v15416_v35 = vpop.eup %11531  ;;  %v8524_v21 = vsel %vm8523_vm14, %v15374_v13, %v8520_v52 }
 0x79f   : > { %5783 = vmatmul.bf16.gmra.mxu3 %v17069_v62  ;;  %11535 = vrcp.f32 %v15412_v60  ;;  %v11534_v53 = vpop.eup %11533  ;;  %v8637_v12 = vmul.f32 %v15416_v35, %v15390_v5  ;;  %vm8526_vm15 = vcmp.eq.f32.partialorder %v8525_v33, 8.507059e+37  ;;  %vm8642_vm4 = vweird.f32 %v15416_v35 }
 0x7a0   : > { %11537 = vpow2.f32 %v10618_v7  ;;  %v15432_v58 = vadd.f32 1.0, %v11534_v53  ;;  %v8587_v7 = vand.u32 2147483648, %v15370_v17  ;;  %vm8643_vm6 = vmor %vm8641_vm5, %vm8642_vm4  ;;  %vm8701_vm9 = vweird.f32 %v15412_v60 }
 0x7a1   : > { %v5379_v37 = vpop.f32.mrf.mxu2 }
 0x7a2   : > { %v5380_v11 = vadd.f32 %v5379_v37, %v5291_v3  ;;  %v5468_v63 = vpop.f32.mrf.mxu3  ;;  %v5203_v23 = vpop.f32.mrf.mxu0  ;;  %v8579_v3 = vmul.f32 %v15392_v36, %v8578_v14  ;;  %v8528_v37 = vor.u32 1.1754944e-38, %v8527_v54  ;;  %v8585_v54 = vand.u32 2147483647, %v15370_v17 }
 0x7a3   : > { %v5292_v26 = vpop.f32.mrf.mxu1  ;;  %11539 = vrcp.f32 %v15432_v58  ;;  %vm8761_vm13 = vweird.f32 %v15432_v58 }
 0x7a4   : > { %v5469_v15 = vadd.f32 %v5468_v63, %v5380_v11  ;;  %v5293_v19 = vadd.f32 %v5292_v26, %v5203_v23  ;;  %v8529_v22 = vsel %vm8526_vm15, %v8528_v37, %v8524_v21  ;;  %v8580_v47 = vadd.f32 %v15392_v36, %v8579_v3  ;;  %v17074_v37 = vld [vmem:[#allocation32_spill] sm:$0xff] }
 0x7a5   : > { %v8638_v11 = vsub.f32 1.0, %v8637_v12  ;;  %v15434_v52 = vpop.eup %11535  ;;  %vm8586_vm3 = vcmp.eq.f32.partialorder %v8585_v54, 8.507059e+37  ;;  %v8647_v54 = vand.u32 2147483648, %v15390_v5 }
 0x7a6   : > { %v15428_v62 = vmul.f32 %v8892_v51, %v5469_v15  ;;  %v8896_v51 = vmul.f32 %v8529_v22, %v17051_v28  ;;  %v17073_v15 = vld [vmem:[#allocation167_spill] sm:$0xff]  ;;  %v11538_v21 = vpop.eup %11537  ;;  %v8584_v12 = vsel %vm15440_vm2, %v15392_v36, %v8580_v47  ;;  %v8697_v28 = vmul.f32 %v15434_v52, %v15412_v60 }
 0x7a7   : > { %v10622_v3 = vmul.f32 -1.442695, %v17073_v15  ;;  %v8639_v17 = vmul.f32 %v15416_v35, %v8638_v11  ;;  %v15458_v36 = vadd.f32 1.0, %v11538_v21  ;;  %v17079_v21 = vld [vmem:[#allocation168_spill] sm:$0xff]  ;;  %vm8702_vm8 = vweird.f32 %v15434_v52 }
 0x7a8   : > { %v8698_v33 = vsub.f32 1.0, %v8697_v28  ;;  %vm8703_vm10 = vmor %vm8701_vm9, %vm8702_vm8 }
 0x7a9   : > { %v5381_v14 = vpop.f32.mrf.mxu2  ;;  %11541 = vpow2.f32 %v10622_v3  ;;  %v8640_v11 = vadd.f32 %v15416_v35, %v8639_v17  ;;  %v10626_v3 = vmul.f32 -1.442695, %v17079_v21  ;;  %vm6916_vm1 = vweird.f32 %v15458_v36 }
 0x7aa   : > { %v5382_v63 = vadd.f32 %v5381_v14, %v5293_v19  ;;  %v5470_v23 = vpop.f32.mrf.mxu3  ;;  %v5206_v13 = vpop.f32.mrf.mxu0  ;;  %v17076_v14 = vld [vmem:[#allocation33_spill] sm:$0xff]  ;;  %11543 = vrcp.f32 %v15458_v36 }
 0x7ab   : > { %v5295_v26 = vpop.f32.mrf.mxu1  ;;  %11545 = vpow2.f32 %v10626_v3 }
 0x7ac   : > { %v5471_v19 = vadd.f32 %v5470_v23, %v5382_v63  ;;  %v5296_v53 = vadd.f32 %v5295_v26, %v5206_v13  ;;  %v17077_v63 = vld [vmem:[#allocation34_spill] sm:$0xff]  ;;  %v8588_v23 = vor.u32 1.1754944e-38, %v8587_v7  ;;  %v17078_v13 = vld [vmem:[#allocation35_spill] sm:$0xff]  ;;  %v8645_v7 = vand.u32 2147483647, %v15390_v5 }
 0x7ad   : > { %5521 = vmatmul.bf16.gmra.mxu0 %v17074_v37  ;;  %5610 = vmatmul.bf16.gmra.mxu1 %v17076_v14  ;;  %v15462_v14 = vpop.eup %11539 }
 0x7ae   : > { %v15453_v22 = vmul.f32 %v8896_v51, %v5471_v19  ;;  %5699 = vmatmul.bf16.gmra.mxu2 %v17077_v63  ;;  %v8589_v47 = vsel %vm8586_vm3, %v8588_v23, %v8584_v12  ;;  %v8644_v23 = vsel %vm8643_vm6, %v15416_v35, %v8640_v11  ;;  %v8757_v5 = vmul.f32 %v15462_v14, %v15432_v58 }
 0x7af   : > { %5788 = vmatmul.bf16.gmra.mxu3 %v17078_v13  ;;  %v8900_v63 = vmul.f32 %v8589_v47, %v17056_v24  ;;  %v8699_v13 = vmul.f32 %v15434_v52, %v8698_v33  ;;  %vm8646_vm7 = vcmp.eq.f32.partialorder %v8645_v7, 8.507059e+37  ;;  %v8707_v7 = vand.u32 2147483648, %v15412_v60 }
 0x7b0   : > { %17075 = vst [vmem:[#allocation36_spill] sm:$0xff] %v15453_v22  ;;  %v8648_v22 = vor.u32 1.1754944e-38, %v8647_v54  ;;  %v8758_v35 = vsub.f32 1.0, %v8757_v5  ;;  %v8705_v54 = vand.u32 2147483647, %v15412_v60  ;;  %vm8762_vm12 = vweird.f32 %v15462_v14 }
 0x7b1   : > { %v5384_v26 = vpop.f32.mrf.mxu2  ;;  %vm8763_vm14 = vmor %vm8761_vm13, %vm8762_vm12 }
 0x7b2   : > { %v5385_v51 = vadd.f32 %v5384_v26, %v5296_v53  ;;  %v5473_v19 = vpop.f32.mrf.mxu3  ;;  %v5208_v37 = vpop.f32.mrf.mxu0  ;;  %v8649_v24 = vsel %vm8646_vm7, %v8648_v22, %v8644_v23  ;;  %v8759_v60 = vmul.f32 %v15462_v14, %v8758_v35  ;;  %vm8706_vm11 = vcmp.eq.f32.partialorder %v8705_v54, 8.507059e+37  ;;  %v17081_v54 = vld [vmem:[#allocation170_spill] sm:$0xff] }
 0x7b3   : > { %v5297_v12 = vpop.f32.mrf.mxu1  ;;  %v11542_v53 = vpop.eup %11541  ;;  %v8904_v3 = vmul.f32 %v8649_v24, %v17059_v45  ;;  %v8708_v45 = vor.u32 1.1754944e-38, %v8707_v7  ;;  %v10634_v7 = vmul.f32 -1.442695, %v17081_v54 }
 0x7b4   : > { %v5474_v17 = vadd.f32 %v5473_v19, %v5385_v51  ;;  %v5298_v28 = vadd.f32 %v5297_v12, %v5208_v37  ;;  %v15478_v47 = vadd.f32 1.0, %v11542_v53  ;;  %v15480_v19 = vpop.eup %11543  ;;  %v8700_v37 = vadd.f32 %v15434_v52, %v8699_v13 }
 0x7b5   : > { %v11546_v13 = vpop.eup %11545  ;;  %vm6917_vm0 = vweird.f32 %v15480_v19 }
 0x7b6   : > { %v15476_v26 = vmul.f32 %v8900_v63, %v5474_v17  ;;  %v17080_v63 = vld [vmem:[#allocation169_spill] sm:$0xff]  ;;  %11547 = vrcp.f32 %v15478_v47  ;;  %v8704_v5 = vsel %vm8703_vm10, %v15434_v52, %v8700_v37  ;;  %v15500_v24 = vadd.f32 1.0, %v11546_v13  ;;  %vm15527_vm2 = vmor %vm6916_vm1, %vm6917_vm0 }
 0x7b7   : > { %v10630_v17 = vmul.f32 -1.442695, %v17080_v63  ;;  %v8760_v52 = vadd.f32 %v15462_v14, %v8759_v60  ;;  %vm6976_vm5 = vweird.f32 %v15478_v47 }
 0x7b8   : > { %vm7036_vm9 = vweird.f32 %v15500_v24 }
 0x7b9   : > { %v5386_v51 = vpop.f32.mrf.mxu2  ;;  %11549 = vpow2.f32 %v10630_v17 }
 0x7ba   : > { %v5387_v11 = vadd.f32 %v5386_v51, %v5298_v28  ;;  %v5475_v33 = vpop.f32.mrf.mxu3  ;;  %v5211_v12 = vpop.f32.mrf.mxu0  ;;  %v6912_v28 = vmul.f32 %v15480_v19, %v15458_v36  ;;  %11551 = vrcp.f32 %v15500_v24 }
 0x7bb   : > { %v5300_v22 = vpop.f32.mrf.mxu1  ;;  %11553 = vpow2.f32 %v10634_v7 }
 0x7bc   : > { %v5476_v53 = vadd.f32 %v5475_v33, %v5387_v11  ;;  %v5301_v23 = vadd.f32 %v5300_v22, %v5211_v12  ;;  %v8709_v11 = vsel %vm8706_vm11, %v8708_v45, %v8704_v5  ;;  %v6913_v33 = vsub.f32 1.0, %v6912_v28 }
 0x7bd   : > { %5526 = vmatmul.bf16.gmra.mxu0 %v16840_v27  ;;  %5615 = vmatmul.bf16.gmra.mxu1 %v16842_v2  ;;  %v15504_v2 = vpop.eup %11547  ;;  %v8764_v28 = vsel %vm8763_vm14, %v15462_v14, %v8760_v52 }
 0x7be   : > { %v15495_v51 = vmul.f32 %v8904_v3, %v5476_v53  ;;  %5704 = vmatmul.bf16.gmra.mxu2 %v16843_v57  ;;  %v8765_v57 = vand.u32 2147483647, %v15432_v58  ;;  %v8908_v3 = vmul.f32 %v8709_v11, %v17064_v30  ;;  %v6972_v5 = vmul.f32 %v15504_v2, %v15478_v47 }
 0x7bf   : > { %5793 = vmatmul.bf16.gmra.mxu3 %v16974_v56  ;;  %v8767_v56 = vand.u32 2147483648, %v15432_v58  ;;  %v11550_v13 = vpop.eup %11549  ;;  %vm6977_vm4 = vweird.f32 %v15504_v2 }
 0x7c0   : > { %vm8766_vm15 = vcmp.eq.f32.partialorder %v8765_v57, 8.507059e+37  ;;  %v15520_v11 = vadd.f32 1.0, %v11550_v13  ;;  %vm6978_vm6 = vmor %vm6976_vm5, %vm6977_vm4 }
 0x7c1   : > { %v5389_v27 = vpop.f32.mrf.mxu2  ;;  %v8768_v58 = vor.u32 1.1754944e-38, %v8767_v56 }
 0x7c2   : > { %v5390_v37 = vadd.f32 %v5389_v27, %v5301_v23  ;;  %v5478_v35 = vpop.f32.mrf.mxu3  ;;  %v5213_v12 = vpop.f32.mrf.mxu0  ;;  %v6914_v23 = vmul.f32 %v15480_v19, %v6913_v33  ;;  %11555 = vrcp.f32 %v15520_v11  ;;  %vm7096_vm13 = vweird.f32 %v15520_v11 }
 0x7c3   : > { %v5302_v22 = vpop.f32.mrf.mxu1  ;;  %v8769_v45 = vsel %vm8766_vm15, %v8768_v58, %v8764_v28  ;;  %v15522_v33 = vpop.eup %11551 }
 0x7c4   : > { %v5479_v17 = vadd.f32 %v5478_v35, %v5390_v37  ;;  %v5303_v53 = vadd.f32 %v5302_v22, %v5213_v12  ;;  %v6915_v30 = vadd.f32 %v15480_v19, %v6914_v23  ;;  %v6973_v37 = vsub.f32 1.0, %v6972_v5  ;;  %v11554_v13 = vpop.eup %11553 }
 0x7c5   : > { %v6922_v12 = vand.u32 2147483648, %v15458_v36  ;;  %v8912_v57 = vmul.f32 %v8769_v45, %v17065_v0  ;;  %v6920_v22 = vand.u32 2147483647, %v15458_v36  ;;  %v7032_v28 = vmul.f32 %v15522_v33, %v15500_v24  ;;  %v17085_v45 = vld [vmem:[#allocation43_spill] sm:$0xff] }
 0x7c6   : > { %v15516_v60 = vmul.f32 %v8908_v3, %v5479_v17  ;;  %v17084_v3 = vld [vmem:[#allocation171_spill] sm:$0xff]  ;;  %v6974_v0 = vmul.f32 %v15504_v2, %v6973_v37  ;;  %vm7037_vm8 = vweird.f32 %v15522_v33 }
 0x7c7   : > { %v10638_v17 = vmul.f32 -1.442695, %v17084_v3  ;;  %v6923_v58 = vor.u32 1.1754944e-38, %v6922_v12  ;;  %vm6921_vm3 = vcmp.eq.f32.partialorder %v6920_v22, 8.507059e+37  ;;  %v17086_v12 = vld [vmem:[#allocation172_spill] sm:$0xff]  ;;  %vm15573_vm10 = vmor %vm7036_vm9, %vm7037_vm8 }
 0x7c8   : > { %v6980_v22 = vand.u32 2147483647, %v15478_v47 }
 0x7c9   : > { %v5391_v27 = vpop.f32.mrf.mxu2  ;;  %11557 = vpow2.f32 %v10638_v17 }
 0x7ca   : > { %v5392_v14 = vadd.f32 %v5391_v27, %v5303_v53  ;;  %v5480_v52 = vpop.f32.mrf.mxu3  ;;  %v5492_v35 = vpop.f32.mrf.mxu0  ;;  %v6919_v53 = vsel %vm15527_vm2, %v15480_v19, %v6915_v30  ;;  %v15546_v19 = vadd.f32 1.0, %v11554_v13  ;;  %v7033_v27 = vsub.f32 1.0, %v7032_v28 }
 0x7cb   : > { %v5581_v56 = vpop.f32.mrf.mxu1  ;;  %v6924_v30 = vsel %vm6921_vm3, %v6923_v58, %v6919_v53  ;;  %vm6981_vm7 = vcmp.eq.f32.partialorder %v6980_v22, 8.507059e+37  ;;  %v7040_v22 = vand.u32 2147483647, %v15500_v24 }
 0x7cc   : > { %v5481_v23 = vadd.f32 %v5480_v52, %v5392_v14  ;;  %v5582_v36 = vadd.f32 %v5581_v56, %v5492_v35  ;;  %v10642_v56 = vmul.f32 -1.442695, %v17086_v12  ;;  %v8789_v7 = vmul.f32 %v6924_v30, %v17070_v50  ;;  %v17087_v50 = vld [vmem:[#allocation96_spill] sm:$0xff] }
 0x7cd   : > { %5531 = vmatmul.bf16.gmra.mxu0 %v16981_v20  ;;  %5620 = vmatmul.bf16.gmra.mxu1 %v16982_v34  ;;  %v6975_v20 = vadd.f32 %v15504_v2, %v6974_v0  ;;  %v15550_v34 = vpop.eup %11555  ;;  %11559 = vrcp.f32 %v15546_v19  ;;  %vm7041_vm11 = vcmp.eq.f32.partialorder %v7040_v22, 8.507059e+37  ;;  %v7102_v22 = vand.u32 2147483648, %v15520_v11 }
 0x7ce   : > { %v15541_v5 = vmul.f32 %v8912_v57, %v5481_v23  ;;  %5709 = vmatmul.bf16.gmra.mxu2 %v16983_v8  ;;  %v6982_v8 = vand.u32 2147483648, %v15478_v47  ;;  %v7034_v23 = vmul.f32 %v15522_v33, %v7033_v27  ;;  %v7092_v28 = vmul.f32 %v15550_v34, %v15520_v11 }
 0x7cf   : > { %5798 = vmatmul.bf16.gmra.mxu3 %v17085_v45  ;;  %v11558_v13 = vpop.eup %11557  ;;  %v6979_v53 = vsel %vm6978_vm6, %v15504_v2, %v6975_v20  ;;  %11561 = vpow2.f32 %v10642_v56  ;;  %v7042_v56 = vand.u32 2147483648, %v15500_v24  ;;  %vm7097_vm12 = vweird.f32 %v15550_v34 }
 0x7d0   : > { %v7035_v30 = vadd.f32 %v15522_v33, %v7034_v23  ;;  %v15565_v27 = vadd.f32 1.0, %v11558_v13  ;;  %v7093_v2 = vsub.f32 1.0, %v7092_v28  ;;  %vm7098_vm14 = vmor %vm7096_vm13, %vm7097_vm12  ;;  %vm7156_vm1 = vweird.f32 %v15546_v19 }
 0x7d1   : > { %v5670_v14 = vpop.f32.mrf.mxu2 }
 0x7d2   : > { %v5671_v37 = vadd.f32 %v5670_v14, %v5582_v36  ;;  %v5759_v52 = vpop.f32.mrf.mxu3  ;;  %v5494_v35 = vpop.f32.mrf.mxu0  ;;  %v6983_v36 = vor.u32 1.1754944e-38, %v6982_v8  ;;  %v7039_v28 = vsel %vm15573_vm10, %v15522_v33, %v7035_v30  ;;  %11563 = vrcp.f32 %v15565_v27  ;;  %v17095_v30 = vld [vmem:[#allocation97_spill] sm:$0xff] }
 0x7d3   : > { %v5583_v57 = vpop.f32.mrf.mxu1  ;;  %vm7216_vm5 = vweird.f32 %v15565_v27 }
 0x7d4   : > { %v5760_v17 = vadd.f32 %v5759_v52, %v5671_v37  ;;  %v5584_v47 = vadd.f32 %v5583_v57, %v5494_v35  ;;  %v6984_v45 = vsel %vm6981_vm7, %v6983_v36, %v6979_v53  ;;  %v15567_v37 = vpop.eup %11559  ;;  %v7094_v36 = vmul.f32 %v15550_v34, %v7093_v2 }
 0x7d5   : > { %v8793_v57 = vmul.f32 %v6984_v45, %v17073_v15  ;;  %v11562_v53 = vpop.eup %11561  ;;  %v17091_v15 = vld [vmem:[#allocation45_spill] sm:$0xff]  ;;  %v7043_v45 = vor.u32 1.1754944e-38, %v7042_v56  ;;  %vm7157_vm0 = vweird.f32 %v15567_v37 }
 0x7d6   : > { %v8917_v0 = vmul.f32 %v8789_v7, %v5760_v17  ;;  %v17090_v17 = vld [vmem:[#allocation173_spill] sm:$0xff]  ;;  %v15590_v33 = vadd.f32 1.0, %v11562_v53  ;;  %v7095_v2 = vadd.f32 %v15550_v34, %v7094_v36  ;;  %vm15619_vm2 = vmor %vm7156_vm1, %vm7157_vm0 }
 0x7d7   : > { %v10646_v23 = vmul.f32 -1.442695, %v17090_v17 }
 0x7d8   : > { %v9043_v58 = vpack.c.bf16 %v8917_v0, %v17087_v50  ;;  %v7152_v0 = vmul.f32 %v15567_v37, %v15546_v19  ;;  %v15596_v56 = vpop.eup %11563  ;;  %vm7276_vm9 = vweird.f32 %v15590_v33 }
 0x7d9   : > { %v5672_v14 = vpop.f32.mrf.mxu2  ;;  %11565 = vpow2.f32 %v10646_v23  ;;  %v17096_v23 = vld [vmem:[#allocation174_spill] sm:$0xff]  ;;  %vm7217_vm4 = vweird.f32 %v15596_v56 }
 0x7da   : > { %9107 = vst [vmem:[%s13987_s23 + $0x8] sm:$0xff] %v9043_v58  ;;  %v5673_v20 = vadd.f32 %v5672_v14, %v5584_v47  ;;  %v5761_v52 = vpop.f32.mrf.mxu3  ;;  %v5497_v8 = vpop.f32.mrf.mxu0  ;;  %v17092_v58 = vld [vmem:[#allocation46_spill] sm:$0xff]  ;;  %v17093_v47 = vld [vmem:[#allocation47_spill] sm:$0xff]  ;;  %v17094_v14 = vld [vmem:[#allocation48_spill] sm:$0xff]  ;;  %v7153_v7 = vsub.f32 1.0, %v7152_v0  ;;  %11567 = vrcp.f32 %v15590_v33 }
 0x7db   : > { %v5586_v35 = vpop.f32.mrf.mxu1  ;;  %v7100_v0 = vand.u32 2147483647, %v15520_v11  ;;  %vm7218_vm6 = vmor %vm7216_vm5, %vm7217_vm4 }
 0x7dc   : > { %v5762_v13 = vadd.f32 %v5761_v52, %v5673_v20  ;;  %v5587_v24 = vadd.f32 %v5586_v35, %v5497_v8  ;;  %v7044_v52 = vsel %vm7041_vm11, %v7043_v45, %v7039_v28 }
 0x7dd   : > { %5536 = vmatmul.bf16.gmra.mxu0 %v17091_v15  ;;  %5625 = vmatmul.bf16.gmra.mxu1 %v17092_v58  ;;  %v8797_v28 = vmul.f32 %v7044_v52, %v17079_v21  ;;  %v7099_v58 = vsel %vm7098_vm14, %v15550_v34, %v7095_v2  ;;  %vm7101_vm15 = vcmp.eq.f32.partialorder %v7100_v0, 8.507059e+37  ;;  %v17097_v21 = vld [vmem:[#allocation98_spill] sm:$0xff]  ;;  %v7160_v0 = vand.u32 2147483647, %v15546_v19 }
 0x7de   : > { %v8921_v50 = vmul.f32 %v8793_v57, %v5762_v13  ;;  %5714 = vmatmul.bf16.gmra.mxu2 %v17093_v47  ;;  %v10650_v13 = vmul.f32 -1.442695, %v17096_v23  ;;  %v7212_v47 = vmul.f32 %v15596_v56, %v15565_v27 }
 0x7df   : > { %5803 = vmatmul.bf16.gmra.mxu3 %v17094_v14  ;;  %v7103_v14 = vor.u32 1.1754944e-38, %v7102_v22  ;;  %vm7161_vm3 = vcmp.eq.f32.partialorder %v7160_v0, 8.507059e+37  ;;  %v7222_v0 = vand.u32 2147483648, %v15565_v27 }
 0x7e0   : > { %v9045_v20 = vpack.c.bf16 %v8921_v50, %v17095_v30  ;;  %v7154_v50 = vmul.f32 %v15567_v37, %v7153_v7  ;;  %11569 = vpow2.f32 %v10650_v13  ;;  %v7213_v34 = vsub.f32 1.0, %v7212_v47 }
 0x7e1   : > { %v5675_v15 = vpop.f32.mrf.mxu2  ;;  %v7162_v13 = vand.u32 2147483648, %v15546_v19 }
 0x7e2   : > { %9109 = vst [vmem:[%s13987_s23 + $0x18] sm:$0xff] %v9045_v20  ;;  %v5676_v8 = vadd.f32 %v5675_v15, %v5587_v24  ;;  %v5764_v35 = vpop.f32.mrf.mxu3  ;;  %v5499_v57 = vpop.f32.mrf.mxu0  ;;  %v7104_v20 = vsel %vm7101_vm15, %v7103_v14, %v7099_v58  ;;  %v7155_v52 = vadd.f32 %v15567_v37, %v7154_v50  ;;  %v7214_v14 = vmul.f32 %v15596_v56, %v7213_v34 }
 0x7e3   : > { %v5588_v53 = vpop.f32.mrf.mxu1  ;;  %v11566_v24 = vpop.eup %11565 }
 0x7e4   : > { %v5765_v36 = vadd.f32 %v5764_v35, %v5676_v8  ;;  %v5589_v11 = vadd.f32 %v5588_v53, %v5499_v57  ;;  %v15611_v7 = vadd.f32 1.0, %v11566_v24  ;;  %v15613_v8 = vpop.eup %11567  ;;  %v8801_v53 = vmul.f32 %v7104_v20, %v17080_v63  ;;  %v17101_v63 = vld [vmem:[#allocation51_spill] sm:$0xff] }
 0x7e5   : > { %v7159_v47 = vsel %vm15619_vm2, %v15567_v37, %v7155_v52  ;;  %v7163_v20 = vor.u32 1.1754944e-38, %v7162_v13  ;;  %v17105_v52 = vld [vmem:[#allocation99_spill] sm:$0xff]  ;;  %v7215_v34 = vadd.f32 %v15596_v56, %v7214_v14  ;;  %vm7277_vm8 = vweird.f32 %v15613_v8 }
 0x7e6   : > { %v8925_v45 = vmul.f32 %v8797_v28, %v5765_v36  ;;  %v17100_v36 = vld [vmem:[#allocation175_spill] sm:$0xff]  ;;  %v11570_v58 = vpop.eup %11569  ;;  %11571 = vrcp.f32 %v15611_v7  ;;  %vm15665_vm10 = vmor %vm7276_vm9, %vm7277_vm8  ;;  %vm7336_vm13 = vweird.f32 %v15611_v7 }
 0x7e7   : > { %v10654_v50 = vmul.f32 -1.442695, %v17100_v36  ;;  %v15636_v37 = vadd.f32 1.0, %v11570_v58 }
 0x7e8   : > { %v9047_v30 = vpack.c.bf16 %v8925_v45, %v17097_v21  ;;  %v7272_v45 = vmul.f32 %v15613_v8, %v15590_v33 }
 0x7e9   : > { %v5677_v15 = vpop.f32.mrf.mxu2  ;;  %11573 = vpow2.f32 %v10654_v50  ;;  %v17106_v50 = vld [vmem:[#allocation176_spill] sm:$0xff]  ;;  %vm7396_vm1 = vweird.f32 %v15636_v37 }
 0x7ea   : > { %9111 = vst [vmem:[%s13987_s23 + $0x28] sm:$0xff] %v9047_v30  ;;  %v5678_v2 = vadd.f32 %v5677_v15, %v5589_v11  ;;  %v5766_v35 = vpop.f32.mrf.mxu3  ;;  %v5502_v22 = vpop.f32.mrf.mxu0  ;;  %v17102_v30 = vld [vmem:[#allocation52_spill] sm:$0xff]  ;;  %v17103_v11 = vld [vmem:[#allocation53_spill] sm:$0xff]  ;;  %v17104_v15 = vld [vmem:[#allocation54_spill] sm:$0xff]  ;;  %v7273_v28 = vsub.f32 1.0, %v7272_v45  ;;  %11575 = vrcp.f32 %v15636_v37 }
 0x7eb   : > { %v5591_v57 = vpop.f32.mrf.mxu1  ;;  %v7220_v45 = vand.u32 2147483647, %v15565_v27 }
 0x7ec   : > { %v5767_v24 = vadd.f32 %v5766_v35, %v5678_v2  ;;  %v5592_v19 = vadd.f32 %v5591_v57, %v5502_v22  ;;  %v7164_v35 = vsel %vm7161_vm3, %v7163_v20, %v7159_v47  ;;  %v15642_v13 = vpop.eup %11571 }
 0x7ed   : > { %5541 = vmatmul.bf16.gmra.mxu0 %v17101_v63  ;;  %5630 = vmatmul.bf16.gmra.mxu1 %v17102_v30  ;;  %v8805_v47 = vmul.f32 %v7164_v35, %v17081_v54  ;;  %v7219_v30 = vsel %vm7218_vm6, %v15596_v56, %v7215_v34  ;;  %vm7221_vm7 = vcmp.eq.f32.partialorder %v7220_v45, 8.507059e+37  ;;  %vm7337_vm12 = vweird.f32 %v15642_v13 }
 0x7ee   : > { %v8929_v21 = vmul.f32 %v8801_v53, %v5767_v24  ;;  %5719 = vmatmul.bf16.gmra.mxu2 %v17103_v11  ;;  %v10658_v24 = vmul.f32 -1.442695, %v17106_v50  ;;  %v7332_v11 = vmul.f32 %v15642_v13, %v15611_v7  ;;  %vm7338_vm14 = vmor %vm7336_vm13, %vm7337_vm12 }
 0x7ef   : > { %5808 = vmatmul.bf16.gmra.mxu3 %v17104_v15  ;;  %v7223_v15 = vor.u32 1.1754944e-38, %v7222_v0 }
 0x7f0   : > { %v9049_v2 = vpack.c.bf16 %v8929_v21, %v17105_v52  ;;  %v7274_v21 = vmul.f32 %v15613_v8, %v7273_v28  ;;  %11577 = vpow2.f32 %v10658_v24  ;;  %v7333_v56 = vsub.f32 1.0, %v7332_v11  ;;  %v17114_v24 = vld [vmem:[#allocation178_spill] sm:$0xff] }
 0x7f1   : > { %v5680_v63 = vpop.f32.mrf.mxu2  ;;  %v7224_v52 = vsel %vm7221_vm7, %v7223_v15, %v7219_v30  ;;  %v17111_v15 = vld [vmem:[#allocation59_spill] sm:$0xff] }
 0x7f2   : > { %9113 = vst [vmem:[%s13987_s23 + $0x38] sm:$0xff] %v9049_v2  ;;  %v5681_v22 = vadd.f32 %v5680_v63, %v5592_v19  ;;  %v5769_v57 = vpop.f32.mrf.mxu3  ;;  %v5504_v53 = vpop.f32.mrf.mxu0  ;;  %v7275_v2 = vadd.f32 %v15613_v8, %v7274_v21  ;;  %v8809_v0 = vmul.f32 %v7224_v52, %v17084_v3  ;;  %v7334_v3 = vmul.f32 %v15642_v13, %v7333_v56  ;;  %v17113_v52 = vld [vmem:[#allocation100_spill] sm:$0xff] }
 0x7f3   : > { %v5593_v58 = vpop.f32.mrf.mxu1  ;;  %v11574_v19 = vpop.eup %11573 }
 0x7f4   : > { %v5770_v14 = vadd.f32 %v5769_v57, %v5681_v22  ;;  %v5594_v27 = vadd.f32 %v5593_v58, %v5504_v53  ;;  %v15657_v35 = vadd.f32 1.0, %v11574_v19  ;;  %v15659_v63 = vpop.eup %11575  ;;  %v7280_v58 = vand.u32 2147483647, %v15590_v33 }
 0x7f5   : > { %v7279_v19 = vsel %vm15665_vm10, %v15613_v8, %v7275_v2  ;;  %v7392_v30 = vmul.f32 %v15659_v63, %v15636_v37  ;;  %v7335_v56 = vadd.f32 %v15642_v13, %v7334_v3  ;;  %vm7397_vm0 = vweird.f32 %v15659_v63 }
 0x7f6   : > { %v8933_v20 = vmul.f32 %v8805_v47, %v5770_v14  ;;  %v17109_v47 = vld [vmem:[#allocation177_spill] sm:$0xff]  ;;  %v11578_v21 = vpop.eup %11577  ;;  %11579 = vrcp.f32 %v15657_v35  ;;  %vm7281_vm11 = vcmp.eq.f32.partialorder %v7280_v58, 8.507059e+37  ;;  %v10666_v58 = vmul.f32 -1.442695, %v17114_v24  ;;  %vm15711_vm2 = vmor %vm7396_vm1, %vm7397_vm0 }
 0x7f7   : > { %v10662_v45 = vmul.f32 -1.442695, %v17109_v47  ;;  %v15682_v8 = vadd.f32 1.0, %v11578_v21  ;;  %v7340_v21 = vand.u32 2147483647, %v15611_v7  ;;  %vm7456_vm5 = vweird.f32 %v15657_v35 }
 0x7f8   : > { %v9051_v54 = vpack.c.bf16 %v8933_v20, %v14930_v32  ;;  %v7282_v32 = vand.u32 2147483648, %v15590_v33  ;;  %v17110_v20 = vld [vmem:[#allocation58_spill] sm:$0xff] }
 0x7f9   : > { %v5682_v28 = vpop.f32.mrf.mxu2  ;;  %11581 = vpow2.f32 %v10662_v45  ;;  %vm7341_vm15 = vcmp.eq.f32.partialorder %v7340_v21, 8.507059e+37  ;;  %vm7516_vm9 = vweird.f32 %v15682_v8 }
 0x7fa   : > { %9115 = vst [vmem:[%s13987_s23 + $0x48] sm:$0xff] %v9051_v54  ;;  %v5683_v34 = vadd.f32 %v5682_v28, %v5594_v27  ;;  %v5771_v22 = vpop.f32.mrf.mxu3  ;;  %v5507_v57 = vpop.f32.mrf.mxu0  ;;  %v7283_v54 = vor.u32 1.1754944e-38, %v7282_v32  ;;  %v17112_v27 = vld [vmem:[#allocation60_spill] sm:$0xff]  ;;  %11583 = vrcp.f32 %v15682_v8 }
 0x7fb   : > { %v5596_v53 = vpop.f32.mrf.mxu1  ;;  %11585 = vpow2.f32 %v10666_v58  ;;  %v7462_v58 = vand.u32 2147483648, %v15657_v35 }
 0x7fc   : > { %v5772_v14 = vadd.f32 %v5771_v22, %v5683_v34  ;;  %v5597_v33 = vadd.f32 %v5596_v53, %v5507_v57  ;;  %v7284_v28 = vsel %vm7281_vm11, %v7283_v54, %v7279_v19  ;;  %v15688_v32 = vpop.eup %11579 }
 0x7fd   : > { %5546 = vmatmul.bf16.gmra.mxu0 %v16877_v41  ;;  %5635 = vmatmul.bf16.gmra.mxu1 %v17110_v20  ;;  %v7393_v41 = vsub.f32 1.0, %v7392_v30  ;;  %vm7457_vm4 = vweird.f32 %v15688_v32 }
 0x7fe   : > { %v8937_v11 = vmul.f32 %v8809_v0, %v5772_v14  ;;  %5724 = vmatmul.bf16.gmra.mxu2 %v17111_v15  ;;  %v7342_v0 = vand.u32 2147483648, %v15611_v7  ;;  %v8813_v14 = vmul.f32 %v7284_v28, %v17086_v12  ;;  %v17115_v12 = vld [vmem:[#allocation101_spill] sm:$0xff]  ;;  %vm7458_vm6 = vmor %vm7456_vm5, %vm7457_vm4 }
 0x7ff   : > { %5813 = vmatmul.bf16.gmra.mxu3 %v17112_v27  ;;  %v7394_v30 = vmul.f32 %v15659_v63, %v7393_v41  ;;  %v11582_v3 = vpop.eup %11581 }
 0x800   : > { %v9053_v2 = vpack.c.bf16 %v8937_v11, %v17113_v52  ;;  %v7339_v11 = vsel %vm7338_vm14, %v15642_v13, %v7335_v56  ;;  %v7343_v15 = vor.u32 1.1754944e-38, %v7342_v0  ;;  %v15705_v41 = vpop.eup %11583 }
 0x801   : > { %v5685_v34 = vpop.f32.mrf.mxu2  ;;  %v7395_v52 = vadd.f32 %v15659_v63, %v7394_v30  ;;  %v11586_v30 = vpop.eup %11585  ;;  %vm7517_vm8 = vweird.f32 %v15705_v41 }
 0x802   : > { %9117 = vst [vmem:[%s13987_s23 + $0x58] sm:$0xff] %v9053_v2  ;;  %v5686_v22 = vadd.f32 %v5685_v34, %v5597_v33  ;;  %v5774_v57 = vpop.f32.mrf.mxu3  ;;  %v5509_v53 = vpop.f32.mrf.mxu0  ;;  %v7452_v33 = vmul.f32 %v15688_v32, %v15657_v35  ;;  %v7344_v27 = vsel %vm7341_vm15, %v7343_v15, %v7339_v11  ;;  %v15703_v2 = vadd.f32 1.0, %v11582_v3  ;;  %v17120_v15 = vld [vmem:[#allocation64_spill] sm:$0xff]  ;;  %vm15757_vm10 = vmor %vm7516_vm9, %vm7517_vm8 }
 0x803   : > { %v5598_v45 = vpop.f32.mrf.mxu1  ;;  %v8817_v0 = vmul.f32 %v7344_v27, %v17090_v17  ;;  %v7399_v3 = vsel %vm15711_vm2, %v15659_v63, %v7395_v52  ;;  %v7512_v11 = vmul.f32 %v15705_v41, %v15682_v8  ;;  %v17119_v17 = vld [vmem:[#allocation63_spill] sm:$0xff]  ;;  %v15728_v63 = vadd.f32 1.0, %v11586_v30  ;;  %v17123_v27 = vld [vmem:[#allocation102_spill] sm:$0xff] }
 0x804   : > { %v5775_v19 = vadd.f32 %v5774_v57, %v5686_v22  ;;  %v5599_v7 = vadd.f32 %v5598_v45, %v5509_v53  ;;  %v7453_v13 = vsub.f32 1.0, %v7452_v33  ;;  %v7402_v57 = vand.u32 2147483648, %v15636_v37 }
 0x805   : > { %v7400_v45 = vand.u32 2147483647, %v15636_v37  ;;  %11587 = vrcp.f32 %v15703_v2  ;;  %vm7576_vm13 = vweird.f32 %v15703_v2  ;;  %vm7636_vm1 = vweird.f32 %v15728_v63 }
 0x806   : > { %v8941_v20 = vmul.f32 %v8813_v14, %v5775_v19  ;;  %v17118_v14 = vld [vmem:[#allocation179_spill] sm:$0xff]  ;;  %v7454_v33 = vmul.f32 %v15688_v32, %v7453_v13 }
 0x807   : > { %v10670_v21 = vmul.f32 -1.442695, %v17118_v14  ;;  %vm7401_vm3 = vcmp.eq.f32.partialorder %v7400_v45, 8.507059e+37  ;;  %v17124_v45 = vld [vmem:[#allocation180_spill] sm:$0xff] }
 0x808   : > { %v9055_v54 = vpack.c.bf16 %v8941_v20, %v17115_v12  ;;  %v17121_v12 = vld [vmem:[#allocation65_spill] sm:$0xff]  ;;  %v7455_v13 = vadd.f32 %v15688_v32, %v7454_v33 }
 0x809   : > { %v5687_v28 = vpop.f32.mrf.mxu2  ;;  %11589 = vpow2.f32 %v10670_v21  ;;  %v10674_v21 = vmul.f32 -1.442695, %v17124_v45 }
 0x80a   : > { %9119 = vst [vmem:[%s13987_s23 + $0x68] sm:$0xff] %v9055_v54  ;;  %v5688_v34 = vadd.f32 %v5687_v28, %v5599_v7  ;;  %v5776_v56 = vpop.f32.mrf.mxu3  ;;  %v5512_v22 = vpop.f32.mrf.mxu0  ;;  %v7403_v54 = vor.u32 1.1754944e-38, %v7402_v57  ;;  %v17122_v7 = vld [vmem:[#allocation66_spill] sm:$0xff]  ;;  %11591 = vrcp.f32 %v15728_v63 }
 0x80b   : > { %v5601_v53 = vpop.f32.mrf.mxu1  ;;  %v15734_v57 = vpop.eup %11587  ;;  %11593 = vpow2.f32 %v10674_v21  ;;  %v17127_v21 = vld [vmem:[#allocation181_spill] sm:$0xff] }
 0x80c   : > { %v5777_v19 = vadd.f32 %v5776_v56, %v5688_v34  ;;  %v5602_v37 = vadd.f32 %v5601_v53, %v5512_v22  ;;  %v7404_v28 = vsel %vm7401_vm3, %v7403_v54, %v7399_v3  ;;  %v7513_v34 = vsub.f32 1.0, %v7512_v11 }
 0x80d   : > { %5551 = vmatmul.bf16.gmra.mxu0 %v17119_v17  ;;  %5640 = vmatmul.bf16.gmra.mxu1 %v17120_v15  ;;  %v8821_v30 = vmul.f32 %v7404_v28, %v17096_v23  ;;  %v7460_v3 = vand.u32 2147483647, %v15657_v35  ;;  %vm7577_vm12 = vweird.f32 %v15734_v57 }
 0x80e   : > { %v8945_v20 = vmul.f32 %v8817_v0, %v5777_v19  ;;  %5729 = vmatmul.bf16.gmra.mxu2 %v17121_v12  ;;  %v7514_v17 = vmul.f32 %v15705_v41, %v7513_v34  ;;  %v7463_v12 = vor.u32 1.1754944e-38, %v7462_v58  ;;  %v7520_v58 = vand.u32 2147483647, %v15682_v8  ;;  %vm7578_vm14 = vmor %vm7576_vm13, %vm7577_vm12 }
 0x80f   : > { %5818 = vmatmul.bf16.gmra.mxu3 %v17122_v7  ;;  %v11590_v33 = vpop.eup %11589  ;;  %vm7461_vm7 = vcmp.eq.f32.partialorder %v7460_v3, 8.507059e+37 }
 0x810   : > { %v9057_v52 = vpack.c.bf16 %v8945_v20, %v17123_v27  ;;  %v7459_v20 = vsel %vm7458_vm6, %v15688_v32, %v7455_v13  ;;  %v7515_v7 = vadd.f32 %v15705_v41, %v7514_v17  ;;  %v15749_v27 = vadd.f32 1.0, %v11590_v33  ;;  %v15751_v28 = vpop.eup %11591 }
 0x811   : > { %v5690_v56 = vpop.f32.mrf.mxu2  ;;  %v7464_v54 = vsel %vm7461_vm7, %v7463_v12, %v7459_v20  ;;  %v11594_v3 = vpop.eup %11593  ;;  %v7632_v17 = vmul.f32 %v15751_v28, %v15728_v63  ;;  %vm7521_vm11 = vcmp.eq.f32.partialorder %v7520_v58, 8.507059e+37  ;;  %vm7637_vm0 = vweird.f32 %v15751_v28 }
 0x812   : > { %9121 = vst [vmem:[%s13987_s23 + $0x78] sm:$0xff] %v9057_v52  ;;  %v5691_v22 = vadd.f32 %v5690_v56, %v5602_v37  ;;  %v5779_v53 = vpop.f32.mrf.mxu3  ;;  %v5514_v0 = vpop.f32.mrf.mxu0  ;;  %v7572_v37 = vmul.f32 %v15734_v57, %v15703_v2  ;;  %11595 = vrcp.f32 %v15749_v27  ;;  %vm15803_vm2 = vmor %vm7636_vm1, %vm7637_vm0  ;;  %vm7696_vm5 = vweird.f32 %v15749_v27 }
 0x813   : > { %v5603_v19 = vpop.f32.mrf.mxu1 }
 0x814   : > { %v5780_v11 = vadd.f32 %v5779_v53, %v5691_v22  ;;  %v5604_v35 = vadd.f32 %v5603_v19, %v5514_v0  ;;  %v7573_v32 = vsub.f32 1.0, %v7572_v37  ;;  %v8825_v53 = vmul.f32 %v7464_v54, %v17100_v36 }
 0x815   : > { %v10678_v19 = vmul.f32 -1.442695, %v17127_v21 }
 0x816   : > { %v8949_v15 = vmul.f32 %v8821_v30, %v5780_v11  ;;  %v7519_v11 = vsel %vm15757_vm10, %v15705_v41, %v7515_v7  ;;  %v7574_v36 = vmul.f32 %v15734_v57, %v7573_v32  ;;  %v15774_v41 = vadd.f32 1.0, %v11594_v3  ;;  %v17128_v7 = vld [vmem:[#allocation182_spill] sm:$0xff] }
 0x817   : > { %11597 = vpow2.f32 %v10678_v19 }
 0x818   : > { %v9059_v23 = vpack.c.bf16 %v8949_v15, %v15032_v42  ;;  %v7522_v42 = vand.u32 2147483648, %v15682_v8  ;;  %v15780_v54 = vpop.eup %11595  ;;  %11599 = vrcp.f32 %v15774_v41  ;;  %vm7756_vm9 = vweird.f32 %v15774_v41 }
 0x819   : > { %v5692_v52 = vpop.f32.mrf.mxu2  ;;  %vm7697_vm4 = vweird.f32 %v15780_v54 }
 0x81a   : > { %9123 = vst [vmem:[%s13987_s23 + $0x88] sm:$0xff] %v9059_v23  ;;  %v5693_v34 = vadd.f32 %v5692_v52, %v5604_v35  ;;  %v5781_v56 = vpop.f32.mrf.mxu3  ;;  %v5517_v13 = vpop.f32.mrf.mxu0  ;;  %v7523_v20 = vor.u32 1.1754944e-38, %v7522_v42  ;;  %v7575_v23 = vadd.f32 %v15734_v57, %v7574_v36  ;;  %v10682_v52 = vmul.f32 -1.442695, %v17128_v7  ;;  %vm7698_vm6 = vmor %vm7696_vm5, %vm7697_vm4 }
 0x81b   : > { %v5606_v22 = vpop.f32.mrf.mxu1 }
 0x81c   : > { %v5782_v30 = vadd.f32 %v5781_v56, %v5693_v34  ;;  %v5607_v8 = vadd.f32 %v5606_v22, %v5517_v13  ;;  %v7524_v15 = vsel %vm7521_vm11, %v7523_v20, %v7519_v11  ;;  %v7580_v34 = vand.u32 2147483647, %v15703_v2 }
 0x81d   : > { %5556 = vmatmul.bf16.gmra.mxu0 %v16764_v44  ;;  %5645 = vmatmul.bf16.gmra.mxu1 %v16766_v46  ;;  %v7633_v44 = vsub.f32 1.0, %v7632_v17  ;;  %v8829_v32 = vmul.f32 %v7524_v15, %v17106_v50  ;;  %v11598_v42 = vpop.eup %11597  ;;  %v7579_v22 = vsel %vm7578_vm14, %v15734_v57, %v7575_v23  ;;  %11601 = vpow2.f32 %v10682_v52  ;;  %v17129_v50 = vld [vmem:[#allocation103_spill] sm:$0xff] }
 0x81e   : > { %v8953_v33 = vmul.f32 %v8825_v53, %v5782_v30  ;;  %5734 = vmatmul.bf16.gmra.mxu2 %v16767_v40  ;;  %v7692_v53 = vmul.f32 %v15780_v54, %v15749_v27  ;;  %vm7581_vm15 = vcmp.eq.f32.partialorder %v7580_v34, 8.507059e+37  ;;  %v15795_v11 = vadd.f32 1.0, %v11598_v42  ;;  %v15797_v36 = vpop.eup %11599  ;;  %v17133_v34 = vld [vmem:[#allocation76_spill] sm:$0xff]  ;;  %v17135_v42 = vld [vmem:[#allocation78_spill] sm:$0xff] }
 0x81f   : > { %5823 = vmatmul.bf16.gmra.mxu3 %v16896_v10  ;;  %v7582_v10 = vand.u32 2147483648, %v15703_v2  ;;  %v7634_v13 = vmul.f32 %v15751_v28, %v7633_v44  ;;  %v7640_v23 = vand.u32 2147483647, %v15728_v63  ;;  %vm7757_vm8 = vweird.f32 %v15797_v36 }
 0x820   : > { %v9061_v37 = vpack.c.bf16 %v8953_v33, %v15055_v18  ;;  %v7693_v57 = vsub.f32 1.0, %v7692_v53  ;;  %11603 = vrcp.f32 %v15795_v11  ;;  %vm15849_vm10 = vmor %vm7756_vm9, %vm7757_vm8  ;;  %vm7816_vm13 = vweird.f32 %v15795_v11 }
 0x821   : > { %v5695_v12 = vpop.f32.mrf.mxu2  ;;  %v7583_v58 = vor.u32 1.1754944e-38, %v7582_v10  ;;  %v7635_v3 = vadd.f32 %v15751_v28, %v7634_v13  ;;  %vm7641_vm3 = vcmp.eq.f32.partialorder %v7640_v23, 8.507059e+37 }
 0x822   : > { %9125 = vst [vmem:[%s13987_s23 + $0x98] sm:$0xff] %v9061_v37  ;;  %v5696_v46 = vadd.f32 %v5695_v12, %v5607_v8  ;;  %v5784_v35 = vpop.f32.mrf.mxu3  ;;  %v5519_v40 = vpop.f32.mrf.mxu0  ;;  %v7642_v37 = vand.u32 2147483648, %v15728_v63 }
 0x823   : > { %v5608_v18 = vpop.f32.mrf.mxu1  ;;  %v7584_v30 = vsel %vm7581_vm15, %v7583_v58, %v7579_v22  ;;  %v11602_v10 = vpop.eup %11601  ;;  %v7639_v52 = vsel %vm15803_vm2, %v15751_v28, %v7635_v3  ;;  %v17136_v22 = vld [vmem:[#allocation104_spill] sm:$0xff] }
 0x824   : > { %v5785_v56 = vadd.f32 %v5784_v35, %v5696_v46  ;;  %v5609_v2 = vadd.f32 %v5608_v18, %v5519_v40  ;;  %v8833_v44 = vmul.f32 %v7584_v30, %v17109_v47  ;;  %v17132_v46 = vld [vmem:[#allocation183_spill] sm:$0xff]  ;;  %v7752_v18 = vmul.f32 %v15797_v36, %v15774_v41 }
 0x825   : > { %v10686_v35 = vmul.f32 -1.442695, %v17132_v46  ;;  %v7694_v47 = vmul.f32 %v15780_v54, %v7693_v57  ;;  %v7643_v13 = vor.u32 1.1754944e-38, %v7642_v37  ;;  %v15820_v28 = vadd.f32 1.0, %v11602_v10 }
 0x826   : > { %v8957_v0 = vmul.f32 %v8829_v32, %v5785_v56  ;;  %v17134_v56 = vld [vmem:[#allocation77_spill] sm:$0xff]  ;;  %v15826_v3 = vpop.eup %11603  ;;  %v7702_v57 = vand.u32 2147483648, %v15749_v27 }
 0x827   : > { %11605 = vpow2.f32 %v10686_v35  ;;  %v7812_v35 = vmul.f32 %v15826_v3, %v15795_v11  ;;  %vm7817_vm12 = vweird.f32 %v15826_v3  ;;  %vm7876_vm1 = vweird.f32 %v15820_v28 }
 0x828   : > { %v9063_v19 = vpack.c.bf16 %v8957_v0, %v17129_v50  ;;  %v7644_v0 = vsel %vm7641_vm3, %v7643_v13, %v7639_v52  ;;  %v7695_v50 = vadd.f32 %v15780_v54, %v7694_v47  ;;  %11607 = vrcp.f32 %v15820_v28  ;;  %vm7818_vm14 = vmor %vm7816_vm13, %vm7817_vm12 }
 0x829   : > { %v5697_v17 = vpop.f32.mrf.mxu2 }
 0x82a   : > { %9127 = vst [vmem:[%s13987_s23 + $0xa8] sm:$0xff] %v9063_v19  ;;  %v5698_v33 = vadd.f32 %v5697_v17, %v5609_v2  ;;  %v5786_v8 = vpop.f32.mrf.mxu3  ;;  %v5522_v20 = vpop.f32.mrf.mxu0  ;;  %v7700_v17 = vand.u32 2147483647, %v15749_v27  ;;  %v7699_v23 = vsel %vm7698_vm6, %v15780_v54, %v7695_v50  ;;  %v7703_v27 = vor.u32 1.1754944e-38, %v7702_v57  ;;  %v17141_v57 = vld [vmem:[#allocation81_spill] sm:$0xff] }
 0x82b   : > { %v5611_v15 = vpop.f32.mrf.mxu1  ;;  %v7813_v54 = vsub.f32 1.0, %v7812_v35 }
 0x82c   : > { %v5787_v40 = vadd.f32 %v5786_v8, %v5698_v33  ;;  %v5612_v63 = vadd.f32 %v5611_v15, %v5522_v20  ;;  %v8837_v8 = vmul.f32 %v7644_v0, %v17114_v24  ;;  %v17137_v20 = vld [vmem:[#allocation184_spill] sm:$0xff]  ;;  %vm7701_vm7 = vcmp.eq.f32.partialorder %v7700_v17, 8.507059e+37 }
 0x82d   : > { %5561 = vmatmul.bf16.gmra.mxu0 %v17032_v55  ;;  %5650 = vmatmul.bf16.gmra.mxu1 %v17133_v34  ;;  %v7753_v55 = vsub.f32 1.0, %v7752_v18  ;;  %v10690_v37 = vmul.f32 -1.442695, %v17137_v20  ;;  %v11606_v12 = vpop.eup %11605  ;;  %v7704_v52 = vsel %vm7701_vm7, %v7703_v27, %v7699_v23  ;;  %v7760_v0 = vand.u32 2147483647, %v15774_v41 }
 0x82e   : > { %v8961_v32 = vmul.f32 %v8833_v44, %v5787_v40  ;;  %5739 = vmatmul.bf16.gmra.mxu2 %v17134_v56  ;;  %v15841_v47 = vadd.f32 1.0, %v11606_v12 }
 0x82f   : > { %5828 = vmatmul.bf16.gmra.mxu3 %v17135_v42  ;;  %v7754_v44 = vmul.f32 %v15797_v36, %v7753_v55  ;;  %11609 = vpow2.f32 %v10690_v37  ;;  %v17140_v55 = vld [vmem:[#allocation185_spill] sm:$0xff]  ;;  %vm7761_vm11 = vcmp.eq.f32.partialorder %v7760_v0, 8.507059e+37 }
 0x830   : > { %v9065_v53 = vpack.c.bf16 %v8961_v32, %v17136_v22  ;;  %v8841_v22 = vmul.f32 %v7704_v52, %v17118_v14  ;;  %11611 = vrcp.f32 %v15841_v47  ;;  %vm7936_vm5 = vweird.f32 %v15841_v47 }
 0x831   : > { %v5700_v58 = vpop.f32.mrf.mxu2  ;;  %v7755_v18 = vadd.f32 %v15797_v36, %v7754_v44 }
 0x832   : > { %9129 = vst [vmem:[%s13987_s23 + $0xb8] sm:$0xff] %v9065_v53  ;;  %v5701_v19 = vadd.f32 %v5700_v58, %v5612_v63  ;;  %v5789_v2 = vpop.f32.mrf.mxu3  ;;  %v5524_v30 = vpop.f32.mrf.mxu0  ;;  %v10694_v58 = vmul.f32 -1.442695, %v17140_v55 }
 0x833   : > { %v5613_v33 = vpop.f32.mrf.mxu1  ;;  %v15843_v63 = vpop.eup %11607 }
 0x834   : > { %v5790_v15 = vadd.f32 %v5789_v2, %v5701_v19  ;;  %v5614_v10 = vadd.f32 %v5613_v33, %v5524_v30  ;;  %v7759_v19 = vsel %vm15849_vm10, %v15797_v36, %v7755_v18  ;;  %v7872_v2 = vmul.f32 %v15843_v63, %v15820_v28  ;;  %v17143_v36 = vld [vmem:[#allocation105_spill] sm:$0xff] }
 0x835   : > { %v11610_v14 = vpop.eup %11609  ;;  %v7814_v30 = vmul.f32 %v15826_v3, %v7813_v54  ;;  %11613 = vpow2.f32 %v10694_v58  ;;  %v7820_v54 = vand.u32 2147483647, %v15795_v11  ;;  %vm7877_vm0 = vweird.f32 %v15843_v63 }
 0x836   : > { %v8965_v40 = vmul.f32 %v8837_v8, %v5790_v15  ;;  %v17142_v8 = vld [vmem:[#allocation82_spill] sm:$0xff]  ;;  %v7873_v44 = vsub.f32 1.0, %v7872_v2  ;;  %v15872_v27 = vpop.eup %11611  ;;  %vm15895_vm2 = vmor %vm7876_vm1, %vm7877_vm0 }
 0x837   : > { %v7815_v23 = vadd.f32 %v15826_v3, %v7814_v30  ;;  %vm7821_vm15 = vcmp.eq.f32.partialorder %v7820_v54, 8.507059e+37  ;;  %vm7937_vm4 = vweird.f32 %v15872_v27 }
 0x838   : > { %v9067_v24 = vpack.c.bf16 %v8965_v40, %v15124_v9  ;;  %v7762_v9 = vand.u32 2147483648, %v15774_v41  ;;  %vm7938_vm6 = vmor %vm7936_vm5, %vm7937_vm4 }
 0x839   : > { %v5702_v32 = vpop.f32.mrf.mxu2 }
 0x83a   : > { %9131 = vst [vmem:[%s13987_s23 + $0xc8] sm:$0xff] %v9067_v24  ;;  %v5703_v34 = vadd.f32 %v5702_v32, %v5614_v10  ;;  %v5791_v56 = vpop.f32.mrf.mxu3  ;;  %v5527_v13 = vpop.f32.mrf.mxu0  ;;  %v7763_v33 = vor.u32 1.1754944e-38, %v7762_v9  ;;  %v7822_v24 = vand.u32 2147483648, %v15795_v11  ;;  %v17144_v10 = vld [vmem:[#allocation186_spill] sm:$0xff]  ;;  %v7819_v9 = vsel %vm7818_vm14, %v15826_v3, %v7815_v23 }
 0x83b   : > { %v5616_v42 = vpop.f32.mrf.mxu1  ;;  %v10698_v52 = vmul.f32 -1.442695, %v17144_v10 }
 0x83c   : > { %v5792_v50 = vadd.f32 %v5791_v56, %v5703_v34  ;;  %v5617_v41 = vadd.f32 %v5616_v42, %v5527_v13  ;;  %v7764_v15 = vsel %vm7761_vm11, %v7763_v33, %v7759_v19  ;;  %v7874_v56 = vmul.f32 %v15843_v63, %v7873_v44  ;;  %v11614_v13 = vpop.eup %11613 }
 0x83d   : > { %5566 = vmatmul.bf16.gmra.mxu0 %v12329_v4  ;;  %5655 = vmatmul.bf16.gmra.mxu1 %v12331_v59  ;;  %v15867_v4 = vadd.f32 1.0, %v11610_v14  ;;  %v8845_v32 = vmul.f32 %v7764_v15, %v17124_v45  ;;  %v7932_v42 = vmul.f32 %v15872_v27, %v15841_v47  ;;  %v7823_v53 = vor.u32 1.1754944e-38, %v7822_v24 }
 0x83e   : > { %v8969_v17 = vmul.f32 %v8841_v22, %v5792_v50  ;;  %5744 = vmatmul.bf16.gmra.mxu2 %v17141_v57  ;;  %v7875_v58 = vadd.f32 %v15843_v63, %v7874_v56  ;;  %v15887_v50 = vadd.f32 1.0, %v11614_v13 }
 0x83f   : > { %5833 = vmatmul.bf16.gmra.mxu3 %v17142_v8  ;;  %11615 = vrcp.f32 %v15867_v4  ;;  %v7824_v0 = vsel %vm7821_vm15, %v7823_v53, %v7819_v9  ;;  %v7933_v2 = vsub.f32 1.0, %v7932_v42  ;;  %v7880_v8 = vand.u32 2147483647, %v15820_v28  ;;  %v17148_v53 = vld [vmem:[#allocation188_spill] sm:$0xff] }
 0x840   : > { %v9069_v37 = vpack.c.bf16 %v8969_v17, %v17143_v36  ;;  %11617 = vpow2.f32 %v10698_v52  ;;  %v8849_v57 = vmul.f32 %v7824_v0, %v17127_v21  ;;  %v17147_v36 = vld [vmem:[#allocation187_spill] sm:$0xff]  ;;  %v7940_v9 = vand.u32 2147483647, %v15841_v47 }
 0x841   : > { %v5705_v12 = vpop.f32.mrf.mxu2  ;;  %11619 = vrcp.f32 %v15887_v50  ;;  %v7934_v23 = vmul.f32 %v15872_v27, %v7933_v2  ;;  %vm7881_vm3 = vcmp.eq.f32.partialorder %v7880_v8, 8.507059e+37  ;;  %v7942_v42 = vand.u32 2147483648, %v15841_v47 }
 0x842   : > { %9133 = vst [vmem:[%s13987_s23 + $0xd8] sm:$0xff] %v9069_v37  ;;  %v5706_v59 = vadd.f32 %v5705_v12, %v5617_v41  ;;  %v5794_v35 = vpop.f32.mrf.mxu3  ;;  %v5529_v40 = vpop.f32.mrf.mxu0  ;;  %v10702_v37 = vmul.f32 -1.442695, %v17147_v36  ;;  %v7879_v12 = vsel %vm15895_vm2, %v15843_v63, %v7875_v58  ;;  %vm7941_vm7 = vcmp.eq.f32.partialorder %v7940_v9, 8.507059e+37 }
 0x843   : > { %v5618_v18 = vpop.f32.mrf.mxu1  ;;  %v7935_v63 = vadd.f32 %v15872_v27, %v7934_v23  ;;  %vm7996_vm9 = vweird.f32 %v15867_v4  ;;  %v8000_v23 = vand.u32 2147483647, %v15867_v4  ;;  %vm8056_vm13 = vweird.f32 %v15887_v50 }
 0x844   : > { %v5795_v34 = vadd.f32 %v5794_v35, %v5706_v59  ;;  %v5619_v11 = vadd.f32 %v5618_v18, %v5529_v40  ;;  %11621 = vpow2.f32 %v10702_v37 }
 0x845   : > { %v15890_v17 = vpop.eup %11615  ;;  %v7939_v58 = vsel %vm7938_vm6, %v15872_v27, %v7935_v63  ;;  %vm8001_vm11 = vcmp.eq.f32.partialorder %v8000_v23, 8.507059e+37 }
 0x846   : > { %v8973_v22 = vmul.f32 %v8845_v32, %v5795_v34  ;;  %v11618_v44 = vpop.eup %11617  ;;  %v7992_v21 = vmul.f32 %v15890_v17, %v15867_v4  ;;  %vm7997_vm8 = vweird.f32 %v15890_v17 }
 0x847   : > { %v15914_v13 = vpop.eup %11619  ;;  %vm7998_vm10 = vmor %vm7996_vm9, %vm7997_vm8 }
 0x848   : > { %v9071_v45 = vpack.c.bf16 %v8973_v22, %v15164_v38  ;;  %v7882_v38 = vand.u32 2147483648, %v15820_v28  ;;  %v15908_v28 = vadd.f32 1.0, %v11618_v44  ;;  %v7993_v32 = vsub.f32 1.0, %v7992_v21  ;;  %v17149_v21 = vld [vmem:[#allocation189_spill] sm:$0xff] }
 0x849   : > { %v5707_v19 = vpop.f32.mrf.mxu2  ;;  %v8052_v47 = vmul.f32 %v15914_v13, %v15887_v50  ;;  %vm8057_vm12 = vweird.f32 %v15914_v13 }
 0x84a   : > { %9135 = vst [vmem:[%s13987_s23 + $0xe8] sm:$0xff] %v9071_v45  ;;  %v5708_v3 = vadd.f32 %v5707_v19, %v5619_v11  ;;  %v5796_v14 = vpop.f32.mrf.mxu3  ;;  %v5532_v30 = vpop.f32.mrf.mxu0  ;;  %v7883_v40 = vor.u32 1.1754944e-38, %v7882_v38  ;;  %11623 = vrcp.f32 %v15908_v28  ;;  %v10706_v45 = vmul.f32 -1.442695, %v17148_v53  ;;  %vm8058_vm14 = vmor %vm8056_vm13, %vm8057_vm12 }
 0x84b   : > { %v5621_v41 = vpop.f32.mrf.mxu1  ;;  %v11622_v0 = vpop.eup %11621  ;;  %v7994_v19 = vmul.f32 %v15890_v17, %v7993_v32  ;;  %v8053_v33 = vsub.f32 1.0, %v8052_v47  ;;  %v8060_v47 = vand.u32 2147483647, %v15887_v50  ;;  %vm8116_vm1 = vweird.f32 %v15908_v28 }
 0x84c   : > { %v5797_v15 = vadd.f32 %v5796_v14, %v5708_v3  ;;  %v5622_v35 = vadd.f32 %v5621_v41, %v5532_v30  ;;  %v7884_v52 = vsel %vm7881_vm3, %v7883_v40, %v7879_v12  ;;  %v7943_v3 = vor.u32 1.1754944e-38, %v7942_v42 }
 0x84d   : > { %v8853_v22 = vmul.f32 %v7884_v52, %v17128_v7  ;;  %11625 = vpow2.f32 %v10706_v45  ;;  %v15929_v38 = vadd.f32 1.0, %v11622_v0  ;;  %v7995_v27 = vadd.f32 %v15890_v17, %v7994_v19  ;;  %v17150_v0 = vld [vmem:[#allocation190_spill] sm:$0xff] }
 0x84e   : > { %v8977_v59 = vmul.f32 %v8849_v57, %v5797_v15  ;;  %v7944_v30 = vsel %vm7941_vm7, %v7943_v3, %v7939_v58  ;;  %v10714_v58 = vmul.f32 -1.442695, %v17150_v0  ;;  %vm8061_vm15 = vcmp.eq.f32.partialorder %v8060_v47, 8.507059e+37 }
 0x84f   : > { %v8857_v12 = vmul.f32 %v7944_v30, %v17132_v46  ;;  %11627 = vrcp.f32 %v15929_v38  ;;  %v7999_v52 = vsel %vm7998_vm10, %v15890_v17, %v7995_v27  ;;  %vm8176_vm5 = vweird.f32 %v15929_v38 }
 0x850   : > { %v9073_v24 = vpack.c.bf16 %v8977_v59, %v15189_v49  ;;  %v15931_v57 = vpop.eup %11623  ;;  %v10710_v59 = vmul.f32 -1.442695, %v17149_v21  ;;  %v8180_v47 = vand.u32 2147483647, %v15929_v38 }
 0x851   : > { %v5710_v18 = vpop.f32.mrf.mxu2  ;;  %v8112_v40 = vmul.f32 %v15931_v57, %v15908_v28  ;;  %vm8117_vm0 = vweird.f32 %v15931_v57 }
 0x852   : > { %9137 = vst [vmem:[%s13987_s23 + $0xf8] sm:$0xff] %v9073_v24  ;;  %v5711_v54 = vadd.f32 %v5710_v18, %v5622_v35  ;;  %v5799_v34 = vpop.f32.mrf.mxu3  ;;  %v5534_v56 = vpop.f32.mrf.mxu0  ;;  %v8054_v18 = vmul.f32 %v15914_v13, %v8053_v33  ;;  %11629 = vpow2.f32 %v10710_v59  ;;  %vm15975_vm2 = vmor %vm8116_vm1, %vm8117_vm0  ;;  %vm8181_vm7 = vcmp.eq.f32.partialorder %v8180_v47, 8.507059e+37 }
 0x853   : > { %v5623_v49 = vpop.f32.mrf.mxu1  ;;  %v11626_v24 = vpop.eup %11625 }
 0x854   : > { %v5800_v11 = vadd.f32 %v5799_v34, %v5711_v54  ;;  %v5624_v14 = vadd.f32 %v5623_v49, %v5534_v56  ;;  %v8113_v34 = vsub.f32 1.0, %v8112_v40  ;;  %v15947_v56 = vadd.f32 1.0, %v11626_v24 }
 0x855   : > { %v8055_v42 = vadd.f32 %v15914_v13, %v8054_v18  ;;  %v15952_v45 = vpop.eup %11627  ;;  %v8120_v24 = vand.u32 2147483647, %v15908_v28 }
 0x856   : > { %v8981_v2 = vmul.f32 %v8853_v22, %v5800_v11  ;;  %v8062_v11 = vand.u32 2147483648, %v15887_v50  ;;  %v8114_v3 = vmul.f32 %v15931_v57, %v8113_v34  ;;  %11631 = vrcp.f32 %v15947_v56 }
 0x857   : > { %v8172_v30 = vmul.f32 %v15952_v45, %v15929_v38  ;;  %11633 = vpow2.f32 %v10714_v58  ;;  %vm8121_vm3 = vcmp.eq.f32.partialorder %v8120_v24, 8.507059e+37  ;;  %vm8177_vm4 = vweird.f32 %v15952_v45 }
 0x858   : > { %v9075_v7 = vpack.c.bf16 %v8981_v2, %v15212_v48  ;;  %v8002_v48 = vand.u32 2147483648, %v15867_v4  ;;  %v8063_v27 = vor.u32 1.1754944e-38, %v8062_v11  ;;  %vm8178_vm6 = vmor %vm8176_vm5, %vm8177_vm4  ;;  %vm8236_vm9 = vweird.f32 %v15947_v56 }
 0x859   : > { %v5712_v41 = vpop.f32.mrf.mxu2 }
 0x85a   : > { %9139 = vst [vmem:[%s13987_s23 + $0x108] sm:$0xff] %v9075_v7  ;;  %v5713_v8 = vadd.f32 %v5712_v41, %v5624_v14  ;;  %v5801_v37 = vpop.f32.mrf.mxu3  ;;  %v5537_v15 = vpop.f32.mrf.mxu0  ;;  %v8003_v46 = vor.u32 1.1754944e-38, %v8002_v48  ;;  %v8059_v14 = vsel %vm8058_vm14, %v15914_v13, %v8055_v42  ;;  %v8173_v48 = vsub.f32 1.0, %v8172_v30 }
 0x85b   : > { %v5626_v44 = vpop.f32.mrf.mxu1  ;;  %v11630_v7 = vpop.eup %11629  ;;  %v8064_v33 = vsel %vm8061_vm15, %v8063_v27, %v8059_v14 }
 0x85c   : > { %v5802_v35 = vadd.f32 %v5801_v37, %v5713_v8  ;;  %v5627_v32 = vadd.f32 %v5626_v44, %v5537_v15  ;;  %v8004_v54 = vsel %vm8001_vm11, %v8003_v46, %v7999_v52  ;;  %v8115_v8 = vadd.f32 %v15931_v57, %v8114_v3  ;;  %v15970_v23 = vpop.eup %11631  ;;  %v17153_v52 = vld [vmem:[#allocation191_spill] sm:$0xff] }
 0x85d   : > { %v8861_v19 = vmul.f32 %v8004_v54, %v17137_v20  ;;  %v15967_v37 = vadd.f32 1.0, %v11630_v7  ;;  %v10718_v18 = vmul.f32 -1.442695, %v17153_v52  ;;  %v17154_v7 = vld [vmem:[#allocation44_spill] sm:$0xff]  ;;  %vm8237_vm8 = vweird.f32 %v15970_v23 }
 0x85e   : > { %v8985_v63 = vmul.f32 %v8857_v12, %v5802_v35  ;;  %v8865_v35 = vmul.f32 %v8064_v33, %v17140_v55  ;;  %v8119_v46 = vsel %vm15975_vm2, %v15931_v57, %v8115_v8  ;;  %v8232_v55 = vmul.f32 %v15970_v23, %v15947_v56  ;;  %vm8238_vm10 = vmor %vm8236_vm9, %vm8237_vm8 }
 0x85f   : > { %11635 = vrcp.f32 %v15967_v37  ;;  %v10722_v14 = vmul.f32 -1.442695, %v17154_v7  ;;  %vm8296_vm13 = vweird.f32 %v15967_v37 }
 0x860   : > { %v9077_v4 = vpack.c.bf16 %v8985_v63, %v15231_v61  ;;  %11637 = vpow2.f32 %v10718_v18  ;;  %v8240_v18 = vand.u32 2147483647, %v15947_v56 }
 0x861   : > { %v5715_v9 = vpop.f32.mrf.mxu2 }
 0x862   : > { %9141 = vst [vmem:[%s13987_s23 + $0x118] sm:$0xff] %v9077_v4  ;;  %v5716_v17 = vadd.f32 %v5715_v9, %v5627_v32  ;;  %v5804_v49 = vpop.f32.mrf.mxu3  ;;  %v5539_v22 = vpop.f32.mrf.mxu0  ;;  %v8174_v4 = vmul.f32 %v15952_v45, %v8173_v48  ;;  %vm8241_vm11 = vcmp.eq.f32.partialorder %v8240_v18, 8.507059e+37 }
 0x863   : > { %v5628_v61 = vpop.f32.mrf.mxu1  ;;  %v11634_v32 = vpop.eup %11633 }
 0x864   : > { %v5805_v2 = vadd.f32 %v5804_v49, %v5716_v17  ;;  %v5629_v50 = vadd.f32 %v5628_v61, %v5539_v22  ;;  %v8175_v57 = vadd.f32 %v15952_v45, %v8174_v4  ;;  %v8233_v22 = vsub.f32 1.0, %v8232_v55 }
 0x866   : > { %v8989_v41 = vmul.f32 %v8861_v19, %v5805_v2  ;;  %v15994_v19 = vpop.eup %11635  ;;  %v8182_v2 = vand.u32 2147483648, %v15929_v38  ;;  %v8179_v27 = vsel %vm8178_vm6, %v15952_v45, %v8175_v57 }
 0x867   : > { %v8292_v38 = vmul.f32 %v15994_v19, %v15967_v37  ;;  %vm8297_vm12 = vweird.f32 %v15994_v19 }
 0x868   : > { %v9079_v20 = vpack.c.bf16 %v8989_v41, %v15252_v31  ;;  %v8122_v31 = vand.u32 2147483648, %v15908_v28  ;;  %v15988_v28 = vadd.f32 1.0, %v11634_v32  ;;  %v11638_v41 = vpop.eup %11637  ;;  %v8183_v33 = vor.u32 1.1754944e-38, %v8182_v2  ;;  %vm8298_vm14 = vmor %vm8296_vm13, %vm8297_vm12 }
 0x869   : > { %v5717_v15 = vpop.f32.mrf.mxu2  ;;  %v16009_v48 = vadd.f32 1.0, %v11638_v41  ;;  %v8302_v2 = vand.u32 2147483648, %v15967_v37 }
 0x86a   : > { %9143 = vst [vmem:[%s13987_s23 + $0x128] sm:$0xff] %v9079_v20  ;;  %v5718_v13 = vadd.f32 %v5717_v15, %v5629_v50  ;;  %v5806_v44 = vpop.f32.mrf.mxu3  ;;  %v5542_v12 = vpop.f32.mrf.mxu0  ;;  %v8123_v9 = vor.u32 1.1754944e-38, %v8122_v31  ;;  %11639 = vrcp.f32 %v15988_v28  ;;  %v8234_v20 = vmul.f32 %v15970_v23, %v8233_v22 }
 0x86b   : > { %v5631_v59 = vpop.f32.mrf.mxu1  ;;  %11641 = vpow2.f32 %v10722_v14  ;;  %v8184_v15 = vsel %vm8181_vm7, %v8183_v33, %v8179_v27  ;;  %vm8356_vm1 = vweird.f32 %v15988_v28  ;;  %v8360_v18 = vand.u32 2147483647, %v15988_v28 }
 0x86c   : > { %v5807_v63 = vadd.f32 %v5806_v44, %v5718_v13  ;;  %v5632_v34 = vadd.f32 %v5631_v59, %v5542_v12  ;;  %v8124_v17 = vsel %vm8121_vm3, %v8123_v9, %v8119_v46  ;;  %v8235_v45 = vadd.f32 %v15970_v23, %v8234_v20 }
 0x86d   : > { %v8869_v3 = vmul.f32 %v8124_v17, %v17144_v10  ;;  %v8293_v12 = vsub.f32 1.0, %v8292_v38  ;;  %v8873_v24 = vmul.f32 %v8184_v15, %v17147_v36  ;;  %11643 = vrcp.f32 %v16009_v48 }
 0x86e   : > { %v8993_v54 = vmul.f32 %v8865_v35, %v5807_v63  ;;  %v17155_v63 = vld [vmem:[#allocation49_spill] sm:$0xff]  ;;  %vm8361_vm3 = vcmp.eq.f32.partialorder %v8360_v18, 8.507059e+37  ;;  %vm8416_vm5 = vweird.f32 %v16009_v48 }
 0x86f   : > { %v10726_v32 = vmul.f32 -1.442695, %v17155_v63 }
 0x870   : > { %v9081_v42 = vpack.c.bf16 %v8993_v54, %v15277_v29  ;;  %v16011_v44 = vpop.eup %11639  ;;  %v8239_v54 = vsel %vm8238_vm10, %v15970_v23, %v8235_v45 }
 0x871   : > { %v5720_v49 = vpop.f32.mrf.mxu2  ;;  %v8352_v4 = vmul.f32 %v16011_v44, %v15988_v28  ;;  %v11642_v55 = vpop.eup %11641  ;;  %11645 = vpow2.f32 %v10726_v32  ;;  %vm8357_vm0 = vweird.f32 %v16011_v44  ;;  %v17159_v32 = vld [vmem:[#allocation55_spill] sm:$0xff] }
 0x872   : > { %9145 = vst [vmem:[%s13987_s23 + $0x138] sm:$0xff] %v9081_v42  ;;  %v5721_v11 = vadd.f32 %v5720_v49, %v5632_v34  ;;  %v5809_v58 = vpop.f32.mrf.mxu3  ;;  %v5544_v61 = vpop.f32.mrf.mxu0  ;;  %v8294_v34 = vmul.f32 %v15994_v19, %v8293_v12  ;;  %v16027_v57 = vadd.f32 1.0, %v11642_v55  ;;  %vm16055_vm2 = vmor %vm8356_vm1, %vm8357_vm0 }
 0x873   : > { %v5633_v29 = vpop.f32.mrf.mxu1  ;;  %v8353_v49 = vsub.f32 1.0, %v8352_v4  ;;  %v16032_v47 = vpop.eup %11643 }
 0x874   : > { %v5810_v30 = vadd.f32 %v5809_v58, %v5721_v11  ;;  %v5634_v8 = vadd.f32 %v5633_v29, %v5544_v61  ;;  %v8295_v11 = vadd.f32 %v15994_v19, %v8294_v34  ;;  %v17156_v29 = vld [vmem:[#allocation50_spill] sm:$0xff]  ;;  %11647 = vrcp.f32 %v16027_v57 }
 0x875   : > { %v8354_v27 = vmul.f32 %v16011_v44, %v8353_v49  ;;  %vm8417_vm4 = vweird.f32 %v16032_v47  ;;  %vm8476_vm9 = vweird.f32 %v16027_v57 }
 0x876   : > { %v8997_v50 = vmul.f32 %v8869_v3, %v5810_v30  ;;  %v10730_v3 = vmul.f32 -1.442695, %v17156_v29  ;;  %v8300_v30 = vand.u32 2147483647, %v15967_v37  ;;  %v8299_v38 = vsel %vm8298_vm14, %v15994_v19, %v8295_v11  ;;  %vm8418_vm6 = vmor %vm8416_vm5, %vm8417_vm4 }
 0x877   : > { %v11646_v20 = vpop.eup %11645  ;;  %v8355_v15 = vadd.f32 %v16011_v44, %v8354_v27 }
 0x878   : > { %v9083_v10 = vpack.c.bf16 %v8997_v50, %v15300_v1  ;;  %v8242_v1 = vand.u32 2147483648, %v15947_v56  ;;  %v8412_v50 = vmul.f32 %v16032_v47, %v16009_v48  ;;  %11649 = vpow2.f32 %v10730_v3 }
 0x879   : > { %v5722_v13 = vpop.f32.mrf.mxu2  ;;  %vm8301_vm15 = vcmp.eq.f32.partialorder %v8300_v30, 8.507059e+37  ;;  %v8422_v3 = vand.u32 2147483648, %v16009_v48 }
 0x87a   : > { %9147 = vst [vmem:[%s13987_s23 + $0x148] sm:$0xff] %v9083_v10  ;;  %v5723_v31 = vadd.f32 %v5722_v13, %v5634_v8  ;;  %v5811_v59 = vpop.f32.mrf.mxu3  ;;  %v5547_v35 = vpop.f32.mrf.mxu0  ;;  %v8243_v36 = vor.u32 1.1754944e-38, %v8242_v1  ;;  %v8303_v10 = vor.u32 1.1754944e-38, %v8302_v2  ;;  %v16047_v13 = vadd.f32 1.0, %v11646_v20 }
 0x87b   : > { %v5636_v40 = vpop.f32.mrf.mxu1  ;;  %v8413_v12 = vsub.f32 1.0, %v8412_v50  ;;  %v8420_v2 = vand.u32 2147483647, %v16009_v48 }
 0x87c   : > { %v5812_v46 = vadd.f32 %v5811_v59, %v5723_v31  ;;  %v5637_v42 = vadd.f32 %v5636_v40, %v5547_v35  ;;  %v8244_v17 = vsel %vm8241_vm11, %v8243_v36, %v8239_v54  ;;  %v8304_v8 = vsel %vm8301_vm15, %v8303_v10, %v8299_v38  ;;  %v16050_v35 = vpop.eup %11647 }
 0x87d   : > { %v8877_v14 = vmul.f32 %v8244_v17, %v17148_v53  ;;  %v8881_v40 = vmul.f32 %v8304_v8, %v17149_v21  ;;  %v8359_v54 = vsel %vm16055_vm2, %v16011_v44, %v8355_v15  ;;  %11651 = vrcp.f32 %v16047_v13 }
 0x87e   : > { %v9001_v9 = vmul.f32 %v8873_v24, %v5812_v46  ;;  %v10734_v46 = vmul.f32 -1.442695, %v17159_v32  ;;  %v11650_v55 = vpop.eup %11649  ;;  %v8414_v34 = vmul.f32 %v16032_v47, %v8413_v12  ;;  %v8472_v21 = vmul.f32 %v16050_v35, %v16027_v57 }
 0x87f   : > { %vm8421_vm7 = vcmp.eq.f32.partialorder %v8420_v2, 8.507059e+37  ;;  %vm8477_vm8 = vweird.f32 %v16050_v35  ;;  %vm8536_vm13 = vweird.f32 %v16047_v13 }
 0x880   : > { %v9085_v56 = vpack.c.bf16 %v9001_v9, %v15319_v16  ;;  %11653 = vpow2.f32 %v10734_v46  ;;  %v8415_v44 = vadd.f32 %v16032_v47, %v8414_v34  ;;  %vm8478_vm10 = vmor %vm8476_vm9, %vm8477_vm8 }
 0x881   : > { %v5725_v22 = vpop.f32.mrf.mxu2 }
 0x882   : > { %9149 = vst [vmem:[%s13987_s23 + $0x158] sm:$0xff] %v9085_v56  ;;  %v5726_v23 = vadd.f32 %v5725_v22, %v5637_v42  ;;  %v5814_v58 = vpop.f32.mrf.mxu3  ;;  %v5549_v61 = vpop.f32.mrf.mxu0  ;;  %v8473_v22 = vsub.f32 1.0, %v8472_v21  ;;  %v8419_v20 = vsel %vm8418_vm6, %v16032_v47, %v8415_v44 }
 0x883   : > { %v5638_v16 = vpop.f32.mrf.mxu1 }
 0x884   : > { %v5815_v41 = vadd.f32 %v5814_v58, %v5726_v23  ;;  %v5639_v37 = vadd.f32 %v5638_v16, %v5549_v61  ;;  %v16074_v61 = vpop.eup %11651  ;;  %v8474_v38 = vmul.f32 %v16050_v35, %v8473_v22 }
 0x885   : > { %v8532_v48 = vmul.f32 %v16074_v61, %v16047_v13  ;;  %vm8537_vm12 = vweird.f32 %v16074_v61 }
 0x886   : > { %v9005_v33 = vmul.f32 %v8877_v14, %v5815_v41  ;;  %v17160_v14 = vld [vmem:[#allocation56_spill] sm:$0xff]  ;;  %v11654_v27 = vpop.eup %11653  ;;  %v8475_v47 = vadd.f32 %v16050_v35, %v8474_v38  ;;  %vm8538_vm14 = vmor %vm8536_vm13, %vm8537_vm12 }
 0x887   : > { %v10738_v30 = vmul.f32 -1.442695, %v17160_v14 }
 0x888   : > { %v9087_v53 = vpack.c.bf16 %v9005_v33, %v15340_v39  ;;  %v8362_v39 = vand.u32 2147483648, %v15988_v28  ;;  %v16068_v28 = vadd.f32 1.0, %v11650_v55  ;;  %v8423_v33 = vor.u32 1.1754944e-38, %v8422_v3 }
 0x889   : > { %v5727_v45 = vpop.f32.mrf.mxu2  ;;  %v8479_v55 = vsel %vm8478_vm10, %v16050_v35, %v8475_v47 }
 0x88a   : > { %9151 = vst [vmem:[%s13987_s23 + $0x168] sm:$0xff] %v9087_v53  ;;  %v5728_v19 = vadd.f32 %v5727_v45, %v5639_v37  ;;  %v5816_v31 = vpop.f32.mrf.mxu3  ;;  %v5552_v59 = vpop.f32.mrf.mxu0  ;;  %v8363_v36 = vor.u32 1.1754944e-38, %v8362_v39  ;;  %11655 = vrcp.f32 %v16068_v28  ;;  %v8424_v53 = vsel %vm8421_vm7, %v8423_v33, %v8419_v20 }
 0x88b   : > { %v5641_v1 = vpop.f32.mrf.mxu1  ;;  %11657 = vpow2.f32 %v10738_v30  ;;  %v16089_v37 = vadd.f32 1.0, %v11654_v27  ;;  %v8533_v45 = vsub.f32 1.0, %v8532_v48  ;;  %v8889_v39 = vmul.f32 %v8424_v53, %v17153_v52 }
 0x88c   : > { %v5817_v4 = vadd.f32 %v5816_v31, %v5728_v19  ;;  %v5642_v42 = vadd.f32 %v5641_v1, %v5552_v59  ;;  %v8364_v17 = vsel %vm8361_vm3, %v8363_v36, %v8359_v54  ;;  %v8480_v1 = vand.u32 2147483647, %v16027_v57 }
 0x88d   : > { %v8885_v16 = vmul.f32 %v8364_v17, %v17150_v0  ;;  %11659 = vrcp.f32 %v16089_v37  ;;  %v8534_v54 = vmul.f32 %v16074_v61, %v8533_v45  ;;  %vm8596_vm1 = vweird.f32 %v16068_v28 }
 0x88e   : > { %v9009_v9 = vmul.f32 %v8881_v40, %v5817_v4  ;;  %v17161_v40 = vld [vmem:[#allocation61_spill] sm:$0xff]  ;;  %vm8481_vm11 = vcmp.eq.f32.partialorder %v8480_v1, 8.507059e+37  ;;  %v8600_v45 = vand.u32 2147483647, %v16068_v28  ;;  %vm8656_vm5 = vweird.f32 %v16089_v37 }
 0x88f   : > { %v10742_v24 = vmul.f32 -1.442695, %v17161_v40  ;;  %v8535_v17 = vadd.f32 %v16074_v61, %v8534_v54 }
 0x890   : > { %v9089_v56 = vpack.c.bf16 %v9009_v9, %v15365_v25  ;;  %v16091_v15 = vpop.eup %11655  ;;  %vm8601_vm3 = vcmp.eq.f32.partialorder %v8600_v45, 8.507059e+37 }
 0x891   : > { %v5730_v49 = vpop.f32.mrf.mxu2  ;;  %v8592_v46 = vmul.f32 %v16091_v15, %v16068_v28  ;;  %v11658_v4 = vpop.eup %11657  ;;  %11661 = vpow2.f32 %v10742_v24  ;;  %vm8597_vm0 = vweird.f32 %v16091_v15  ;;  %v17162_v24 = vld [vmem:[#allocation36_spill] sm:$0xff] }
 0x892   : > { %9153 = vst [vmem:[%s13987_s23 + $0x178] sm:$0xff] %v9089_v56  ;;  %v5731_v11 = vadd.f32 %v5730_v49, %v5642_v42  ;;  %v5819_v23 = vpop.f32.mrf.mxu3  ;;  %v5554_v58 = vpop.f32.mrf.mxu0  ;;  %v16107_v36 = vadd.f32 1.0, %v11658_v4  ;;  %vm8598_vm2 = vmor %vm8596_vm1, %vm8597_vm0 }
 0x893   : > { %v5643_v25 = vpop.f32.mrf.mxu1  ;;  %v8593_v42 = vsub.f32 1.0, %v8592_v46  ;;  %v16112_v22 = vpop.eup %11659 }
 0x894   : > { %v5820_v41 = vadd.f32 %v5819_v23, %v5731_v11  ;;  %v5644_v10 = vadd.f32 %v5643_v25, %v5554_v58  ;;  %v8542_v11 = vand.u32 2147483648, %v16047_v13  ;;  %v8540_v58 = vand.u32 2147483647, %v16047_v13 }
 0x895   : > { %v8594_v3 = vmul.f32 %v16091_v15, %v8593_v42  ;;  %11663 = vrcp.f32 %v16107_v36  ;;  %v8652_v30 = vmul.f32 %v16112_v22, %v16089_v37  ;;  %vm8657_vm4 = vweird.f32 %v16112_v22 }
 0x896   : > { %v9013_v50 = vmul.f32 %v8885_v16, %v5820_v41  ;;  %v8539_v16 = vsel %vm8538_vm14, %v16074_v61, %v8535_v17  ;;  %v8543_v27 = vor.u32 1.1754944e-38, %v8542_v11  ;;  %vm8541_vm15 = vcmp.eq.f32.partialorder %v8540_v58, 8.507059e+37  ;;  %vm8658_vm6 = vmor %vm8656_vm5, %vm8657_vm4 }
 0x897   : > { %v11662_v25 = vpop.eup %11661  ;;  %v8595_v38 = vadd.f32 %v16091_v15, %v8594_v3  ;;  %v8653_v33 = vsub.f32 1.0, %v8652_v30  ;;  %v8722_v3 = vand.u32 2147483648, %v16107_v36  ;;  %vm8716_vm9 = vweird.f32 %v16107_v36 }
 0x898   : > { %v9091_v0 = vpack.c.bf16 %v9013_v50, %v15388_v43  ;;  %v8482_v43 = vand.u32 2147483648, %v16027_v57  ;;  %v8544_v13 = vsel %vm8541_vm15, %v8543_v27, %v8539_v16  ;;  %v16126_v48 = vadd.f32 1.0, %v11662_v25 }
 0x899   : > { %v5732_v8 = vpop.f32.mrf.mxu2  ;;  %v8897_v47 = vmul.f32 %v8544_v13, %v17155_v63 }
 0x89a   : > { %9155 = vst [vmem:[%s13987_s23 + $0x188] sm:$0xff] %v9091_v0  ;;  %v5733_v12 = vadd.f32 %v5732_v8, %v5644_v10  ;;  %v5821_v19 = vpop.f32.mrf.mxu3  ;;  %v5557_v31 = vpop.f32.mrf.mxu0  ;;  %v8483_v52 = vor.u32 1.1754944e-38, %v8482_v43  ;;  %11665 = vrcp.f32 %v16126_v48  ;;  %vm8776_vm13 = vweird.f32 %v16126_v48 }
 0x89b   : > { %v5646_v59 = vpop.f32.mrf.mxu1  ;;  %v16129_v53 = vpop.eup %11663 }
 0x89c   : > { %v5822_v18 = vadd.f32 %v5821_v19, %v5733_v12  ;;  %v5647_v21 = vadd.f32 %v5646_v59, %v5557_v31  ;;  %v8484_v9 = vsel %vm8481_vm11, %v8483_v52, %v8479_v55  ;;  %v8599_v19 = vsel %vm8598_vm2, %v16091_v15, %v8595_v38 }
 0x89d   : > { %v8654_v31 = vmul.f32 %v16112_v22, %v8653_v33  ;;  %v8712_v43 = vmul.f32 %v16129_v53, %v16107_v36  ;;  %vm8717_vm8 = vweird.f32 %v16129_v53  ;;  %v8723_v38 = vor.u32 1.1754944e-38, %v8722_v3 }
 0x89e   : > { %v9017_v34 = vmul.f32 %v8889_v39, %v5822_v18  ;;  %vm8718_vm10 = vmor %vm8716_vm9, %vm8717_vm8 }
 0x89f   : > { %v8713_v15 = vsub.f32 1.0, %v8712_v43 }
 0x8a0   : > { %v9093_v57 = vpack.c.bf16 %v9017_v34, %v15407_v6  ;;  %v8893_v6 = vmul.f32 %v8484_v9, %v17154_v7  ;;  %v16144_v34 = vpop.eup %11665  ;;  %v8660_v9 = vand.u32 2147483647, %v16089_v37 }
 0x8a1   : > { %v5735_v56 = vpop.f32.mrf.mxu2  ;;  %v8714_v17 = vmul.f32 %v16129_v53, %v8713_v15  ;;  %vm8777_vm12 = vweird.f32 %v16144_v34 }
 0x8a2   : > { %9157 = vst [vmem:[%s13987_s23 + $0x198] sm:$0xff] %v9093_v57  ;;  %v5736_v35 = vadd.f32 %v5735_v56, %v5647_v21  ;;  %v5824_v49 = vpop.f32.mrf.mxu3  ;;  %v5559_v44 = vpop.f32.mrf.mxu0  ;;  %v8662_v21 = vand.u32 2147483648, %v16089_v37  ;;  %vm8661_vm7 = vcmp.eq.f32.partialorder %v8660_v9, 8.507059e+37  ;;  %vm8778_vm14 = vmor %vm8776_vm13, %vm8777_vm12 }
 0x8a3   : > { %v5648_v23 = vpop.f32.mrf.mxu1  ;;  %v8715_v37 = vadd.f32 %v16129_v53, %v8714_v17 }
 0x8a4   : > { %v5825_v2 = vadd.f32 %v5824_v49, %v5736_v35  ;;  %v5649_v20 = vadd.f32 %v5648_v23, %v5559_v44  ;;  %v8772_v35 = vmul.f32 %v16144_v34, %v16126_v48  ;;  %v8663_v44 = vor.u32 1.1754944e-38, %v8662_v21 }
 0x8a5   : > { %v8719_v27 = vsel %vm8718_vm10, %v16129_v53, %v8715_v37 }
 0x8a6   : > { %v9021_v41 = vmul.f32 %v8893_v6, %v5825_v2  ;;  %v8773_v58 = vsub.f32 1.0, %v8772_v35 }
 0x8a8   : > { %v9095_v7 = vpack.c.bf16 %v9021_v41, %v15428_v62  ;;  %v8602_v62 = vand.u32 2147483648, %v16068_v28  ;;  %v8655_v28 = vadd.f32 %v16112_v22, %v8654_v31 }
 0x8a9   : > { %v5737_v50 = vpop.f32.mrf.mxu2 }
 0x8aa   : > { %9159 = vst [vmem:[%s13987_s23 + $0x1a8] sm:$0xff] %v9095_v7  ;;  %v5738_v61 = vadd.f32 %v5737_v50, %v5649_v20  ;;  %v5826_v0 = vpop.f32.mrf.mxu3  ;;  %v5562_v10 = vpop.f32.mrf.mxu0  ;;  %v8603_v1 = vor.u32 1.1754944e-38, %v8602_v62  ;;  %v8659_v56 = vsel %vm8658_vm6, %v16112_v22, %v8655_v28  ;;  %v8774_v7 = vmul.f32 %v16144_v34, %v8773_v58 }
 0x8ab   : > { %v5651_v8 = vpop.f32.mrf.mxu1  ;;  %v8664_v23 = vsel %vm8661_vm7, %v8663_v44, %v8659_v56  ;;  %v8780_v62 = vand.u32 2147483647, %v16126_v48 }
 0x8ac   : > { %v5827_v12 = vadd.f32 %v5826_v0, %v5738_v61  ;;  %v5652_v39 = vadd.f32 %v5651_v8, %v5562_v10  ;;  %v8604_v18 = vsel %vm8601_vm3, %v8603_v1, %v8599_v19  ;;  %v8905_v30 = vmul.f32 %v8664_v23, %v17159_v32 }
 0x8ad   : > { %v8901_v57 = vmul.f32 %v8604_v18, %v17156_v29  ;;  %v8775_v32 = vadd.f32 %v16144_v34, %v8774_v7  ;;  %v8782_v10 = vand.u32 2147483648, %v16126_v48  ;;  %vm8781_vm15 = vcmp.eq.f32.partialorder %v8780_v62, 8.507059e+37 }
 0x8ae   : > { %v9025_v59 = vmul.f32 %v8897_v47, %v5827_v12 }
 0x8af   : > { %v8779_v45 = vsel %vm8778_vm14, %v16144_v34, %v8775_v32  ;;  %v8783_v19 = vor.u32 1.1754944e-38, %v8782_v10 }
 0x8b0   : > { %v9097_v63 = vpack.c.bf16 %v9025_v59, %v17162_v24 }
 0x8b1   : > { %v5740_v46 = vpop.f32.mrf.mxu2  ;;  %v8784_v43 = vsel %vm8781_vm15, %v8783_v19, %v8779_v45 }
 0x8b2   : > { %9161 = vst [vmem:[%s13987_s23 + $0x1b8] sm:$0xff] %v9097_v63  ;;  %v5741_v4 = vadd.f32 %v5740_v46, %v5652_v39  ;;  %v5829_v55 = vpop.f32.mrf.mxu3  ;;  %v5564_v54 = vpop.f32.mrf.mxu0  ;;  %v8913_v1 = vmul.f32 %v8784_v43, %v17161_v40 }
 0x8b3   : > { %v5653_v52 = vpop.f32.mrf.mxu1 }
 0x8b4   : > { %v5830_v42 = vadd.f32 %v5829_v55, %v5741_v4  ;;  %v5654_v29 = vadd.f32 %v5653_v52, %v5564_v54 }
 0x8b6   : > { %v9029_v49 = vmul.f32 %v8901_v57, %v5830_v42 }
 0x8b8   : > { %v9099_v11 = vpack.c.bf16 %v9029_v49, %v15476_v26  ;;  %v8720_v26 = vand.u32 2147483647, %v16107_v36 }
 0x8b9   : > { %v5742_v6 = vpop.f32.mrf.mxu2 }
 0x8ba   : > { %9163 = vst [vmem:[%s13987_s23 + $0x1c8] sm:$0xff] %v9099_v11  ;;  %v5743_v22 = vadd.f32 %v5742_v6, %v5654_v29  ;;  %v5831_v2 = vpop.f32.mrf.mxu3  ;;  %v5567_v25 = vpop.f32.mrf.mxu0  ;;  %vm8721_vm11 = vcmp.eq.f32.partialorder %v8720_v26, 8.507059e+37 }
 0x8bb   : > { %v5656_v16 = vpop.f32.mrf.mxu1  ;;  %v8724_v33 = vsel %vm8721_vm11, %v8723_v38, %v8719_v27 }
 0x8bc   : > { %v5832_v41 = vadd.f32 %v5831_v2, %v5743_v22  ;;  %v5657_v13 = vadd.f32 %v5656_v16, %v5567_v25  ;;  %v8909_v53 = vmul.f32 %v8724_v33, %v17160_v14 }
 0x8be   : > { %v9033_v20 = vmul.f32 %v8905_v30, %v5832_v41 }
 0x8c0   : > { %v9101_v50 = vpack.c.bf16 %v9033_v20, %v15495_v51 }
 0x8c1   : > { %v5745_v61 = vpop.f32.mrf.mxu2 }
 0x8c2   : > { %9165 = vst [vmem:[%s13987_s23 + $0x1d8] sm:$0xff] %v9101_v50  ;;  %v5746_v36 = vadd.f32 %v5745_v61, %v5657_v13  ;;  %v5834_v0 = vpop.f32.mrf.mxu3  ;;  %v5569_v8 = vpop.f32.mrf.mxu0 }
 0x8c3   : > { %v5658_v47 = vpop.f32.mrf.mxu1 }
 0x8c4   : > { %v5835_v51 = vadd.f32 %v5834_v0, %v5746_v36  ;;  %v5659_v14 = vadd.f32 %v5658_v47, %v5569_v8 }
 0x8c6   : > { %v9037_v12 = vmul.f32 %v8909_v53, %v5835_v51 }
 0x8c8   : > { %v9103_v31 = vpack.c.bf16 %v9037_v12, %v15516_v60 }
 0x8c9   : > { %v5747_v59 = vpop.f32.mrf.mxu2 }
 0x8ca   : > { %9167 = vst [vmem:[%s13987_s23 + $0x1e8] sm:$0xff] %v9103_v31  ;;  %v5748_v48 = vadd.f32 %v5747_v59, %v5659_v14  ;;  %v5836_v39 = vpop.f32.mrf.mxu3 }
 0x8cc   : > { %v5837_v24 = vadd.f32 %v5836_v39, %v5748_v48 }
 0x8ce   : > { %v9041_v63 = vmul.f32 %v8913_v1, %v5837_v24 }
 0x8d0   : > { %v9105_v60 = vpack.c.bf16 %v9041_v63, %v15541_v5 }
 0x8d2   : > { %9169 = vst [vmem:[%s13987_s23 + $0x1f8] sm:$0xff] %v9105_v60 }
 0x8d3   : > { %11784 = shalt.err (!%p11781_p13)
}
 0x8d4   : > { %s11849_s6 = smov 256   ;;  %s11850_s19 = smov 512  }
 0x8d5   : > { %s11851_s21 = smov 16  }
 0x8d6   : > { %11079 = dma.vmem_to_hbm [thread:$0]  (%p11959_p0), %s9187_s30, 8192, %s9189_s15, %s9171_s4, %s11849_s6, %s11850_s19, %s11851_s21  }
 0x8d7 PF: > { %s9203_s23 = sand.u32 1, %s11823_s12   ;;  %p11093_p3 = pnand %p9323_p4, %p11963_p2 }
 0x8d8   : > { %s9204_s27 = scalar_lea.sflag [#allocation6], %s9203_s23 }
 0x8d9   : > { %p11094_p5 = pneg %p11093_p3 }
 0x8db   : > { %11818 = dma.done.wait (%p11094_p5), %s9204_s27, 8192  }
 0x8dc   : > { %11820 = vsyncadd (%p11094_p5), %s9204_s27, 4294959104  ;;  %s20_s17 = sadd.s32 1, %s11843_s17   ;;  %s17163_s12 = smov %s11827_s13 }
 0x8dd   : > { %p17_p6 = scmp.ge.s32.totalorder %s20_s17, 4   ;;  %s17164_s13 = smov %s11831_s14 }
 0x8de   : > { %s17165_s14 = smov %s11923_s24  ;;  %s17166_s15 = smov %s11839_s16 }
 0x8df   : > { %s17167_s16 = smov %s17169_s18  ;;  %19 = sbr.rel (!%p17_p6) target bundleno = 7 (0x7), region = 102 }
 0x8e4   :  { %9210 = vsyncpa [#allocation5], 1 }
 0x8e5   :  { %9212 = vsyncpa [#allocation5 + $0x1], 1 }
 0x8e6   :  { %9213 = vsyncpa [#allocation8], 1 }
 0x8e7   :  { %9215 = vsyncpa [#allocation8 + $0x1], 1 }
 0x8e8   :  { %9216 = vsyncpa [#allocation6], 1 }
 0x8e9   :  { %9218 = vsyncpa [#allocation6 + $0x1], 1 }

</bundles_post_ra>
